<compile_context>
chip_gen: v7x
topology: tpu7x:2x2x1
jax: 0.10.0
libtpu: 0.0.40
codegen_flags: <defaults>
</compile_context>

<pallas_src>
import functools

import jax
import jax.numpy as jnp
from jax.experimental import pallas as pl
from jax.experimental.pallas import tpu as pltpu


# ----------------------------- cfg stand-in ----------------------------------
class _Cfg:
    num_points = 16
    scale = 1
    embed = False
    mid = False
    pos = False
    onlybackbone = False
    know = False
    resume = False
    device = None


cfg = _Cfg()


# ---------------- fused backbone + seg_head Pallas kernel ---------------------
def _backbone_seg_kernel(strip_ref, wf_ref, bf_ref,
                         w1_ref, b1_ref, a1_ref,
                         w2_ref, b2_ref, a2_ref,
                         w3t_ref, b3_ref,
                         o_ref, up1p_ref, y1p_ref, *, H, W, HS):
    sid = pl.program_id(1)
    r0 = sid * HS
    NE1 = (HS + 12) * W          # up1 strip + dilated-conv halo rows
    NE2 = (HS + 8) * W           # y1  strip + dilated-conv halo rows
    N0 = HS * W                  # output strip rows

    # ---- FPN stand-in: 3x3 conv, pad=1, 3->32, ReLU (per-tap accumulation).
    # TODO(synk): the real VGG/ResNet FPN backbone is not provided; this single
    # conv stands in for it and produces the 32-channel `up1`.
    acc = jnp.zeros((NE1, 32), jnp.float32)
    for ky in range(3):
        for kx in range(3):
            tap = strip_ref[0, 0, ky:ky + HS + 12, kx:kx + W, :].reshape(NE1, 3)
            acc = acc + jnp.dot(tap, wf_ref[3 * ky + kx],
                                preferred_element_type=jnp.float32)
    up1 = jnp.maximum(acc + bf_ref[...], 0.0).reshape(HS + 12, W, 32)
    # Rows outside the image are conv1's zero padding -> mask them to zero.
    row1 = jax.lax.broadcasted_iota(jnp.int32, (HS + 12, 1), 0) + (r0 - 6)
    up1 = jnp.where(((row1 >= 0) & (row1 < H))[:, :, None], up1, 0.0)
    up1_out = up1[6:6 + HS]                               # valid strip rows, f32

    # Per-strip padded scratch: interior fully overwritten every step; only the
    # thin zero-pad column borders are stored (no full-buffer zero fill).
    up1p_ref[:, 0:2, :] = jnp.zeros((HS + 12, 2, 32), jnp.bfloat16)
    up1p_ref[:, W + 2:W + 4, :] = jnp.zeros((HS + 12, 2, 32), jnp.bfloat16)
    up1p_ref[:, 2:2 + W, :] = up1.astype(jnp.bfloat16)

    # ---- seg conv1: 3x3, dilation=2, pad=2, 32->16, PReLU.
    acc1 = jnp.zeros((NE2, 16), jnp.float32)
    for ky in range(3):
        for kx in range(3):
            tap = up1p_ref[ky * 2:ky * 2 + HS + 8,
                           kx * 2:kx * 2 + W, :].reshape(NE2, 32)
            acc1 = acc1 + jnp.dot(tap, w1_ref[3 * ky + kx],
                                  preferred_element_type=jnp.float32)
    y1 = acc1 + b1_ref[...]
    y1 = jnp.where(y1 >= 0.0, y1, y1 * a1_ref[...]).reshape(HS + 8, W, 16)
    row2 = jax.lax.broadcasted_iota(jnp.int32, (HS + 8, 1), 0) + (r0 - 4)
    y1 = jnp.where(((row2 >= 0) & (row2 < H))[:, :, None], y1, 0.0)

    y1p_ref[:, 0:4, :] = jnp.zeros((HS + 8, 4, 16), jnp.bfloat16)
    y1p_ref[:, W + 4:W + 8, :] = jnp.zeros((HS + 8, 4, 16), jnp.bfloat16)
    y1p_ref[:, 4:4 + W, :] = y1.astype(jnp.bfloat16)

    # ---- seg conv2: 3x3, dilation=4, pad=4, 16->16, PReLU.
    acc2 = jnp.zeros((N0, 16), jnp.float32)
    for ky in range(3):
        for kx in range(3):
            tap = y1p_ref[ky * 4:ky * 4 + HS,
                          kx * 4:kx * 4 + W, :].reshape(N0, 16)
            acc2 = acc2 + jnp.dot(tap, w2_ref[3 * ky + kx],
                                  preferred_element_type=jnp.float32)
    y2 = acc2 + b2_ref[...]
    y2 = jnp.where(y2 >= 0.0, y2, y2 * a2_ref[...])            # (N0, 16) f32

    # ---- seg conv3 (1x1, 16->4) computed channel-major; sigmoid on ch 0..1.
    y2_t = y2.T.astype(jnp.bfloat16)                           # (16, N0)
    fy_t = jnp.dot(w3t_ref[...], y2_t,
                   preferred_element_type=jnp.float32) + b3_ref[...]   # (4, N0)

    # ---- lane-dense channel-major stores (no concat): cnn_feats = [up1 | fy].
    o_ref[0, 0:32, :] = up1_out.reshape(N0, 32).T
    o_ref[0, 32:34, :] = pl.reciprocal(1.0 + jnp.exp(-fy_t[0:2, :]), approx=True)
    o_ref[0, 34:36, :] = fy_t[2:4, :]


def backbone_seg_head(image, p, strip_rows=64):
    """image: (B, H, W, 3) NHWC f32.  Returns cnn_feats as (B, 36, H*W) f32."""
    B, H, W, _ = image.shape
    hs = max(1, min(strip_rows, H))
    while H % hs:
        hs -= 1
    if H // hs > 1 and (hs * W) % 128 != 0:
        hs = H                     # lane-dense strip blocks need hs*W % 128 == 0
    n_strips = H // hs

    # Each strip carries its 7-row halo, materialized by the wrapper so the
    # Pallas input spec stays a plain Blocked, double-buffered BlockSpec.
    imgp = jnp.pad(image, ((0, 0), (7, 7), (1, 1), (0, 0)))
    strips = jnp.stack([imgp[:, s * hs:s * hs + hs + 14]
                        for s in range(n_strips)], axis=1).astype(jnp.bfloat16)

    kern = functools.partial(_backbone_seg_kernel, H=H, W=W, HS=hs)
    out = pl.pallas_call(
        kern,
        out_shape=jax.ShapeDtypeStruct((B, 36, H * W), jnp.float32),
        grid=(B, n_strips),
        in_specs=[
            pl.BlockSpec((1, 1, hs + 14, W + 2, 3), lambda b, s: (b, s, 0, 0, 0)),
            pl.BlockSpec((9, 3, 32), lambda b, s: (0, 0, 0)),
            pl.BlockSpec((1, 32), lambda b, s: (0, 0)),
            pl.BlockSpec((9, 32, 16), lambda b, s: (0, 0, 0)),
            pl.BlockSpec((1, 16), lambda b, s: (0, 0)),
            pl.BlockSpec((1, 1), lambda b, s: (0, 0)),
            pl.BlockSpec((9, 16, 16), lambda b, s: (0, 0, 0)),
            pl.BlockSpec((1, 16), lambda b, s: (0, 0)),
            pl.BlockSpec((1, 1), lambda b, s: (0, 0)),
            pl.BlockSpec((4, 16), lambda b, s: (0, 0)),
            pl.BlockSpec((4, 1), lambda b, s: (0, 0)),
        ],
        out_specs=pl.BlockSpec((1, 36, hs * W), lambda b, s: (b, 0, s)),
        scratch_shapes=[pltpu.VMEM((hs + 12, W + 4, 32), jnp.bfloat16),
                        pltpu.VMEM((hs + 8, W + 8, 16), jnp.bfloat16)],
        compiler_params=pltpu.CompilerParams(
            dimension_semantics=("parallel", "parallel"),
            vmem_limit_bytes=64 * 1024 * 1024),
    )(strips, p['fpn_w'], p['fpn_b'],
      p['seg1_w'], p['seg1_b'], p['seg1_a'],
      p['seg2_w'], p['seg2_b'], p['seg2_a'],
      p['seg3_wt'], p['seg3_b'])
    return out


# ------------------ fused snake-iteration Pallas kernel ------------------------
def _snake_iter_kernel(x_ref, we_ref, be_ref,
                       wqkv_ref, bqkv_ref, wo_ref, bo_ref,
                       w1_ref, b1_ref, w2_ref, b2_ref,
                       wp1_ref, bp1_ref, wp2_ref, bp2_ref,
                       o_ref, *, NB, P, D, NH, NBLK):
    # TODO(synk): MixNet's Transformer module body is not provided (no LayerNorm
    # spec); implemented as embed Conv1d + NBLK x (NH-head self-attention + FFN
    # residual blocks) + Conv1d prediction head per its __init__ arguments.
    hd = D // NH
    scale = 1.0 / float(hd) ** 0.5
    R = NB * P

    x = x_ref[...].reshape(R, -1).astype(jnp.bfloat16)            # (R, 36)
    x = jnp.dot(x, we_ref[...], preferred_element_type=jnp.float32) + be_ref[...]

    def block(blk, x):
        xb = x.astype(jnp.bfloat16)
        # Fused full-width QKV projection: (R, D) @ (D, 3D).
        qkv = (jnp.dot(xb, wqkv_ref[blk], preferred_element_type=jnp.float32)
               + bqkv_ref[blk])
        qkvb = qkv.astype(jnp.bfloat16)
        # TODO(synk): a fully head-batched einsum needs a multi-batch-dim
        # dot_general (not lowered by Mosaic); heads stay in a short unrolled
        # loop but share a single softmax over the stacked head axis.
        scores = []
        for h in range(NH):
            qh = qkvb[:, h * hd:(h + 1) * hd].reshape(NB, P, hd)
            kh = qkvb[:, D + h * hd:D + (h + 1) * hd].reshape(NB, P, hd)
            scores.append(jnp.einsum('npk,nqk->npq', qh, kh,
                                     preferred_element_type=jnp.float32))
        s_all = jnp.concatenate(scores, axis=1) * scale           # (NB, NH*P, P)
        s_all = s_all - jnp.max(s_all, axis=-1, keepdims=True)
        e = jnp.exp(s_all)
        pw = (e * pl.reciprocal(jnp.sum(e, axis=-1, keepdims=True), approx=True)
              ).astype(jnp.bfloat16)
        heads = []
        for h in range(NH):
            vh = qkvb[:, 2 * D + h * hd:2 * D + (h + 1) * hd].reshape(NB, P, hd)
            heads.append(jnp.einsum('npq,nqk->npk', pw[:, h * P:(h + 1) * P, :],
                                    vh, preferred_element_type=jnp.float32))
        attn = jnp.concatenate(heads, axis=-1).reshape(R, D).astype(jnp.bfloat16)
        # Output projection + residual (if_resi=True).
        x = x + jnp.dot(attn, wo_ref[blk],
                        preferred_element_type=jnp.float32) + bo_ref[blk]
        # FFN 128 -> 1024 -> 128 with residual.
        h1 = jnp.maximum(jnp.dot(x.astype(jnp.bfloat16), w1_ref[blk],
                                 preferred_element_type=jnp.float32) + b1_ref[blk],
                         0.0)
        x = x + jnp.dot(h1.astype(jnp.bfloat16), w2_ref[blk],
                        preferred_element_type=jnp.float32) + b2_ref[blk]
        return x

    x = jax.lax.fori_loop(0, NBLK, block, x, unroll=True)

    # Prediction head: 128 -> 64 (ReLU) -> 2 offsets.
    y = jnp.maximum(jnp.dot(x.astype(jnp.bfloat16), wp1_ref[...],
                            preferred_element_type=jnp.float32) + bp1_ref[...], 0.0)
    off = jnp.dot(y.astype(jnp.bfloat16), wp2_ref[...],
                  preferred_element_type=jnp.float32) + bp2_ref[...]
    o_ref[...] = off.reshape(NB, P, 2)


def snake_forward(node_feats, sp):
    # node_feats: (Np, P, C).  Equivalent of the torch snake acting on (Np, C, P)
    # through Conv1d(k=1) layers -- per-position linears are identical.
    Np, P, C = node_feats.shape
    # TODO(synk): BatchNorm1d (no affine) approximated with training-mode batch
    # statistics; inference-mode running stats are not available.
    mean = jnp.mean(node_feats, axis=(0, 1), keepdims=True)
    var = jnp.var(node_feats, axis=(0, 1), keepdims=True)
    x = (node_feats - mean) * jax.lax.rsqrt(var + 1e-5)

    NB = 32                                  # 32 polys x 16 pts = 512 MXU rows
    num_blocks = max(1, -(-Np // NB))
    Np_pad = num_blocks * NB
    if Np_pad != Np:
        x = jnp.pad(x, ((0, Np_pad - Np), (0, 0), (0, 0)))

    D = sp['embed_w'].shape[1]
    NBLK = sp['wqkv'].shape[0]
    kern = functools.partial(_snake_iter_kernel, NB=NB, P=P, D=D, NH=8, NBLK=NBLK)

    def w2d(a):
        return pl.BlockSpec(a.shape, lambda g: (0, 0))

    def w3d(a):
        return pl.BlockSpec(a.shape, lambda g: (0, 0, 0))

    out = pl.pallas_call(
        kern,
        out_shape=jax.ShapeDtypeStruct((Np_pad, P, 2), jnp.float32),
        grid=(num_blocks,),
        in_specs=[pl.BlockSpec((NB, P, C), lambda g: (g, 0, 0)),
                  w2d(sp['embed_w']), w2d(sp['embed_b']),
                  w3d(sp['wqkv']), w3d(sp['bqkv']),
                  w3d(sp['wo']), w3d(sp['bo']),
                  w3d(sp['w1']), w3d(sp['b1']),
                  w3d(sp['w2']), w3d(sp['b2']),
                  w2d(sp['pred1_w']), w2d(sp['pred1_b']),
                  w2d(sp['pred2_w']), w2d(sp['pred2_b'])],
        out_specs=pl.BlockSpec((NB, P, 2), lambda g: (g, 0, 0)),
        compiler_params=pltpu.CompilerParams(
            dimension_semantics=("parallel",),
            vmem_limit_bytes=64 * 1024 * 1024),
    )(x, sp['embed_w'], sp['embed_b'],
      sp['wqkv'], sp['bqkv'], sp['wo'], sp['bo'],
      sp['w1'], sp['b1'], sp['w2'], sp['b2'],
      sp['pred1_w'], sp['pred1_b'], sp['pred2_w'], sp['pred2_b'])
    return out[:Np]


# ------------------------------- glue -----------------------------------------
def bilinear_sample(feat_flat, H, W, polys, batch_inds):
    # TODO(synk): MixNet's external `get_node_feature` (grid_sample helper) is
    # approximated by bilinear sampling at polygon node coordinates; only the 4
    # corner pixels per node are gathered from the flat channel-major features.
    B, C, _ = feat_flat.shape                                    # (B, 36, H*W)
    x = jnp.clip(polys[..., 0] / cfg.scale, 0.0, W - 1.0)
    y = jnp.clip(polys[..., 1] / cfg.scale, 0.0, H - 1.0)
    x0 = jnp.floor(x).astype(jnp.int32)
    y0 = jnp.floor(y).astype(jnp.int32)
    x1 = jnp.minimum(x0 + 1, W - 1)
    y1 = jnp.minimum(y0 + 1, H - 1)
    wx = (x - x0.astype(jnp.float32))[..., None]
    wy = (y - y0.astype(jnp.float32))[..., None]
    bi = batch_inds.astype(jnp.int32)[:, None]                   # (Np, 1)

    def gather(yy, xx):
        return feat_flat[bi, :, yy * W + xx]                     # (Np, P, C)

    f00 = gather(y0, x0)
    f01 = gather(y0, x1)
    f10 = gather(y1, x0)
    f11 = gather(y1, x1)
    return (f00 * (1 - wx) * (1 - wy) + f01 * wx * (1 - wy)
            + f10 * (1 - wx) * wy + f11 * wx * wy)               # (Np, P, C)


class Evolution:
    def __init__(self, node_num, seg_channel, snake_params, is_training=True):
        self.node_num = node_num
        self.seg_channel = seg_channel
        self.is_training = is_training
        self.clip_dis = 100
        self.iter = 3 if is_training else 1
        self.snakes = snake_params

    def get_boundary_proposal(self, input):
        tags = input['ignore_tags']
        b_inds, p_inds = jnp.nonzero(tags > 0, size=tags.size)
        init_polys = input['proposal_points'][b_inds, p_inds]
        return init_polys, (b_inds, p_inds), None

    def evolve_poly(self, snake_params, feat_flat, H, W, i_it_poly, ind):
        h = H * cfg.scale
        w = W * cfg.scale
        node_feats = bilinear_sample(feat_flat, H, W, i_it_poly, ind)
        offsets = snake_forward(node_feats, snake_params)          # (Np, P, 2)
        i_poly = i_it_poly + jnp.clip(offsets, -self.clip_dis, self.clip_dis)
        if self.is_training:
            i_poly = jnp.clip(i_poly, 0.0, w - 1)                  # torch train branch
        else:
            i_poly = jnp.stack([jnp.clip(i_poly[..., 0], 0.0, w - 1),
                                jnp.clip(i_poly[..., 1], 0.0, h - 1)], axis=-1)
        return i_poly

    def __call__(self, feat_flat, H, W, input=None, seg_preds=None, switch='gt'):
        init_polys, inds, confidences = self.get_boundary_proposal(input)
        py_preds = [init_polys]
        for i in range(self.iter):
            init_polys = self.evolve_poly(self.snakes[i], feat_flat, H, W,
                                          init_polys, inds[0])
            py_preds.append(init_polys)
        return py_preds, inds, confidences


class TextNet:
    def __init__(self, params, is_training=True, strip_rows=64):
        self.params = params
        self.is_training = is_training
        self.strip_rows = strip_rows
        self.BPN = Evolution(cfg.num_points, seg_channel=32 + 4,
                             snake_params=params['snakes'], is_training=is_training)

    def __call__(self, input_dict):
        p = self.params
        output = {}
        image = jnp.transpose(input_dict['img'], (0, 2, 3, 1))     # NCHW -> NHWC
        B, H, W, _ = image.shape
        # Fused FPN stand-in + seg_head: channel-major cnn_feats = [up1 | fy].
        cnn_flat = backbone_seg_head(image, p, self.strip_rows)    # (B, 36, H*W)
        cnn_feats = cnn_flat.reshape(B, 36, H, W)                  # NCHW, free reshape
        fy_preds = cnn_feats[:, 32:]                               # (B, 4, H, W)
        py_preds, inds, confidences = self.BPN(cnn_flat, H, W, input=input_dict,
                                               seg_preds=fy_preds, switch='gt')
        output['fy_preds'] = fy_preds
        output['py_preds'] = py_preds
        output['inds'] = inds
        output['confidences'] = confidences
        return output


# --------------------------- parameter init -----------------------------------
def init_params(key):
    keys = iter(jax.random.split(key, 64))

    def nrm(shape):                      # bf16 weights (MXU-native)
        return (0.02 * jax.random.normal(next(keys), shape, jnp.float32)
                ).astype(jnp.bfloat16)

    zeros = lambda shape: jnp.zeros(shape, jnp.float32)
    prelu = lambda: jnp.full((1, 1), 0.25, jnp.float32)   # nn.PReLU() default

    p = {}
    # Conv weights stored per-tap: (9, Cin, Cout); 1x1 head stored transposed.
    p['fpn_w'] = nrm((9, 3, 32)); p['fpn_b'] = zeros((1, 32))
    p['seg1_w'] = nrm((9, 32, 16)); p['seg1_b'] = zeros((1, 16)); p['seg1_a'] = prelu()
    p['seg2_w'] = nrm((9, 16, 16)); p['seg2_b'] = zeros((1, 16)); p['seg2_a'] = prelu()
    p['seg3_wt'] = nrm((4, 16)); p['seg3_b'] = zeros((4, 1))

    seg_ch, D, FF, NBLK = 32 + 4, 128, 1024, 3
    snakes = []
    for _ in range(3):                                   # evolve_gcn0..2
        sp = {
            'embed_w': nrm((seg_ch, D)), 'embed_b': zeros((1, D)),
            # per-block weights stacked along a leading block axis; Q|K|V fused.
            'wqkv': nrm((NBLK, D, 3 * D)), 'bqkv': zeros((NBLK, 1, 3 * D)),
            'wo': nrm((NBLK, D, D)), 'bo': zeros((NBLK, 1, D)),
            'w1': nrm((NBLK, D, FF)), 'b1': zeros((NBLK, 1, FF)),
            'w2': nrm((NBLK, FF, D)), 'b2': zeros((NBLK, 1, D)),
            'pred1_w': nrm((D, 64)), 'pred1_b': zeros((1, 64)),
            'pred2_w': nrm((64, 2)), 'pred2_b': zeros((1, 2)),
        }
        snakes.append(sp)
    p['snakes'] = snakes
    return p


# --------------------------------- main ----------------------------------------
if __name__ == "__main__":
    key = jax.random.PRNGKey(0)
    kp, ki, kt = jax.random.split(key, 3)
    params = init_params(kp)

    B, C, H, W = 2, 3, 16, 16
    M, P = 2, cfg.num_points
    img = jax.random.normal(ki, (B, C, H, W), jnp.float32)
    proposal_points = jax.random.uniform(kt, (B, M, P, 2), jnp.float32,
                                         minval=0.0, maxval=float(W - 1))
    ignore_tags = jnp.ones((B, M), jnp.int32)
    input_dict = {'img': img, 'ignore_tags': ignore_tags,
                  'proposal_points': proposal_points}

    # strip_rows=8 -> 2 row-strips at H=16, exercising the strip-tiled path.
    model = TextNet(params, is_training=True, strip_rows=8)
    out = model(input_dict)

    jax.block_until_ready(out['fy_preds'])
    for poly in out['py_preds']:
        jax.block_until_ready(poly)

    assert out['fy_preds'].shape == (B, 4, H, W)
    assert out['py_preds'][-1].shape == (B * M, P, 2)
    print("KERNEL_OK")
</pallas_src>

<mosaic_0001>
module attributes {stable_mosaic.version = 11 : i64} {
  func.func @_backbone_seg_kernel(%arg0: i32, %arg1: i32, %arg2: memref<1x1x22x18x3xbf16, #tpu.memory_space<vmem>>, %arg3: memref<9x3x32xbf16, #tpu.memory_space<vmem>>, %arg4: memref<1x32xf32, #tpu.memory_space<vmem>>, %arg5: memref<9x32x16xbf16, #tpu.memory_space<vmem>>, %arg6: memref<1x16xf32, #tpu.memory_space<vmem>>, %arg7: memref<1x1xf32, #tpu.memory_space<vmem>>, %arg8: memref<9x16x16xbf16, #tpu.memory_space<vmem>>, %arg9: memref<1x16xf32, #tpu.memory_space<vmem>>, %arg10: memref<1x1xf32, #tpu.memory_space<vmem>>, %arg11: memref<4x16xbf16, #tpu.memory_space<vmem>>, %arg12: memref<4x1xf32, #tpu.memory_space<vmem>>, %arg13: memref<1x36x128xf32, #tpu.memory_space<vmem>>, %arg14: memref<20x20x32xbf16, #tpu.memory_space<vmem>>, %arg15: memref<16x24x16xbf16, #tpu.memory_space<vmem>>) attributes {dimension_semantics = [#tpu.dimension_semantics<parallel>, #tpu.dimension_semantics<parallel>], iteration_bounds = array<i64: 2, 2>, scalar_prefetch = 0 : i64, scratch_operands = 2 : i64, tpu.core_type = #tpu.core_type<tc>, window_params = [{transform_indices = @transform_0, window_bounds = array<i64: 1, 1, 22, 18, 3>}, {pipeline_mode = #tpu.pipeline_mode<synchronous>, transform_indices = @transform_1, window_bounds = array<i64: 9, 3, 32>}, {pipeline_mode = #tpu.pipeline_mode<synchronous>, transform_indices = @transform_2, window_bounds = array<i64: 1, 32>}, {pipeline_mode = #tpu.pipeline_mode<synchronous>, transform_indices = @transform_3, window_bounds = array<i64: 9, 32, 16>}, {pipeline_mode = #tpu.pipeline_mode<synchronous>, transform_indices = @transform_4, window_bounds = array<i64: 1, 16>}, {pipeline_mode = #tpu.pipeline_mode<synchronous>, transform_indices = @transform_5, window_bounds = array<i64: 1, 1>}, {pipeline_mode = #tpu.pipeline_mode<synchronous>, transform_indices = @transform_6, window_bounds = array<i64: 9, 16, 16>}, {pipeline_mode = #tpu.pipeline_mode<synchronous>, transform_indices = @transform_7, window_bounds = array<i64: 1, 16>}, {pipeline_mode = #tpu.pipeline_mode<synchronous>, transform_indices = @transform_8, window_bounds = array<i64: 1, 1>}, {pipeline_mode = #tpu.pipeline_mode<synchronous>, transform_indices = @transform_9, window_bounds = array<i64: 4, 16>}, {pipeline_mode = #tpu.pipeline_mode<synchronous>, transform_indices = @transform_10, window_bounds = array<i64: 4, 1>}, {transform_indices = @transform_11, window_bounds = array<i64: 1, 36, 128>}]} {
    %c8_i32 = arith.constant 8 : i32
    %0 = arith.muli %arg1, %c8_i32 : i32
    %cst = arith.constant 0.000000e+00 : f32
    %1 = vector.broadcast %cst : f32 to vector<320x32xf32>
    %c0 = arith.constant 0 : index
    %c0_0 = arith.constant 0 : index
    %c0_1 = arith.constant 0 : index
    %c0_2 = arith.constant 0 : index
    %c0_3 = arith.constant 0 : index
    %2 = vector.load %arg2[%c0, %c0_0, %c0_1, %c0_2, %c0_3] : memref<1x1x22x18x3xbf16, #tpu.memory_space<vmem>>, vector<1x1x20x16x3xbf16>
    %3 = vector.shape_cast %2 : vector<1x1x20x16x3xbf16> to vector<20x16x3xbf16>
    %4 = vector.shape_cast %3 : vector<20x16x3xbf16> to vector<320x3xbf16>
    %c0_4 = arith.constant 0 : index
    %c0_5 = arith.constant 0 : index
    %c0_6 = arith.constant 0 : index
    %5 = vector.load %arg3[%c0_4, %c0_5, %c0_6] : memref<9x3x32xbf16, #tpu.memory_space<vmem>>, vector<1x3x32xbf16>
    %6 = vector.shape_cast %5 : vector<1x3x32xbf16> to vector<3x32xbf16>
    %cst_7 = arith.constant dense<0.000000e+00> : vector<320x32xf32>
    %7 = tpu.matmul %4, %6, %cst_7 {dimension_numbers = #tpu.dot_dimension_numbers<[1], [0], [0], [1], [0, 0, 1, 1], [], []>} : vector<320x3xbf16>, vector<3x32xbf16>, vector<320x32xf32> -> vector<320x32xf32>
    %8 = arith.addf %1, %7 : vector<320x32xf32>
    %c0_8 = arith.constant 0 : index
    %c0_9 = arith.constant 0 : index
    %c0_10 = arith.constant 0 : index
    %c1 = arith.constant 1 : index
    %c0_11 = arith.constant 0 : index
    %9 = vector.load %arg2[%c0_8, %c0_9, %c0_10, %c1, %c0_11] : memref<1x1x22x18x3xbf16, #tpu.memory_space<vmem>>, vector<1x1x20x16x3xbf16>
    %10 = vector.shape_cast %9 : vector<1x1x20x16x3xbf16> to vector<20x16x3xbf16>
    %11 = vector.shape_cast %10 : vector<20x16x3xbf16> to vector<320x3xbf16>
    %c1_12 = arith.constant 1 : index
    %c0_13 = arith.constant 0 : index
    %c0_14 = arith.constant 0 : index
    %12 = vector.load %arg3[%c1_12, %c0_13, %c0_14] : memref<9x3x32xbf16, #tpu.memory_space<vmem>>, vector<1x3x32xbf16>
    %13 = vector.shape_cast %12 : vector<1x3x32xbf16> to vector<3x32xbf16>
    %cst_15 = arith.constant dense<0.000000e+00> : vector<320x32xf32>
    %14 = tpu.matmul %11, %13, %cst_15 {dimension_numbers = #tpu.dot_dimension_numbers<[1], [0], [0], [1], [0, 0, 1, 1], [], []>} : vector<320x3xbf16>, vector<3x32xbf16>, vector<320x32xf32> -> vector<320x32xf32>
    %15 = arith.addf %8, %14 : vector<320x32xf32>
    %c0_16 = arith.constant 0 : index
    %c0_17 = arith.constant 0 : index
    %c0_18 = arith.constant 0 : index
    %c2 = arith.constant 2 : index
    %c0_19 = arith.constant 0 : index
    %16 = vector.load %arg2[%c0_16, %c0_17, %c0_18, %c2, %c0_19] : memref<1x1x22x18x3xbf16, #tpu.memory_space<vmem>>, vector<1x1x20x16x3xbf16>
    %17 = vector.shape_cast %16 : vector<1x1x20x16x3xbf16> to vector<20x16x3xbf16>
    %18 = vector.shape_cast %17 : vector<20x16x3xbf16> to vector<320x3xbf16>
    %c2_20 = arith.constant 2 : index
    %c0_21 = arith.constant 0 : index
    %c0_22 = arith.constant 0 : index
    %19 = vector.load %arg3[%c2_20, %c0_21, %c0_22] : memref<9x3x32xbf16, #tpu.memory_space<vmem>>, vector<1x3x32xbf16>
    %20 = vector.shape_cast %19 : vector<1x3x32xbf16> to vector<3x32xbf16>
    %cst_23 = arith.constant dense<0.000000e+00> : vector<320x32xf32>
    %21 = tpu.matmul %18, %20, %cst_23 {dimension_numbers = #tpu.dot_dimension_numbers<[1], [0], [0], [1], [0, 0, 1, 1], [], []>} : vector<320x3xbf16>, vector<3x32xbf16>, vector<320x32xf32> -> vector<320x32xf32>
    %22 = arith.addf %15, %21 : vector<320x32xf32>
    %c0_24 = arith.constant 0 : index
    %c0_25 = arith.constant 0 : index
    %c1_26 = arith.constant 1 : index
    %c0_27 = arith.constant 0 : index
    %c0_28 = arith.constant 0 : index
    %23 = vector.load %arg2[%c0_24, %c0_25, %c1_26, %c0_27, %c0_28] : memref<1x1x22x18x3xbf16, #tpu.memory_space<vmem>>, vector<1x1x20x16x3xbf16>
    %24 = vector.shape_cast %23 : vector<1x1x20x16x3xbf16> to vector<20x16x3xbf16>
    %25 = vector.shape_cast %24 : vector<20x16x3xbf16> to vector<320x3xbf16>
    %c3 = arith.constant 3 : index
    %c0_29 = arith.constant 0 : index
    %c0_30 = arith.constant 0 : index
    %26 = vector.load %arg3[%c3, %c0_29, %c0_30] : memref<9x3x32xbf16, #tpu.memory_space<vmem>>, vector<1x3x32xbf16>
    %27 = vector.shape_cast %26 : vector<1x3x32xbf16> to vector<3x32xbf16>
    %cst_31 = arith.constant dense<0.000000e+00> : vector<320x32xf32>
    %28 = tpu.matmul %25, %27, %cst_31 {dimension_numbers = #tpu.dot_dimension_numbers<[1], [0], [0], [1], [0, 0, 1, 1], [], []>} : vector<320x3xbf16>, vector<3x32xbf16>, vector<320x32xf32> -> vector<320x32xf32>
    %29 = arith.addf %22, %28 : vector<320x32xf32>
    %c0_32 = arith.constant 0 : index
    %c0_33 = arith.constant 0 : index
    %c1_34 = arith.constant 1 : index
    %c1_35 = arith.constant 1 : index
    %c0_36 = arith.constant 0 : index
    %30 = vector.load %arg2[%c0_32, %c0_33, %c1_34, %c1_35, %c0_36] : memref<1x1x22x18x3xbf16, #tpu.memory_space<vmem>>, vector<1x1x20x16x3xbf16>
    %31 = vector.shape_cast %30 : vector<1x1x20x16x3xbf16> to vector<20x16x3xbf16>
    %32 = vector.shape_cast %31 : vector<20x16x3xbf16> to vector<320x3xbf16>
    %c4 = arith.constant 4 : index
    %c0_37 = arith.constant 0 : index
    %c0_38 = arith.constant 0 : index
    %33 = vector.load %arg3[%c4, %c0_37, %c0_38] : memref<9x3x32xbf16, #tpu.memory_space<vmem>>, vector<1x3x32xbf16>
    %34 = vector.shape_cast %33 : vector<1x3x32xbf16> to vector<3x32xbf16>
    %cst_39 = arith.constant dense<0.000000e+00> : vector<320x32xf32>
    %35 = tpu.matmul %32, %34, %cst_39 {dimension_numbers = #tpu.dot_dimension_numbers<[1], [0], [0], [1], [0, 0, 1, 1], [], []>} : vector<320x3xbf16>, vector<3x32xbf16>, vector<320x32xf32> -> vector<320x32xf32>
    %36 = arith.addf %29, %35 : vector<320x32xf32>
    %c0_40 = arith.constant 0 : index
    %c0_41 = arith.constant 0 : index
    %c1_42 = arith.constant 1 : index
    %c2_43 = arith.constant 2 : index
    %c0_44 = arith.constant 0 : index
    %37 = vector.load %arg2[%c0_40, %c0_41, %c1_42, %c2_43, %c0_44] : memref<1x1x22x18x3xbf16, #tpu.memory_space<vmem>>, vector<1x1x20x16x3xbf16>
    %38 = vector.shape_cast %37 : vector<1x1x20x16x3xbf16> to vector<20x16x3xbf16>
    %39 = vector.shape_cast %38 : vector<20x16x3xbf16> to vector<320x3xbf16>
    %c5 = arith.constant 5 : index
    %c0_45 = arith.constant 0 : index
    %c0_46 = arith.constant 0 : index
    %40 = vector.load %arg3[%c5, %c0_45, %c0_46] : memref<9x3x32xbf16, #tpu.memory_space<vmem>>, vector<1x3x32xbf16>
    %41 = vector.shape_cast %40 : vector<1x3x32xbf16> to vector<3x32xbf16>
    %cst_47 = arith.constant dense<0.000000e+00> : vector<320x32xf32>
    %42 = tpu.matmul %39, %41, %cst_47 {dimension_numbers = #tpu.dot_dimension_numbers<[1], [0], [0], [1], [0, 0, 1, 1], [], []>} : vector<320x3xbf16>, vector<3x32xbf16>, vector<320x32xf32> -> vector<320x32xf32>
    %43 = arith.addf %36, %42 : vector<320x32xf32>
    %c0_48 = arith.constant 0 : index
    %c0_49 = arith.constant 0 : index
    %c2_50 = arith.constant 2 : index
    %c0_51 = arith.constant 0 : index
    %c0_52 = arith.constant 0 : index
    %44 = vector.load %arg2[%c0_48, %c0_49, %c2_50, %c0_51, %c0_52] : memref<1x1x22x18x3xbf16, #tpu.memory_space<vmem>>, vector<1x1x20x16x3xbf16>
    %45 = vector.shape_cast %44 : vector<1x1x20x16x3xbf16> to vector<20x16x3xbf16>
    %46 = vector.shape_cast %45 : vector<20x16x3xbf16> to vector<320x3xbf16>
    %c6 = arith.constant 6 : index
    %c0_53 = arith.constant 0 : index
    %c0_54 = arith.constant 0 : index
    %47 = vector.load %arg3[%c6, %c0_53, %c0_54] : memref<9x3x32xbf16, #tpu.memory_space<vmem>>, vector<1x3x32xbf16>
    %48 = vector.shape_cast %47 : vector<1x3x32xbf16> to vector<3x32xbf16>
    %cst_55 = arith.constant dense<0.000000e+00> : vector<320x32xf32>
    %49 = tpu.matmul %46, %48, %cst_55 {dimension_numbers = #tpu.dot_dimension_numbers<[1], [0], [0], [1], [0, 0, 1, 1], [], []>} : vector<320x3xbf16>, vector<3x32xbf16>, vector<320x32xf32> -> vector<320x32xf32>
    %50 = arith.addf %43, %49 : vector<320x32xf32>
    %c0_56 = arith.constant 0 : index
    %c0_57 = arith.constant 0 : index
    %c2_58 = arith.constant 2 : index
    %c1_59 = arith.constant 1 : index
    %c0_60 = arith.constant 0 : index
    %51 = vector.load %arg2[%c0_56, %c0_57, %c2_58, %c1_59, %c0_60] : memref<1x1x22x18x3xbf16, #tpu.memory_space<vmem>>, vector<1x1x20x16x3xbf16>
    %52 = vector.shape_cast %51 : vector<1x1x20x16x3xbf16> to vector<20x16x3xbf16>
    %53 = vector.shape_cast %52 : vector<20x16x3xbf16> to vector<320x3xbf16>
    %c7 = arith.constant 7 : index
    %c0_61 = arith.constant 0 : index
    %c0_62 = arith.constant 0 : index
    %54 = vector.load %arg3[%c7, %c0_61, %c0_62] : memref<9x3x32xbf16, #tpu.memory_space<vmem>>, vector<1x3x32xbf16>
    %55 = vector.shape_cast %54 : vector<1x3x32xbf16> to vector<3x32xbf16>
    %cst_63 = arith.constant dense<0.000000e+00> : vector<320x32xf32>
    %56 = tpu.matmul %53, %55, %cst_63 {dimension_numbers = #tpu.dot_dimension_numbers<[1], [0], [0], [1], [0, 0, 1, 1], [], []>} : vector<320x3xbf16>, vector<3x32xbf16>, vector<320x32xf32> -> vector<320x32xf32>
    %57 = arith.addf %50, %56 : vector<320x32xf32>
    %c0_64 = arith.constant 0 : index
    %c0_65 = arith.constant 0 : index
    %c2_66 = arith.constant 2 : index
    %c2_67 = arith.constant 2 : index
    %c0_68 = arith.constant 0 : index
    %58 = vector.load %arg2[%c0_64, %c0_65, %c2_66, %c2_67, %c0_68] : memref<1x1x22x18x3xbf16, #tpu.memory_space<vmem>>, vector<1x1x20x16x3xbf16>
    %59 = vector.shape_cast %58 : vector<1x1x20x16x3xbf16> to vector<20x16x3xbf16>
    %60 = vector.shape_cast %59 : vector<20x16x3xbf16> to vector<320x3xbf16>
    %c8 = arith.constant 8 : index
    %c0_69 = arith.constant 0 : index
    %c0_70 = arith.constant 0 : index
    %61 = vector.load %arg3[%c8, %c0_69, %c0_70] : memref<9x3x32xbf16, #tpu.memory_space<vmem>>, vector<1x3x32xbf16>
    %62 = vector.shape_cast %61 : vector<1x3x32xbf16> to vector<3x32xbf16>
    %cst_71 = arith.constant dense<0.000000e+00> : vector<320x32xf32>
    %63 = tpu.matmul %60, %62, %cst_71 {dimension_numbers = #tpu.dot_dimension_numbers<[1], [0], [0], [1], [0, 0, 1, 1], [], []>} : vector<320x3xbf16>, vector<3x32xbf16>, vector<320x32xf32> -> vector<320x32xf32>
    %64 = arith.addf %57, %63 : vector<320x32xf32>
    %c0_72 = arith.constant 0 : index
    %c0_73 = arith.constant 0 : index
    %65 = vector.load %arg4[%c0_72, %c0_73] : memref<1x32xf32, #tpu.memory_space<vmem>>, vector<1x32xf32>
    %66 = vector.broadcast %65 : vector<1x32xf32> to vector<320x32xf32>
    %67 = arith.addf %64, %66 : vector<320x32xf32>
    %cst_74 = arith.constant 0.000000e+00 : f32
    %68 = vector.broadcast %cst_74 : f32 to vector<320x32xf32>
    %69 = arith.maximumf %67, %68 : vector<320x32xf32>
    %70 = vector.shape_cast %69 : vector<320x32xf32> to vector<20x16x32xf32>
    %71 = tpu.iota {dimensions = array<i32: 0>} : vector<20x1xi32>
    %c6_i32 = arith.constant 6 : i32
    %72 = arith.subi %0, %c6_i32 : i32
    %73 = vector.broadcast %72 : i32 to vector<20x1xi32>
    %74 = arith.addi %71, %73 : vector<20x1xi32>
    %c0_i32 = arith.constant 0 : i32
    %75 = vector.broadcast %c0_i32 : i32 to vector<20x1xi32>
    %76 = arith.cmpi sge, %74, %75 : vector<20x1xi32>
    %c16_i32 = arith.constant 16 : i32
    %77 = vector.broadcast %c16_i32 : i32 to vector<20x1xi32>
    %78 = arith.cmpi slt, %74, %77 : vector<20x1xi32>
    %79 = arith.andi %76, %78 : vector<20x1xi1>
    %80 = vector.shape_cast %79 : vector<20x1xi1> to vector<20x1x1xi1>
    %cst_75 = arith.constant 0.000000e+00 : f32
    %81 = vector.shape_cast %80 : vector<20x1x1xi1> to vector<20x1x1xi1>
    %82 = vector.broadcast %81 : vector<20x1x1xi1> to vector<20x16x32xi1>
    %83 = vector.broadcast %cst_75 : f32 to vector<20x16x32xf32>
    %84 = arith.select %82, %70, %83 : vector<20x16x32xi1>, vector<20x16x32xf32>
    %85 = vector.extract_strided_slice %84 {offsets = [6, 0, 0], sizes = [8, 16, 32], strides = [1, 1, 1]} : vector<20x16x32xf32> to vector<8x16x32xf32>
    %cst_76 = arith.constant 0.000000e+00 : bf16
    %86 = vector.broadcast %cst_76 : bf16 to vector<20x2x32xbf16>
    %c0_77 = arith.constant 0 : index
    %c0_78 = arith.constant 0 : index
    %c0_79 = arith.constant 0 : index
    %87 = vector.load %arg14[%c0_77, %c0_78, %c0_79] : memref<20x20x32xbf16, #tpu.memory_space<vmem>>, vector<20x2x32xbf16>
    tpu.vector_store %arg14[%c0_77, %c0_78, %c0_79], %86 {strides = array<i32>} : memref<20x20x32xbf16, #tpu.memory_space<vmem>>, vector<20x2x32xbf16>,
    %cst_80 = arith.constant 0.000000e+00 : bf16
    %88 = vector.broadcast %cst_80 : bf16 to vector<20x2x32xbf16>
    %c0_81 = arith.constant 0 : index
    %c18 = arith.constant 18 : index
    %c0_82 = arith.constant 0 : index
    %89 = vector.load %arg14[%c0_81, %c18, %c0_82] : memref<20x20x32xbf16, #tpu.memory_space<vmem>>, vector<20x2x32xbf16>
    tpu.vector_store %arg14[%c0_81, %c18, %c0_82], %88 {strides = array<i32>} : memref<20x20x32xbf16, #tpu.memory_space<vmem>>, vector<20x2x32xbf16>,
    %90 = arith.truncf %84 : vector<20x16x32xf32> to vector<20x16x32xbf16>
    %c0_83 = arith.constant 0 : index
    %c2_84 = arith.constant 2 : index
    %c0_85 = arith.constant 0 : index
    %91 = vector.load %arg14[%c0_83, %c2_84, %c0_85] : memref<20x20x32xbf16, #tpu.memory_space<vmem>>, vector<20x16x32xbf16>
    tpu.vector_store %arg14[%c0_83, %c2_84, %c0_85], %90 {strides = array<i32>} : memref<20x20x32xbf16, #tpu.memory_space<vmem>>, vector<20x16x32xbf16>,
    %cst_86 = arith.constant 0.000000e+00 : f32
    %92 = vector.broadcast %cst_86 : f32 to vector<256x16xf32>
    %c0_87 = arith.constant 0 : index
    %c0_88 = arith.constant 0 : index
    %c0_89 = arith.constant 0 : index
    %93 = vector.load %arg14[%c0_87, %c0_88, %c0_89] : memref<20x20x32xbf16, #tpu.memory_space<vmem>>, vector<16x16x32xbf16>
    %94 = vector.shape_cast %93 : vector<16x16x32xbf16> to vector<256x32xbf16>
    %c0_90 = arith.constant 0 : index
    %c0_91 = arith.constant 0 : index
    %c0_92 = arith.constant 0 : index
    %95 = vector.load %arg5[%c0_90, %c0_91, %c0_92] : memref<9x32x16xbf16, #tpu.memory_space<vmem>>, vector<1x32x16xbf16>
    %96 = vector.shape_cast %95 : vector<1x32x16xbf16> to vector<32x16xbf16>
    %cst_93 = arith.constant dense<0.000000e+00> : vector<256x16xf32>
    %97 = tpu.matmul %94, %96, %cst_93 {dimension_numbers = #tpu.dot_dimension_numbers<[1], [0], [0], [1], [0, 0, 1, 1], [], []>} : vector<256x32xbf16>, vector<32x16xbf16>, vector<256x16xf32> -> vector<256x16xf32>
    %98 = arith.addf %92, %97 : vector<256x16xf32>
    %c0_94 = arith.constant 0 : index
    %c2_95 = arith.constant 2 : index
    %c0_96 = arith.constant 0 : index
    %99 = vector.load %arg14[%c0_94, %c2_95, %c0_96] : memref<20x20x32xbf16, #tpu.memory_space<vmem>>, vector<16x16x32xbf16>
    %100 = vector.shape_cast %99 : vector<16x16x32xbf16> to vector<256x32xbf16>
    %c1_97 = arith.constant 1 : index
    %c0_98 = arith.constant 0 : index
    %c0_99 = arith.constant 0 : index
    %101 = vector.load %arg5[%c1_97, %c0_98, %c0_99] : memref<9x32x16xbf16, #tpu.memory_space<vmem>>, vector<1x32x16xbf16>
    %102 = vector.shape_cast %101 : vector<1x32x16xbf16> to vector<32x16xbf16>
    %cst_100 = arith.constant dense<0.000000e+00> : vector<256x16xf32>
    %103 = tpu.matmul %100, %102, %cst_100 {dimension_numbers = #tpu.dot_dimension_numbers<[1], [0], [0], [1], [0, 0, 1, 1], [], []>} : vector<256x32xbf16>, vector<32x16xbf16>, vector<256x16xf32> -> vector<256x16xf32>
    %104 = arith.addf %98, %103 : vector<256x16xf32>
    %c0_101 = arith.constant 0 : index
    %c4_102 = arith.constant 4 : index
    %c0_103 = arith.constant 0 : index
    %105 = vector.load %arg14[%c0_101, %c4_102, %c0_103] : memref<20x20x32xbf16, #tpu.memory_space<vmem>>, vector<16x16x32xbf16>
    %106 = vector.shape_cast %105 : vector<16x16x32xbf16> to vector<256x32xbf16>
    %c2_104 = arith.constant 2 : index
    %c0_105 = arith.constant 0 : index
    %c0_106 = arith.constant 0 : index
    %107 = vector.load %arg5[%c2_104, %c0_105, %c0_106] : memref<9x32x16xbf16, #tpu.memory_space<vmem>>, vector<1x32x16xbf16>
    %108 = vector.shape_cast %107 : vector<1x32x16xbf16> to vector<32x16xbf16>
    %cst_107 = arith.constant dense<0.000000e+00> : vector<256x16xf32>
    %109 = tpu.matmul %106, %108, %cst_107 {dimension_numbers = #tpu.dot_dimension_numbers<[1], [0], [0], [1], [0, 0, 1, 1], [], []>} : vector<256x32xbf16>, vector<32x16xbf16>, vector<256x16xf32> -> vector<256x16xf32>
    %110 = arith.addf %104, %109 : vector<256x16xf32>
    %c2_108 = arith.constant 2 : index
    %c0_109 = arith.constant 0 : index
    %c0_110 = arith.constant 0 : index
    %111 = vector.load %arg14[%c2_108, %c0_109, %c0_110] : memref<20x20x32xbf16, #tpu.memory_space<vmem>>, vector<16x16x32xbf16>
    %112 = vector.shape_cast %111 : vector<16x16x32xbf16> to vector<256x32xbf16>
    %c3_111 = arith.constant 3 : index
    %c0_112 = arith.constant 0 : index
    %c0_113 = arith.constant 0 : index
    %113 = vector.load %arg5[%c3_111, %c0_112, %c0_113] : memref<9x32x16xbf16, #tpu.memory_space<vmem>>, vector<1x32x16xbf16>
    %114 = vector.shape_cast %113 : vector<1x32x16xbf16> to vector<32x16xbf16>
    %cst_114 = arith.constant dense<0.000000e+00> : vector<256x16xf32>
    %115 = tpu.matmul %112, %114, %cst_114 {dimension_numbers = #tpu.dot_dimension_numbers<[1], [0], [0], [1], [0, 0, 1, 1], [], []>} : vector<256x32xbf16>, vector<32x16xbf16>, vector<256x16xf32> -> vector<256x16xf32>
    %116 = arith.addf %110, %115 : vector<256x16xf32>
    %c2_115 = arith.constant 2 : index
    %c2_116 = arith.constant 2 : index
    %c0_117 = arith.constant 0 : index
    %117 = vector.load %arg14[%c2_115, %c2_116, %c0_117] : memref<20x20x32xbf16, #tpu.memory_space<vmem>>, vector<16x16x32xbf16>
    %118 = vector.shape_cast %117 : vector<16x16x32xbf16> to vector<256x32xbf16>
    %c4_118 = arith.constant 4 : index
    %c0_119 = arith.constant 0 : index
    %c0_120 = arith.constant 0 : index
    %119 = vector.load %arg5[%c4_118, %c0_119, %c0_120] : memref<9x32x16xbf16, #tpu.memory_space<vmem>>, vector<1x32x16xbf16>
    %120 = vector.shape_cast %119 : vector<1x32x16xbf16> to vector<32x16xbf16>
    %cst_121 = arith.constant dense<0.000000e+00> : vector<256x16xf32>
    %121 = tpu.matmul %118, %120, %cst_121 {dimension_numbers = #tpu.dot_dimension_numbers<[1], [0], [0], [1], [0, 0, 1, 1], [], []>} : vector<256x32xbf16>, vector<32x16xbf16>, vector<256x16xf32> -> vector<256x16xf32>
    %122 = arith.addf %116, %121 : vector<256x16xf32>
    %c2_122 = arith.constant 2 : index
    %c4_123 = arith.constant 4 : index
    %c0_124 = arith.constant 0 : index
    %123 = vector.load %arg14[%c2_122, %c4_123, %c0_124] : memref<20x20x32xbf16, #tpu.memory_space<vmem>>, vector<16x16x32xbf16>
    %124 = vector.shape_cast %123 : vector<16x16x32xbf16> to vector<256x32xbf16>
    %c5_125 = arith.constant 5 : index
    %c0_126 = arith.constant 0 : index
    %c0_127 = arith.constant 0 : index
    %125 = vector.load %arg5[%c5_125, %c0_126, %c0_127] : memref<9x32x16xbf16, #tpu.memory_space<vmem>>, vector<1x32x16xbf16>
    %126 = vector.shape_cast %125 : vector<1x32x16xbf16> to vector<32x16xbf16>
    %cst_128 = arith.constant dense<0.000000e+00> : vector<256x16xf32>
    %127 = tpu.matmul %124, %126, %cst_128 {dimension_numbers = #tpu.dot_dimension_numbers<[1], [0], [0], [1], [0, 0, 1, 1], [], []>} : vector<256x32xbf16>, vector<32x16xbf16>, vector<256x16xf32> -> vector<256x16xf32>
    %128 = arith.addf %122, %127 : vector<256x16xf32>
    %c4_129 = arith.constant 4 : index
    %c0_130 = arith.constant 0 : index
    %c0_131 = arith.constant 0 : index
    %129 = vector.load %arg14[%c4_129, %c0_130, %c0_131] : memref<20x20x32xbf16, #tpu.memory_space<vmem>>, vector<16x16x32xbf16>
    %130 = vector.shape_cast %129 : vector<16x16x32xbf16> to vector<256x32xbf16>
    %c6_132 = arith.constant 6 : index
    %c0_133 = arith.constant 0 : index
    %c0_134 = arith.constant 0 : index
    %131 = vector.load %arg5[%c6_132, %c0_133, %c0_134] : memref<9x32x16xbf16, #tpu.memory_space<vmem>>, vector<1x32x16xbf16>
    %132 = vector.shape_cast %131 : vector<1x32x16xbf16> to vector<32x16xbf16>
    %cst_135 = arith.constant dense<0.000000e+00> : vector<256x16xf32>
    %133 = tpu.matmul %130, %132, %cst_135 {dimension_numbers = #tpu.dot_dimension_numbers<[1], [0], [0], [1], [0, 0, 1, 1], [], []>} : vector<256x32xbf16>, vector<32x16xbf16>, vector<256x16xf32> -> vector<256x16xf32>
    %134 = arith.addf %128, %133 : vector<256x16xf32>
    %c4_136 = arith.constant 4 : index
    %c2_137 = arith.constant 2 : index
    %c0_138 = arith.constant 0 : index
    %135 = vector.load %arg14[%c4_136, %c2_137, %c0_138] : memref<20x20x32xbf16, #tpu.memory_space<vmem>>, vector<16x16x32xbf16>
    %136 = vector.shape_cast %135 : vector<16x16x32xbf16> to vector<256x32xbf16>
    %c7_139 = arith.constant 7 : index
    %c0_140 = arith.constant 0 : index
    %c0_141 = arith.constant 0 : index
    %137 = vector.load %arg5[%c7_139, %c0_140, %c0_141] : memref<9x32x16xbf16, #tpu.memory_space<vmem>>, vector<1x32x16xbf16>
    %138 = vector.shape_cast %137 : vector<1x32x16xbf16> to vector<32x16xbf16>
    %cst_142 = arith.constant dense<0.000000e+00> : vector<256x16xf32>
    %139 = tpu.matmul %136, %138, %cst_142 {dimension_numbers = #tpu.dot_dimension_numbers<[1], [0], [0], [1], [0, 0, 1, 1], [], []>} : vector<256x32xbf16>, vector<32x16xbf16>, vector<256x16xf32> -> vector<256x16xf32>
    %140 = arith.addf %134, %139 : vector<256x16xf32>
    %c4_143 = arith.constant 4 : index
    %c4_144 = arith.constant 4 : index
    %c0_145 = arith.constant 0 : index
    %141 = vector.load %arg14[%c4_143, %c4_144, %c0_145] : memref<20x20x32xbf16, #tpu.memory_space<vmem>>, vector<16x16x32xbf16>
    %142 = vector.shape_cast %141 : vector<16x16x32xbf16> to vector<256x32xbf16>
    %c8_146 = arith.constant 8 : index
    %c0_147 = arith.constant 0 : index
    %c0_148 = arith.constant 0 : index
    %143 = vector.load %arg5[%c8_146, %c0_147, %c0_148] : memref<9x32x16xbf16, #tpu.memory_space<vmem>>, vector<1x32x16xbf16>
    %144 = vector.shape_cast %143 : vector<1x32x16xbf16> to vector<32x16xbf16>
    %cst_149 = arith.constant dense<0.000000e+00> : vector<256x16xf32>
    %145 = tpu.matmul %142, %144, %cst_149 {dimension_numbers = #tpu.dot_dimension_numbers<[1], [0], [0], [1], [0, 0, 1, 1], [], []>} : vector<256x32xbf16>, vector<32x16xbf16>, vector<256x16xf32> -> vector<256x16xf32>
    %146 = arith.addf %140, %145 : vector<256x16xf32>
    %c0_150 = arith.constant 0 : index
    %c0_151 = arith.constant 0 : index
    %147 = vector.load %arg6[%c0_150, %c0_151] : memref<1x16xf32, #tpu.memory_space<vmem>>, vector<1x16xf32>
    %148 = vector.broadcast %147 : vector<1x16xf32> to vector<256x16xf32>
    %149 = arith.addf %146, %148 : vector<256x16xf32>
    %cst_152 = arith.constant 0.000000e+00 : f32
    %150 = vector.broadcast %cst_152 : f32 to vector<256x16xf32>
    %151 = arith.cmpf oge, %149, %150 : vector<256x16xf32>
    %c0_153 = arith.constant 0 : index
    %c0_154 = arith.constant 0 : index
    %152 = vector.load %arg7[%c0_153, %c0_154] : memref<1x1xf32, #tpu.memory_space<vmem>>, vector<1x1xf32>
    %153 = vector.broadcast %152 : vector<1x1xf32> to vector<256x16xf32>
    %154 = arith.mulf %149, %153 : vector<256x16xf32>
    %155 = arith.select %151, %149, %154 : vector<256x16xi1>, vector<256x16xf32>
    %156 = vector.shape_cast %155 : vector<256x16xf32> to vector<16x16x16xf32>
    %157 = tpu.iota {dimensions = array<i32: 0>} : vector<16x1xi32>
    %c4_i32 = arith.constant 4 : i32
    %158 = arith.subi %0, %c4_i32 : i32
    %159 = vector.broadcast %158 : i32 to vector<16x1xi32>
    %160 = arith.addi %157, %159 : vector<16x1xi32>
    %c0_i32_155 = arith.constant 0 : i32
    %161 = vector.broadcast %c0_i32_155 : i32 to vector<16x1xi32>
    %162 = arith.cmpi sge, %160, %161 : vector<16x1xi32>
    %c16_i32_156 = arith.constant 16 : i32
    %163 = vector.broadcast %c16_i32_156 : i32 to vector<16x1xi32>
    %164 = arith.cmpi slt, %160, %163 : vector<16x1xi32>
    %165 = arith.andi %162, %164 : vector<16x1xi1>
    %166 = vector.shape_cast %165 : vector<16x1xi1> to vector<16x1x1xi1>
    %cst_157 = arith.constant 0.000000e+00 : f32
    %167 = vector.shape_cast %166 : vector<16x1x1xi1> to vector<16x1x1xi1>
    %168 = vector.broadcast %167 : vector<16x1x1xi1> to vector<16x16x16xi1>
    %169 = vector.broadcast %cst_157 : f32 to vector<16x16x16xf32>
    %170 = arith.select %168, %156, %169 : vector<16x16x16xi1>, vector<16x16x16xf32>
    %cst_158 = arith.constant 0.000000e+00 : bf16
    %171 = vector.broadcast %cst_158 : bf16 to vector<16x4x16xbf16>
    %c0_159 = arith.constant 0 : index
    %c0_160 = arith.constant 0 : index
    %c0_161 = arith.constant 0 : index
    %172 = vector.load %arg15[%c0_159, %c0_160, %c0_161] : memref<16x24x16xbf16, #tpu.memory_space<vmem>>, vector<16x4x16xbf16>
    tpu.vector_store %arg15[%c0_159, %c0_160, %c0_161], %171 {strides = array<i32>} : memref<16x24x16xbf16, #tpu.memory_space<vmem>>, vector<16x4x16xbf16>,
    %cst_162 = arith.constant 0.000000e+00 : bf16
    %173 = vector.broadcast %cst_162 : bf16 to vector<16x4x16xbf16>
    %c0_163 = arith.constant 0 : index
    %c20 = arith.constant 20 : index
    %c0_164 = arith.constant 0 : index
    %174 = vector.load %arg15[%c0_163, %c20, %c0_164] : memref<16x24x16xbf16, #tpu.memory_space<vmem>>, vector<16x4x16xbf16>
    tpu.vector_store %arg15[%c0_163, %c20, %c0_164], %173 {strides = array<i32>} : memref<16x24x16xbf16, #tpu.memory_space<vmem>>, vector<16x4x16xbf16>,
    %175 = arith.truncf %170 : vector<16x16x16xf32> to vector<16x16x16xbf16>
    %c0_165 = arith.constant 0 : index
    %c4_166 = arith.constant 4 : index
    %c0_167 = arith.constant 0 : index
    %176 = vector.load %arg15[%c0_165, %c4_166, %c0_167] : memref<16x24x16xbf16, #tpu.memory_space<vmem>>, vector<16x16x16xbf16>
    tpu.vector_store %arg15[%c0_165, %c4_166, %c0_167], %175 {strides = array<i32>} : memref<16x24x16xbf16, #tpu.memory_space<vmem>>, vector<16x16x16xbf16>,
    %cst_168 = arith.constant 0.000000e+00 : f32
    %177 = vector.broadcast %cst_168 : f32 to vector<128x16xf32>
    %c0_169 = arith.constant 0 : index
    %c0_170 = arith.constant 0 : index
    %c0_171 = arith.constant 0 : index
    %178 = vector.load %arg15[%c0_169, %c0_170, %c0_171] : memref<16x24x16xbf16, #tpu.memory_space<vmem>>, vector<8x16x16xbf16>
    %179 = vector.shape_cast %178 : vector<8x16x16xbf16> to vector<128x16xbf16>
    %c0_172 = arith.constant 0 : index
    %c0_173 = arith.constant 0 : index
    %c0_174 = arith.constant 0 : index
    %180 = vector.load %arg8[%c0_172, %c0_173, %c0_174] : memref<9x16x16xbf16, #tpu.memory_space<vmem>>, vector<1x16x16xbf16>
    %181 = vector.shape_cast %180 : vector<1x16x16xbf16> to vector<16x16xbf16>
    %cst_175 = arith.constant dense<0.000000e+00> : vector<128x16xf32>
    %182 = tpu.matmul %179, %181, %cst_175 {dimension_numbers = #tpu.dot_dimension_numbers<[1], [0], [0], [1], [0, 0, 1, 1], [], []>} : vector<128x16xbf16>, vector<16x16xbf16>, vector<128x16xf32> -> vector<128x16xf32>
    %183 = arith.addf %177, %182 : vector<128x16xf32>
    %c0_176 = arith.constant 0 : index
    %c4_177 = arith.constant 4 : index
    %c0_178 = arith.constant 0 : index
    %184 = vector.load %arg15[%c0_176, %c4_177, %c0_178] : memref<16x24x16xbf16, #tpu.memory_space<vmem>>, vector<8x16x16xbf16>
    %185 = vector.shape_cast %184 : vector<8x16x16xbf16> to vector<128x16xbf16>
    %c1_179 = arith.constant 1 : index
    %c0_180 = arith.constant 0 : index
    %c0_181 = arith.constant 0 : index
    %186 = vector.load %arg8[%c1_179, %c0_180, %c0_181] : memref<9x16x16xbf16, #tpu.memory_space<vmem>>, vector<1x16x16xbf16>
    %187 = vector.shape_cast %186 : vector<1x16x16xbf16> to vector<16x16xbf16>
    %cst_182 = arith.constant dense<0.000000e+00> : vector<128x16xf32>
    %188 = tpu.matmul %185, %187, %cst_182 {dimension_numbers = #tpu.dot_dimension_numbers<[1], [0], [0], [1], [0, 0, 1, 1], [], []>} : vector<128x16xbf16>, vector<16x16xbf16>, vector<128x16xf32> -> vector<128x16xf32>
    %189 = arith.addf %183, %188 : vector<128x16xf32>
    %c0_183 = arith.constant 0 : index
    %c8_184 = arith.constant 8 : index
    %c0_185 = arith.constant 0 : index
    %190 = vector.load %arg15[%c0_183, %c8_184, %c0_185] : memref<16x24x16xbf16, #tpu.memory_space<vmem>>, vector<8x16x16xbf16>
    %191 = vector.shape_cast %190 : vector<8x16x16xbf16> to vector<128x16xbf16>
    %c2_186 = arith.constant 2 : index
    %c0_187 = arith.constant 0 : index
    %c0_188 = arith.constant 0 : index
    %192 = vector.load %arg8[%c2_186, %c0_187, %c0_188] : memref<9x16x16xbf16, #tpu.memory_space<vmem>>, vector<1x16x16xbf16>
    %193 = vector.shape_cast %192 : vector<1x16x16xbf16> to vector<16x16xbf16>
    %cst_189 = arith.constant dense<0.000000e+00> : vector<128x16xf32>
    %194 = tpu.matmul %191, %193, %cst_189 {dimension_numbers = #tpu.dot_dimension_numbers<[1], [0], [0], [1], [0, 0, 1, 1], [], []>} : vector<128x16xbf16>, vector<16x16xbf16>, vector<128x16xf32> -> vector<128x16xf32>
    %195 = arith.addf %189, %194 : vector<128x16xf32>
    %c4_190 = arith.constant 4 : index
    %c0_191 = arith.constant 0 : index
    %c0_192 = arith.constant 0 : index
    %196 = vector.load %arg15[%c4_190, %c0_191, %c0_192] : memref<16x24x16xbf16, #tpu.memory_space<vmem>>, vector<8x16x16xbf16>
    %197 = vector.shape_cast %196 : vector<8x16x16xbf16> to vector<128x16xbf16>
    %c3_193 = arith.constant 3 : index
    %c0_194 = arith.constant 0 : index
    %c0_195 = arith.constant 0 : index
    %198 = vector.load %arg8[%c3_193, %c0_194, %c0_195] : memref<9x16x16xbf16, #tpu.memory_space<vmem>>, vector<1x16x16xbf16>
    %199 = vector.shape_cast %198 : vector<1x16x16xbf16> to vector<16x16xbf16>
    %cst_196 = arith.constant dense<0.000000e+00> : vector<128x16xf32>
    %200 = tpu.matmul %197, %199, %cst_196 {dimension_numbers = #tpu.dot_dimension_numbers<[1], [0], [0], [1], [0, 0, 1, 1], [], []>} : vector<128x16xbf16>, vector<16x16xbf16>, vector<128x16xf32> -> vector<128x16xf32>
    %201 = arith.addf %195, %200 : vector<128x16xf32>
    %c4_197 = arith.constant 4 : index
    %c4_198 = arith.constant 4 : index
    %c0_199 = arith.constant 0 : index
    %202 = vector.load %arg15[%c4_197, %c4_198, %c0_199] : memref<16x24x16xbf16, #tpu.memory_space<vmem>>, vector<8x16x16xbf16>
    %203 = vector.shape_cast %202 : vector<8x16x16xbf16> to vector<128x16xbf16>
    %c4_200 = arith.constant 4 : index
    %c0_201 = arith.constant 0 : index
    %c0_202 = arith.constant 0 : index
    %204 = vector.load %arg8[%c4_200, %c0_201, %c0_202] : memref<9x16x16xbf16, #tpu.memory_space<vmem>>, vector<1x16x16xbf16>
    %205 = vector.shape_cast %204 : vector<1x16x16xbf16> to vector<16x16xbf16>
    %cst_203 = arith.constant dense<0.000000e+00> : vector<128x16xf32>
    %206 = tpu.matmul %203, %205, %cst_203 {dimension_numbers = #tpu.dot_dimension_numbers<[1], [0], [0], [1], [0, 0, 1, 1], [], []>} : vector<128x16xbf16>, vector<16x16xbf16>, vector<128x16xf32> -> vector<128x16xf32>
    %207 = arith.addf %201, %206 : vector<128x16xf32>
    %c4_204 = arith.constant 4 : index
    %c8_205 = arith.constant 8 : index
    %c0_206 = arith.constant 0 : index
    %208 = vector.load %arg15[%c4_204, %c8_205, %c0_206] : memref<16x24x16xbf16, #tpu.memory_space<vmem>>, vector<8x16x16xbf16>
    %209 = vector.shape_cast %208 : vector<8x16x16xbf16> to vector<128x16xbf16>
    %c5_207 = arith.constant 5 : index
    %c0_208 = arith.constant 0 : index
    %c0_209 = arith.constant 0 : index
    %210 = vector.load %arg8[%c5_207, %c0_208, %c0_209] : memref<9x16x16xbf16, #tpu.memory_space<vmem>>, vector<1x16x16xbf16>
    %211 = vector.shape_cast %210 : vector<1x16x16xbf16> to vector<16x16xbf16>
    %cst_210 = arith.constant dense<0.000000e+00> : vector<128x16xf32>
    %212 = tpu.matmul %209, %211, %cst_210 {dimension_numbers = #tpu.dot_dimension_numbers<[1], [0], [0], [1], [0, 0, 1, 1], [], []>} : vector<128x16xbf16>, vector<16x16xbf16>, vector<128x16xf32> -> vector<128x16xf32>
    %213 = arith.addf %207, %212 : vector<128x16xf32>
    %c8_211 = arith.constant 8 : index
    %c0_212 = arith.constant 0 : index
    %c0_213 = arith.constant 0 : index
    %214 = vector.load %arg15[%c8_211, %c0_212, %c0_213] : memref<16x24x16xbf16, #tpu.memory_space<vmem>>, vector<8x16x16xbf16>
    %215 = vector.shape_cast %214 : vector<8x16x16xbf16> to vector<128x16xbf16>
    %c6_214 = arith.constant 6 : index
    %c0_215 = arith.constant 0 : index
    %c0_216 = arith.constant 0 : index
    %216 = vector.load %arg8[%c6_214, %c0_215, %c0_216] : memref<9x16x16xbf16, #tpu.memory_space<vmem>>, vector<1x16x16xbf16>
    %217 = vector.shape_cast %216 : vector<1x16x16xbf16> to vector<16x16xbf16>
    %cst_217 = arith.constant dense<0.000000e+00> : vector<128x16xf32>
    %218 = tpu.matmul %215, %217, %cst_217 {dimension_numbers = #tpu.dot_dimension_numbers<[1], [0], [0], [1], [0, 0, 1, 1], [], []>} : vector<128x16xbf16>, vector<16x16xbf16>, vector<128x16xf32> -> vector<128x16xf32>
    %219 = arith.addf %213, %218 : vector<128x16xf32>
    %c8_218 = arith.constant 8 : index
    %c4_219 = arith.constant 4 : index
    %c0_220 = arith.constant 0 : index
    %220 = vector.load %arg15[%c8_218, %c4_219, %c0_220] : memref<16x24x16xbf16, #tpu.memory_space<vmem>>, vector<8x16x16xbf16>
    %221 = vector.shape_cast %220 : vector<8x16x16xbf16> to vector<128x16xbf16>
    %c7_221 = arith.constant 7 : index
    %c0_222 = arith.constant 0 : index
    %c0_223 = arith.constant 0 : index
    %222 = vector.load %arg8[%c7_221, %c0_222, %c0_223] : memref<9x16x16xbf16, #tpu.memory_space<vmem>>, vector<1x16x16xbf16>
    %223 = vector.shape_cast %222 : vector<1x16x16xbf16> to vector<16x16xbf16>
    %cst_224 = arith.constant dense<0.000000e+00> : vector<128x16xf32>
    %224 = tpu.matmul %221, %223, %cst_224 {dimension_numbers = #tpu.dot_dimension_numbers<[1], [0], [0], [1], [0, 0, 1, 1], [], []>} : vector<128x16xbf16>, vector<16x16xbf16>, vector<128x16xf32> -> vector<128x16xf32>
    %225 = arith.addf %219, %224 : vector<128x16xf32>
    %c8_225 = arith.constant 8 : index
    %c8_226 = arith.constant 8 : index
    %c0_227 = arith.constant 0 : index
    %226 = vector.load %arg15[%c8_225, %c8_226, %c0_227] : memref<16x24x16xbf16, #tpu.memory_space<vmem>>, vector<8x16x16xbf16>
    %227 = vector.shape_cast %226 : vector<8x16x16xbf16> to vector<128x16xbf16>
    %c8_228 = arith.constant 8 : index
    %c0_229 = arith.constant 0 : index
    %c0_230 = arith.constant 0 : index
    %228 = vector.load %arg8[%c8_228, %c0_229, %c0_230] : memref<9x16x16xbf16, #tpu.memory_space<vmem>>, vector<1x16x16xbf16>
    %229 = vector.shape_cast %228 : vector<1x16x16xbf16> to vector<16x16xbf16>
    %cst_231 = arith.constant dense<0.000000e+00> : vector<128x16xf32>
    %230 = tpu.matmul %227, %229, %cst_231 {dimension_numbers = #tpu.dot_dimension_numbers<[1], [0], [0], [1], [0, 0, 1, 1], [], []>} : vector<128x16xbf16>, vector<16x16xbf16>, vector<128x16xf32> -> vector<128x16xf32>
    %231 = arith.addf %225, %230 : vector<128x16xf32>
    %c0_232 = arith.constant 0 : index
    %c0_233 = arith.constant 0 : index
    %232 = vector.load %arg9[%c0_232, %c0_233] : memref<1x16xf32, #tpu.memory_space<vmem>>, vector<1x16xf32>
    %233 = vector.broadcast %232 : vector<1x16xf32> to vector<128x16xf32>
    %234 = arith.addf %231, %233 : vector<128x16xf32>
    %cst_234 = arith.constant 0.000000e+00 : f32
    %235 = vector.broadcast %cst_234 : f32 to vector<128x16xf32>
    %236 = arith.cmpf oge, %234, %235 : vector<128x16xf32>
    %c0_235 = arith.constant 0 : index
    %c0_236 = arith.constant 0 : index
    %237 = vector.load %arg10[%c0_235, %c0_236] : memref<1x1xf32, #tpu.memory_space<vmem>>, vector<1x1xf32>
    %238 = vector.broadcast %237 : vector<1x1xf32> to vector<128x16xf32>
    %239 = arith.mulf %234, %238 : vector<128x16xf32>
    %240 = arith.select %236, %234, %239 : vector<128x16xi1>, vector<128x16xf32>
    %241 = tpu.transpose %240, [1, 0] : vector<128x16xf32> -> vector<16x128xf32>
    %242 = arith.truncf %241 : vector<16x128xf32> to vector<16x128xbf16>
    %c0_237 = arith.constant 0 : index
    %c0_238 = arith.constant 0 : index
    %243 = vector.load %arg11[%c0_237, %c0_238] : memref<4x16xbf16, #tpu.memory_space<vmem>>, vector<4x16xbf16>
    %cst_239 = arith.constant dense<0.000000e+00> : vector<4x128xf32>
    %244 = tpu.matmul %243, %242, %cst_239 {dimension_numbers = #tpu.dot_dimension_numbers<[1], [0], [0], [1], [0, 0, 1, 1], [], []>} : vector<4x16xbf16>, vector<16x128xbf16>, vector<4x128xf32> -> vector<4x128xf32>
    %c0_240 = arith.constant 0 : index
    %c0_241 = arith.constant 0 : index
    %245 = vector.load %arg12[%c0_240, %c0_241] : memref<4x1xf32, #tpu.memory_space<vmem>>, vector<4x1xf32>
    %246 = vector.broadcast %245 : vector<4x1xf32> to vector<4x128xf32>
    %247 = arith.addf %244, %246 : vector<4x128xf32>
    %248 = vector.shape_cast %85 : vector<8x16x32xf32> to vector<128x32xf32>
    %249 = tpu.transpose %248, [1, 0] : vector<128x32xf32> -> vector<32x128xf32>
    %c0_242 = arith.constant 0 : index
    %c0_243 = arith.constant 0 : index
    %c0_244 = arith.constant 0 : index
    %250 = vector.load %arg13[%c0_242, %c0_243, %c0_244] : memref<1x36x128xf32, #tpu.memory_space<vmem>>, vector<1x32x128xf32>
    %251 = vector.shape_cast %250 : vector<1x32x128xf32> to vector<32x128xf32>
    %252 = vector.shape_cast %249 : vector<32x128xf32> to vector<1x32x128xf32>
    tpu.vector_store %arg13[%c0_242, %c0_243, %c0_244], %252 {strides = array<i32>} : memref<1x36x128xf32, #tpu.memory_space<vmem>>, vector<1x32x128xf32>,
    %253 = vector.extract_strided_slice %247 {offsets = [0, 0], sizes = [2, 128], strides = [1, 1]} : vector<4x128xf32> to vector<2x128xf32>
    %cst_245 = arith.constant 0.000000e+00 : f32
    %254 = vector.broadcast %cst_245 : f32 to vector<2x128xf32>
    %255 = arith.subf %254, %253 : vector<2x128xf32>
    %256 = math.exp %255 : vector<2x128xf32>
    %cst_246 = arith.constant 1.000000e+00 : f32
    %257 = vector.broadcast %cst_246 : f32 to vector<2x128xf32>
    %258 = arith.addf %257, %256 : vector<2x128xf32>
    %259 = tpu.reciprocal %258 {approx = true} : vector<2x128xf32> -> vector<2x128xf32>
    %c0_247 = arith.constant 0 : index
    %c32 = arith.constant 32 : index
    %c0_248 = arith.constant 0 : index
    %260 = vector.load %arg13[%c0_247, %c32, %c0_248] : memref<1x36x128xf32, #tpu.memory_space<vmem>>, vector<1x2x128xf32>
    %261 = vector.shape_cast %260 : vector<1x2x128xf32> to vector<2x128xf32>
    %262 = vector.shape_cast %259 : vector<2x128xf32> to vector<1x2x128xf32>
    tpu.vector_store %arg13[%c0_247, %c32, %c0_248], %262 {strides = array<i32>} : memref<1x36x128xf32, #tpu.memory_space<vmem>>, vector<1x2x128xf32>,
    %263 = vector.extract_strided_slice %247 {offsets = [2, 0], sizes = [2, 128], strides = [1, 1]} : vector<4x128xf32> to vector<2x128xf32>
    %c0_249 = arith.constant 0 : index
    %c34 = arith.constant 34 : index
    %c0_250 = arith.constant 0 : index
    %264 = vector.load %arg13[%c0_249, %c34, %c0_250] : memref<1x36x128xf32, #tpu.memory_space<vmem>>, vector<1x2x128xf32>
    %265 = vector.shape_cast %264 : vector<1x2x128xf32> to vector<2x128xf32>
    %266 = vector.shape_cast %263 : vector<2x128xf32> to vector<1x2x128xf32>
    tpu.vector_store %arg13[%c0_249, %c34, %c0_250], %266 {strides = array<i32>} : memref<1x36x128xf32, #tpu.memory_space<vmem>>, vector<1x2x128xf32>,
    return
  }
  func.func @transform_0(%arg0: i32, %arg1: i32) -> (i32, i32, i32, i32, i32) {
    %c0_i32 = arith.constant 0 : i32
    %c0_i32_0 = arith.constant 0 : i32
    %c0_i32_1 = arith.constant 0 : i32
    %c0_i32_2 = arith.constant 0 : i32
    return %arg0, %arg1, %c0_i32, %c0_i32_0, %c0_i32_1 : i32, i32, i32, i32, i32
  }
  func.func @transform_1(%arg0: i32, %arg1: i32) -> (i32, i32, i32) {
    %c0_i32 = arith.constant 0 : i32
    %c0_i32_0 = arith.constant 0 : i32
    %c0_i32_1 = arith.constant 0 : i32
    %c0_i32_2 = arith.constant 0 : i32
    return %c0_i32, %c0_i32_0, %c0_i32_1 : i32, i32, i32
  }
  func.func @transform_2(%arg0: i32, %arg1: i32) -> (i32, i32) {
    %c0_i32 = arith.constant 0 : i32
    %c0_i32_0 = arith.constant 0 : i32
    %c0_i32_1 = arith.constant 0 : i32
    return %c0_i32, %c0_i32_0 : i32, i32
  }
  func.func @transform_3(%arg0: i32, %arg1: i32) -> (i32, i32, i32) {
    %c0_i32 = arith.constant 0 : i32
    %c0_i32_0 = arith.constant 0 : i32
    %c0_i32_1 = arith.constant 0 : i32
    %c0_i32_2 = arith.constant 0 : i32
    return %c0_i32, %c0_i32_0, %c0_i32_1 : i32, i32, i32
  }
  func.func @transform_4(%arg0: i32, %arg1: i32) -> (i32, i32) {
    %c0_i32 = arith.constant 0 : i32
    %c0_i32_0 = arith.constant 0 : i32
    %c0_i32_1 = arith.constant 0 : i32
    return %c0_i32, %c0_i32_0 : i32, i32
  }
  func.func @transform_5(%arg0: i32, %arg1: i32) -> (i32, i32) {
    %c0_i32 = arith.constant 0 : i32
    %c0_i32_0 = arith.constant 0 : i32
    %c0_i32_1 = arith.constant 0 : i32
    return %c0_i32, %c0_i32_0 : i32, i32
  }
  func.func @transform_6(%arg0: i32, %arg1: i32) -> (i32, i32, i32) {
    %c0_i32 = arith.constant 0 : i32
    %c0_i32_0 = arith.constant 0 : i32
    %c0_i32_1 = arith.constant 0 : i32
    %c0_i32_2 = arith.constant 0 : i32
    return %c0_i32, %c0_i32_0, %c0_i32_1 : i32, i32, i32
  }
  func.func @transform_7(%arg0: i32, %arg1: i32) -> (i32, i32) {
    %c0_i32 = arith.constant 0 : i32
    %c0_i32_0 = arith.constant 0 : i32
    %c0_i32_1 = arith.constant 0 : i32
    return %c0_i32, %c0_i32_0 : i32, i32
  }
  func.func @transform_8(%arg0: i32, %arg1: i32) -> (i32, i32) {
    %c0_i32 = arith.constant 0 : i32
    %c0_i32_0 = arith.constant 0 : i32
    %c0_i32_1 = arith.constant 0 : i32
    return %c0_i32, %c0_i32_0 : i32, i32
  }
  func.func @transform_9(%arg0: i32, %arg1: i32) -> (i32, i32) {
    %c0_i32 = arith.constant 0 : i32
    %c0_i32_0 = arith.constant 0 : i32
    %c0_i32_1 = arith.constant 0 : i32
    return %c0_i32, %c0_i32_0 : i32, i32
  }
  func.func @transform_10(%arg0: i32, %arg1: i32) -> (i32, i32) {
    %c0_i32 = arith.constant 0 : i32
    %c0_i32_0 = arith.constant 0 : i32
    %c0_i32_1 = arith.constant 0 : i32
    return %c0_i32, %c0_i32_0 : i32, i32
  }
  func.func @transform_11(%arg0: i32, %arg1: i32) -> (i32, i32, i32) {
    %c0_i32 = arith.constant 0 : i32
    %c0_i32_0 = arith.constant 0 : i32
    return %arg0, %c0_i32, %arg1 : i32, i32, i32
  }
}

</mosaic_0001>

<bundles_post_ra>
// kernel: tpu_custom_call.1
= control target key start
LH: loop header
LB: loop body
LE: loop exit
PB: predicated region body
PF: predicated region fallthrough
CT: control target
= control target key end

     0   :  { %s22689_s0 = inlined_call_operand.hbm [shape: bf16[2,2,22,18,3], index: 0, kind: input, shape index: {}]   ;;  %s22690_s1 = inlined_call_operand.hbm [shape: bf16[9,3,32], index: 1, kind: input, shape index: {}]   ;;  %s22691_s2 = inlined_call_operand.hbm [shape: f32[1,32], index: 2, kind: input, shape index: {}]   ;;  %s22692_s3 = inlined_call_operand.hbm [shape: bf16[9,32,16], index: 3, kind: input, shape index: {}]   ;;  %s22693_s4 = inlined_call_operand.hbm [shape: f32[1,16], index: 4, kind: input, shape index: {}]   ;;  %s22694_s5 = inlined_call_operand.<no memory space> [shape: f32[1,1], index: 5, kind: input, shape index: {}]   ;;  %s22695_s6 = inlined_call_operand.hbm [shape: bf16[9,16,16], index: 6, kind: input, shape index: {}]   ;;  %s22696_s7 = inlined_call_operand.hbm [shape: f32[1,16], index: 7, kind: input, shape index: {}]   ;;  %s22697_s9 = inlined_call_operand.hbm [shape: bf16[4,16], index: 9, kind: input, shape index: {}]   ;;  %s22698_s10 = inlined_call_operand.hbm [shape: f32[4,1], index: 10, kind: input, shape index: {}]   ;;  %s22699_s11 = inlined_call_operand.hbm [shape: f32[2,36,256], index: 11, kind: output, shape index: {}]   ;;  %s22700_s8 = inlined_call_operand.<no memory space> [shape: f32[1,1], index: 8, kind: input, shape index: {}]  }
   0x1   :  { %22748 = sst [smem:[#allocation49_spill]] %s22690_s1  ;;  %v16_v0 = vstv %s22694_s5  ;;  %v18_v1 = vstv %s22700_s8 }
   0x2   :  { %22749 = sst [smem:[#allocation50_spill]] %s22691_s2  ;;  %17 = vst [vmem:[#allocation4] sm:$0x1] %v16_v0  ;;  %19 = vst [vmem:[#allocation5] sm:$0x1] %v18_v1 }
   0x3   :  { %22750 = sst [smem:[#allocation51_spill]] %s22692_s3 }
   0x4   :  { %22751 = sst [smem:[#allocation52_spill]] %s22693_s4 }
   0x5   :  { %22752 = sst [smem:[#allocation53_spill]] %s22695_s6 }
   0x6   :  { %22753 = sst [smem:[#allocation54_spill]] %s22699_s11 }
   0x7   :  { %20 = vsyncpa [#allocation7], 0 }
   0x8   :  { %22 = vsyncpa [#allocation7 + $0x1], 0 }
   0x9   :  { %23 = vsyncpa [#allocation10], 0 }
   0xa   :  { %24 = vsyncpa [#allocation13], 0 }
   0xb   :  { %25 = vsyncpa [#allocation16], 0 }
   0xc   :  { %26 = vsyncpa [#allocation19], 0 }
   0xd   :  { %27 = vsyncpa [#allocation8], 0 }
   0xe   :  { %29 = vsyncpa [#allocation8 + $0x1], 0  ;;  %s18012_s21 = smov 0   ;;  %s18014_s22 = smov 0  }
   0xf   :  { %s18016_s23 = smov 0   ;;  %s18018_s5 = smov 0  }
  0x10   :  { %s18020_s24 = smov 0   ;;  %s18022_s8 = smov 0  }
  0x11   :  { %s18024_s25 = smov 0   ;;  %s18026_s26 = smov 0  }
  0x12 LB: > { %22754 = sst [smem:[#allocation28_spill]] %s17907_s5  ;;  %s22701_s27 = sadd.s32 4294967295, %s17923_s26   ;;  %s17923_s26 = sphi %s18026_s26, %s35_s26   ;;  %s17919_s25 = sphi %s18024_s25, %s22981_s25   ;;  %s17915_s8 = sphi %s18022_s8, %s22980_s8   ;;  %s17911_s24 = sphi %s18020_s24, %s22979_s24   ;;  %s17907_s5 = sphi %s18018_s5, %s22978_s5   ;;  %s17903_s23 = sphi %s18016_s23, %s22977_s23   ;;  %s17899_s22 = sphi %s18014_s22, %s22976_s22   ;;  %s17895_s21 = sphi %s18012_s21, %s22975_s21  }
  0x13   : > { %22755 = sst [smem:[#allocation29_spill]] %s17911_s24  ;;  %p13760_p0 = scmp.ge.s32.totalorder %s17923_s26, 1 }
  0x14   : > { %p18056_p1 = scmp.eq.s32.totalorder %s22701_s27, 0  ;;  %p318_p2 = scmp.lt.s32.totalorder %s17923_s26, 5 }
  0x15   : > { %s17925_s30 = smov [#allocation9]   ;;  %s17926_s14 = smov [#allocation12]  }
  0x16   : > { %s22756_s28 = scalar_select %p18056_p1, 1, 0 }
  0x17   : > { %p18061_p3 = pnand %p13760_p0, %p318_p2  ;;  %s330_s12 = sshll.u32 %s17925_s30, 4  ;;  %s331_s12 = int_to_ptr.vmem [resolvable:$true] %s330_s12 }
  0x18   : > { %s354_s15 = sshll.u32 %s17926_s14, 4  ;;  %s22760_s1 = sld [smem:[#allocation49_spill]]  ;;  %s18073_s15 = int_to_ptr.vmem [resolvable:$true] %s354_s15 }
  0x19   : > { %s22757_s29 = scalar_select %p18061_p3, 1, 0 }
  0x1a   : > { %p17225_p4 = pneg %p18061_p3 }
  0x1b   : > { %22758 = sst [smem:[#allocation30_spill]] %s22757_s29 }
  0x1c   : > { %p18069_p5 = pnand %p17225_p4, %p18056_p1 }
  0x1e   : > { %s17555_s18 = scalar_lea.hbm %s22760_s1, 288  ;;  %p18083_p7 = pneg %p18069_p5 }
  0x1f   : > { %p17556_p6 = scmp.ne.s32.totalorder %s22760_s1, %s17555_s18  ;;  %p17562_p10 = scmp.lt.u32.totalorder %s17555_s18, %s22760_s1 }
  0x21   : > { %p17558_p8 = pnand %p18083_p7, %p17556_p6 }
  0x23   : > { %p17559_p9 = pneg %p17558_p8 }
  0x25   : > { %p17564_p11 = pnand %p17562_p10, %p17559_p9 }
  0x27   : > { %17567 = shalt.err (!%p17564_p11)
}
  0x28   : > { %s17568_s16 = scalar_lea.vmem %s331_s12, 288  ;;  %p17576_p2 = scmp.lt.s32.totalorder %s331_s12, %s331_s12 }
  0x29   : > { %p17569_p12 = scmp.ne.s32.totalorder %s331_s12, %s17568_s16  ;;  %p17577_p4 = scmp.lt.s32.totalorder %s17568_s16, %s17568_s16 }
  0x2b   : > { %p17571_p13 = pnand %p17569_p12, %p18083_p7  ;;  %p17578_p3 = por %p17577_p4, %p17576_p2 }
  0x2d   : > { %p17572_p0 = pneg %p17571_p13 }
  0x2f   : > { %p17579_p1 = pnand %p17578_p3, %p17572_p0 }
  0x31   : > { %17582 = shalt.err (!%p17579_p1)
}
  0x32   : > { %s17927_s17 = smov 32   ;;  %s17928_s19 = smov 2  }
  0x33   : > { %17228 = dma.hbm_to_vmem [thread:$0]  (!%p18069_p5), %s22760_s1, 288, %s331_s12, [#allocation10], %s17927_s17, %s17927_s17, %s17928_s19  }
  0x34   : > { %s22762_s3 = sld [smem:[#allocation51_spill]] }
  0x3a   : > { %s17583_s11 = scalar_lea.hbm %s22762_s3, 2304 }
  0x3b   : > { %p17584_p6 = scmp.ne.s32.totalorder %s22762_s3, %s17583_s11  ;;  %p17590_p8 = scmp.lt.u32.totalorder %s17583_s11, %s22762_s3 }
  0x3d   : > { %p17586_p3 = pnand %p17584_p6, %p18083_p7 }
  0x3f   : > { %p17587_p1 = pneg %p17586_p3 }
  0x41   : > { %p17592_p9 = pnand %p17590_p8, %p17587_p1 }
  0x43   : > { %17595 = shalt.err (!%p17592_p9)
}
  0x44   : > { %s17596_s12 = scalar_lea.vmem %s18073_s15, 2304  ;;  %p17604_p13 = scmp.lt.s32.totalorder %s18073_s15, %s18073_s15 }
  0x45   : > { %p17597_p10 = scmp.ne.s32.totalorder %s18073_s15, %s17596_s12  ;;  %p17605_p0 = scmp.lt.s32.totalorder %s17596_s12, %s17596_s12 }
  0x47   : > { %p17599_p11 = pnand %p17597_p10, %p18083_p7  ;;  %p17606_p2 = por %p17605_p0, %p17604_p13 }
  0x49   : > { %p17600_p12 = pneg %p17599_p11 }
  0x4b   : > { %p17607_p4 = pnand %p17606_p2, %p17600_p12 }
  0x4d   : > { %17610 = shalt.err (!%p17607_p4)
}
  0x4e   : > { %s22708_s5 = smov 64   ;;  %s22709_s11 = smov 4  }
  0x4f   : > { %17234 = dma.hbm_to_vmem [thread:$0]  (!%p18069_p5), %s22762_s3, 2304, %s18073_s15, [#allocation13], %s22708_s5, %s22708_s5, %s22709_s11  }
  0x50   : > { %s17931_s17 = smov [#allocation15]   ;;  %s17932_s27 = smov [#allocation18]  }
  0x51   : > { %s381_s19 = sshll.u32 %s17931_s17, 4  ;;  %s409_s18 = sshll.u32 %s17932_s27, 4  ;;  %s382_s19 = int_to_ptr.vmem [resolvable:$true] %s381_s19  ;;  %s18125_s18 = int_to_ptr.vmem [resolvable:$true] %s409_s18 }
  0x52   : > { %s22763_s6 = sld [smem:[#allocation53_spill]] }
  0x58   : > { %s17611_s16 = scalar_lea.hbm %s22763_s6, 1152 }
  0x59   : > { %p17612_p6 = scmp.ne.s32.totalorder %s22763_s6, %s17611_s16  ;;  %p17618_p8 = scmp.lt.u32.totalorder %s17611_s16, %s22763_s6 }
  0x5b   : > { %p17614_p3 = pnand %p17612_p6, %p18083_p7 }
  0x5d   : > { %p17615_p1 = pneg %p17614_p3 }
  0x5f   : > { %p17620_p9 = pnand %p17618_p8, %p17615_p1 }
  0x61   : > { %17623 = shalt.err (!%p17620_p9)
}
  0x62   : > { %s17624_s29 = scalar_lea.vmem %s382_s19, 1152  ;;  %p17632_p13 = scmp.lt.s32.totalorder %s382_s19, %s382_s19 }
  0x63   : > { %p17625_p10 = scmp.ne.s32.totalorder %s382_s19, %s17624_s29  ;;  %p17633_p0 = scmp.lt.s32.totalorder %s17624_s29, %s17624_s29 }
  0x65   : > { %p17627_p11 = pnand %p17625_p10, %p18083_p7  ;;  %p17634_p2 = por %p17633_p0, %p17632_p13 }
  0x67   : > { %p17628_p12 = pneg %p17627_p11 }
  0x69   : > { %p17635_p4 = pnand %p17634_p2, %p17628_p12 }
  0x6b   : > { %17638 = shalt.err (!%p17635_p4)
}
  0x6c   : > { %17240 = dma.hbm_to_vmem [thread:$0]  (!%p18069_p5), %s22763_s6, 1152, %s382_s19, [#allocation16], %s22708_s5, %s22708_s5, %s22709_s11  }
  0x6d   : > { %s17639_s14 = scalar_lea.hbm %s22697_s9, 32 }
  0x6e   : > { %p17640_p6 = scmp.ne.s32.totalorder %s22697_s9, %s17639_s14  ;;  %p17646_p8 = scmp.lt.u32.totalorder %s17639_s14, %s22697_s9 }
  0x70   : > { %p17642_p3 = pnand %p17640_p6, %p18083_p7 }
  0x72   : > { %p17643_p1 = pneg %p17642_p3 }
  0x74   : > { %p17648_p9 = pnand %p17646_p8, %p17643_p1 }
  0x76   : > { %17651 = shalt.err (!%p17648_p9)
}
  0x77   : > { %s17652_s19 = scalar_lea.vmem %s18125_s18, 32  ;;  %p17660_p13 = scmp.lt.s32.totalorder %s18125_s18, %s18125_s18 }
  0x78   : > { %p17653_p10 = scmp.ne.s32.totalorder %s18125_s18, %s17652_s19  ;;  %p17661_p0 = scmp.lt.s32.totalorder %s17652_s19, %s17652_s19 }
  0x7a   : > { %p17655_p11 = pnand %p17653_p10, %p18083_p7  ;;  %p17662_p2 = por %p17661_p0, %p17660_p13 }
  0x7c   : > { %p17656_p12 = pneg %p17655_p11 }
  0x7e   : > { %p17663_p4 = pnand %p17662_p2, %p17656_p12 }
  0x80   : > { %17666 = shalt.err (!%p17663_p4)
}
  0x81   : > { %17246 = dma.hbm_to_vmem [thread:$0]  (!%p18069_p5), %s22697_s9, 32, %s18125_s18, [#allocation19]  }
  0x82   : > { %s17933_s17 = smov [#allocation11]   ;;  %s17934_s20 = smov [#allocation14]  }
  0x83   : > { %s344_s27 = sshll.u32 %s17933_s17, 4  ;;  %s368_s14 = sshll.u32 %s17934_s20, 4  ;;  %s345_s27 = int_to_ptr.vmem [resolvable:$true] %s344_s27  ;;  %s18171_s14 = int_to_ptr.vmem [resolvable:$true] %s368_s14 }
  0x84   : > { %s22764_s2 = sld [smem:[#allocation50_spill]] }
  0x8a   : > { %s17667_s24 = scalar_lea.hbm %s22764_s2, 16 }
  0x8b   : > { %p17668_p6 = scmp.ne.s32.totalorder %s22764_s2, %s17667_s24  ;;  %p17674_p8 = scmp.lt.u32.totalorder %s17667_s24, %s22764_s2 }
  0x8d   : > { %p17670_p3 = pnand %p17668_p6, %p18083_p7 }
  0x8f   : > { %p17671_p1 = pneg %p17670_p3 }
  0x91   : > { %p17676_p9 = pnand %p17674_p8, %p17671_p1 }
  0x93   : > { %17679 = shalt.err (!%p17676_p9)
}
  0x94   : > { %s17680_s1 = scalar_lea.vmem %s345_s27, 16  ;;  %s17687_s17 = scalar_lea.vmem %s345_s27, 32 }
  0x95   : > { %p17681_p10 = scmp.ne.s32.totalorder %s345_s27, %s17680_s1  ;;  %p17688_p13 = scmp.lt.s32.totalorder %s345_s27, %s345_s27 }
  0x96   : > { %p17689_p0 = scmp.lt.s32.totalorder %s17687_s17, %s17680_s1 }
  0x97   : > { %p17683_p11 = pnand %p17681_p10, %p18083_p7 }
  0x98   : > { %p17690_p2 = por %p17689_p0, %p17688_p13 }
  0x99   : > { %p17684_p12 = pneg %p17683_p11 }
  0x9b   : > { %p17691_p4 = pnand %p17690_p2, %p17684_p12 }
  0x9d   : > { %17694 = shalt.err (!%p17691_p4)
}
  0x9e   : > { %17231 = dma.hbm_to_vmem [thread:$0]  (!%p18069_p5), %s22764_s2, 16, %s345_s27, [#allocation10]  }
  0x9f   : > { %s22765_s4 = sld [smem:[#allocation52_spill]] }
  0xa5   : > { %s17695_s15 = scalar_lea.hbm %s22765_s4, 16 }
  0xa6   : > { %p17696_p6 = scmp.ne.s32.totalorder %s22765_s4, %s17695_s15  ;;  %p17702_p8 = scmp.lt.u32.totalorder %s17695_s15, %s22765_s4 }
  0xa8   : > { %p17698_p3 = pnand %p17696_p6, %p18083_p7 }
  0xaa   : > { %p17699_p1 = pneg %p17698_p3 }
  0xac   : > { %p17704_p9 = pnand %p17702_p8, %p17699_p1 }
  0xae   : > { %17707 = shalt.err (!%p17704_p9)
}
  0xaf   : > { %s17708_s27 = scalar_lea.vmem %s18171_s14, 16  ;;  %s17715_s17 = scalar_lea.vmem %s18171_s14, 32 }
  0xb0   : > { %p17709_p10 = scmp.ne.s32.totalorder %s18171_s14, %s17708_s27  ;;  %p17716_p13 = scmp.lt.s32.totalorder %s18171_s14, %s18171_s14 }
  0xb1   : > { %p17717_p0 = scmp.lt.s32.totalorder %s17715_s17, %s17708_s27 }
  0xb2   : > { %p17711_p11 = pnand %p17709_p10, %p18083_p7 }
  0xb3   : > { %p17718_p2 = por %p17717_p0, %p17716_p13 }
  0xb4   : > { %p17712_p12 = pneg %p17711_p11 }
  0xb6   : > { %p17719_p4 = pnand %p17718_p2, %p17712_p12 }
  0xb8   : > { %17722 = shalt.err (!%p17719_p4)
}
  0xb9   : > { %17237 = dma.hbm_to_vmem [thread:$0]  (!%p18069_p5), %s22765_s4, 16, %s18171_s14, [#allocation13]  }
  0xba   : > { %s17935_s12 = smov [#allocation17]   ;;  %s17936_s15 = smov [#allocation20]  }
  0xbb   : > { %s395_s24 = sshll.u32 %s17935_s12, 4  ;;  %s420_s19 = sshll.u32 %s17936_s15, 4  ;;  %s396_s24 = int_to_ptr.vmem [resolvable:$true] %s395_s24  ;;  %s18215_s19 = int_to_ptr.vmem [resolvable:$true] %s420_s19 }
  0xbc   : > { %s17723_s1 = scalar_lea.hbm %s22696_s7, 16 }
  0xbd   : > { %p17724_p6 = scmp.ne.s32.totalorder %s22696_s7, %s17723_s1  ;;  %p17730_p8 = scmp.lt.u32.totalorder %s17723_s1, %s22696_s7 }
  0xbf   : > { %p17726_p3 = pnand %p17724_p6, %p18083_p7 }
  0xc1   : > { %p17727_p1 = pneg %p17726_p3 }
  0xc3   : > { %p17732_p9 = pnand %p17730_p8, %p17727_p1 }
  0xc5   : > { %17735 = shalt.err (!%p17732_p9)
}
  0xc6   : > { %s17736_s16 = scalar_lea.vmem %s396_s24, 16  ;;  %s17743_s12 = scalar_lea.vmem %s396_s24, 32 }
  0xc7   : > { %p17737_p10 = scmp.ne.s32.totalorder %s396_s24, %s17736_s16  ;;  %p17744_p13 = scmp.lt.s32.totalorder %s396_s24, %s396_s24 }
  0xc8   : > { %p17745_p0 = scmp.lt.s32.totalorder %s17743_s12, %s17736_s16 }
  0xc9   : > { %p17739_p11 = pnand %p17737_p10, %p18083_p7 }
  0xca   : > { %p17746_p2 = por %p17745_p0, %p17744_p13 }
  0xcb   : > { %p17740_p12 = pneg %p17739_p11 }
  0xcd   : > { %p17747_p4 = pnand %p17746_p2, %p17740_p12 }
  0xcf   : > { %17750 = shalt.err (!%p17747_p4)
}
  0xd0   : > { %17243 = dma.hbm_to_vmem [thread:$0]  (!%p18069_p5), %s22696_s7, 16, %s396_s24, [#allocation16]  }
  0xd1   : > { %s17751_s27 = scalar_lea.hbm %s22698_s10, 64 }
  0xd2   : > { %p17752_p6 = scmp.ne.s32.totalorder %s22698_s10, %s17751_s27  ;;  %p17758_p8 = scmp.lt.u32.totalorder %s17751_s27, %s22698_s10 }
  0xd4   : > { %p17754_p3 = pnand %p17752_p6, %p18083_p7 }
  0xd6   : > { %p17755_p1 = pneg %p17754_p3 }
  0xd8   : > { %p17760_p9 = pnand %p17758_p8, %p17755_p1 }
  0xda   : > { %17763 = shalt.err (!%p17760_p9)
}
  0xdb   : > { %s17764_s24 = scalar_lea.vmem %s18215_s19, 64  ;;  %p17772_p13 = scmp.lt.s32.totalorder %s18215_s19, %s18215_s19 }
  0xdc   : > { %p17765_p10 = scmp.ne.s32.totalorder %s18215_s19, %s17764_s24  ;;  %p17773_p0 = scmp.lt.s32.totalorder %s17764_s24, %s17764_s24 }
  0xde   : > { %p17767_p11 = pnand %p17765_p10, %p18083_p7  ;;  %p17774_p2 = por %p17773_p0, %p17772_p13 }
  0xe0   : > { %p17768_p12 = pneg %p17767_p11 }
  0xe2   : > { %p17775_p4 = pnand %p17774_p2, %p17768_p12 }
  0xe4   : > { %17778 = shalt.err (!%p17775_p4)
}
  0xe5   : > { %17249 = dma.hbm_to_vmem [thread:$0]  (!%p18069_p5), %s22698_s10, 64, %s18215_s19, [#allocation19]  }
  0xe6   : > { %s13759_s30 = sadd.s32 4294967294, %s17923_s26   ;;  %s44_s13 = sadd.s32 1, %s17915_s8 }
  0xe7   : > { %p45_p7 = scmp.ge.s32.totalorder %s44_s13, 2  ;;  %s47_s29 = sadd.s32 1, %s17919_s25 }
  0xe8   : > { %s56_s18 = sadd.s32 1, %s17903_s23  ;;  %p63_p6 = scmp.ne.s32.totalorder %s17903_s23, %s17899_s22 }
  0xe9   : > { %s22983_s13 = smov (%p45_p7, %s44_s13), 0  ;;  %s22985_s29 = smov (!%p45_p7, %s47_s29), %s17919_s25 }
  0xea   : > { %s52_s1 = ssub.s32 %s17915_s8, %s22983_s13  ;;  %p64_p3 = scmp.eq.s32.totalorder %s17923_s26, 0 }
  0xeb   : > { %p49_p1 = scmp.ge.s32.totalorder %s22985_s29, 2  ;;  %p69_p5 = scmp.ne.s32.totalorder %s17899_s22, %s17895_s21 }
  0xec   : > { %p18272_p8 = por %p64_p3, %p63_p6  ;;  %s22767_s27 = sadd.s32 4294967295, %s17923_s26  }
  0xed   : > { %p305_p9 = scmp.eq.s32.totalorder %s22767_s27, 3  ;;  %s22987_s29 = smov (%p49_p1, %s22985_s29), 0 }
  0xee   : > { %p22768_p10 = scmp.ne.s32.totalorder %s22756_s28, 0  ;;  %s51_s14 = ssub.s32 %s17919_s25, %s22987_s29 }
  0xef   : > { %p18286_p12 = por %p305_p9, %p63_p6  ;;  %p311_p13 = scmp.eq.s32.totalorder %s13759_s30, 3 }
  0xf0   : > { %p18282_p11 = por %p22768_p10, %p69_p5  ;;  %s53_s16 = sor.u32 %s52_s1, %s51_s14 }
  0xf1   : > { %s22770_s20 = scalar_select %p18286_p12, 1, 0 }
  0xf2   : > { %p17266_p0 = scmp.lt.s32.totalorder %s17923_s26, 4  ;;  %p54_p2 = scmp.eq.s32.totalorder %s53_s16, 0 }
  0xf3   : > { %p18293_p4 = por %p311_p13, %p69_p5  ;;  %s431_s12 = sand.u32 1, %s17903_s23  }
  0xf4   : > { %s17184_s15 = smul.u32 66, %s17915_s8  ;;  %p18305_p7 = pnand %p17266_p0, %p18272_p8 }
  0xf5   : > { %s22771_s24 = scalar_select %p18293_p4, 1, 0 }
  0xf6   : > { %s18300_s27 = scalar_select %p54_p2, %s17903_s23, %s56_s18  }
  0xf7   : > { %s17183_s5 = smul.u32 264, %s431_s12  ;;  %s18316_s19 = scalar_lea.sflag [#allocation7], %s431_s12 }
  0xf8   : > { %s17185_s11 = smul.u32 132, %s17919_s25  ;;  %p17781_p3 = pneg %p18305_p7 }
  0xf9   : > { %s435_s1 = scalar_lea.vmem [#allocation6], %s17183_s5  ;;  %s17784_s3 = scalar_lea.hbm %s22689_s0, 16896 }
  0xfa   : > { %s441_s30 = sadd.s32 %s17185_s11, %s17184_s15  ;;  %s444_s14 = sshll.u32 %s435_s1, 4  ;;  %s18309_s14 = int_to_ptr.vmem [resolvable:$true] %s444_s14 }
  0xfb   : > { %s13770_s16 = sshll.u32 %s441_s30, 6 }
  0xfc   : > { %s18314_s18 = scalar_lea.hbm %s22689_s0, %s13770_s16 }
  0xfd   : > { %s17779_s6 = scalar_lea.hbm %s18314_s18, 4224  ;;  %p17785_p8 = scmp.lt.u32.totalorder %s18314_s18, %s22689_s0 }
  0xfe   : > { %p17780_p6 = scmp.ne.s32.totalorder %s18314_s18, %s17779_s6  ;;  %p17786_p9 = scmp.lt.u32.totalorder %s17784_s3, %s17779_s6 }
  0xff   : > { %p17788_p13 = scmp.lt.u32.totalorder %s17779_s6, %s18314_s18 }
 0x100   : > { %p17782_p1 = pnand %p17781_p3, %p17780_p6  ;;  %p17787_p10 = por %p17786_p9, %p17785_p8 }
 0x102   : > { %p17783_p5 = pneg %p17782_p1  ;;  %p17789_p0 = por %p17788_p13, %p17787_p10 }
 0x104   : > { %p17790_p2 = pnand %p17789_p0, %p17783_p5 }
 0x106   : > { %17793 = shalt.err (!%p17790_p2)
}
 0x107   : > { %s17794_s12 = scalar_lea.vmem %s18309_s14, 4224  ;;  %s17937_s30 = smov [#allocation6]  }
 0x108   : > { %p17795_p6 = scmp.ne.s32.totalorder %s18309_s14, %s17794_s12  ;;  %s17799_s1 = sshll.u32 %s17937_s30, 4  ;;  %s17800_s1 = int_to_ptr.vmem [resolvable:$false] %s17799_s1 }
 0x109   : > { %s17801_s16 = scalar_lea.vmem %s17800_s1, 8448  ;;  %p17802_p12 = scmp.lt.s32.totalorder %s18309_s14, %s17800_s1 }
 0x10a   : > { %p17797_p1 = pnand %p17795_p6, %p17781_p3  ;;  %p17803_p8 = scmp.lt.s32.totalorder %s17801_s16, %s17794_s12 }
 0x10c   : > { %p17798_p4 = pneg %p17797_p1  ;;  %p17804_p9 = por %p17803_p8, %p17802_p12 }
 0x10e   : > { %p17805_p10 = pnand %p17804_p9, %p17798_p4 }
 0x110   : > { %17808 = shalt.err (!%p17805_p10)
}
 0x111   : > { %s22773_s6 = smov 4   ;;  %s22774_s5 = smov 64  }
 0x112   : > { %17253 = dma.hbm_to_vmem [thread:$0]  (!%p18305_p7), %s18314_s18, 4224, %s18309_s14, %s18316_s19, %s22774_s5, %s22774_s5, %s22773_s6  }
 0x113   : > { %s22775_s11 = sld [smem:[#allocation30_spill]] }
 0x119   : > { %p22776_p3 = scmp.ne.s32.totalorder %s22775_s11, 0 }
 0x11b   : > { %456 = sbr.rel (%p22776_p3) target bundleno = 2831 (0xb0f), region = 64 }
 0x122   : > { %s18350_s3 = sand.u32 1, %s17899_s22  }
 0x123   : > { %s17186_s4 = smul.u32 264, %s18350_s3  ;;  %s459_s15 = scalar_lea.sflag [#allocation7], %s18350_s3 }
 0x125   : > { %s18354_s12 = scalar_lea.vmem [#allocation6], %s17186_s4 }
 0x126   : > { %17870 = dma.done.wait (%p18282_p11), %s459_s15, 4224  }
 0x127   : > { %17872 = vsyncadd (%p18282_p11), %s459_s15, 4294963072  ;;  %p22777_p12 = scmp.ne.s32.totalorder %s22756_s28, 0 }
 0x129   : > { %17874 = dma.done.wait (%p22777_p12), [#allocation10], 304  }
 0x12a   : > { %17876 = vsyncadd (%p22777_p12), [#allocation10], 4294966992 }
 0x12b   : > { %17878 = dma.done.wait (%p22777_p12), [#allocation13], 2320  }
 0x12c   : > { %17880 = vsyncadd (%p22777_p12), [#allocation13], 4294964976 }
 0x12d   : > { %17882 = dma.done.wait (%p22777_p12), [#allocation16], 1168  }
 0x12e   : > { %17884 = vsyncadd (%p22777_p12), [#allocation16], 4294966128 }
 0x12f   : > { %17886 = dma.done.wait (%p22777_p12), [#allocation19], 96  }
 0x130   : > { %17888 = vsyncadd (%p22777_p12), [#allocation19], 4294967200  ;;  %vm1202_vm0 = vcmask 1040384   ;;  %vm1203_vm1 = vcmask 1041408   ;;  %v17938_v2 = vmov 65535   ;;  %vm1141_vm5 = vcmask 23552  }
 0x131   : > { %v1204_v3 = vsel %vm1202_vm0, 4294967295, %v17938_v2  ;;  %vm596_vm2 = vsmask.f32 3328  ;;  %v1080_v5 = vld [vmem:[#allocation9 + $0x2] sm:$0x3]  ;;  %vm1818_vm6 = vcmask 1042432  }
 0x132   : > { %v18378_v4 = vsel %vm1203_vm1, %v1204_v3, 0  ;;  %v18381_v6 = vld [vmem:[%s18354_s12] sm:$0xf]  ;;  %v18384_v7 = vld [vmem:[%s18354_s12 + $0x4] sm:$0xf]  ;;  %vm1819_vm7 = vcmask 1046532  }
 0x133   : > { %v1207_v8 = vand.u32 %v18378_v4, %v1080_v5  ;;  %v576_v9 = vld [vmem:[%s18354_s12 + $0x8] sm:$0x1]  ;;  %v600_v10 = vshrl.u32 %v18381_v6, 16  ;;  %v603_v11 = vshll.u32 %v18381_v6, 16  ;;  %v609_v12 = vshll.u32 %v18384_v7, 16  ;;  %vm18775_vm8 = vmor %vm1818_vm6, %vm1819_vm7  ;;  %s22849_s2 = sld [smem:[#allocation28_spill]] }
 0x134   : > { %vm597_vm3 = vsmask.f32 7440  ;;  %v613_v13 = vshrl.u32 %v18384_v7, 16  ;;  %v619_v14 = vshll.u32 %v576_v9, 16  ;;  %v18393_v15 = vld [vmem:[%s18354_s12 + $0xc] sm:$0xf] }
 0x135   : > { %15609 = vmatprep.subr.bf16.mxu0 %v1207_v8  ;;  %v602_v16 = vrot.slane %v600_v10, 4  ;;  %v605_v17 = vrot.slane %v603_v11, 5  ;;  %v611_v18 = vrot.slane %v609_v12, 5  ;;  %v18396_v19 = vld [vmem:[%s18354_s12 + $0x10] sm:$0xf]  ;;  %v624_v20 = vshrl.u32 %v18393_v15, 16  ;;  %vm18408_vm4 = vmor %vm596_vm2, %vm597_vm3 }
 0x136   : > { %15610 = vmatpush3.bf16.msra.mxu0 %v1207_v8  ;;  %v615_v21 = vrot.slane %v613_v13, 4  ;;  %v577_v22 = vld [vmem:[%s18354_s12 + $0x14] sm:$0x1]  ;;  %v627_v23 = vshll.u32 %v18393_v15, 16  ;;  %v633_v24 = vshll.u32 %v18396_v19, 16  ;;  %v637_v27 = vshrl.u32 %v18396_v19, 16 }
 0x137   : > { %v606_v25 = vor.u32 %v605_v17, %v602_v16  ;;  %v626_v26 = vrot.slane %v624_v20, 4  ;;  %v643_v28 = vshll.u32 %v577_v22, 16  ;;  %v18404_v29 = vld [vmem:[%s18354_s12 + $0x18] sm:$0xf]  ;;  %v621_v32 = vrot.slane %v619_v14, 5  ;;  %s17187_s18 = smul.u32 40, %s18350_s3 }
 0x138   : > { %v616_v31 = vor.u32 %v615_v21, %v611_v18  ;;  %v629_v33 = vrot.slane %v627_v23, 5  ;;  %v635_v34 = vrot.slane %v633_v24, 5  ;;  %v18413_v35 = vld [vmem:[%s18354_s12 + $0x1c] sm:$0xf]  ;;  %v639_v37 = vrot.slane %v637_v27, 4  ;;  %s22971_s30 = sld [smem:[#allocation29_spill]] }
 0x139   : > { %v607_v36 = vrot.slane %v606_v25, 4  ;;  %v645_v38 = vrot.slane %v643_v28, 5  ;;  %v648_v41 = vshrl.u32 %v18404_v29, 16  ;;  %v651_v42 = vshll.u32 %v18404_v29, 16  ;;  %v578_v45 = vld [vmem:[%s18354_s12 + $0x20] sm:$0x1] }
 0x13a   : > { %v617_v39 = vrot.slane %v616_v31, 4  ;;  %v630_v40 = vor.u32 %v629_v33, %v626_v26  ;;  %v640_v44 = vor.u32 %v639_v37, %v635_v34  ;;  %v657_v46 = vshll.u32 %v18413_v35, 16  ;;  %v18423_v48 = vld [vmem:[%s18354_s12 + $0x24] sm:$0xf]  ;;  %v18428_v53 = vld [vmem:[%s18354_s12 + $0x28] sm:$0xf] }
 0x13b   : > { %v612_v43 = vsel %vm18408_vm4, %v607_v36, %v611_v18  ;;  %v661_v47 = vshrl.u32 %v18413_v35, 16  ;;  %v650_v51 = vrot.slane %v648_v41, 4  ;;  %v653_v52 = vrot.slane %v651_v42, 5  ;;  %v579_v0 = vld [vmem:[%s18354_s12 + $0x2c] sm:$0x1]  ;;  %s13780_s28 = sshll.u32 %s22849_s2, 3 }
 0x13c   : > { %v622_v49 = vsel %vm18408_vm4, %v617_v39, %v621_v32  ;;  %v631_v50 = vrot.slane %v630_v40, 4  ;;  %v641_v55 = vrot.slane %v640_v44, 4  ;;  %v659_v56 = vrot.slane %v657_v46, 5  ;;  %v18440_v3 = vld [vmem:[%s18354_s12 + $0x30] sm:$0xf]  ;;  %s20335_s17 = sadd.s32 4294967292, %s13780_s28 }
 0x13d   : > { %v13781_v54 = vcombine.low %v612_v43, %v622_v49  ;;  %v663_v57 = vrot.slane %v661_v47, 4  ;;  %v654_v59 = vor.u32 %v653_v52, %v650_v51  ;;  %v667_v60 = vshll.u32 %v578_v45, 16  ;;  %v18443_v11 = vld [vmem:[%s18354_s12 + $0x34] sm:$0xf]  ;;  %v580_v25 = vld [vmem:[%s18354_s12 + $0x38] sm:$0x1] }
 0x13e   : > { %v636_v58 = vsel %vm18408_vm4, %v631_v50, %v635_v34  ;;  %v672_v61 = vshrl.u32 %v18423_v48, 16  ;;  %v646_v62 = vsel %vm18408_vm4, %v641_v55, %v645_v38  ;;  %v675_v1 = vshll.u32 %v18423_v48, 16  ;;  %v18456_v27 = vld [vmem:[%s18354_s12 + $0x3c] sm:$0xf]  ;;  %v18459_v34 = vld [vmem:[%s18354_s12 + $0x40] sm:$0xf] }
 0x13f   : > { %15611 = vmatprep.mubr.msk.bf16.mxu0 %vm1141_vm5, %v13781_v54  ;;  %v664_v63 = vor.u32 %v663_v57, %v659_v56  ;;  %v681_v2 = vshll.u32 %v18428_v53, 16  ;;  %v13782_v5 = vcombine.low %v636_v58, %v646_v62  ;;  %v655_v8 = vrot.slane %v654_v59, 4  ;;  %v581_v47 = vld [vmem:[%s18354_s12 + $0x44] sm:$0x1]  ;;  %v18470_v55 = vld [vmem:[%s18354_s12 + $0x48] sm:$0xf] }
 0x140   : > { %v669_v9 = vrot.slane %v667_v60, 5  ;;  %v674_v10 = vrot.slane %v672_v61, 4  ;;  %v677_v13 = vrot.slane %v675_v1, 5  ;;  %v685_v16 = vshrl.u32 %v18428_v53, 16  ;;  %v18476_v60 = vld [vmem:[%s18354_s12 + $0x4c] sm:$0xf] }
 0x141   : > { %v665_v12 = vrot.slane %v664_v63, 4  ;;  %v683_v14 = vrot.slane %v681_v2, 5  ;;  %15612 = vmatmul.mubr.msk.bf16.vlgmr.msra.gmra.mrb[0].mxu0 %vm1141_vm5, %v13782_v5  ;;  %v660_v17 = vsel %vm18408_vm4, %v655_v8, %v659_v56  ;;  %v691_v18 = vshll.u32 %v579_v0, 16  ;;  %v582_v5 = vld [vmem:[%s18354_s12 + $0x50] sm:$0x1]  ;;  %s14442_s14 = sadd.s32 4294967290, %s13780_s28 }
 0x142   : > { %v696_v20 = vshrl.u32 %v18440_v3, 16  ;;  %v699_v21 = vshll.u32 %v18440_v3, 16  ;;  %v678_v23 = vor.u32 %v677_v13, %v674_v10  ;;  %v687_v24 = vrot.slane %v685_v16, 4  ;;  %v18487_v16 = vld [vmem:[%s18354_s12 + $0x54] sm:$0xf]  ;;  %s532_s19 = scalar_lea.vmem [#allocation21], %s17187_s18 }
 0x143   : > { %v670_v22 = vsel %vm18408_vm4, %v665_v12, %v669_v9  ;;  %v705_v26 = vshll.u32 %v18443_v11, 16  ;;  %v693_v31 = vrot.slane %v691_v18, 5  ;;  %v709_v39 = vshrl.u32 %v18443_v11, 16  ;;  %s17188_s1 = smul.u32 10, %s22971_s30  ;;  %s13593_s6 = sshll.u32 %s532_s19, 4  ;;  %s22630_s6 = int_to_ptr.vmem [resolvable:$true] %s13593_s6 }
 0x144   : > { %v13783_v28 = vcombine.low %v660_v17, %v670_v22  ;;  %v698_v32 = vrot.slane %v696_v20, 4  ;;  %v701_v33 = vrot.slane %v699_v21, 5  ;;  %v679_v36 = vrot.slane %v678_v23, 4  ;;  %v18492_v22 = vld [vmem:[%s18354_s12 + $0x58] sm:$0xf]  ;;  %s22972_s15 = sld [smem:[#allocation54_spill]] }
 0x145   : > { %v688_v37 = vor.u32 %v687_v24, %v683_v14  ;;  %v707_v38 = vrot.slane %v705_v26, 5  ;;  %v715_v41 = vshll.u32 %v580_v25, 16  ;;  %v720_v42 = vshrl.u32 %v18456_v27, 16  ;;  %s13590_s16 = sadd.s32 %s22849_s2, %s17188_s1  ;;  %s13579_s28 = scalar_lea.sflag [#allocation8], %s18350_s3 }
 0x146   : > { %15615 = vmatprep.mubr.msk.bf16.mxu0 %vm1141_vm5, %v13783_v28  ;;  %v702_v40 = vor.u32 %v701_v33, %v698_v32  ;;  %v723_v43 = vshll.u32 %v18456_v27, 16  ;;  %v684_v44 = vsel %vm18408_vm4, %v679_v36, %v683_v14  ;;  %v711_v46 = vrot.slane %v709_v39, 4  ;;  %v583_v33 = vld [vmem:[%s18354_s12 + $0x5c] sm:$0x1]  ;;  %s15100_s5 = sshll.u32 %s13590_s16, 7  ;;  %p22973_p4 = scmp.ne.s32.totalorder %s22770_s20, 0 }
 0x147   : > { %v689_v45 = vrot.slane %v688_v37, 4  ;;  %v729_v49 = vshll.u32 %v18459_v34, 16  ;;  %v717_v51 = vrot.slane %v715_v41, 5  ;;  %v722_v52 = vrot.slane %v720_v42, 4  ;;  %v18503_v41 = vld [vmem:[%s18354_s12 + $0x60] sm:$0xf] }
 0x148   : > { %v703_v50 = vrot.slane %v702_v40, 4  ;;  %v725_v54 = vrot.slane %v723_v43, 5  ;;  %v712_v57 = vor.u32 %v711_v46, %v707_v38  ;;  %v733_v59 = vshrl.u32 %v18459_v34, 16  ;;  %v18508_v46 = vld [vmem:[%s18354_s12 + $0x64] sm:$0xf]  ;;  %s17942_s2 = smov [#allocation21]  }
 0x149   : > { %v694_v56 = vsel %vm18408_vm4, %v689_v45, %v693_v31  ;;  %v731_v58 = vrot.slane %v729_v49, 5  ;;  %v739_v0 = vshll.u32 %v581_v47, 16  ;;  %v744_v8 = vshrl.u32 %v18470_v55, 16 }
 0x14a   : > { %v13784_v61 = vcombine.low %v684_v44, %v694_v56  ;;  %v708_v62 = vsel %vm18408_vm4, %v703_v50, %v707_v38  ;;  %v726_v63 = vor.u32 %v725_v54, %v722_v52  ;;  %v713_v1 = vrot.slane %v712_v57, 4 }
 0x14b   : > { %v735_v2 = vrot.slane %v733_v59, 4  ;;  %v747_v9 = vshll.u32 %v18470_v55, 16  ;;  %v741_v12 = vrot.slane %v739_v0, 5  ;;  %v753_v13 = vshll.u32 %v18476_v60, 16  ;;  %v18520_v0 = vld [vmem:[%s18354_s12 + $0x6c] sm:$0xf] }
 0x14c   : > { %15616 = vmatmul.mubr.msk.bf16.gmra.mrb[4].mxu0 %vm1141_vm5, %v13784_v61  ;;  %v727_v10 = vrot.slane %v726_v63, 4  ;;  %v757_v14 = vshrl.u32 %v18476_v60, 16  ;;  %v718_v17 = vsel %vm18408_vm4, %v713_v1, %v717_v51  ;;  %v746_v20 = vrot.slane %v744_v8, 4  ;;  %v584_v61 = vld [vmem:[%s18354_s12 + $0x68] sm:$0x1]  ;;  %22780 = vst [vmem:[#allocation31_spill] sm:$0xff] %v18520_v0 }
 0x14d   : > { %v736_v18 = vor.u32 %v735_v2, %v731_v58  ;;  %v749_v21 = vrot.slane %v747_v9, 5  ;;  %v13785_v23 = vcombine.low %v708_v62, %v718_v17  ;;  %v755_v25 = vrot.slane %v753_v13, 5  ;;  %v18523_v9 = vld [vmem:[%s18354_s12 + $0x70] sm:$0xf] }
 0x14e   : > { %v732_v24 = vsel %vm18408_vm4, %v727_v10, %v731_v58  ;;  %v759_v26 = vrot.slane %v757_v14, 4  ;;  %v763_v32 = vshll.u32 %v582_v5, 16  ;;  %v768_v36 = vshrl.u32 %v18487_v16, 16  ;;  %22781 = vst [vmem:[#allocation32_spill] sm:$0xff] %v18523_v9 }
 0x14f   : > { %v737_v28 = vrot.slane %v736_v18, 4  ;;  %v750_v31 = vor.u32 %v749_v21, %v746_v20  ;;  %15619 = vmatprep.mubr.msk.bf16.mxu0 %vm1141_vm5, %v13785_v23  ;;  %v771_v38 = vshll.u32 %v18487_v16, 16  ;;  %v777_v39 = vshll.u32 %v18492_v22, 16 }
 0x150   : > { %v760_v37 = vor.u32 %v759_v26, %v755_v25  ;;  %v781_v40 = vshrl.u32 %v18492_v22, 16  ;;  %v765_v44 = vrot.slane %v763_v32, 5  ;;  %v770_v45 = vrot.slane %v768_v36, 4  ;;  %v585_v26 = vld [vmem:[%s18354_s12 + $0x74] sm:$0x1] }
 0x151   : > { %v742_v42 = vsel %vm18408_vm4, %v737_v28, %v741_v12  ;;  %v751_v43 = vrot.slane %v750_v31, 4  ;;  %v773_v50 = vrot.slane %v771_v38, 5  ;;  %v779_v51 = vrot.slane %v777_v39, 5  ;;  %v18534_v31 = vld [vmem:[%s18354_s12 + $0x78] sm:$0xf] }
 0x152   : > { %v13786_v47 = vcombine.low %v732_v24, %v742_v42  ;;  %v761_v49 = vrot.slane %v760_v37, 4  ;;  %v783_v54 = vrot.slane %v781_v40, 4  ;;  %v787_v56 = vshll.u32 %v583_v33, 16  ;;  %22782 = vst [vmem:[#allocation33_spill] sm:$0xff] %v18534_v31  ;;  %v18539_v38 = vld [vmem:[%s18354_s12 + $0x7c] sm:$0xf] }
 0x153   : > { %v756_v52 = vsel %vm18408_vm4, %v751_v43, %v755_v25  ;;  %v792_v57 = vshrl.u32 %v18503_v41, 16  ;;  %v774_v59 = vor.u32 %v773_v50, %v770_v45  ;;  %v795_v62 = vshll.u32 %v18503_v41, 16  ;;  %22783 = vst [vmem:[#allocation34_spill] sm:$0xff] %v18539_v38 }
 0x154   : > { %15620 = vmatmul.mubr.msk.bf16.gmra.mrb[8].mxu0 %vm1141_vm5, %v13786_v47  ;;  %v766_v58 = vsel %vm18408_vm4, %v761_v49, %v765_v44  ;;  %v801_v63 = vshll.u32 %v18508_v46, 16  ;;  %v784_v2 = vor.u32 %v783_v54, %v779_v51  ;;  %v789_v5 = vrot.slane %v787_v56, 5 }
 0x155   : > { %v13787_v1 = vcombine.low %v756_v52, %v766_v58  ;;  %v794_v8 = vrot.slane %v792_v57, 4  ;;  %v775_v10 = vrot.slane %v774_v59, 4  ;;  %v797_v12 = vrot.slane %v795_v62, 5  ;;  %v586_v52 = vld [vmem:[%s18354_s12 + $0x80] sm:$0x1] }
 0x156   : > { %v803_v13 = vrot.slane %v801_v63, 5  ;;  %v805_v14 = vshrl.u32 %v18508_v46, 16  ;;  %v785_v17 = vrot.slane %v784_v2, 4  ;;  %v811_v18 = vshll.u32 %v584_v61, 16  ;;  %v18550_v62 = vld [vmem:[%s18354_s12 + $0x84] sm:$0xf] }
 0x157   : > { %15623 = vmatprep.mubr.msk.bf16.mxu0 %vm1141_vm5, %v13787_v1  ;;  %v816_v20 = vshrl.u32 %v18520_v0, 16  ;;  %v819_v21 = vshll.u32 %v18520_v0, 16  ;;  %v780_v23 = vsel %vm18408_vm4, %v775_v10, %v779_v51  ;;  %v798_v24 = vor.u32 %v797_v12, %v794_v8  ;;  %v18556_v8 = vld [vmem:[%s18354_s12 + $0x88] sm:$0xf] }
 0x158   : > { %v807_v25 = vrot.slane %v805_v14, 4  ;;  %v825_v28 = vshll.u32 %v18523_v9, 16  ;;  %v790_v32 = vsel %vm18408_vm4, %v785_v17, %v789_v5  ;;  %v813_v33 = vrot.slane %v811_v18, 5 }
 0x159   : > { %v818_v36 = vrot.slane %v816_v20, 4  ;;  %v821_v37 = vrot.slane %v819_v21, 5  ;;  %v13788_v39 = vcombine.low %v780_v23, %v790_v32  ;;  %v799_v40 = vrot.slane %v798_v24, 4  ;;  %v18561_v20 = vld [vmem:[%s18354_s12 + $0x8c] sm:$0x1] }
 0x15a   : > { %v808_v42 = vor.u32 %v807_v25, %v803_v13  ;;  %v827_v43 = vrot.slane %v825_v28, 5  ;;  %v829_v45 = vshrl.u32 %v18523_v9, 16  ;;  %v835_v47 = vshll.u32 %v585_v26, 16  ;;  %v18569_v32 = vld [vmem:[%s18354_s12 + $0x90] sm:$0xf] }
 0x15b   : > { %v822_v44 = vor.u32 %v821_v37, %v818_v36  ;;  %v840_v49 = vshrl.u32 %v18534_v31, 16  ;;  %v804_v50 = vsel %vm18408_vm4, %v799_v40, %v803_v13  ;;  %v843_v54 = vshll.u32 %v18534_v31, 16  ;;  %v18572_v40 = vld [vmem:[%s18354_s12 + $0x94] sm:$0xf] }
 0x15c   : > { %15624 = vmatmul.mubr.msk.bf16.gmra.mrb[12].mxu0 %vm1141_vm5, %v13788_v39  ;;  %v809_v51 = vrot.slane %v808_v42, 4  ;;  %v849_v56 = vshll.u32 %v18539_v38, 16  ;;  %v831_v58 = vrot.slane %v829_v45, 4  ;;  %v837_v59 = vrot.slane %v835_v47, 5  ;;  %v18578_v47 = vld [vmem:[%s18354_s12 + $0x98] sm:$0x1] }
 0x15d   : > { %v823_v57 = vrot.slane %v822_v44, 4  ;;  %v842_v61 = vrot.slane %v840_v49, 4  ;;  %v845_v1 = vrot.slane %v843_v54, 5  ;;  %v853_v5 = vshrl.u32 %v18539_v38, 16  ;;  %v18583_v54 = vld [vmem:[%s18354_s12 + $0x9c] sm:$0xf] }
 0x15e   : > { %v814_v63 = vsel %vm18408_vm4, %v809_v51, %v813_v33  ;;  %v851_v2 = vrot.slane %v849_v56, 5  ;;  %v832_v13 = vor.u32 %v831_v58, %v827_v43  ;;  %v859_v14 = vshll.u32 %v586_v52, 16  ;;  %v18679_v38 = vld [vmem:[%s18354_s12 + $0xd8] sm:$0xf] }
 0x15f   : > { %v13789_v10 = vcombine.low %v804_v50, %v814_v63  ;;  %v828_v12 = vsel %vm18408_vm4, %v823_v57, %v827_v43  ;;  %v846_v17 = vor.u32 %v845_v1, %v842_v61  ;;  %v855_v18 = vrot.slane %v853_v5, 4  ;;  %v18588_v61 = vld [vmem:[%s18354_s12 + $0xa0] sm:$0xf] }
 0x160   : > { %v864_v21 = vshrl.u32 %v18550_v62, 16  ;;  %v867_v23 = vshll.u32 %v18550_v62, 16  ;;  %v833_v24 = vrot.slane %v832_v13, 4  ;;  %v861_v25 = vrot.slane %v859_v14, 5 }
 0x161   : > { %15627 = vmatprep.mubr.msk.bf16.mxu0 %vm1141_vm5, %v13789_v10  ;;  %v873_v26 = vshll.u32 %v18556_v8, 16  ;;  %v877_v28 = vshrl.u32 %v18556_v8, 16  ;;  %v847_v33 = vrot.slane %v846_v17, 4  ;;  %v856_v36 = vor.u32 %v855_v18, %v851_v2  ;;  %v18596_v17 = vld [vmem:[%s18354_s12 + $0xa4] sm:$0x1] }
 0x162   : > { %v866_v37 = vrot.slane %v864_v21, 4  ;;  %v869_v39 = vrot.slane %v867_v23, 5  ;;  %v838_v42 = vsel %vm18408_vm4, %v833_v24, %v837_v59  ;;  %v883_v45 = vshll.u32 %v18561_v20, 16  ;;  %22784 = vst [vmem:[#allocation35_spill] sm:$0xff] %v18596_v17 }
 0x163   : > { %v875_v43 = vrot.slane %v873_v26, 5  ;;  %v879_v44 = vrot.slane %v877_v28, 4  ;;  %v13790_v49 = vcombine.low %v828_v12, %v838_v42  ;;  %v852_v50 = vsel %vm18408_vm4, %v847_v33, %v851_v2 }
 0x164   : > { %v857_v51 = vrot.slane %v856_v36, 4  ;;  %v870_v52 = vor.u32 %v869_v39, %v866_v37  ;;  %v885_v57 = vrot.slane %v883_v45, 5  ;;  %v888_v58 = vshrl.u32 %v18569_v32, 16  ;;  %v18610_v37 = vld [vmem:[%s18354_s12 + $0xac] sm:$0xf] }
 0x165   : > { %v880_v56 = vor.u32 %v879_v44, %v875_v43  ;;  %v891_v59 = vshll.u32 %v18569_v32, 16  ;;  %15628 = vmatmul.mubr.msk.bf16.gmra.mrb[16].mxu0 %vm1141_vm5, %v13790_v49  ;;  %v897_v2 = vshll.u32 %v18572_v40, 16  ;;  %v901_v5 = vshrl.u32 %v18572_v40, 16 }
 0x166   : > { %v862_v63 = vsel %vm18408_vm4, %v857_v51, %v861_v25  ;;  %v871_v1 = vrot.slane %v870_v52, 4  ;;  %v890_v13 = vrot.slane %v888_v58, 4  ;;  %v907_v24 = vshll.u32 %v18578_v47, 16  ;;  %v18602_v25 = vld [vmem:[%s18354_s12 + $0xa8] sm:$0xf] }
 0x167   : > { %v13791_v10 = vcombine.low %v852_v50, %v862_v63  ;;  %v881_v12 = vrot.slane %v880_v56, 4  ;;  %v893_v14 = vrot.slane %v891_v59, 5  ;;  %v899_v21 = vrot.slane %v897_v2, 5  ;;  %v18615_v52 = vld [vmem:[%s18354_s12 + $0xb0] sm:$0x1] }
 0x168   : > { %v876_v18 = vsel %vm18408_vm4, %v871_v1, %v875_v43  ;;  %v903_v23 = vrot.slane %v901_v5, 4  ;;  %v912_v33 = vshrl.u32 %v18583_v54, 16  ;;  %v915_v36 = vshll.u32 %v18583_v54, 16  ;;  %22785 = vst [vmem:[#allocation36_spill] sm:$0xff] %v18615_v52  ;;  %v18618_v56 = vld [vmem:[%s18354_s12 + $0xb4] sm:$0xf] }
 0x169   : > { %15631 = vmatprep.mubr.msk.bf16.mxu0 %vm1141_vm5, %v13791_v10  ;;  %v886_v26 = vsel %vm18408_vm4, %v881_v12, %v885_v57  ;;  %v894_v28 = vor.u32 %v893_v14, %v890_v13  ;;  %v909_v43 = vrot.slane %v907_v24, 5  ;;  %v921_v44 = vshll.u32 %v18588_v61, 16  ;;  %v18626_v12 = vld [vmem:[%s18354_s12 + $0xb8] sm:$0xf] }
 0x16a   : > { %v13792_v39 = vcombine.low %v876_v18, %v886_v26  ;;  %v904_v42 = vor.u32 %v903_v23, %v899_v21  ;;  %v914_v49 = vrot.slane %v912_v33, 4  ;;  %v917_v50 = vrot.slane %v915_v36, 5  ;;  %v18633_v33 = vld [vmem:[%s18354_s12 + $0xbc] sm:$0x1] }
 0x16b   : > { %v895_v45 = vrot.slane %v894_v28, 4  ;;  %v925_v51 = vshrl.u32 %v18588_v61, 16  ;;  %v923_v58 = vrot.slane %v921_v44, 5  ;;  %v931_v59 = vshll.u32 %v18596_v17, 16  ;;  %22786 = vst [vmem:[#allocation37_spill] sm:$0xff] %v18633_v33 }
 0x16c   : > { %v905_v57 = vrot.slane %v904_v42, 4  ;;  %v936_v63 = vshrl.u32 %v18602_v25, 16  ;;  %v918_v2 = vor.u32 %v917_v50, %v914_v49  ;;  %v939_v10 = vshll.u32 %v18602_v25, 16  ;;  %v18711_v17 = vld [vmem:[%s18354_s12 + $0xec] sm:$0x1] }
 0x16d   : > { %v900_v1 = vsel %vm18408_vm4, %v895_v45, %v899_v21  ;;  %v927_v5 = vrot.slane %v925_v51, 4  ;;  %15632 = vmatmul.mubr.msk.bf16.gmra.mrb[20].mxu0 %vm1141_vm5, %v13792_v39  ;;  %v933_v14 = vrot.slane %v931_v59, 5  ;;  %v945_v23 = vshll.u32 %v18610_v37, 16 }
 0x16e   : > { %v910_v13 = vsel %vm18408_vm4, %v905_v57, %v909_v43  ;;  %v938_v18 = vrot.slane %v936_v63, 4  ;;  %v919_v26 = vrot.slane %v918_v2, 4  ;;  %v941_v21 = vrot.slane %v939_v10, 5  ;;  %v575_v43 = vld [vmem:[#allocation9] sm:$0x3] }
 0x16f   : > { %v13793_v24 = vcombine.low %v900_v1, %v910_v13  ;;  %v928_v28 = vor.u32 %v927_v5, %v923_v58  ;;  %v947_v36 = vrot.slane %v945_v23, 5  ;;  %v949_v42 = vshrl.u32 %v18610_v37, 16  ;;  %v18643_v57 = vld [vmem:[%s18354_s12 + $0xc0] sm:$0xf]  ;;  %v18647_v5 = vld [vmem:[%s18354_s12 + $0xc4] sm:$0xf] }
 0x170   : > { %v955_v39 = vshll.u32 %v18615_v52, 16  ;;  %v960_v44 = vshrl.u32 %v18618_v56, 16  ;;  %v924_v45 = vsel %vm18408_vm4, %v919_v26, %v923_v58  ;;  %v942_v50 = vor.u32 %v941_v21, %v938_v18  ;;  %v18653_v18 = vld [vmem:[%s18354_s12 + $0xc8] sm:$0x1] }
 0x171   : > { %15635 = vmatprep.mubr.msk.bf16.mxu0 %vm1141_vm5, %v13793_v24  ;;  %v929_v49 = vrot.slane %v928_v28, 4  ;;  %v963_v51 = vshll.u32 %v18618_v56, 16  ;;  %v951_v59 = vrot.slane %v949_v42, 4  ;;  %v969_v2 = vshll.u32 %v18626_v12, 16  ;;  %22787 = vst [vmem:[#allocation38_spill] sm:$0xff] %v18653_v18 }
 0x172   : > { %v957_v63 = vrot.slane %v955_v39, 5  ;;  %v962_v1 = vrot.slane %v960_v44, 4  ;;  %v943_v13 = vrot.slane %v942_v50, 4  ;;  %v973_v58 = vshrl.u32 %v18626_v12, 16 }
 0x173   : > { %v934_v10 = vsel %vm18408_vm4, %v929_v49, %v933_v14  ;;  %v965_v23 = vrot.slane %v963_v51, 5  ;;  %v952_v26 = vor.u32 %v951_v59, %v947_v36  ;;  %v971_v28 = vrot.slane %v969_v2, 5  ;;  %v18660_v14 = vld [vmem:[%s18354_s12 + $0xcc] sm:$0xf]  ;;  %v18666_v59 = vld [vmem:[%s18354_s12 + $0xd0] sm:$0xf] }
 0x174   : > { %v13794_v24 = vcombine.low %v924_v45, %v934_v10  ;;  %v979_v21 = vshll.u32 %v18633_v33, 16  ;;  %v948_v42 = vsel %vm18408_vm4, %v943_v13, %v947_v36  ;;  %v975_v44 = vrot.slane %v973_v58, 4 }
 0x175   : > { %v966_v39 = vor.u32 %v965_v23, %v962_v1  ;;  %v1563_v31 = vand.u32 %v18378_v4, %v575_v43  ;;  %v953_v49 = vrot.slane %v952_v26, 4  ;;  %v984_v45 = vshrl.u32 %v18643_v57, 16 }
 0x176   : > { %15636 = vmatmul.mubr.msk.bf16.gmra.mrb[24].mxu0 %vm1141_vm5, %v13794_v24  ;;  %v981_v50 = vrot.slane %v979_v21, 5  ;;  %v987_v51 = vshll.u32 %v18643_v57, 16  ;;  %v976_v36 = vor.u32 %v975_v44, %v971_v28  ;;  %v993_v1 = vshll.u32 %v18647_v5, 16  ;;  %v18674_v24 = vld [vmem:[%s18354_s12 + $0xd4] sm:$0x1] }
 0x177   : > { %v967_v2 = vrot.slane %v966_v39, 4  ;;  %15651 = vmatprep.subr.bf16.mxu0 %v1563_v31  ;;  %v997_v43 = vshrl.u32 %v18647_v5, 16  ;;  %v958_v10 = vsel %vm18408_vm4, %v953_v49, %v957_v63  ;;  %v986_v13 = vrot.slane %v984_v45, 4  ;;  %22788 = vst [vmem:[#allocation39_spill] sm:$0xff] %v18674_v24  ;;  %v18683_v63 = vld [vmem:[%s18354_s12 + $0xdc] sm:$0xf] }
 0x178   : > { %15652 = vmatpush3.bf16.msra.mxu0 %v1563_v31  ;;  %v989_v23 = vrot.slane %v987_v51, 5  ;;  %v1003_v58 = vshll.u32 %v18653_v18, 16  ;;  %v13795_v26 = vcombine.low %v948_v42, %v958_v10  ;;  %v977_v39 = vrot.slane %v976_v36, 4  ;;  %v18708_v18 = vld [vmem:[%s18354_s12 + $0xe8] sm:$0xf] }
 0x179   : > { %v972_v21 = vsel %vm18408_vm4, %v967_v2, %v971_v28  ;;  %v995_v44 = vrot.slane %v993_v1, 5  ;;  %v999_v9 = vrot.slane %v997_v43, 4  ;;  %v1008_v31 = vshrl.u32 %v18660_v14, 16 }
 0x17a   : > { %v990_v0 = vor.u32 %v989_v23, %v986_v13  ;;  %v1005_v33 = vrot.slane %v1003_v58, 5  ;;  %15639 = vmatprep.mubr.msk.bf16.mxu0 %vm1141_vm5, %v13795_v26  ;;  %v982_v42 = vsel %vm18408_vm4, %v977_v39, %v981_v50  ;;  %v1011_v28 = vshll.u32 %v18660_v14, 16  ;;  %v18693_v58 = vld [vmem:[%s18354_s12 + $0xe0] sm:$0x1]  ;;  %v18696_v26 = vld [vmem:[%s18354_s12 + $0xe4] sm:$0xf] }
 0x17b   : > { %v1017_v49 = vshll.u32 %v18666_v59, 16  ;;  %v1021_v45 = vshrl.u32 %v18666_v59, 16  ;;  %v13796_v51 = vcombine.low %v972_v21, %v982_v42  ;;  %v1000_v36 = vor.u32 %v999_v9, %v995_v44 }
 0x17c   : > { %v991_v2 = vrot.slane %v990_v0, 4  ;;  %v1010_v1 = vrot.slane %v1008_v31, 4  ;;  %v1013_v43 = vrot.slane %v1011_v28, 5  ;;  %v1027_v23 = vshll.u32 %v18674_v24, 16 }
 0x17d   : > { %v1019_v10 = vrot.slane %v1017_v49, 5  ;;  %v1023_v13 = vrot.slane %v1021_v45, 4  ;;  %v1001_v39 = vrot.slane %v1000_v36, 4  ;;  %v1032_v0 = vshrl.u32 %v18679_v38, 16 }
 0x17e   : > { %15640 = vmatmul.mubr.msk.bf16.gmra.mrb[28].mxu0 %vm1141_vm5, %v13796_v51  ;;  %v996_v50 = vsel %vm18408_vm4, %v991_v2, %v995_v44  ;;  %v1035_v9 = vshll.u32 %v18679_v38, 16  ;;  %v1014_v21 = vor.u32 %v1013_v43, %v1010_v1  ;;  %v1029_v42 = vrot.slane %v1027_v23, 5 }
 0x17f   : > { %v1024_v31 = vor.u32 %v1023_v13, %v1019_v10  ;;  %v1041_v28 = vshll.u32 %v18683_v63, 16  ;;  %v1006_v49 = vsel %vm18408_vm4, %v1001_v39, %v1005_v33  ;;  %v1034_v45 = vrot.slane %v1032_v0, 4 }
 0x180   : > { %v1037_v24 = vrot.slane %v1035_v9, 5  ;;  %v1045_v51 = vshrl.u32 %v18683_v63, 16  ;;  %v13797_v44 = vcombine.low %v996_v50, %v1006_v49  ;;  %v1015_v2 = vrot.slane %v1014_v21, 4 }
 0x181   : > { %v1025_v36 = vrot.slane %v1024_v31, 4  ;;  %v1043_v52 = vrot.slane %v1041_v28, 5  ;;  %v1051_v13 = vshll.u32 %v18693_v58, 16  ;;  %v1056_v23 = vshrl.u32 %v18696_v26, 16 }
 0x182   : > { %v1038_v1 = vor.u32 %v1037_v24, %v1034_v45  ;;  %v1047_v43 = vrot.slane %v1045_v51, 4  ;;  %15643 = vmatprep.mubr.msk.bf16.mxu0 %vm1141_vm5, %v13797_v44  ;;  %v1020_v33 = vsel %vm18408_vm4, %v1015_v2, %v1019_v10  ;;  %v1059_v50 = vshll.u32 %v18696_v26, 16 }
 0x183   : > { %v1030_v39 = vsel %vm18408_vm4, %v1025_v36, %v1029_v42  ;;  %v1065_v0 = vshll.u32 %v18708_v18, 16  ;;  %v1053_v31 = vrot.slane %v1051_v13, 5  ;;  %v1058_v28 = vrot.slane %v1056_v23, 4 }
 0x184   : > { %v13798_v9 = vcombine.low %v1020_v33, %v1030_v39  ;;  %v1039_v21 = vrot.slane %v1038_v1, 4  ;;  %v1048_v24 = vor.u32 %v1047_v43, %v1043_v52  ;;  %v1061_v49 = vrot.slane %v1059_v50, 5  ;;  %v1962_v39 = vld [vmem:[#allocation9 + $0x4] sm:$0x3] }
 0x185   : > { %v1067_v45 = vrot.slane %v1065_v0, 5  ;;  %v1069_v51 = vshrl.u32 %v18708_v18, 16  ;;  %v1075_v42 = vshll.u32 %v18711_v17, 16  ;;  %v13821_v50 = vcombine.low %v18381_v6, %v18384_v7 }
 0x186   : > { %15644 = vmatmul.mubr.msk.bf16.gmra.mrb[32].mxu0 %vm1141_vm5, %v13798_v9  ;;  %v1044_v10 = vsel %vm18408_vm4, %v1039_v21, %v1043_v52  ;;  %v1049_v44 = vrot.slane %v1048_v24, 4  ;;  %v1062_v2 = vor.u32 %v1061_v49, %v1058_v28  ;;  %v13832_v9 = vcombine.low %v18550_v62, %v18556_v8 }
 0x187   : > { %v1071_v36 = vrot.slane %v1069_v51, 4  ;;  %v1077_v33 = vrot.slane %v1075_v42, 5  ;;  %v13833_v21 = vcombine.low %v18569_v32, %v18572_v40  ;;  %v13834_v24 = vcombine.low %v18583_v54, %v18588_v61  ;;  %v17532_v32 = vld [vmem:[%s18354_s12 + $0x8] sm:$0x1] }
 0x188   : > { %v1054_v1 = vsel %vm18408_vm4, %v1049_v44, %v1053_v31  ;;  %v1063_v13 = vrot.slane %v1062_v2, 4  ;;  %v13835_v31 = vcombine.low %v18602_v25, %v18610_v37  ;;  %v13836_v6 = vcombine.low %v18618_v56, %v18626_v12 }
 0x189   : > { %v13799_v43 = vcombine.low %v1044_v10, %v1054_v1  ;;  %v1072_v23 = vor.u32 %v1071_v36, %v1067_v45  ;;  %v2084_v7 = vand.u32 %v1962_v39, %v18378_v4  ;;  %v13837_v49 = vcombine.low %v18643_v57, %v18647_v5 }
 0x18a   : > { %v1068_v52 = vsel %vm18408_vm4, %v1063_v13, %v1067_v45  ;;  %v13822_v42 = vcombine.low %v18393_v15, %v18396_v19  ;;  %v13823_v2 = vcombine.low %v18404_v29, %v18413_v35  ;;  %v13824_v36 = vcombine.low %v18423_v48, %v18428_v53  ;;  %v1770_v13 = vld [vmem:[%s18354_s12 + $0x90] sm:$0xe]  ;;  %v1771_v29 = vld [vmem:[%s18354_s12 + $0x9c] sm:$0xe] }
 0x18b   : > { %15647 = vmatprep.mubr.msk.bf16.mxu0 %vm1141_vm5, %v13799_v43  ;;  %v1073_v0 = vrot.slane %v1072_v23, 4  ;;  %15693 = vmatprep.subr.bf16.mxu0 %v2084_v7  ;;  %v13825_v1 = vcombine.low %v18440_v3, %v18443_v11  ;;  %v1769_v43 = vld [vmem:[%s18354_s12 + $0x84] sm:$0xe]  ;;  %v1900_v19 = vrot.slane %v18556_v8, 5  ;;  %v13826_v35 = vcombine.low %v18456_v27, %v18459_v34  ;;  %v1772_v23 = vld [vmem:[%s18354_s12 + $0xa8] sm:$0xe] }
 0x18c   : > { %v13872_v15 = vrot.slane %v1769_v43, 9  ;;  %v1903_v53 = vrot.slane %v18561_v20, 5  ;;  %v13873_v3 = vrot.slane %v1770_v13, 9  ;;  %v1907_v11 = vrot.slane %v18572_v40, 5  ;;  %v1758_v8 = vld [vmem:[%s18354_s12] sm:$0xe] }
 0x18d   : > { %v1078_v28 = vsel %vm18408_vm4, %v1073_v0, %v1077_v33  ;;  %v13827_v33 = vcombine.low %v18470_v55, %v18476_v60  ;;  %v13828_v39 = vcombine.low %v18487_v16, %v18492_v22  ;;  %v1902_v34 = vrot.slane %v1900_v19, 4  ;;  %v2361_v60 = vld [vmem:[#allocation9 + $0x6] sm:$0x3] }
 0x18e   : > { %v13800_v10 = vcombine.low %v1068_v52, %v1078_v28  ;;  %v18788_v27 = vsel %vm18775_vm8, %v13872_v15, %v1900_v19  ;;  %v13829_v20 = vcombine.low %v18503_v41, %v18508_v46  ;;  %v18795_v52 = vsel %vm18775_vm8, %v13873_v3, %v1907_v11  ;;  %v1775_v15 = vld [vmem:[%s18354_s12 + $0xcc] sm:$0xe]  ;;  %v22792_v3 = vld [vmem:[#allocation36_spill] sm:$0xff] }
 0x18f   : > { %v1909_v0 = vrot.slane %v1907_v11, 4  ;;  %v1910_v55 = vrot.slane %v18578_v47, 5  ;;  %v18801_v28 = vsel %vm18775_vm8, %v1902_v34, %v1903_v53  ;;  %v13875_v13 = vrot.slane %v1772_v23, 9  ;;  %v17531_v46 = vld [vmem:[%s18354_s12 + $0x4] sm:$0xf] }
 0x190   : > { %15648 = vmatmul.mubr.msk.bf16.gmra.mrb[36].mxu0 %vm1141_vm5, %v13800_v10  ;;  %v13874_v10 = vrot.slane %v1771_v29, 9  ;;  %v1921_v47 = vrot.slane %v18610_v37, 5  ;;  %v1924_v11 = vrot.slane %v22792_v3, 5  ;;  %v1823_v62 = vrot.slane %v17531_v46, 5  ;;  %v17533_v37 = vld [vmem:[%s18354_s12 + $0x10] sm:$0xf] }
 0x191   : > { %15653 = vmatprep.mubr.msk.bf16.mxu0 %vm1141_vm5, %v13821_v50  ;;  %v1773_v50 = vld [vmem:[%s18354_s12 + $0xb4] sm:$0xe]  ;;  %v18809_v43 = vsel %vm18775_vm8, %v1909_v0, %v1910_v55  ;;  %v1928_v55 = vrot.slane %v18626_v12, 5  ;;  %v1826_v40 = vrot.slane %v17532_v32, 5  ;;  %v13861_v54 = vrot.slane %v1758_v8, 9 }
 0x192   : > { %v18822_v34 = vsel %vm18775_vm8, %v13875_v13, %v1921_v47  ;;  %v1923_v23 = vrot.slane %v1921_v47, 4  ;;  %v13876_v0 = vrot.slane %v1773_v50, 9  ;;  %v1777_v47 = vld [vmem:[%s18354_s12 + $0xe4] sm:$0xe]  ;;  %v22800_v25 = vcombine.low %v18660_v14, %v18666_v59  ;;  %v17539_v32 = vld [vmem:[%s18354_s12 + $0x2c] sm:$0x1] }
 0x193   : > { %v13880_v45 = vrot.slane %v1777_v47, 9  ;;  %v1830_v56 = vrot.slane %v17533_v37, 5  ;;  %v22801_v12 = vcombine.low %v18679_v38, %v18683_v63  ;;  %v1824_v57 = vsel %vm18775_vm8, %v13861_v54, %v1823_v62 }
 0x194   : > { %v18840_v13 = vsel %vm18775_vm8, %v1923_v23, %v1924_v11  ;;  %v1942_v23 = vrot.slane %v18666_v59, 5  ;;  %v1760_v59 = vld [vmem:[%s18354_s12 + $0x18] sm:$0xe]  ;;  %vm6437_vm9 = vcmask 253952   ;;  %vm6458_vm10 = vcmask 254977  }
 0x195   : > { %v1832_v38 = vrot.slane %v1830_v56, 4  ;;  %vm6600_vm14 = vcmask 1044484   ;;  %vm6762_vm3 = vcmask 257025   ;;  %vm6764_vm6 = vcmask 257024  }
 0x198   : > { %15654 = vmatmul.mubr.msk.bf16.vlgmr.msra.gmra.mrb[0].mxu0 %vm1141_vm5, %v13822_v42  ;;  %v1914_v42 = vrot.slane %v18588_v61, 5  ;;  %v1825_v61 = vrot.slane %v1823_v62, 4 }
 0x199   : > { %15657 = vmatprep.mubr.msk.bf16.mxu0 %vm1141_vm5, %v13823_v2  ;;  %15694 = vmatpush3.bf16.msra.mxu0 %v2084_v7  ;;  %v1774_v7 = vld [vmem:[%s18354_s12 + $0xc0] sm:$0xe]  ;;  %v22791_v2 = vld [vmem:[#allocation35_spill] sm:$0xff] }
 0x19a   : > { %v18817_v29 = vsel %vm18775_vm8, %v13874_v10, %v1914_v42  ;;  %v1916_v53 = vrot.slane %v1914_v42, 4  ;;  %v22793_v10 = vld [vmem:[#allocation37_spill] sm:$0xff]  ;;  %v18832_v42 = vand.u32 %v2361_v60, %v18378_v4  ;;  %v13877_v3 = vrot.slane %v1774_v7, 9  ;;  %v22794_v7 = vld [vmem:[#allocation38_spill] sm:$0xff] }
 0x19b   : > { %v1931_v19 = vrot.slane %v22793_v10, 5  ;;  %v13878_v10 = vrot.slane %v1775_v15, 9 }
 0x19c   : > { %15735 = vmatprep.subr.bf16.mxu0 %v18832_v42 }
 0x19d   : > { %v18867_v15 = vsel %vm18775_vm8, %v13878_v10, %v1942_v23 }
 0x1a0   : > { %15658 = vmatmul.mubr.msk.bf16.gmra.mrb[4].mxu0 %vm1141_vm5, %v13824_v36  ;;  %v1917_v36 = vrot.slane %v22791_v2, 5 }
 0x1a1   : > { %15661 = vmatprep.mubr.msk.bf16.mxu0 %vm1141_vm5, %v13825_v1  ;;  %v1776_v1 = vld [vmem:[%s18354_s12 + $0xd8] sm:$0xe] }
 0x1a2   : > { %v18828_v2 = vsel %vm18775_vm8, %v1916_v53, %v1917_v36  ;;  %v1930_v36 = vrot.slane %v1928_v55, 4  ;;  %v1938_v53 = vrot.slane %v22794_v7, 5  ;;  %v1949_v7 = vrot.slane %v18683_v63, 5 }
 0x1a3   : > { %v13863_v63 = vrot.slane %v1760_v59, 9  ;;  %v17542_v59 = vld [vmem:[%s18354_s12 + $0x4c] sm:$0xf] }
 0x1a4   : > { %v18854_v11 = vsel %vm18775_vm8, %v1930_v36, %v1931_v19  ;;  %v1944_v19 = vrot.slane %v1942_v23, 4  ;;  %v1952_v36 = vrot.slane %v18693_v58, 5  ;;  %v1959_v58 = vrot.slane %v18711_v17, 5 }
 0x1a8   : > { %15662 = vmatmul.mubr.msk.bf16.gmra.mrb[8].mxu0 %vm1141_vm5, %v13826_v35  ;;  %v18844_v35 = vsel %vm18775_vm8, %v13876_v0, %v1928_v55  ;;  %v22795_v0 = vld [vmem:[#allocation39_spill] sm:$0xff]  ;;  %v13879_v55 = vrot.slane %v1776_v1, 9 }
 0x1a9   : > { %15665 = vmatprep.mubr.msk.bf16.mxu0 %vm1141_vm5, %v13827_v33  ;;  %v1935_v33 = vrot.slane %v18647_v5, 5  ;;  %v1945_v50 = vrot.slane %v22795_v0, 5  ;;  %v1827_v5 = vsel %vm18775_vm8, %v1825_v61, %v1826_v40  ;;  %v1847_v40 = vrot.slane %v17539_v32, 5 }
 0x1aa   : > { %v18876_v0 = vsel %vm18775_vm8, %v13879_v55, %v1949_v7  ;;  %v22798_v55 = vld [vmem:[#allocation34_spill] sm:$0xff] }
 0x1ab   : > { %v18862_v60 = vsel %vm18775_vm8, %v13877_v3, %v1935_v33  ;;  %v1937_v51 = vrot.slane %v1935_v33, 4  ;;  %v1951_v3 = vrot.slane %v1949_v7, 4  ;;  %v1956_v33 = vrot.slane %v18708_v18, 5  ;;  %v22799_v7 = vld [vmem:[#allocation33_spill] sm:$0xff] }
 0x1ac   : > { %v18883_v10 = vsel %vm18775_vm8, %v1944_v19, %v1945_v50  ;;  %v13831_v41 = vcombine.low %v22799_v7, %v22798_v55  ;;  %v17536_v19 = vld [vmem:[%s18354_s12 + $0x20] sm:$0x1]  ;;  %v1762_v7 = vld [vmem:[%s18354_s12 + $0x30] sm:$0xe] }
 0x1ad   : > { %v18872_v1 = vsel %vm18775_vm8, %v1937_v51, %v1938_v53  ;;  %v13898_v51 = vcombine.low %v18867_v15, %v18883_v10  ;;  %v18894_v47 = vsel %vm18775_vm8, %v1951_v3, %v1952_v36  ;;  %v18898_v53 = vsel %vm18775_vm8, %v13880_v45, %v1956_v33  ;;  %v22796_v45 = vld [vmem:[#allocation32_spill] sm:$0xff] }
 0x1ae   : > { %v13897_v44 = vcombine.low %v18862_v60, %v18872_v1  ;;  %v1958_v50 = vrot.slane %v1956_v33, 4  ;;  %v13899_v16 = vcombine.low %v18876_v0, %v18894_v47  ;;  %v1840_v36 = vrot.slane %v17536_v19, 5  ;;  %v17387_v60 = vld [vmem:[%s18354_s12 + $0x60] sm:$0xff]   ;;  %v17389_v15 = vld [vmem:[%s18354_s12 + $0x78] sm:$0xff]   ;;  %v17391_v0 = vld [vmem:[%s18354_s12 + $0x90] sm:$0xff]  }
 0x1af   : > { %v22802_v3 = vcombine.low %v18696_v26, %v18708_v18  ;;  %v1761_v26 = vld [vmem:[%s18354_s12 + $0x24] sm:$0xe]  ;;  %v13865_v54 = vrot.slane %v1762_v7, 9  ;;  %v1765_v7 = vld [vmem:[%s18354_s12 + $0x54] sm:$0xe]  ;;  %v17392_v10 = vld [vmem:[%s18354_s12 + $0x9c] sm:$0xff]  }
 0x1b0   : > { %15666 = vmatmul.mubr.msk.bf16.gmra.mrb[12].mxu0 %vm1141_vm5, %v13828_v39  ;;  %v18908_v22 = vsel %vm18775_vm8, %v1958_v50, %v1959_v58  ;;  %v22797_v39 = vld [vmem:[#allocation31_spill] sm:$0xff]  ;;  %v17537_v50 = vld [vmem:[%s18354_s12 + $0x28] sm:$0xf]  ;;  %v13864_v62 = vrot.slane %v1761_v26, 9 }
 0x1b1   : > { %15669 = vmatprep.mubr.msk.bf16.mxu0 %vm1141_vm5, %v13829_v20  ;;  %v13900_v17 = vcombine.low %v18898_v53, %v18908_v22  ;;  %v13830_v23 = vcombine.low %v22797_v39, %v22796_v45  ;;  %v1844_v45 = vrot.slane %v17537_v50, 5  ;;  %v17390_v1 = vld [vmem:[%s18354_s12 + $0x84] sm:$0xff]   ;;  %v17394_v53 = vld [vmem:[%s18354_s12 + $0xb4] sm:$0xff]  }
 0x1b2   : > { %v17393_v47 = vld [vmem:[%s18354_s12 + $0xa8] sm:$0xff]   ;;  %v14004_v22 = vld [vmem:[%s18354_s12 + $0x18] sm:$0xf] }
 0x1b3   : > { %v1846_v8 = vrot.slane %v1844_v45, 4 }
 0x1b8   : > { %15670 = vmatmul.mubr.msk.bf16.gmra.mrb[16].mxu0 %vm1141_vm5, %v13830_v23  ;;  %v17538_v23 = vld [vmem:[%s18354_s12 + $0x34] sm:$0xf] }
 0x1b9   : > { %15673 = vmatprep.mubr.msk.bf16.mxu0 %vm1141_vm5, %v13831_v41  ;;  %v1851_v55 = vrot.slane %v17538_v23, 5 }
 0x1bb   : > { %v1853_v61 = vrot.slane %v1851_v55, 4 }
 0x1c0   : > { %15674 = vmatmul.mubr.msk.bf16.gmra.mrb[20].mxu0 %vm1141_vm5, %v13832_v9  ;;  %v1759_v9 = vld [vmem:[%s18354_s12 + $0xc] sm:$0xe] }
 0x1c1   : > { %15677 = vmatprep.mubr.msk.bf16.mxu0 %vm1141_vm5, %v13833_v21  ;;  %v17534_v21 = vld [vmem:[%s18354_s12 + $0x1c] sm:$0xf] }
 0x1c2   : > { %v1837_v14 = vrot.slane %v17534_v21, 5 }
 0x1c4   : > { %v1839_v20 = vrot.slane %v1837_v14, 4  ;;  %v1838_v39 = vsel %vm18775_vm8, %v13863_v63, %v1837_v14  ;;  %v1763_v14 = vld [vmem:[%s18354_s12 + $0x3c] sm:$0xe] }
 0x1c6   : > { %v1841_v18 = vsel %vm18775_vm8, %v1839_v20, %v1840_v36  ;;  %v17543_v20 = vld [vmem:[%s18354_s12 + $0x44] sm:$0x1] }
 0x1c7   : > { %v13883_v46 = vcombine.low %v1838_v39, %v1841_v18  ;;  %v1861_v19 = vrot.slane %v17543_v20, 5  ;;  %v17545_v39 = vld [vmem:[%s18354_s12 + $0x58] sm:$0xf] }
 0x1c8   : > { %15678 = vmatmul.mubr.msk.bf16.gmra.mrb[24].mxu0 %vm1141_vm5, %v13834_v24  ;;  %v17535_v24 = vld [vmem:[%s18354_s12 + $0x14] sm:$0x1]  ;;  %v1872_v18 = vrot.slane %v17545_v39, 5 }
 0x1c9   : > { %15681 = vmatprep.mubr.msk.bf16.mxu0 %vm1141_vm5, %v13835_v31  ;;  %v1833_v31 = vrot.slane %v17535_v24, 5  ;;  %v1865_v24 = vrot.slane %v17542_v59, 5 }
 0x1cb   : > { %v1834_v58 = vsel %vm18775_vm8, %v1832_v38, %v1833_v31  ;;  %v1764_v31 = vld [vmem:[%s18354_s12 + $0x48] sm:$0xe]  ;;  %v13866_v38 = vrot.slane %v1763_v14, 9  ;;  %v1867_v36 = vrot.slane %v1865_v24, 4 }
 0x1d0   : > { %15682 = vmatmul.mubr.msk.bf16.gmra.mrb[28].mxu0 %vm1141_vm5, %v13836_v6  ;;  %v13881_v6 = vcombine.low %v1824_v57, %v1827_v5  ;;  %v17541_v57 = vld [vmem:[%s18354_s12 + $0x40] sm:$0xf] }
 0x1d1   : > { %15685 = vmatprep.mubr.msk.bf16.mxu0 %vm1141_vm5, %v13837_v49  ;;  %v13862_v49 = vrot.slane %v1759_v9, 9  ;;  %v1858_v5 = vrot.slane %v17541_v57, 5  ;;  %v1852_v9 = vsel %vm18775_vm8, %v13865_v54, %v1851_v55  ;;  %v1874_v54 = vrot.slane %v1872_v18, 4 }
 0x1d3   : > { %v1831_v33 = vsel %vm18775_vm8, %v13862_v49, %v1830_v56  ;;  %v1845_v56 = vsel %vm18775_vm8, %v13864_v62, %v1844_v45  ;;  %v1860_v63 = vrot.slane %v1858_v5, 4  ;;  %v1859_v50 = vsel %vm18775_vm8, %v13866_v38, %v1858_v5  ;;  %v1766_v62 = vld [vmem:[%s18354_s12 + $0x60] sm:$0xe]  ;;  %v1768_v38 = vld [vmem:[%s18354_s12 + $0x78] sm:$0xe] }
 0x1d4   : > { %v13882_v41 = vcombine.low %v1831_v33, %v1834_v58  ;;  %v3299_v58 = vld [vmem:[#allocation9 + $0x8] sm:$0x3] }
 0x1d5   : > { %v1862_v45 = vsel %vm18775_vm8, %v1860_v63, %v1861_v19  ;;  %v19007_v26 = vand.u32 %v3299_v58, %v18378_v4 }
 0x1d8   : > { %15686 = vmatmul.mubr.msk.bf16.gmra.mrb[32].mxu0 %vm1141_vm5, %v22800_v25  ;;  %v17540_v25 = vld [vmem:[%s18354_s12 + $0x38] sm:$0x1] }
 0x1d9   : > { %15689 = vmatprep.mubr.msk.bf16.mxu0 %vm1141_vm5, %v22801_v12  ;;  %v1854_v37 = vrot.slane %v17540_v25, 5  ;;  %v1848_v12 = vsel %vm18775_vm8, %v1846_v8, %v1847_v40  ;;  %v13886_v8 = vcombine.low %v1859_v50, %v1862_v45  ;;  %v13868_v40 = vrot.slane %v1765_v7, 9  ;;  %v17552_v50 = vld [vmem:[%s18354_s12 + $0x80] sm:$0x1] }
 0x1da   : > { %v1896_v45 = vrot.slane %v17552_v50, 5 }
 0x1db   : > { %v1855_v21 = vsel %vm18775_vm8, %v1853_v61, %v1854_v37  ;;  %v17547_v61 = vld [vmem:[%s18354_s12 + $0x5c] sm:$0x1]  ;;  %v13869_v37 = vrot.slane %v1766_v62, 9  ;;  %v1873_v5 = vsel %vm18775_vm8, %v13868_v40, %v1872_v18  ;;  %v22804_v62 = vcombine.low %v18795_v52, %v18809_v43  ;;  %v17380_v52 = vld [vmem:[%s18354_s12 + $0xc] sm:$0xff]  }
 0x1dc   : > { %v13885_v49 = vcombine.low %v1852_v9, %v1855_v21  ;;  %v1875_v25 = vrot.slane %v17547_v61, 5  ;;  %v17549_v21 = vld [vmem:[%s18354_s12 + $0x70] sm:$0xf]  ;;  %v19122_v40 = vld [vmem:[%s18354_s12 + $0x1c] sm:$0xf] }
 0x1dd   : > { %v1886_v14 = vrot.slane %v17549_v21, 5  ;;  %v17383_v43 = vld [vmem:[%s18354_s12 + $0x30] sm:$0xff]  }
 0x1de   : > { %v1876_v9 = vsel %vm18775_vm8, %v1874_v54, %v1875_v25  ;;  %v14007_v54 = vld [vmem:[%s18354_s12 + $0x24] sm:$0xf] }
 0x1df   : > { %v13888_v63 = vcombine.low %v1873_v5, %v1876_v9  ;;  %v2856_v5 = vshrl.u32 %v19122_v40, 16  ;;  %v2867_v9 = vshrl.u32 %v14007_v54, 16  ;;  %v2870_v21 = vshll.u32 %v14007_v54, 16 }
 0x1e0   : > { %15690 = vmatmul.mubr.msk.bf16.gmra.mrb[36].mxu0 %vm1141_vm5, %v22802_v3  ;;  %v17544_v3 = vld [vmem:[%s18354_s12 + $0x50] sm:$0x1] }
 0x1e1   : > { %15695 = vmatprep.mubr.msk.bf16.mxu0 %vm1141_vm5, %v13881_v6  ;;  %v13884_v6 = vcombine.low %v1845_v56, %v1848_v12  ;;  %v1868_v33 = vrot.slane %v17544_v3, 5  ;;  %v17548_v12 = vld [vmem:[%s18354_s12 + $0x68] sm:$0x1]  ;;  %v2872_v50 = vrot.slane %v2870_v21, 5 }
 0x1e2   : > { %v1882_v57 = vrot.slane %v17548_v12, 5  ;;  %v19128_v12 = vld [vmem:[%s18354_s12 + $0x28] sm:$0xf] }
 0x1e3   : > { %v1869_v55 = vsel %vm18775_vm8, %v1867_v36, %v1868_v33  ;;  %v17551_v36 = vld [vmem:[%s18354_s12 + $0x74] sm:$0x1]  ;;  %v13871_v33 = vrot.slane %v1768_v38, 9  ;;  %v14016_v21 = vld [vmem:[%s18354_s12 + $0x48] sm:$0xf] }
 0x1e4   : > { %v1889_v3 = vrot.slane %v17551_v36, 5  ;;  %v19144_v36 = vld [vmem:[%s18354_s12 + $0x14] sm:$0x1] }
 0x1e8   : > { %15696 = vmatmul.mubr.msk.bf16.vlgmr.msra.gmra.mrb[0].mxu0 %vm1141_vm5, %v13882_v41  ;;  %v17546_v41 = vld [vmem:[%s18354_s12 + $0x64] sm:$0xf] }
 0x1e9   : > { %15699 = vmatprep.mubr.msk.bf16.mxu0 %vm1141_vm5, %v13883_v46  ;;  %15736 = vmatpush3.bf16.msra.mxu0 %v18832_v42  ;;  %v13867_v42 = vrot.slane %v1764_v31, 9  ;;  %v1879_v46 = vrot.slane %v17546_v41, 5  ;;  %v1767_v31 = vld [vmem:[%s18354_s12 + $0x6c] sm:$0xe] }
 0x1ea   : > { %15777 = vmatprep.subr.bf16.mxu0 %v19007_v26  ;;  %v13870_v19 = vrot.slane %v1767_v31, 9  ;;  %v2876_v31 = vshll.u32 %v19128_v12, 16 }
 0x1eb   : > { %v1866_v23 = vsel %vm18775_vm8, %v13867_v42, %v1865_v24  ;;  %v1881_v56 = vrot.slane %v1879_v46, 4  ;;  %v1880_v59 = vsel %vm18775_vm8, %v13869_v37, %v1879_v46  ;;  %v1888_v42 = vrot.slane %v1886_v14, 4 }
 0x1ec   : > { %v13887_v32 = vcombine.low %v1866_v23, %v1869_v55  ;;  %v1887_v39 = vsel %vm18775_vm8, %v13870_v19, %v1886_v14  ;;  %v22803_v46 = vcombine.low %v18788_v27, %v18801_v28  ;;  %v22807_v27 = vcombine.low %v18844_v35, %v18854_v11  ;;  %v17382_v28 = vld [vmem:[%s18354_s12 + $0x24] sm:$0xff]   ;;  %v17386_v35 = vld [vmem:[%s18354_s12 + $0x54] sm:$0xff]   ;;  %v17388_v11 = vld [vmem:[%s18354_s12 + $0x6c] sm:$0xff]  }
 0x1ed   : > { %v1883_v24 = vsel %vm18775_vm8, %v1881_v56, %v1882_v57  ;;  %v1890_v18 = vsel %vm18775_vm8, %v1888_v42, %v1889_v3  ;;  %v2843_v37 = vshrl.u32 %v14004_v22, 16  ;;  %v2846_v56 = vshll.u32 %v14004_v22, 16  ;;  %v19141_v42 = vld [vmem:[%s18354_s12 + $0x34] sm:$0xf] }
 0x1ee   : > { %v13889_v20 = vcombine.low %v1880_v59, %v1883_v24  ;;  %v13890_v7 = vcombine.low %v1887_v39, %v1890_v18  ;;  %v2852_v57 = vshll.u32 %v19122_v40, 16  ;;  %v17395_v24 = vld [vmem:[%s18354_s12 + $0xc0] sm:$0xff]  }
 0x1ef   : > { %v2848_v19 = vrot.slane %v2846_v56, 5  ;;  %v19150_v18 = vld [vmem:[%s18354_s12 + $0x20] sm:$0x1] }
 0x1f0   : > { %15700 = vmatmul.mubr.msk.bf16.gmra.mrb[4].mxu0 %vm1141_vm5, %v13884_v6  ;;  %v17550_v6 = vld [vmem:[%s18354_s12 + $0x7c] sm:$0xf]  ;;  %v19146_v3 = vrot.slane %v2852_v57, 5 }
 0x1f1   : > { %15703 = vmatprep.mubr.msk.bf16.mxu0 %vm1141_vm5, %v13885_v49  ;;  %v1893_v49 = vrot.slane %v17550_v6, 5  ;;  %v2880_v6 = vshrl.u32 %v19128_v12, 16 }
 0x1f3   : > { %v1895_v58 = vrot.slane %v1893_v49, 4  ;;  %v1894_v23 = vsel %vm18775_vm8, %v13871_v33, %v1893_v49  ;;  %v14010_v49 = vld [vmem:[%s18354_s12 + $0x30] sm:$0xf]  ;;  %v2858_v33 = vrot.slane %v2856_v5, 4 }
 0x1f5   : > { %v1897_v55 = vsel %vm18775_vm8, %v1895_v58, %v1896_v45  ;;  %v2869_v58 = vrot.slane %v2867_v9, 4  ;;  %v17396_v45 = vld [vmem:[%s18354_s12 + $0xcc] sm:$0xff]   ;;  %v19180_v9 = vld [vmem:[%s18354_s12 + $0x44] sm:$0x1] }
 0x1f6   : > { %v13891_v41 = vcombine.low %v1894_v23, %v1897_v55  ;;  %v2891_v23 = vshrl.u32 %v14010_v49, 16  ;;  %v2894_v55 = vshll.u32 %v14010_v49, 16 }
 0x1f8   : > { %15704 = vmatmul.mubr.msk.bf16.gmra.mrb[8].mxu0 %vm1141_vm5, %v13886_v8  ;;  %v22805_v8 = vcombine.low %v18817_v29, %v18828_v2  ;;  %v17384_v29 = vld [vmem:[%s18354_s12 + $0x3c] sm:$0xff]  }
 0x1f9   : > { %15707 = vmatprep.mubr.msk.bf16.mxu0 %vm1141_vm5, %v13887_v32  ;;  %v22806_v32 = vcombine.low %v18822_v34, %v18840_v13  ;;  %v3877_v34 = vld [vmem:[#allocation9 + $0xa] sm:$0x3]  ;;  %v17385_v13 = vld [vmem:[%s18354_s12 + $0x48] sm:$0xff]  }
 0x1fa   : > { %v19095_v2 = vand.u32 %v3877_v34, %v18378_v4 }
 0x200   : > { %15708 = vmatmul.mubr.msk.bf16.gmra.mrb[12].mxu0 %vm1141_vm5, %v13888_v63 }
 0x201   : > { %15711 = vmatprep.mubr.msk.bf16.mxu0 %vm1141_vm5, %v13889_v20  ;;  %v2845_v20 = vrot.slane %v2843_v37, 4 }
 0x208   : > { %15712 = vmatmul.mubr.msk.bf16.gmra.mrb[16].mxu0 %vm1141_vm5, %v13890_v7  ;;  %v19153_v7 = vld [vmem:[%s18354_s12 + $0x2c] sm:$0x1] }
 0x209   : > { %15715 = vmatprep.mubr.msk.bf16.mxu0 %vm1141_vm5, %v13891_v41  ;;  %v19155_v41 = vrot.slane %v2876_v31, 5  ;;  %v2886_v34 = vshll.u32 %v19153_v7, 16 }
 0x20b   : > { %v2888_v56 = vrot.slane %v2886_v34, 5 }
 0x210   : > { %15716 = vmatmul.mubr.msk.bf16.gmra.mrb[20].mxu0 %vm1141_vm5, %v22803_v46  ;;  %v2882_v46 = vrot.slane %v2880_v6, 4 }
 0x211   : > { %15719 = vmatprep.mubr.msk.bf16.mxu0 %vm1141_vm5, %v22804_v62  ;;  %v2900_v62 = vshll.u32 %v19141_v42, 16 }
 0x218   : > { %15720 = vmatmul.mubr.msk.bf16.gmra.mrb[24].mxu0 %vm1141_vm5, %v22805_v8  ;;  %v2904_v8 = vshrl.u32 %v19141_v42, 16 }
 0x219   : > { %15723 = vmatprep.mubr.msk.bf16.mxu0 %vm1141_vm5, %v22806_v32 }
 0x220   : > { %15724 = vmatmul.mubr.msk.bf16.gmra.mrb[28].mxu0 %vm1141_vm5, %v22807_v27  ;;  %v2838_v27 = vshll.u32 %v19144_v36, 16 }
 0x221   : > { %15727 = vmatprep.mubr.msk.bf16.mxu0 %vm1141_vm5, %v13897_v44  ;;  %v17381_v44 = vld [vmem:[%s18354_s12 + $0x18] sm:$0xff]  }
 0x228   : > { %15728 = vmatmul.mubr.msk.bf16.gmra.mrb[32].mxu0 %vm1141_vm5, %v13898_v51  ;;  %v14001_v51 = vld [vmem:[%s18354_s12 + $0xc] sm:$0xf] }
 0x229   : > { %15731 = vmatprep.mubr.msk.bf16.mxu0 %vm1141_vm5, %v13899_v16  ;;  %v19118_v16 = vld [vmem:[%s18354_s12 + $0x10] sm:$0xf] }
 0x22a   : > { %v2828_v61 = vshll.u32 %v19118_v16, 16  ;;  %v2832_v25 = vshrl.u32 %v19118_v16, 16 }
 0x22c   : > { %v19138_v38 = vrot.slane %v2828_v61, 5  ;;  %v2834_v63 = vrot.slane %v2832_v25, 4 }
 0x22e   : > { %v2835_v32 = vor.u32 %v2834_v63, %v19138_v38 }
 0x230   : > { %15732 = vmatmul.mubr.msk.bf16.gmra.mrb[36].mxu0 %vm1141_vm5, %v13900_v17  ;;  %v2819_v17 = vshrl.u32 %v14001_v51, 16 }
 0x231   : > { %15737 = vmatprep.mubr.msk.bf16.mxu0 %vm1141_vm5, %v17380_v52  ;;  %v2849_v52 = vor.u32 %v2848_v19, %v2845_v20 }
 0x232   : > { %v2821_v14 = vrot.slane %v2819_v17, 4  ;;  %v17397_v17 = vld [vmem:[%s18354_s12 + $0xd8] sm:$0xff]  }
 0x233   : > { %v2850_v54 = vrot.slane %v2849_v52, 4 }
 0x235   : > { %v2855_v19 = vsel %vm18408_vm4, %v2850_v54, %v19146_v3  ;;  %v14025_v54 = vld [vmem:[%s18354_s12 + $0x6c] sm:$0xf] }
 0x238   : > { %15738 = vmatmul.mubr.msk.bf16.vlgmr.msra.gmra.mrb[0].mxu0 %vm1141_vm5, %v17381_v44  ;;  %v2859_v44 = vor.u32 %v2858_v33, %v19146_v3  ;;  %v2934_v33 = vshll.u32 %v19180_v9, 16 }
 0x239   : > { %15741 = vmatprep.mubr.msk.bf16.mxu0 %vm1141_vm5, %v17382_v28  ;;  %15778 = vmatpush3.bf16.msra.mxu0 %v19007_v26  ;;  %v2822_v26 = vshll.u32 %v14001_v51, 16  ;;  %v2862_v28 = vshll.u32 %v19150_v18, 16  ;;  %v2840_v51 = vrot.slane %v2838_v27, 5  ;;  %v2942_v27 = vshll.u32 %v14016_v21, 16 }
 0x23a   : > { %15819 = vmatprep.subr.bf16.mxu0 %v19095_v2  ;;  %v2860_v61 = vrot.slane %v2859_v44, 4  ;;  %v19219_v44 = vld [vmem:[%s18354_s12 + $0x58] sm:$0xf]  ;;  %v19222_v34 = vrot.slane %v2934_v33, 5 }
 0x23b   : > { %v2824_v59 = vrot.slane %v2822_v26, 5  ;;  %v17398_v26 = vld [vmem:[%s18354_s12 + $0xe4] sm:$0xff]   ;;  %v2864_v25 = vrot.slane %v2862_v28, 5  ;;  %v17399_v28 = vld [vmem:[%s18354_s12 + $0xf0] sm:$0xff]  }
 0x23d   : > { %v2825_v39 = vor.u32 %v2824_v59, %v2821_v14 }
 0x240   : > { %15742 = vmatmul.mubr.msk.bf16.gmra.mrb[4].mxu0 %vm1141_vm5, %v17383_v43  ;;  %v2873_v43 = vor.u32 %v2872_v50, %v2869_v58  ;;  %v19197_v58 = vld [vmem:[%s18354_s12 + $0x4c] sm:$0xf]  ;;  %v2939_v50 = vshrl.u32 %v14016_v21, 16 }
 0x241   : > { %15745 = vmatprep.mubr.msk.bf16.mxu0 %vm1141_vm5, %v17384_v29  ;;  %v14013_v29 = vld [vmem:[%s18354_s12 + $0x3c] sm:$0xf]  ;;  %v2948_v52 = vshll.u32 %v19197_v58, 16 }
 0x242   : > { %v2918_v22 = vshll.u32 %v14013_v29, 16  ;;  %v2874_v37 = vrot.slane %v2873_v43, 4 }
 0x244   : > { %v2920_v63 = vrot.slane %v2918_v22, 5 }
 0x248   : > { %15746 = vmatmul.mubr.msk.bf16.gmra.mrb[8].mxu0 %vm1141_vm5, %v17385_v13  ;;  %v2893_v13 = vrot.slane %v2891_v23, 4 }
 0x249   : > { %15749 = vmatprep.mubr.msk.bf16.mxu0 %vm1141_vm5, %v17386_v35  ;;  %v2896_v35 = vrot.slane %v2894_v55, 5 }
 0x24b   : > { %v2897_v57 = vor.u32 %v2896_v35, %v2893_v13  ;;  %v2941_v13 = vrot.slane %v2939_v50, 4 }
 0x250   : > { %15750 = vmatmul.mubr.msk.bf16.gmra.mrb[12].mxu0 %vm1141_vm5, %v17387_v60  ;;  %v2826_v60 = vrot.slane %v2825_v39, 4  ;;  %v19205_v39 = vrot.slane %v2897_v57, 4  ;;  %v19247_v57 = vld [vmem:[%s18354_s12 + $0x50] sm:$0x1] }
 0x251   : > { %15753 = vmatprep.mubr.msk.bf16.mxu0 %vm1141_vm5, %v17388_v11  ;;  %v2883_v11 = vor.u32 %v2882_v46, %v19155_v41 }
 0x252   : > { %v2831_v6 = vsel %vm18408_vm4, %v2826_v60, %v19138_v38  ;;  %v2865_v38 = vsel %vm18408_vm4, %v2860_v61, %v2864_v25  ;;  %v19241_v61 = vld [vmem:[%s18354_s12 + $0x70] sm:$0xf]  ;;  %v2944_v25 = vrot.slane %v2942_v27, 5 }
 0x253   : > { %v2884_v14 = vrot.slane %v2883_v11, 4 }
 0x255   : > { %v2889_v3 = vsel %vm18408_vm4, %v2884_v14, %v2888_v56 }
 0x258   : > { %15754 = vmatmul.mubr.msk.bf16.gmra.mrb[16].mxu0 %vm1141_vm5, %v17389_v15  ;;  %v19169_v15 = vld [vmem:[%s18354_s12 + $0x38] sm:$0x1] }
 0x259   : > { %15757 = vmatprep.mubr.msk.bf16.mxu0 %vm1141_vm5, %v17390_v1  ;;  %v19171_v1 = vrot.slane %v2900_v62, 5  ;;  %v2910_v5 = vshll.u32 %v19169_v15, 16 }
 0x25b   : > { %v19207_v23 = vrot.slane %v2910_v5, 5  ;;  %v2903_v60 = vsel %vm18408_vm4, %v19205_v39, %v19171_v1  ;;  %v2958_v39 = vshll.u32 %v19247_v57, 16 }
 0x260   : > { %15758 = vmatmul.mubr.msk.bf16.gmra.mrb[20].mxu0 %vm1141_vm5, %v17391_v0  ;;  %v2906_v0 = vrot.slane %v2904_v8, 4  ;;  %v14019_v8 = vld [vmem:[%s18354_s12 + $0x54] sm:$0xf] }
 0x261   : > { %15761 = vmatprep.mubr.msk.bf16.mxu0 %vm1141_vm5, %v17392_v10  ;;  %v2836_v10 = vrot.slane %v2835_v32, 4  ;;  %v2963_v11 = vshrl.u32 %v14019_v8, 16 }
 0x262   : > { %v2907_v59 = vor.u32 %v2906_v0, %v19171_v1  ;;  %v2966_v0 = vshll.u32 %v14019_v8, 16 }
 0x263   : > { %v2841_v20 = vsel %vm18408_vm4, %v2836_v10, %v2840_v51  ;;  %v14022_v10 = vld [vmem:[%s18354_s12 + $0x60] sm:$0xf]  ;;  %v19230_v51 = vld [vmem:[%s18354_s12 + $0x64] sm:$0xf] }
 0x264   : > { %v19211_v55 = vrot.slane %v2907_v59, 4  ;;  %v14061_v43 = vcombine.low %v2831_v6, %v2841_v20  ;;  %v2987_v5 = vshrl.u32 %v14022_v10, 16  ;;  %v2990_v21 = vshll.u32 %v14022_v10, 16  ;;  %v19274_v10 = vld [vmem:[%s18354_s12 + $0x74] sm:$0x1] }
 0x265   : > { %v2996_v14 = vshll.u32 %v19230_v51, 16  ;;  %v3000_v59 = vshrl.u32 %v19230_v51, 16  ;;  %v3020_v6 = vshll.u32 %v19241_v61, 16  ;;  %v2968_v20 = vrot.slane %v2966_v0, 5 }
 0x267   : > { %v3002_v8 = vrot.slane %v3000_v59, 4  ;;  %v19293_v59 = vld [vmem:[%s18354_s12 + $0x7c] sm:$0xf] }
 0x268   : > { %15762 = vmatmul.mubr.msk.bf16.gmra.mrb[24].mxu0 %vm1141_vm5, %v17393_v47  ;;  %v19174_v47 = vld [vmem:[%s18354_s12 + $0x40] sm:$0xf] }
 0x269   : > { %15765 = vmatprep.mubr.msk.bf16.mxu0 %vm1141_vm5, %v17394_v53  ;;  %v2915_v53 = vshrl.u32 %v14013_v29, 16  ;;  %v2928_v31 = vshrl.u32 %v19174_v47, 16  ;;  %v14062_v29 = vcombine.low %v2855_v19, %v2865_v38  ;;  %v2945_v38 = vor.u32 %v2944_v25, %v2941_v13 }
 0x26b   : > { %v2917_v49 = vrot.slane %v2915_v53, 4  ;;  %v2930_v62 = vrot.slane %v2928_v31, 4  ;;  %v2913_v53 = vsel %vm18408_vm4, %v19211_v55, %v19207_v23  ;;  %v3014_v31 = vshll.u32 %v14025_v54, 16  ;;  %v19259_v23 = vld [vmem:[%s18354_s12 + $0x5c] sm:$0x1] }
 0x26c   : > { %v2992_v55 = vrot.slane %v2990_v21, 5  ;;  %v2982_v0 = vshll.u32 %v19259_v23, 16 }
 0x26d   : > { %v2921_v32 = vor.u32 %v2920_v63, %v2917_v49  ;;  %v3024_v49 = vshrl.u32 %v19241_v61, 16  ;;  %v2965_v63 = vrot.slane %v2963_v11, 4 }
 0x26f   : > { %v2922_v1 = vrot.slane %v2921_v32, 4  ;;  %v19264_v32 = vld [vmem:[%s18354_s12 + $0x68] sm:$0x1]  ;;  %v2969_v13 = vor.u32 %v2968_v20, %v2965_v63  ;;  %v14031_v63 = vld [vmem:[%s18354_s12 + $0x84] sm:$0xf] }
 0x270   : > { %15766 = vmatmul.mubr.msk.bf16.gmra.mrb[28].mxu0 %vm1141_vm5, %v17395_v24  ;;  %v2924_v24 = vshll.u32 %v19174_v47, 16  ;;  %v3006_v25 = vshll.u32 %v19264_v32, 16  ;;  %v19306_v20 = vld [vmem:[%s18354_s12 + $0x88] sm:$0xf] }
 0x271   : > { %15769 = vmatprep.mubr.msk.bf16.mxu0 %vm1141_vm5, %v17396_v45  ;;  %v2879_v45 = vsel %vm18408_vm4, %v2874_v37, %v19155_v41  ;;  %v2952_v41 = vshrl.u32 %v19197_v58, 16  ;;  %v19243_v37 = vrot.slane %v2948_v52, 5  ;;  %v3016_v52 = vrot.slane %v3014_v31, 5 }
 0x272   : > { %v19213_v46 = vrot.slane %v2924_v24, 5  ;;  %v14063_v35 = vcombine.low %v2879_v45, %v2889_v3  ;;  %v3011_v24 = vshrl.u32 %v14025_v54, 16  ;;  %v2989_v3 = vrot.slane %v2987_v5, 4 }
 0x273   : > { %v2954_v56 = vrot.slane %v2952_v41, 4  ;;  %v19266_v41 = vrot.slane %v3020_v6, 5  ;;  %v19283_v54 = vrot.slane %v2958_v39, 5  ;;  %v14064_v5 = vcombine.low %v2903_v60, %v2913_v53 }
 0x274   : > { %v2931_v22 = vor.u32 %v2930_v62, %v19213_v46  ;;  %v19261_v62 = vrot.slane %v2996_v14, 5  ;;  %v3013_v27 = vrot.slane %v3011_v24, 4  ;;  %v3030_v14 = vshll.u32 %v19274_v10, 16 }
 0x275   : > { %v2955_v45 = vor.u32 %v2954_v56, %v19243_v37  ;;  %v14028_v56 = vld [vmem:[%s18354_s12 + $0x78] sm:$0xf]  ;;  %v2970_v24 = vrot.slane %v2969_v13, 4  ;;  %v2984_v6 = vrot.slane %v2982_v0, 5  ;;  %v3072_v0 = vshrl.u32 %v19306_v20, 16 }
 0x276   : > { %v2932_v50 = vrot.slane %v2931_v22, 4  ;;  %v3035_v53 = vshrl.u32 %v14028_v56, 16 }
 0x278   : > { %15770 = vmatmul.mubr.msk.bf16.gmra.mrb[32].mxu0 %vm1141_vm5, %v17397_v17  ;;  %v2972_v17 = vshll.u32 %v19219_v44, 16  ;;  %v2937_v22 = vsel %vm18408_vm4, %v2932_v50, %v19222_v34  ;;  %v3017_v34 = vor.u32 %v3016_v52, %v3013_v27  ;;  %v3008_v50 = vrot.slane %v3006_v25, 5 }
 0x279   : > { %15773 = vmatprep.mubr.msk.bf16.mxu0 %vm1141_vm5, %v17398_v26  ;;  %v2976_v26 = vshrl.u32 %v19219_v44, 16  ;;  %v3059_v27 = vshrl.u32 %v14031_v63, 16  ;;  %v3062_v52 = vshll.u32 %v14031_v63, 16  ;;  %v3037_v13 = vrot.slane %v3035_v53, 4 }
 0x27a   : > { %v19254_v19 = vrot.slane %v2972_v17, 5  ;;  %v19279_v17 = vrot.slane %v2945_v38, 4  ;;  %v3044_v38 = vshll.u32 %v19293_v59, 16 }
 0x27b   : > { %v2978_v33 = vrot.slane %v2976_v26, 4  ;;  %v19281_v26 = vrot.slane %v2955_v45, 4  ;;  %v3018_v45 = vrot.slane %v3017_v34, 4  ;;  %v3061_v34 = vrot.slane %v3059_v27, 4 }
 0x27d   : > { %v2979_v11 = vor.u32 %v2978_v33, %v19254_v19  ;;  %v2961_v60 = vsel %vm18408_vm4, %v19281_v26, %v19283_v54  ;;  %v19327_v26 = vrot.slane %v3044_v38, 5  ;;  %v3023_v25 = vsel %vm18408_vm4, %v3018_v45, %v19266_v41  ;;  %v14037_v45 = vld [vmem:[%s18354_s12 + $0x9c] sm:$0xf] }
 0x27f   : > { %v2980_v31 = vrot.slane %v2979_v11, 4 }
 0x280   : > { %15774 = vmatmul.mubr.msk.bf16.gmra.mrb[36].mxu0 %vm1141_vm5, %v17399_v28  ;;  %v3026_v28 = vrot.slane %v3024_v49, 4  ;;  %v3038_v49 = vshll.u32 %v14028_v56, 16 }
 0x281   : > { %15779 = vmatprep.mubr.msk.bf16.mxu0 %vm1141_vm5, %v14061_v43  ;;  %v2927_v43 = vsel %vm18408_vm4, %v2922_v1, %v19213_v46  ;;  %v2993_v46 = vor.u32 %v2992_v55, %v2989_v3  ;;  %v3003_v1 = vor.u32 %v3002_v8, %v19261_v62  ;;  %v3032_v3 = vrot.slane %v3030_v14, 5 }
 0x282   : > { %v3027_v21 = vor.u32 %v3026_v28, %v19266_v41  ;;  %v3048_v55 = vshrl.u32 %v19293_v59, 16  ;;  %v2975_v8 = vsel %vm18408_vm4, %v2970_v24, %v19254_v19  ;;  %v3068_v28 = vshll.u32 %v19306_v20, 16 }
 0x283   : > { %v3004_v33 = vrot.slane %v3003_v1, 4  ;;  %v3040_v11 = vrot.slane %v3038_v49, 5  ;;  %v4276_v1 = vld [vmem:[#allocation9 + $0xc] sm:$0x3] }
 0x284   : > { %v3028_v39 = vrot.slane %v3027_v21, 4  ;;  %v3064_v21 = vrot.slane %v3062_v52, 5  ;;  %v19342_v14 = vrot.slane %v3068_v28, 5  ;;  %v14040_v28 = vld [vmem:[%s18354_s12 + $0xa8] sm:$0xf] }
 0x285   : > { %v3009_v19 = vsel %vm18408_vm4, %v3004_v33, %v3008_v50  ;;  %v3041_v33 = vor.u32 %v3040_v11, %v3037_v13  ;;  %v19363_v13 = vld [vmem:[%s18354_s12 + $0xac] sm:$0xf]  ;;  %v19367_v11 = vld [vmem:[%s18354_s12 + $0x98] sm:$0x1] }
 0x286   : > { %v3033_v56 = vsel %vm18408_vm4, %v3028_v39, %v3032_v3  ;;  %v19355_v39 = vld [vmem:[%s18354_s12 + $0xa0] sm:$0xf]  ;;  %22808 = vst [vmem:[#allocation35_spill] sm:$0xff] %v19363_v13  ;;  %22809 = vst [vmem:[#allocation36_spill] sm:$0xff] %v19367_v11 }
 0x287   : > { %v14069_v3 = vcombine.low %v3023_v25, %v3033_v56  ;;  %v3131_v25 = vshrl.u32 %v14040_v28, 16  ;;  %v3134_v56 = vshll.u32 %v14040_v28, 16  ;;  %v19389_v28 = vld [vmem:[%s18354_s12 + $0xb0] sm:$0x1] }
 0x288   : > { %15780 = vmatmul.mubr.msk.bf16.vlgmr.msra.gmra.mrb[0].mxu0 %vm1141_vm5, %v14062_v29  ;;  %v14065_v29 = vcombine.low %v2927_v43, %v2937_v22  ;;  %v2985_v43 = vsel %vm18408_vm4, %v2980_v31, %v2984_v6  ;;  %v14034_v22 = vld [vmem:[%s18354_s12 + $0x90] sm:$0xf]  ;;  %v19345_v31 = vld [vmem:[%s18354_s12 + $0x8c] sm:$0x1]  ;;  %22811 = vst [vmem:[#allocation38_spill] sm:$0xff] %v19389_v28 }
 0x289   : > { %15783 = vmatprep.mubr.msk.bf16.mxu0 %vm1141_vm5, %v14063_v35  ;;  %15820 = vmatpush3.bf16.msra.mxu0 %v19095_v2  ;;  %v2951_v35 = vsel %vm18408_vm4, %v19279_v17, %v19243_v37  ;;  %v2994_v2 = vrot.slane %v2993_v46, 4  ;;  %v19310_v37 = vld [vmem:[%s18354_s12 + $0x80] sm:$0x1]  ;;  %v19331_v46 = vld [vmem:[%s18354_s12 + $0x94] sm:$0xf]  ;;  %v3083_v24 = vshrl.u32 %v14034_v22, 16  ;;  %v14067_v63 = vcombine.low %v2975_v8, %v2985_v43 }
 0x28a   : > { %v3054_v54 = vshll.u32 %v19310_v37, 16  ;;  %v3086_v6 = vshll.u32 %v14034_v22, 16  ;;  %v3092_v41 = vshll.u32 %v19331_v46, 16  ;;  %v3096_v53 = vshrl.u32 %v19331_v46, 16 }
 0x28b   : > { %v2999_v17 = vsel %vm18408_vm4, %v2994_v2, %v19261_v62  ;;  %v3050_v62 = vrot.slane %v3048_v55, 4  ;;  %v14066_v49 = vcombine.low %v2951_v35, %v2961_v60  ;;  %v3065_v55 = vor.u32 %v3064_v21, %v3061_v34 }
 0x28c   : > { %v14068_v2 = vcombine.low %v2999_v17, %v3009_v19  ;;  %v19351_v38 = vrot.slane %v3054_v54, 5  ;;  %v3078_v27 = vshll.u32 %v19345_v31, 16  ;;  %v3085_v52 = vrot.slane %v3083_v24, 4 }
 0x28d   : > { %v3051_v50 = vor.u32 %v3050_v62, %v19327_v26  ;;  %v3088_v60 = vrot.slane %v3086_v6, 5  ;;  %v19360_v8 = vrot.slane %v3092_v41, 5  ;;  %v3098_v43 = vrot.slane %v3096_v53, 4 }
 0x28e   : > { %v3110_v22 = vshll.u32 %v14037_v45, 16  ;;  %v3116_v17 = vshll.u32 %v19355_v39, 16  ;;  %v3120_v19 = vshrl.u32 %v19355_v39, 16  ;;  %v3042_v54 = vrot.slane %v3041_v33, 4 }
 0x28f   : > { %v3066_v62 = vrot.slane %v3065_v55, 4  ;;  %v3080_v34 = vrot.slane %v3078_v27, 5  ;;  %v3140_v21 = vshll.u32 %v19363_v13, 16  ;;  %v3144_v24 = vshrl.u32 %v19363_v13, 16 }
 0x290   : > { %15784 = vmatmul.mubr.msk.bf16.gmra.mrb[4].mxu0 %vm1141_vm5, %v14064_v5  ;;  %v19340_v5 = vand.u32 %v4276_v1, %v18378_v4  ;;  %v3052_v1 = vrot.slane %v3051_v50, 4  ;;  %v3089_v6 = vor.u32 %v3088_v60, %v3085_v52  ;;  %v3099_v41 = vor.u32 %v3098_v43, %v19360_v8 }
 0x291   : > { %15787 = vmatprep.mubr.msk.bf16.mxu0 %vm1141_vm5, %v14065_v29  ;;  %v3074_v29 = vrot.slane %v3072_v0, 4  ;;  %v3107_v0 = vshrl.u32 %v14037_v45, 16  ;;  %v3102_v53 = vshll.u32 %v19367_v11, 16  ;;  %v3112_v50 = vrot.slane %v3110_v22, 5  ;;  %v19483_v11 = vld [vmem:[%s18354_s12 + $0xf4] sm:$0xf] }
 0x292   : > { %15861 = vmatprep.subr.bf16.mxu0 %v19340_v5  ;;  %v19380_v45 = vrot.slane %v3116_v17, 5  ;;  %v3122_v55 = vrot.slane %v3120_v19, 4  ;;  %v3047_v27 = vsel %vm18408_vm4, %v3042_v54, %v19327_v26  ;;  %v3057_v52 = vsel %vm18408_vm4, %v3052_v1, %v19351_v38 }
 0x293   : > { %v3075_v35 = vor.u32 %v3074_v29, %v19342_v14  ;;  %v3109_v33 = vrot.slane %v3107_v0, 4  ;;  %v3136_v60 = vrot.slane %v3134_v56, 5  ;;  %v19391_v43 = vrot.slane %v3140_v21, 5  ;;  %v19394_v0 = vld [vmem:[%s18354_s12 + $0xb8] sm:$0xf] }
 0x294   : > { %v3146_v13 = vrot.slane %v3144_v24, 4  ;;  %22812 = vst [vmem:[#allocation39_spill] sm:$0xff] %v19394_v0  ;;  %v3071_v19 = vsel %vm18408_vm4, %v3066_v62, %v19342_v14  ;;  %v3104_v38 = vrot.slane %v3102_v53, 5  ;;  %v3090_v1 = vrot.slane %v3089_v6, 4  ;;  %v14046_v6 = vld [vmem:[%s18354_s12 + $0xc0] sm:$0xf] }
 0x295   : > { %v3076_v29 = vrot.slane %v3075_v35, 4  ;;  %v3133_v35 = vrot.slane %v3131_v25, 4  ;;  %v3100_v25 = vrot.slane %v3099_v41, 4  ;;  %v3113_v56 = vor.u32 %v3112_v50, %v3109_v33 }
 0x296   : > { %v3123_v21 = vor.u32 %v3122_v55, %v19380_v45  ;;  %v3150_v24 = vshll.u32 %v19389_v28, 16  ;;  %v3164_v14 = vshll.u32 %v19394_v0, 16  ;;  %v3168_v62 = vshrl.u32 %v19394_v0, 16  ;;  %v19425_v0 = vld [vmem:[%s18354_s12 + $0xbc] sm:$0x1] }
 0x297   : > { %v3081_v26 = vsel %vm18408_vm4, %v3076_v29, %v3080_v34  ;;  %v3137_v34 = vor.u32 %v3136_v60, %v3133_v35  ;;  %v3147_v29 = vor.u32 %v3146_v13, %v19391_v43  ;;  %v14070_v41 = vcombine.low %v3047_v27, %v3057_v52  ;;  %v19416_v35 = vld [vmem:[%s18354_s12 + $0xc4] sm:$0xf]  ;;  %v14049_v13 = vld [vmem:[%s18354_s12 + $0xcc] sm:$0xf]  ;;  %v19422_v52 = vld [vmem:[%s18354_s12 + $0xd0] sm:$0xf] }
 0x298   : > { %15788 = vmatmul.mubr.msk.bf16.gmra.mrb[8].mxu0 %vm1141_vm5, %v14066_v49  ;;  %v14043_v49 = vld [vmem:[%s18354_s12 + $0xb4] sm:$0xf]  ;;  %v3105_v50 = vsel %vm18408_vm4, %v3100_v25, %v3104_v38  ;;  %v3114_v55 = vrot.slane %v3113_v56, 4  ;;  %v3124_v28 = vrot.slane %v3123_v21, 4  ;;  %22813 = vst [vmem:[#allocation32_spill] sm:$0xff] %v19416_v35  ;;  %v19419_v60 = vrot.slane %v3164_v14, 5 }
 0x299   : > { %15791 = vmatprep.mubr.msk.bf16.mxu0 %vm1141_vm5, %v14067_v63  ;;  %v19378_v63 = vld [vmem:[%s18354_s12 + $0xa4] sm:$0x1]  ;;  %v3155_v22 = vshrl.u32 %v14043_v49, 16  ;;  %v3158_v17 = vshll.u32 %v14043_v49, 16  ;;  %v14071_v49 = vcombine.low %v3071_v19, %v3081_v26  ;;  %v3182_v27 = vshll.u32 %v14046_v6, 16  ;;  %22814 = vst [vmem:[#allocation31_spill] sm:$0xff] %v19422_v52 }
 0x29a   : > { %22810 = vst [vmem:[#allocation37_spill] sm:$0xff] %v19378_v63  ;;  %v3126_v54 = vshll.u32 %v19378_v63, 16  ;;  %v3138_v19 = vrot.slane %v3137_v34, 4  ;;  %v3148_v26 = vrot.slane %v3147_v29, 4  ;;  %22815 = vst [vmem:[#allocation34_spill] sm:$0xff] %v19425_v0  ;;  %v3188_v38 = vshll.u32 %v19416_v35, 16 }
 0x29b   : > { %v3157_v53 = vrot.slane %v3155_v22, 4  ;;  %v3170_v22 = vrot.slane %v3168_v62, 4  ;;  %v3203_v25 = vshrl.u32 %v14049_v13, 16  ;;  %v3206_v56 = vshll.u32 %v14049_v13, 16 }
 0x29c   : > { %v3128_v33 = vrot.slane %v3126_v54, 5  ;;  %v3152_v54 = vrot.slane %v3150_v24, 5  ;;  %v3119_v21 = vsel %vm18408_vm4, %v3114_v55, %v19380_v45  ;;  %v3212_v24 = vshll.u32 %v19422_v52, 16 }
 0x29d   : > { %v3216_v62 = vshrl.u32 %v19422_v52, 16  ;;  %v3171_v34 = vor.u32 %v3170_v22, %v19419_v60  ;;  %v3174_v29 = vshll.u32 %v19425_v0, 16  ;;  %v3143_v45 = vsel %vm18408_vm4, %v3138_v19, %v19391_v43  ;;  %v14052_v19 = vld [vmem:[%s18354_s12 + $0xd8] sm:$0xf] }
 0x29e   : > { %v3129_v14 = vsel %vm18408_vm4, %v3124_v28, %v3128_v33  ;;  %v3153_v28 = vsel %vm18408_vm4, %v3148_v26, %v3152_v54  ;;  %v19448_v33 = vrot.slane %v3188_v38, 5  ;;  %v3205_v55 = vrot.slane %v3203_v25, 4  ;;  %v19458_v38 = vld [vmem:[%s18354_s12 + $0xdc] sm:$0xf] }
 0x29f   : > { %v3208_v13 = vrot.slane %v3206_v56, 5  ;;  %v19453_v52 = vrot.slane %v3212_v24, 5  ;;  %v3218_v43 = vrot.slane %v3216_v62, 4  ;;  %v3172_v26 = vrot.slane %v3171_v34, 4  ;;  %22818 = vst [vmem:[#allocation41_spill] sm:$0xff] %v19458_v38 }
 0x2a0   : > { %15792 = vmatmul.mubr.msk.bf16.gmra.mrb[12].mxu0 %vm1141_vm5, %v14068_v2  ;;  %v3160_v2 = vrot.slane %v3158_v17, 5  ;;  %v3179_v17 = vshrl.u32 %v14046_v6, 16  ;;  %v3176_v54 = vrot.slane %v3174_v29, 5  ;;  %v3227_v56 = vshrl.u32 %v14052_v19, 16 }
 0x2a1   : > { %15795 = vmatprep.mubr.msk.bf16.mxu0 %vm1141_vm5, %v14069_v3  ;;  %v3095_v3 = vsel %vm18408_vm4, %v3090_v1, %v19360_v8  ;;  %v3192_v1 = vshrl.u32 %v19416_v35, 16  ;;  %v3219_v24 = vor.u32 %v3218_v43, %v19453_v52  ;;  %v3230_v62 = vshll.u32 %v14052_v19, 16 }
 0x2a2   : > { %v3161_v8 = vor.u32 %v3160_v2, %v3157_v53  ;;  %v3181_v53 = vrot.slane %v3179_v17, 4  ;;  %v3184_v2 = vrot.slane %v3182_v27, 5  ;;  %v14072_v22 = vcombine.low %v3095_v3, %v3105_v50  ;;  %v19451_v27 = vld [vmem:[%s18354_s12 + $0xd4] sm:$0x1] }
 0x2a3   : > { %v14073_v17 = vcombine.low %v3119_v21, %v3129_v14  ;;  %22817 = vst [vmem:[#allocation40_spill] sm:$0xff] %v19451_v27  ;;  %v3209_v3 = vor.u32 %v3208_v13, %v3205_v55  ;;  %v3222_v50 = vshll.u32 %v19451_v27, 16  ;;  %v14055_v21 = vld [vmem:[%s18354_s12 + $0xe4] sm:$0xf]  ;;  %v19464_v14 = vld [vmem:[%s18354_s12 + $0xe8] sm:$0xf] }
 0x2a4   : > { %v3162_v6 = vrot.slane %v3161_v8, 4  ;;  %v3185_v8 = vor.u32 %v3184_v2, %v3181_v53  ;;  %v3236_v34 = vshll.u32 %v19458_v38, 16  ;;  %v3240_v29 = vshrl.u32 %v19458_v38, 16 }
 0x2a5   : > { %v3177_v2 = vsel %vm18408_vm4, %v3172_v26, %v3176_v54  ;;  %v3254_v55 = vshll.u32 %v14055_v21, 16  ;;  %v3260_v13 = vshll.u32 %v19464_v14, 16  ;;  %v3210_v19 = vrot.slane %v3209_v3, 4 }
 0x2a6   : > { %v3167_v53 = vsel %vm18408_vm4, %v3162_v6, %v19419_v60  ;;  %v3229_v38 = vrot.slane %v3227_v56, 4  ;;  %v3220_v27 = vrot.slane %v3219_v24, 4  ;;  %v19479_v60 = vld [vmem:[%s18354_s12 + $0xe0] sm:$0x1]  ;;  %v3232_v6 = vrot.slane %v3230_v62, 5 }
 0x2a7   : > { %v3238_v26 = vrot.slane %v3236_v34, 5  ;;  %v3242_v54 = vrot.slane %v3240_v29, 4  ;;  %v3262_v0 = vrot.slane %v3260_v13, 5  ;;  %v19492_v56 = vld [vmem:[%s18354_s12 + $0xec] sm:$0x1]  ;;  %v3215_v24 = vsel %vm18408_vm4, %v3210_v19, %v19453_v52 }
 0x2a8   : > { %15796 = vmatmul.mubr.msk.bf16.gmra.mrb[16].mxu0 %vm1141_vm5, %v14070_v41  ;;  %v19446_v41 = vld [vmem:[%s18354_s12 + $0xc8] sm:$0x1]  ;;  %v3233_v34 = vor.u32 %v3232_v6, %v3229_v38 }
 0x2a9   : > { %15799 = vmatprep.mubr.msk.bf16.mxu0 %vm1141_vm5, %v14071_v49  ;;  %22816 = vst [vmem:[#allocation33_spill] sm:$0xff] %v19446_v41  ;;  %v3194_v49 = vrot.slane %v3192_v1, 4  ;;  %v3198_v35 = vshll.u32 %v19446_v41, 16  ;;  %v14074_v1 = vcombine.low %v3143_v45, %v3153_v28  ;;  %v3186_v45 = vrot.slane %v3185_v8, 4 }
 0x2aa   : > { %v14075_v8 = vcombine.low %v3167_v53, %v3177_v2  ;;  %v3243_v29 = vor.u32 %v3242_v54, %v3238_v26  ;;  %v3284_v2 = vshll.u32 %v19483_v11, 16  ;;  %v3234_v13 = vrot.slane %v3233_v34, 4  ;;  %v14101_v34 = vld [vmem:[%s18354_s12 + $0xc] sm:$0xe] }
 0x2ab   : > { %v3195_v25 = vor.u32 %v3194_v49, %v19448_v33  ;;  %v3200_v28 = vrot.slane %v3198_v35, 5  ;;  %v3251_v49 = vshrl.u32 %v14055_v21, 16  ;;  %v14058_v35 = vld [vmem:[%s18354_s12 + $0xf0] sm:$0xf]  ;;  %v3256_v21 = vrot.slane %v3254_v55, 5 }
 0x2ac   : > { %v3278_v53 = vshll.u32 %v14058_v35, 16  ;;  %v3286_v19 = vrot.slane %v3284_v2, 5 }
 0x2ad   : > { %v3196_v43 = vrot.slane %v3195_v25, 4  ;;  %v3253_v41 = vrot.slane %v3251_v49, 4  ;;  %v3191_v25 = vsel %vm18408_vm4, %v3186_v45, %v19448_v33  ;;  %v3275_v33 = vshrl.u32 %v14058_v35, 16  ;;  %v19505_v35 = vld [vmem:[%s18354_s12 + $0xf8] sm:$0x1] }
 0x2ae   : > { %v3288_v45 = vshrl.u32 %v19483_v11, 16  ;;  %v3270_v49 = vshll.u32 %v19492_v56, 16 }
 0x2af   : > { %v3201_v3 = vsel %vm18408_vm4, %v3196_v43, %v3200_v28  ;;  %v3257_v28 = vor.u32 %v3256_v21, %v3253_v41  ;;  %v3277_v38 = vrot.slane %v3275_v33, 4  ;;  %v3280_v43 = vrot.slane %v3278_v53, 5 }
 0x2b0   : > { %15800 = vmatmul.mubr.msk.bf16.gmra.mrb[20].mxu0 %vm1141_vm5, %v14072_v22  ;;  %v3264_v22 = vshrl.u32 %v19464_v14, 16  ;;  %v14076_v55 = vcombine.low %v3191_v25, %v3201_v3  ;;  %v3294_v3 = vshll.u32 %v19505_v35, 16 }
 0x2b1   : > { %15803 = vmatprep.mubr.msk.bf16.mxu0 %vm1141_vm5, %v14073_v17  ;;  %v3224_v17 = vrot.slane %v3222_v50, 5  ;;  %v3246_v50 = vshll.u32 %v19479_v60, 16  ;;  %v3258_v6 = vrot.slane %v3257_v28, 4  ;;  %v3281_v21 = vor.u32 %v3280_v43, %v3277_v38 }
 0x2b2   : > { %v3266_v63 = vrot.slane %v3264_v22, 4  ;;  %v3244_v22 = vrot.slane %v3243_v29, 4  ;;  %v3296_v2 = vrot.slane %v3294_v3, 5 }
 0x2b3   : > { %v3225_v62 = vsel %vm18408_vm4, %v3220_v27, %v3224_v17  ;;  %v3248_v27 = vrot.slane %v3246_v50, 5  ;;  %v3290_v17 = vrot.slane %v3288_v45, 4  ;;  %v3263_v50 = vsel %vm18408_vm4, %v3258_v6, %v3262_v0 }
 0x2b4   : > { %v14077_v52 = vcombine.low %v3215_v24, %v3225_v62  ;;  %v3738_v62 = vrot.slane %v19118_v16, 5  ;;  %v3282_v33 = vrot.slane %v3281_v21, 4  ;;  %v14121_v45 = vrot.slane %v14101_v34, 9  ;;  %v14104_v21 = vld [vmem:[%s18354_s12 + $0x30] sm:$0xe] }
 0x2b5   : > { %v3249_v41 = vsel %vm18408_vm4, %v3244_v22, %v3248_v27  ;;  %v3291_v25 = vor.u32 %v3290_v17, %v3286_v19  ;;  %v14103_v22 = vld [vmem:[%s18354_s12 + $0x24] sm:$0xe]  ;;  %v3748_v17 = vrot.slane %v19150_v18, 5  ;;  %v3762_v34 = vrot.slane %v19169_v15, 5 }
 0x2b6   : > { %v3740_v28 = vrot.slane %v3738_v62, 4  ;;  %v14123_v6 = vrot.slane %v14103_v22, 9  ;;  %v3787_v22 = vrot.slane %v19230_v51, 5 }
 0x2b7   : > { %v3292_v53 = vrot.slane %v3291_v25, 4  ;;  %v14105_v25 = vld [vmem:[%s18354_s12 + $0x3c] sm:$0xe] }
 0x2b8   : > { %15804 = vmatmul.mubr.msk.bf16.gmra.mrb[24].mxu0 %vm1141_vm5, %v14074_v1  ;;  %v3267_v1 = vor.u32 %v3266_v63, %v3262_v0  ;;  %v3239_v63 = vsel %vm18408_vm4, %v3234_v13, %v3238_v26  ;;  %v3287_v0 = vsel %vm18408_vm4, %v3282_v33, %v3286_v19  ;;  %v14102_v13 = vld [vmem:[%s18354_s12 + $0x18] sm:$0xe] }
 0x2b9   : > { %15807 = vmatprep.mubr.msk.bf16.mxu0 %vm1141_vm5, %v14075_v8  ;;  %v3272_v8 = vrot.slane %v3270_v49, 5  ;;  %v14078_v26 = vcombine.low %v3239_v63, %v3249_v41  ;;  %v3297_v16 = vsel %vm18408_vm4, %v3292_v53, %v3296_v2  ;;  %v3745_v49 = vrot.slane %v19122_v40, 5  ;;  %v14106_v2 = vld [vmem:[%s18354_s12 + $0x48] sm:$0xe] }
 0x2ba   : > { %v3268_v54 = vrot.slane %v3267_v1, 4  ;;  %v3741_v1 = vrot.slane %v19144_v36, 5  ;;  %v3752_v36 = vrot.slane %v19128_v12, 5  ;;  %v14080_v27 = vcombine.low %v3287_v0, %v3297_v16 }
 0x2bb   : > { %v14122_v43 = vrot.slane %v14102_v13, 9  ;;  %v3747_v19 = vrot.slane %v3745_v49, 4  ;;  %v3759_v63 = vrot.slane %v19141_v42, 5  ;;  %v3773_v53 = vrot.slane %v19197_v58, 5  ;;  %v5214_v13 = vld [vmem:[#allocation9 + $0xe] sm:$0x3] }
 0x2bc   : > { %v3273_v24 = vsel %vm18408_vm4, %v3268_v54, %v3272_v8  ;;  %v3754_v40 = vrot.slane %v3752_v36, 4  ;;  %v3755_v54 = vrot.slane %v19153_v7, 5  ;;  %v3753_v41 = vsel %vm18775_vm8, %v14123_v6, %v3752_v36 }
 0x2bd   : > { %v14079_v29 = vcombine.low %v3263_v50, %v3273_v24  ;;  %v3746_v12 = vsel %vm18775_vm8, %v14122_v43, %v3745_v49  ;;  %v3749_v8 = vsel %vm18775_vm8, %v3747_v19, %v3748_v17  ;;  %v3766_v7 = vrot.slane %v19174_v47, 5  ;;  %v14109_v19 = vld [vmem:[%s18354_s12 + $0x6c] sm:$0xe] }
 0x2be   : > { %v3756_v18 = vsel %vm18775_vm8, %v3754_v40, %v3755_v54  ;;  %v14142_v3 = vcombine.low %v3746_v12, %v3749_v8  ;;  %v14124_v24 = vrot.slane %v14104_v21, 9  ;;  %v14126_v16 = vrot.slane %v14106_v2, 9 }
 0x2bf   : > { %v14143_v50 = vcombine.low %v3753_v41, %v3756_v18  ;;  %v3768_v42 = vrot.slane %v3766_v7, 4  ;;  %v3775_v49 = vrot.slane %v3773_v53, 4  ;;  %v3776_v58 = vrot.slane %v19247_v57, 5 }
 0x2c0   : > { %15808 = vmatmul.mubr.msk.bf16.gmra.mrb[28].mxu0 %vm1141_vm5, %v14076_v55  ;;  %v3739_v55 = vsel %vm18775_vm8, %v14121_v45, %v3738_v62  ;;  %v3761_v62 = vrot.slane %v3759_v63, 4  ;;  %v3760_v47 = vsel %vm18775_vm8, %v14124_v24, %v3759_v63  ;;  %v3780_v45 = vrot.slane %v19219_v44, 5 }
 0x2c1   : > { %15811 = vmatprep.mubr.msk.bf16.mxu0 %vm1141_vm5, %v14077_v52  ;;  %v3742_v52 = vsel %vm18775_vm8, %v3740_v28, %v3741_v1  ;;  %v14107_v28 = vld [vmem:[%s18354_s12 + $0x54] sm:$0xe]  ;;  %v3774_v44 = vsel %vm18775_vm8, %v14126_v16, %v3773_v53  ;;  %v3777_v36 = vsel %vm18775_vm8, %v3775_v49, %v3776_v58  ;;  %v3794_v43 = vrot.slane %v19241_v61, 5  ;;  %v14112_v53 = vld [vmem:[%s18354_s12 + $0x90] sm:$0xe]  ;;  %v22820_v49 = vld [vmem:[#allocation37_spill] sm:$0xff] }
 0x2c2   : > { %v14141_v38 = vcombine.low %v3739_v55, %v3742_v52  ;;  %v3763_v33 = vsel %vm18775_vm8, %v3761_v62, %v3762_v34  ;;  %v14127_v55 = vrot.slane %v14107_v28, 9  ;;  %v3783_v52 = vrot.slane %v19259_v23, 5 }
 0x2c3   : > { %v14144_v1 = vcombine.low %v3760_v47, %v3763_v33  ;;  %v14146_v17 = vcombine.low %v3774_v44, %v3777_v36  ;;  %v3789_v40 = vrot.slane %v3787_v22, 4  ;;  %v3790_v54 = vrot.slane %v19264_v32, 5  ;;  %v14114_v36 = vld [vmem:[%s18354_s12 + $0xa8] sm:$0xe] }
 0x2c4   : > { %v3781_v57 = vsel %vm18775_vm8, %v14127_v55, %v3780_v45  ;;  %v14129_v12 = vrot.slane %v14109_v19, 9  ;;  %v3796_v8 = vrot.slane %v3794_v43, 4  ;;  %v3797_v63 = vrot.slane %v19274_v10, 5 }
 0x2c5   : > { %v3791_v41 = vsel %vm18775_vm8, %v3789_v40, %v3790_v54  ;;  %v3801_v18 = vrot.slane %v19293_v59, 5  ;;  %v3808_v10 = vrot.slane %v19306_v20, 5  ;;  %v3804_v34 = vrot.slane %v19310_v37, 5 }
 0x2c6   : > { %v3795_v21 = vsel %vm18775_vm8, %v14129_v12, %v3794_v43  ;;  %v3798_v32 = vsel %vm18775_vm8, %v3796_v8, %v3797_v63  ;;  %v3815_v47 = vrot.slane %v19331_v46, 5  ;;  %v3825_v58 = vrot.slane %v22820_v49, 5  ;;  %v22824_v12 = vld [vmem:[#allocation34_spill] sm:$0xff] }
 0x2c7   : > { %v3803_v62 = vrot.slane %v3801_v18, 4  ;;  %v3810_v59 = vrot.slane %v3808_v10, 4  ;;  %v14134_v19 = vrot.slane %v14114_v36, 9  ;;  %v3839_v8 = vrot.slane %v22824_v12, 5  ;;  %v17405_v12 = vld [vmem:[%s18354_s12 + $0x54] sm:$0xff]  }
 0x2c8   : > { %15812 = vmatmul.mubr.msk.bf16.gmra.mrb[32].mxu0 %vm1141_vm5, %v14078_v26  ;;  %v14125_v26 = vrot.slane %v14105_v25, 9  ;;  %v14111_v25 = vld [vmem:[%s18354_s12 + $0x84] sm:$0xe]  ;;  %v3817_v28 = vrot.slane %v3815_v47, 4  ;;  %v3860_v49 = vrot.slane %v19479_v60, 5 }
 0x2c9   : > { %15815 = vmatprep.mubr.msk.bf16.mxu0 %vm1141_vm5, %v14079_v29  ;;  %v3769_v29 = vrot.slane %v19180_v9, 5 }
 0x2ca   : > { %v3767_v15 = vsel %vm18775_vm8, %v14125_v26, %v3766_v7  ;;  %v14110_v7 = vld [vmem:[%s18354_s12 + $0x78] sm:$0xe]  ;;  %v14131_v26 = vrot.slane %v14111_v25, 9 }
 0x2cb   : > { %v3770_v9 = vsel %vm18775_vm8, %v3768_v42, %v3769_v29  ;;  %v14130_v24 = vrot.slane %v14110_v7, 9  ;;  %v3811_v42 = vrot.slane %v19345_v31, 5  ;;  %v3805_v29 = vsel %vm18775_vm8, %v3803_v62, %v3804_v34  ;;  %v14116_v7 = vld [vmem:[%s18354_s12 + $0xc0] sm:$0xe] }
 0x2cc   : > { %v14145_v0 = vcombine.low %v3767_v15, %v3770_v9  ;;  %v3809_v33 = vsel %vm18775_vm8, %v14131_v26, %v3808_v10  ;;  %v3822_v31 = vrot.slane %v19355_v39, 5  ;;  %v14113_v15 = vld [vmem:[%s18354_s12 + $0x9c] sm:$0xe]  ;;  %v14136_v62 = vrot.slane %v14116_v7, 9  ;;  %v14264_v7 = vld [vmem:[%s18354_s12 + $0x24] sm:$0xf] }
 0x2cd   : > { %v3802_v20 = vsel %vm18775_vm8, %v14130_v24, %v3801_v18  ;;  %v3812_v37 = vsel %vm18775_vm8, %v3810_v59, %v3811_v42  ;;  %v14133_v16 = vrot.slane %v14113_v15, 9  ;;  %v22826_v10 = vld [vmem:[#allocation31_spill] sm:$0xff]  ;;  %v22827_v26 = vld [vmem:[#allocation33_spill] sm:$0xff] }
 0x2ce   : > { %v14150_v9 = vcombine.low %v3802_v20, %v3805_v29  ;;  %v14151_v2 = vcombine.low %v3809_v33, %v3812_v37  ;;  %v3824_v46 = vrot.slane %v3822_v31, 4  ;;  %v3850_v25 = vrot.slane %v22826_v10, 5  ;;  %v22828_v29 = vld [vmem:[#allocation40_spill] sm:$0xff] }
 0x2cf   : > { %v3846_v59 = vrot.slane %v22827_v26, 5  ;;  %v17413_v10 = vld [vmem:[%s18354_s12 + $0xb4] sm:$0xff]  }
 0x2d0   : > { %15816 = vmatmul.mubr.msk.bf16.gmra.mrb[36].mxu0 %vm1141_vm5, %v14080_v27  ;;  %v19578_v27 = vand.u32 %v5214_v13, %v18378_v4  ;;  %v3823_v13 = vsel %vm18775_vm8, %v14133_v16, %v3822_v31  ;;  %v3826_v44 = vsel %vm18775_vm8, %v3824_v46, %v3825_v58  ;;  %v3852_v20 = vrot.slane %v3850_v25, 4 }
 0x2d1   : > { %15821 = vmatprep.mubr.msk.bf16.mxu0 %vm1141_vm5, %v14141_v38  ;;  %v14108_v38 = vld [vmem:[%s18354_s12 + $0x60] sm:$0xe]  ;;  %v14153_v43 = vcombine.low %v3823_v13, %v3826_v44  ;;  %v14120_v13 = vld [vmem:[%s18354_s12 + $0xf0] sm:$0xe] }
 0x2d2   : > { %v14128_v51 = vrot.slane %v14108_v38, 9 }
 0x2d4   : > { %v3788_v61 = vsel %vm18775_vm8, %v14128_v51, %v3787_v22  ;;  %v22822_v22 = vld [vmem:[#allocation39_spill] sm:$0xff] }
 0x2d8   : > { %15822 = vmatmul.mubr.msk.bf16.vlgmr.msra.gmra.mrb[0].mxu0 %vm1141_vm5, %v14142_v3  ;;  %v14148_v3 = vcombine.low %v3788_v61, %v3791_v41  ;;  %v22825_v41 = vld [vmem:[#allocation32_spill] sm:$0xff] }
 0x2d9   : > { %15825 = vmatprep.mubr.msk.bf16.mxu0 %vm1141_vm5, %v14143_v50  ;;  %15862 = vmatpush3.bf16.msra.mxu0 %v19340_v5  ;;  %v3782_v5 = vrot.slane %v3780_v45, 4  ;;  %v14149_v50 = vcombine.low %v3795_v21, %v3798_v32  ;;  %v14132_v45 = vrot.slane %v14112_v53, 9  ;;  %v3843_v18 = vrot.slane %v22825_v41, 5  ;;  %v22829_v53 = vld [vmem:[#allocation41_spill] sm:$0xff] }
 0x2da   : > { %15903 = vmatprep.subr.bf16.mxu0 %v19578_v27  ;;  %v3857_v31 = vrot.slane %v22829_v53, 5  ;;  %v17411_v41 = vld [vmem:[%s18354_s12 + $0x9c] sm:$0xff]  }
 0x2db   : > { %v3784_v23 = vsel %vm18775_vm8, %v3782_v5, %v3783_v52  ;;  %v3816_v39 = vsel %vm18775_vm8, %v14132_v45, %v3815_v47  ;;  %v22821_v5 = vld [vmem:[#allocation35_spill] sm:$0xff]  ;;  %v3845_v34 = vrot.slane %v3843_v18, 4  ;;  %v3853_v47 = vrot.slane %v22828_v29, 5 }
 0x2dc   : > { %v14147_v6 = vcombine.low %v3781_v57, %v3784_v23  ;;  %v3829_v52 = vrot.slane %v22821_v5, 5  ;;  %v3836_v57 = vrot.slane %v22822_v22, 5  ;;  %v14115_v23 = vld [vmem:[%s18354_s12 + $0xb4] sm:$0xe]  ;;  %v3844_v33 = vsel %vm18775_vm8, %v14136_v62, %v3843_v18  ;;  %v17412_v18 = vld [vmem:[%s18354_s12 + $0xa8] sm:$0xff]  }
 0x2dd   : > { %v14135_v40 = vrot.slane %v14115_v23, 9  ;;  %v3847_v37 = vsel %vm18775_vm8, %v3845_v34, %v3846_v59  ;;  %v3864_v45 = vrot.slane %v19464_v14, 5  ;;  %v3859_v46 = vrot.slane %v3857_v31, 4  ;;  %v19733_v34 = vld [vmem:[%s18354_s12 + $0x34] sm:$0xf] }
 0x2de   : > { %v3838_v54 = vrot.slane %v3836_v57, 4  ;;  %v3830_v63 = vsel %vm18775_vm8, %v14134_v19, %v3829_v52  ;;  %v14140_v22 = vrot.slane %v14120_v13, 9  ;;  %v3874_v23 = vrot.slane %v19505_v35, 5  ;;  %v17400_v19 = vld [vmem:[%s18354_s12 + $0x18] sm:$0xff]   ;;  %v17402_v35 = vld [vmem:[%s18354_s12 + $0x30] sm:$0xff]  }
 0x2df   : > { %v3837_v21 = vsel %vm18775_vm8, %v14135_v40, %v3836_v57  ;;  %v3861_v14 = vsel %vm18775_vm8, %v3859_v46, %v3860_v49  ;;  %v5792_v40 = vld [vmem:[#allocation9 + $0x10] sm:$0x3]  ;;  %v4791_v53 = vshll.u32 %v19733_v34, 16 }
 0x2e0   : > { %15826 = vmatmul.mubr.msk.bf16.gmra.mrb[4].mxu0 %vm1141_vm5, %v14144_v1  ;;  %v22819_v1 = vld [vmem:[#allocation36_spill] sm:$0xff]  ;;  %v3840_v32 = vsel %vm18775_vm8, %v3838_v54, %v3839_v8  ;;  %v19702_v54 = vand.u32 %v5792_v40, %v18378_v4 }
 0x2e1   : > { %15829 = vmatprep.mubr.msk.bf16.mxu0 %vm1141_vm5, %v14145_v0  ;;  %v3818_v0 = vrot.slane %v22819_v1, 5  ;;  %v14155_v24 = vcombine.low %v3837_v21, %v3840_v32  ;;  %v14156_v1 = vcombine.low %v3844_v33, %v3847_v37  ;;  %v17406_v8 = vld [vmem:[%s18354_s12 + $0x60] sm:$0xff]   ;;  %v14261_v21 = vld [vmem:[%s18354_s12 + $0x18] sm:$0xf]  ;;  %v19723_v32 = vld [vmem:[%s18354_s12 + $0x1c] sm:$0xf] }
 0x2e2   : > { %v17409_v4 = vld [vmem:[%s18354_s12 + $0x84] sm:$0xff]   ;;  %v4737_v62 = vshll.u32 %v14261_v21, 16  ;;  %v4743_v26 = vshll.u32 %v19723_v32, 16  ;;  %v4747_v59 = vshrl.u32 %v19723_v32, 16  ;;  %v19748_v46 = vld [vmem:[%s18354_s12 + $0x40] sm:$0xf] }
 0x2e3   : > { %v3819_v55 = vsel %vm18775_vm8, %v3817_v28, %v3818_v0  ;;  %v14119_v28 = vld [vmem:[%s18354_s12 + $0xe4] sm:$0xe]  ;;  %v19751_v49 = vld [vmem:[%s18354_s12 + $0x20] sm:$0x1] }
 0x2e4   : > { %v14152_v38 = vcombine.low %v3816_v39, %v3819_v55  ;;  %v14139_v58 = vrot.slane %v14119_v28, 9  ;;  %v3866_v39 = vrot.slane %v3864_v45, 4  ;;  %v3867_v55 = vrot.slane %v19492_v56, 5 }
 0x2e5   : > { %v19745_v28 = vrot.slane %v4743_v26, 5  ;;  %v17417_v26 = vld [vmem:[%s18354_s12 + $0xe4] sm:$0xff]  }
 0x2e6   : > { %v3865_v60 = vsel %vm18775_vm8, %v14139_v58, %v3864_v45  ;;  %v3868_v56 = vsel %vm18775_vm8, %v3866_v39, %v3867_v55  ;;  %v17415_v45 = vld [vmem:[%s18354_s12 + $0xcc] sm:$0xff]  }
 0x2e7   : > { %v14159_v36 = vcombine.low %v3865_v60, %v3868_v56 }
 0x2e8   : > { %15830 = vmatmul.mubr.msk.bf16.gmra.mrb[8].mxu0 %vm1141_vm5, %v14146_v17  ;;  %v3831_v17 = vrot.slane %v3829_v52, 4  ;;  %v3871_v52 = vrot.slane %v19483_v11, 5 }
 0x2e9   : > { %15833 = vmatprep.mubr.msk.bf16.mxu0 %vm1141_vm5, %v14147_v6  ;;  %v22823_v6 = vld [vmem:[#allocation38_spill] sm:$0xff] }
 0x2ea   : > { %v3832_v51 = vrot.slane %v22823_v6, 5  ;;  %v3873_v57 = vrot.slane %v3871_v52, 4  ;;  %v3872_v11 = vsel %vm18775_vm8, %v14140_v22, %v3871_v52  ;;  %v17403_v6 = vld [vmem:[%s18354_s12 + $0x3c] sm:$0xff]   ;;  %v19758_v52 = vrot.slane %v4791_v53, 5  ;;  %v19762_v22 = vld [vmem:[%s18354_s12 + $0x38] sm:$0x1] }
 0x2eb   : > { %v4801_v40 = vshll.u32 %v19762_v22, 16 }
 0x2ec   : > { %v3833_v61 = vsel %vm18775_vm8, %v3831_v17, %v3832_v51  ;;  %v17401_v17 = vld [vmem:[%s18354_s12 + $0x24] sm:$0xff]  }
 0x2ed   : > { %v17404_v51 = vld [vmem:[%s18354_s12 + $0x48] sm:$0xff]  }
 0x2f0   : > { %15834 = vmatmul.mubr.msk.bf16.gmra.mrb[12].mxu0 %vm1141_vm5, %v14148_v3  ;;  %v14117_v3 = vld [vmem:[%s18354_s12 + $0xcc] sm:$0xe] }
 0x2f1   : > { %15837 = vmatprep.mubr.msk.bf16.mxu0 %vm1141_vm5, %v14149_v50  ;;  %v14154_v50 = vcombine.low %v3830_v63, %v3833_v61  ;;  %v14137_v42 = vrot.slane %v14117_v3, 9  ;;  %v17408_v63 = vld [vmem:[%s18354_s12 + $0x78] sm:$0xff]   ;;  %v17410_v61 = vld [vmem:[%s18354_s12 + $0x90] sm:$0xff]  }
 0x2f2   : > { %v14267_v3 = vld [vmem:[%s18354_s12 + $0x30] sm:$0xf] }
 0x2f3   : > { %v3851_v15 = vsel %vm18775_vm8, %v14137_v42, %v3850_v25  ;;  %v19728_v25 = vld [vmem:[%s18354_s12 + $0x28] sm:$0xf]  ;;  %v4758_v42 = vshrl.u32 %v14264_v7, 16  ;;  %v4782_v33 = vshrl.u32 %v14267_v3, 16  ;;  %v4785_v37 = vshll.u32 %v14267_v3, 16 }
 0x2f4   : > { %v4767_v29 = vshll.u32 %v19728_v25, 16 }
 0x2f5   : > { %v4784_v55 = vrot.slane %v4782_v33, 4 }
 0x2f6   : > { %v19753_v58 = vrot.slane %v4767_v29, 5 }
 0x2f8   : > { %15838 = vmatmul.mubr.msk.bf16.gmra.mrb[16].mxu0 %vm1141_vm5, %v14150_v9  ;;  %v3854_v9 = vsel %vm18775_vm8, %v3852_v20, %v3853_v47  ;;  %v4761_v20 = vshll.u32 %v14264_v7, 16  ;;  %v4771_v47 = vshrl.u32 %v19728_v25, 16 }
 0x2f9   : > { %15841 = vmatprep.mubr.msk.bf16.mxu0 %vm1141_vm5, %v14151_v2  ;;  %v14118_v2 = vld [vmem:[%s18354_s12 + $0xd8] sm:$0xe]  ;;  %v14157_v0 = vcombine.low %v3851_v15, %v3854_v9  ;;  %v4739_v9 = vrot.slane %v4737_v62, 5 }
 0x2fa   : > { %v14138_v16 = vrot.slane %v14118_v2, 9  ;;  %v14270_v2 = vld [vmem:[%s18354_s12 + $0x3c] sm:$0xf]  ;;  %v4773_v39 = vrot.slane %v4771_v47, 4  ;;  %v17418_v47 = vld [vmem:[%s18354_s12 + $0xf0] sm:$0xff]  }
 0x2fb   : > { %v4806_v56 = vshrl.u32 %v14270_v2, 16  ;;  %v4809_v13 = vshll.u32 %v14270_v2, 16 }
 0x2fc   : > { %v3858_v5 = vsel %vm18775_vm8, %v14138_v16, %v3857_v31  ;;  %v4795_v31 = vshrl.u32 %v19733_v34, 16  ;;  %v4763_v16 = vrot.slane %v4761_v20, 5 }
 0x2fd   : > { %v14158_v44 = vcombine.low %v3858_v5, %v3861_v14  ;;  %v4787_v5 = vrot.slane %v4785_v37, 5  ;;  %v19756_v14 = vld [vmem:[%s18354_s12 + $0x2c] sm:$0x1] }
 0x2fe   : > { %v4797_v60 = vrot.slane %v4795_v31, 4  ;;  %v5663_v30 = vrot.slane %v19756_v14, 5 }
 0x300   : > { %15842 = vmatmul.mubr.msk.bf16.gmra.mrb[20].mxu0 %vm1141_vm5, %v14152_v38  ;;  %v3875_v38 = vsel %vm18775_vm8, %v3873_v57, %v3874_v23  ;;  %v4815_v57 = vshll.u32 %v19748_v46, 16  ;;  %v4819_v23 = vshrl.u32 %v19748_v46, 16 }
 0x301   : > { %15845 = vmatprep.mubr.msk.bf16.mxu0 %vm1141_vm5, %v14153_v43  ;;  %v14160_v43 = vcombine.low %v3872_v11, %v3875_v38  ;;  %v4753_v38 = vshll.u32 %v19751_v49, 16 }
 0x308   : > { %15846 = vmatmul.mubr.msk.bf16.gmra.mrb[24].mxu0 %vm1141_vm5, %v14154_v50  ;;  %v17414_v50 = vld [vmem:[%s18354_s12 + $0xc0] sm:$0xff]  }
 0x309   : > { %15849 = vmatprep.mubr.msk.bf16.mxu0 %vm1141_vm5, %v14155_v24  ;;  %v4734_v24 = vshrl.u32 %v14261_v21, 16  ;;  %v19781_v21 = vld [vmem:[%s18354_s12 + $0x4c] sm:$0xf] }
 0x30a   : > { %v4839_v37 = vshll.u32 %v19781_v21, 16  ;;  %v4843_v53 = vshrl.u32 %v19781_v21, 16 }
 0x30b   : > { %v4736_v15 = vrot.slane %v4734_v24, 4 }
 0x310   : > { %15850 = vmatmul.mubr.msk.bf16.gmra.mrb[28].mxu0 %vm1141_vm5, %v14156_v1  ;;  %v4749_v1 = vrot.slane %v4747_v59, 4 }
 0x311   : > { %15853 = vmatprep.mubr.msk.bf16.mxu0 %vm1141_vm5, %v14157_v0  ;;  %v4760_v0 = vrot.slane %v4758_v42, 4  ;;  %v4803_v42 = vrot.slane %v4801_v40, 5 }
 0x312   : > { %v4750_v11 = vor.u32 %v4749_v1, %v19745_v28 }
 0x318   : > { %15854 = vmatmul.mubr.msk.bf16.gmra.mrb[32].mxu0 %vm1141_vm5, %v14158_v44  ;;  %v17416_v44 = vld [vmem:[%s18354_s12 + $0xd8] sm:$0xff]  }
 0x319   : > { %15857 = vmatprep.mubr.msk.bf16.mxu0 %vm1141_vm5, %v14159_v36  ;;  %v4740_v36 = vor.u32 %v4739_v9, %v4736_v15  ;;  %v14276_v9 = vld [vmem:[%s18354_s12 + $0x54] sm:$0xf] }
 0x320   : > { %15858 = vmatmul.mubr.msk.bf16.gmra.mrb[36].mxu0 %vm1141_vm5, %v14160_v43  ;;  %v4764_v43 = vor.u32 %v4763_v16, %v4760_v0  ;;  %v19801_v16 = vld [vmem:[%s18354_s12 + $0x50] sm:$0x1] }
 0x321   : > { %15863 = vmatprep.mubr.msk.bf16.mxu0 %vm1141_vm5, %v17400_v19  ;;  %v4774_v19 = vor.u32 %v4773_v39, %v19753_v58  ;;  %v19804_v39 = vld [vmem:[%s18354_s12 + $0x58] sm:$0xf] }
 0x322   : > { %v4765_v3 = vrot.slane %v4764_v43, 4 }
 0x324   : > { %v4770_v1 = vsel %vm18408_vm4, %v4765_v3, %v19753_v58  ;;  %v14285_v3 = vld [vmem:[%s18354_s12 + $0x78] sm:$0xf] }
 0x328   : > { %15864 = vmatmul.mubr.msk.bf16.vlgmr.msra.gmra.mrb[0].mxu0 %vm1141_vm5, %v17401_v17  ;;  %v4777_v17 = vshll.u32 %v19756_v14, 16 }
 0x329   : > { %15867 = vmatprep.mubr.msk.bf16.mxu0 %vm1141_vm5, %v17402_v35  ;;  %15904 = vmatpush3.bf16.msra.mxu0 %v19578_v27  ;;  %v17407_v27 = vld [vmem:[%s18354_s12 + $0x6c] sm:$0xff]   ;;  %v4788_v35 = vor.u32 %v4787_v5, %v4784_v55 }
 0x32a   : > { %15945 = vmatprep.subr.bf16.mxu0 %v19702_v54  ;;  %v4779_v24 = vrot.slane %v4777_v17, 5 }
 0x32b   : > { %v4789_v62 = vrot.slane %v4788_v35, 4  ;;  %v19831_v35 = vld [vmem:[%s18354_s12 + $0x5c] sm:$0x1] }
 0x330   : > { %15868 = vmatmul.mubr.msk.bf16.gmra.mrb[4].mxu0 %vm1141_vm5, %v17403_v6  ;;  %v14273_v6 = vld [vmem:[%s18354_s12 + $0x48] sm:$0xf] }
 0x331   : > { %15871 = vmatprep.mubr.msk.bf16.mxu0 %vm1141_vm5, %v17404_v51  ;;  %v4798_v51 = vor.u32 %v4797_v60, %v19758_v52  ;;  %v4830_v7 = vshrl.u32 %v14273_v6, 16 }
 0x333   : > { %v4799_v59 = vrot.slane %v4798_v51, 4  ;;  %v4832_v31 = vrot.slane %v4830_v7, 4  ;;  %v19835_v51 = vld [vmem:[%s18354_s12 + $0x64] sm:$0xf] }
 0x335   : > { %v4804_v55 = vsel %vm18408_vm4, %v4799_v59, %v4803_v42  ;;  %v19853_v59 = vld [vmem:[%s18354_s12 + $0x7c] sm:$0xf] }
 0x338   : > { %15872 = vmatmul.mubr.msk.bf16.gmra.mrb[8].mxu0 %vm1141_vm5, %v17405_v12  ;;  %v4808_v12 = vrot.slane %v4806_v56, 4  ;;  %v19819_v56 = vrot.slane %v4839_v37, 5  ;;  %v4873_v37 = vshll.u32 %v19831_v35, 16 }
 0x339   : > { %15875 = vmatprep.mubr.msk.bf16.mxu0 %vm1141_vm5, %v17406_v8  ;;  %v4811_v8 = vrot.slane %v4809_v13, 5  ;;  %v4845_v13 = vrot.slane %v4843_v53, 4  ;;  %v4926_v53 = vshrl.u32 %v14285_v3, 16 }
 0x33b   : > { %v4812_v20 = vor.u32 %v4811_v8, %v4808_v12  ;;  %v4846_v12 = vor.u32 %v4845_v13, %v19819_v56 }
 0x33d   : > { %v19812_v5 = vrot.slane %v4812_v20, 4 }
 0x340   : > { %15876 = vmatmul.mubr.msk.bf16.gmra.mrb[12].mxu0 %vm1141_vm5, %v17407_v27  ;;  %v4741_v27 = vrot.slane %v4740_v36, 4 }
 0x341   : > { %15879 = vmatprep.mubr.msk.bf16.mxu0 %vm1141_vm5, %v17408_v63  ;;  %v19776_v63 = vld [vmem:[%s18354_s12 + $0x44] sm:$0x1] }
 0x342   : > { %v4825_v29 = vshll.u32 %v19776_v63, 16  ;;  %v4746_v2 = vsel %vm18408_vm4, %v4741_v27, %v19745_v28  ;;  %v4794_v28 = vsel %vm18408_vm4, %v4789_v62, %v19758_v52  ;;  %v4849_v52 = vshll.u32 %v19801_v16, 16 }
 0x343   : > { %v4867_v27 = vshrl.u32 %v19804_v39, 16  ;;  %v4887_v62 = vshll.u32 %v19835_v51, 16 }
 0x344   : > { %v19814_v58 = vrot.slane %v4825_v29, 5 }
 0x348   : > { %15880 = vmatmul.mubr.msk.bf16.gmra.mrb[16].mxu0 %vm1141_vm5, %v17409_v4  ;;  %v19778_v4 = vrot.slane %v4815_v57, 5  ;;  %v4857_v57 = vshll.u32 %v14276_v9, 16 }
 0x349   : > { %15883 = vmatprep.mubr.msk.bf16.mxu0 %vm1141_vm5, %v17410_v61  ;;  %v4821_v61 = vrot.slane %v4819_v23, 4  ;;  %v4863_v23 = vshll.u32 %v19804_v39, 16 }
 0x34a   : > { %v4818_v17 = vsel %vm18408_vm4, %v19812_v5, %v19778_v4  ;;  %v4859_v7 = vrot.slane %v4857_v57, 5 }
 0x34b   : > { %v4822_v33 = vor.u32 %v4821_v61, %v19778_v4  ;;  %v14282_v61 = vld [vmem:[%s18354_s12 + $0x6c] sm:$0xf] }
 0x34c   : > { %v4902_v42 = vshrl.u32 %v14282_v61, 16  ;;  %v4905_v20 = vshll.u32 %v14282_v61, 16 }
 0x34d   : > { %v19817_v60 = vrot.slane %v4822_v33, 4  ;;  %v4869_v33 = vrot.slane %v4867_v27, 4 }
 0x34e   : > { %v4907_v13 = vrot.slane %v4905_v20, 5  ;;  %v4875_v20 = vrot.slane %v4873_v37, 5 }
 0x34f   : > { %v4828_v40 = vsel %vm18408_vm4, %v19817_v60, %v19814_v58  ;;  %v19868_v58 = vld [vmem:[%s18354_s12 + $0x74] sm:$0x1]  ;;  %v4904_v60 = vrot.slane %v4902_v42, 4 }
 0x350   : > { %15884 = vmatmul.mubr.msk.bf16.gmra.mrb[20].mxu0 %vm1141_vm5, %v17411_v41  ;;  %v4751_v41 = vrot.slane %v4750_v11, 4  ;;  %v17419_v11 = vld [vmem:[%s18354_s12 + $0xfc] sm:$0xff]  }
 0x351   : > { %15887 = vmatprep.mubr.msk.bf16.mxu0 %vm1141_vm5, %v17412_v18  ;;  %v4755_v18 = vrot.slane %v4753_v38, 5 }
 0x358   : > { %15888 = vmatmul.mubr.msk.bf16.gmra.mrb[24].mxu0 %vm1141_vm5, %v17413_v10  ;;  %v4833_v10 = vshll.u32 %v14273_v6, 16  ;;  %v14279_v6 = vld [vmem:[%s18354_s12 + $0x60] sm:$0xf] }
 0x359   : > { %15891 = vmatprep.mubr.msk.bf16.mxu0 %vm1141_vm5, %v17414_v50  ;;  %v4775_v50 = vrot.slane %v4774_v19, 4  ;;  %v19824_v19 = vcombine.low %v4794_v28, %v4804_v55  ;;  %v19865_v55 = vrot.slane %v4887_v62, 5 }
 0x35a   : > { %v4835_v15 = vrot.slane %v4833_v10, 5  ;;  %v19847_v10 = vrot.slane %v4863_v23, 5  ;;  %v19877_v23 = vld [vmem:[%s18354_s12 + $0x80] sm:$0x1] }
 0x35b   : > { %v4780_v0 = vsel %vm18408_vm4, %v4775_v50, %v4779_v24  ;;  %v4878_v50 = vshrl.u32 %v14279_v6, 16  ;;  %v4881_v24 = vshll.u32 %v14279_v6, 16  ;;  %v4945_v62 = vshll.u32 %v19877_v23, 16 }
 0x35c   : > { %v4836_v36 = vor.u32 %v4835_v15, %v4832_v31  ;;  %v14322_v43 = vcombine.low %v4770_v1, %v4780_v0  ;;  %v4929_v31 = vshll.u32 %v14285_v3, 16  ;;  %v4847_v15 = vrot.slane %v4846_v12, 4  ;;  %v19863_v1 = vld [vmem:[%s18354_s12 + $0x68] sm:$0x1]  ;;  %v14288_v3 = vld [vmem:[%s18354_s12 + $0x84] sm:$0xf] }
 0x35d   : > { %v4880_v0 = vrot.slane %v4878_v50, 4  ;;  %v4883_v28 = vrot.slane %v4881_v24, 5  ;;  %v4870_v57 = vor.u32 %v4869_v33, %v19847_v10  ;;  %v14324_v50 = vcombine.low %v4818_v17, %v4828_v40 }
 0x35e   : > { %v4837_v4 = vrot.slane %v4836_v36, 4  ;;  %v4908_v24 = vor.u32 %v4907_v13, %v4904_v60  ;;  %v4950_v40 = vshrl.u32 %v14288_v3, 16  ;;  %v4953_v33 = vshll.u32 %v14288_v3, 16  ;;  %v19932_v3 = vld [vmem:[%s18354_s12 + $0xa0] sm:$0xf] }
 0x35f   : > { %v4884_v61 = vor.u32 %v4883_v28, %v4880_v0  ;;  %v4871_v42 = vrot.slane %v4870_v57, 4 }
 0x360   : > { %15892 = vmatmul.mubr.msk.bf16.gmra.mrb[28].mxu0 %vm1141_vm5, %v17415_v45  ;;  %v4756_v45 = vsel %vm18408_vm4, %v4751_v41, %v4755_v18  ;;  %v19845_v41 = vld [vmem:[%s18354_s12 + $0x70] sm:$0xf]  ;;  %v4851_v18 = vrot.slane %v4849_v52, 5  ;;  %v4842_v52 = vsel %vm18408_vm4, %v4837_v4, %v19819_v56  ;;  %v4897_v56 = vshll.u32 %v19863_v1, 16 }
 0x361   : > { %15895 = vmatprep.mubr.msk.bf16.mxu0 %vm1141_vm5, %v17416_v44  ;;  %v4854_v44 = vshrl.u32 %v14276_v9, 16  ;;  %v14321_v38 = vcombine.low %v4746_v2, %v4756_v45  ;;  %v4911_v29 = vshll.u32 %v19845_v41, 16  ;;  %v4935_v2 = vshll.u32 %v19853_v59, 16 }
 0x362   : > { %v4939_v45 = vshrl.u32 %v19853_v59, 16  ;;  %v4852_v6 = vsel %vm18408_vm4, %v4847_v15, %v4851_v18  ;;  %v4921_v4 = vshll.u32 %v19868_v58, 16  ;;  %v4899_v15 = vrot.slane %v4897_v56, 5 }
 0x363   : > { %v4856_v8 = vrot.slane %v4854_v44, 4  ;;  %v19870_v44 = vrot.slane %v4911_v29, 5  ;;  %v4955_v57 = vrot.slane %v4953_v33, 5  ;;  %v5007_v33 = vshll.u32 %v19932_v3, 16 }
 0x364   : > { %v4941_v27 = vrot.slane %v4939_v45, 4  ;;  %v4923_v37 = vrot.slane %v4921_v4, 5 }
 0x365   : > { %v4860_v9 = vor.u32 %v4859_v7, %v4856_v8  ;;  %v19883_v8 = vrot.slane %v4935_v2, 5  ;;  %v4909_v2 = vrot.slane %v4908_v24, 4 }
 0x367   : > { %v19881_v12 = vrot.slane %v4860_v9, 4  ;;  %v4942_v17 = vor.u32 %v4941_v27, %v19883_v8  ;;  %v19905_v9 = vld [vmem:[%s18354_s12 + $0x94] sm:$0xf] }
 0x368   : > { %15896 = vmatmul.mubr.msk.bf16.gmra.mrb[32].mxu0 %vm1141_vm5, %v17417_v26  ;;  %v4891_v26 = vshrl.u32 %v19835_v51, 16  ;;  %v4987_v27 = vshrl.u32 %v19905_v9, 16 }
 0x369   : > { %15899 = vmatprep.mubr.msk.bf16.mxu0 %vm1141_vm5, %v17418_v47  ;;  %v4915_v47 = vshrl.u32 %v19845_v41, 16 }
 0x36a   : > { %v4893_v5 = vrot.slane %v4891_v26, 4  ;;  %v14325_v26 = vcombine.low %v4842_v52, %v4852_v6  ;;  %v4952_v52 = vrot.slane %v4950_v40, 4  ;;  %v4989_v40 = vrot.slane %v4987_v27, 4 }
 0x36b   : > { %v4917_v36 = vrot.slane %v4915_v47, 4  ;;  %v19895_v47 = vld [vmem:[%s18354_s12 + $0x88] sm:$0xf] }
 0x36c   : > { %v4894_v7 = vor.u32 %v4893_v5, %v19865_v55  ;;  %v4959_v0 = vshll.u32 %v19895_v47, 16  ;;  %v19909_v5 = vld [vmem:[%s18354_s12 + $0x8c] sm:$0x1] }
 0x36d   : > { %v4918_v18 = vor.u32 %v4917_v36, %v19870_v44  ;;  %v4943_v36 = vrot.slane %v4942_v17, 4  ;;  %v19943_v17 = vld [vmem:[%s18354_s12 + $0x98] sm:$0x1] }
 0x36e   : > { %v19928_v4 = vrot.slane %v4959_v0, 5 }
 0x36f   : > { %v4919_v45 = vrot.slane %v4918_v18, 4 }
 0x370   : > { %15900 = vmatmul.mubr.msk.bf16.gmra.mrb[36].mxu0 %vm1141_vm5, %v17419_v11  ;;  %v4928_v11 = vrot.slane %v4926_v53, 4  ;;  %v4885_v53 = vrot.slane %v4884_v61, 4  ;;  %v14294_v61 = vld [vmem:[%s18354_s12 + $0x9c] sm:$0xf] }
 0x371   : > { %15905 = vmatprep.mubr.msk.bf16.mxu0 %vm1141_vm5, %v14321_v38  ;;  %v4931_v38 = vrot.slane %v4929_v31, 5  ;;  %v4895_v31 = vrot.slane %v4894_v7, 4  ;;  %v4914_v7 = vsel %vm18408_vm4, %v4909_v2, %v19870_v44  ;;  %v4924_v56 = vsel %vm18408_vm4, %v4919_v45, %v4923_v37  ;;  %v14297_v45 = vld [vmem:[%s18354_s12 + $0xa8] sm:$0xf] }
 0x372   : > { %v4890_v6 = vsel %vm18408_vm4, %v4885_v53, %v19865_v55  ;;  %v4969_v55 = vshll.u32 %v19909_v5, 16 }
 0x373   : > { %v4932_v29 = vor.u32 %v4931_v38, %v4928_v11  ;;  %v4983_v11 = vshll.u32 %v19905_v9, 16  ;;  %v4876_v38 = vsel %vm18408_vm4, %v4871_v42, %v4875_v20  ;;  %v4956_v42 = vor.u32 %v4955_v57, %v4952_v52 }
 0x374   : > { %v19948_v37 = vrot.slane %v4969_v55, 5  ;;  %v19959_v52 = vrot.slane %v5007_v33, 5  ;;  %v14303_v33 = vld [vmem:[%s18354_s12 + $0xc0] sm:$0xf] }
 0x375   : > { %v4933_v28 = vrot.slane %v4932_v29, 4  ;;  %v19940_v20 = vrot.slane %v4983_v11, 5  ;;  %v4998_v29 = vshrl.u32 %v14294_v61, 16  ;;  %v19962_v11 = vld [vmem:[%s18354_s12 + $0xb8] sm:$0xf] }
 0x376   : > { %22830 = vst [vmem:[#allocation36_spill] sm:$0xff] %v19962_v11 }
 0x377   : > { %v4938_v24 = vsel %vm18408_vm4, %v4933_v28, %v19883_v8  ;;  %v5011_v8 = vshrl.u32 %v19932_v3, 16  ;;  %v19954_v28 = vrot.slane %v4956_v42, 4 }
 0x378   : > { %15906 = vmatmul.mubr.msk.bf16.vlgmr.msra.gmra.mrb[0].mxu0 %vm1141_vm5, %v14322_v43  ;;  %v4866_v43 = vsel %vm18408_vm4, %v19881_v12, %v19847_v10  ;;  %v4963_v10 = vshrl.u32 %v19895_v47, 16  ;;  %v4900_v12 = vsel %vm18408_vm4, %v4895_v31, %v4899_v15  ;;  %v14328_v31 = vcombine.low %v4914_v7, %v4924_v56 }
 0x379   : > { %15909 = vmatprep.mubr.msk.bf16.mxu0 %vm1141_vm5, %v19824_v19  ;;  %15946 = vmatpush3.bf16.msra.mxu0 %v19702_v54  ;;  %v14291_v19 = vld [vmem:[%s18354_s12 + $0x90] sm:$0xf]  ;;  %v4947_v54 = vrot.slane %v4945_v62, 5  ;;  %v14327_v53 = vcombine.low %v4890_v6, %v4900_v12  ;;  %v5013_v57 = vrot.slane %v5011_v8, 4  ;;  %v5022_v6 = vshrl.u32 %v14297_v45, 16 }
 0x37a   : > { %v4974_v60 = vshrl.u32 %v14291_v19, 16  ;;  %v4977_v13 = vshll.u32 %v14291_v19, 16  ;;  %v14326_v19 = vcombine.low %v4866_v43, %v4876_v38  ;;  %v4990_v43 = vor.u32 %v4989_v40, %v19940_v20  ;;  %v19966_v38 = vld [vmem:[%s18354_s12 + $0xa4] sm:$0x1]  ;;  %v19981_v8 = vld [vmem:[%s18354_s12 + $0xb0] sm:$0x1] }
 0x37b   : > { %v4948_v44 = vsel %vm18408_vm4, %v4943_v36, %v4947_v54  ;;  %v19952_v54 = vld [vmem:[%s18354_s12 + $0xac] sm:$0xf]  ;;  %v5025_v12 = vshll.u32 %v14297_v45, 16  ;;  %v5014_v40 = vor.u32 %v5013_v57, %v19959_v52  ;;  %v5070_v57 = vshrl.u32 %v14303_v33, 16 }
 0x37c   : > { %v4976_v18 = vrot.slane %v4974_v60, 4  ;;  %v4979_v62 = vrot.slane %v4977_v13, 5  ;;  %v14329_v0 = vcombine.low %v4938_v24, %v4948_v44  ;;  %v5000_v60 = vrot.slane %v4998_v29, 4  ;;  %v14300_v13 = vld [vmem:[%s18354_s12 + $0xb4] sm:$0xf] }
 0x37d   : > { %v5031_v27 = vshll.u32 %v19952_v54, 16  ;;  %v5046_v55 = vshrl.u32 %v14300_v13, 16  ;;  %v5049_v24 = vshll.u32 %v14300_v13, 16  ;;  %v5059_v44 = vshrl.u32 %v19962_v11, 16 }
 0x37e   : > { %v4980_v2 = vor.u32 %v4979_v62, %v4976_v18  ;;  %v5055_v62 = vshll.u32 %v19962_v11, 16  ;;  %v4991_v42 = vrot.slane %v4990_v43, 4  ;;  %v20090_v11 = vld [vmem:[%s18354_s12 + $0x100] sm:$0xf] }
 0x37f   : > { %v5061_v43 = vrot.slane %v5059_v44, 4  ;;  %v22731_v44 = vmov 0  }
 0x380   : > { %15910 = vmatmul.mubr.msk.bf16.gmra.mrb[4].mxu0 %vm1141_vm5, %v14324_v50  ;;  %v4965_v50 = vrot.slane %v4963_v10, 4  ;;  %v4993_v10 = vshll.u32 %v19943_v17, 16  ;;  %v4981_v56 = vrot.slane %v4980_v2, 4  ;;  %v19994_v13 = vrot.slane %v5055_v62, 5  ;;  %17359 = vset.pattern.permute.xlu0 %v22731_v44 }
 0x381   : > { %15913 = vmatprep.mubr.msk.bf16.mxu0 %vm1141_vm5, %v14325_v26  ;;  %v5001_v26 = vshll.u32 %v14294_v61, 16  ;;  %v5035_v61 = vshrl.u32 %v19952_v54, 16 }
 0x382   : > { %v4966_v15 = vor.u32 %v4965_v50, %v19928_v4  ;;  %v4962_v50 = vsel %vm18408_vm4, %v19954_v28, %v19928_v4  ;;  %v4995_v18 = vrot.slane %v4993_v10, 5  ;;  %v4986_v45 = vsel %vm18408_vm4, %v4981_v56, %v19940_v20  ;;  %v19992_v28 = vld [vmem:[%s18354_s12 + $0xbc] sm:$0x1] }
 0x383   : > { %v5003_v36 = vrot.slane %v5001_v26, 5  ;;  %v5017_v26 = vshll.u32 %v19966_v38, 16  ;;  %v5037_v4 = vrot.slane %v5035_v61, 4  ;;  %22831 = vst [vmem:[#allocation37_spill] sm:$0xff] %v19992_v28  ;;  %v5048_v10 = vrot.slane %v5046_v55, 4 }
 0x384   : > { %v4967_v7 = vrot.slane %v4966_v15, 4  ;;  %v19983_v15 = vrot.slane %v5031_v27, 5  ;;  %v5041_v20 = vshll.u32 %v19981_v8, 16  ;;  %v5015_v61 = vrot.slane %v5014_v40, 4  ;;  %v14886_v55 = vld [vmem:[#allocation4] ss:$0 sm:$0xff] }
 0x385   : > { %v5004_v29 = vor.u32 %v5003_v36, %v5000_v60  ;;  %v5051_v60 = vrot.slane %v5049_v24, 5  ;;  %v19997_v36 = vld [vmem:[%s18354_s12 + $0xc4] sm:$0xf]  ;;  %v5065_v24 = vshll.u32 %v19992_v28, 16  ;;  %10909 = vperm.xlu0 %17359, %v14886_v55  }
 0x386   : > { %v4972_v2 = vsel %vm18408_vm4, %v4967_v7, %v19948_v37  ;;  %22832 = vst [vmem:[#allocation35_spill] sm:$0xff] %v19997_v36  ;;  %v20003_v37 = vrot.slane %v5017_v26, 5  ;;  %v5038_v56 = vor.u32 %v5037_v4, %v19983_v15  ;;  %v5083_v62 = vshrl.u32 %v19997_v36, 16  ;;  %v14306_v26 = vld [vmem:[%s18354_s12 + $0xcc] sm:$0xf] }
 0x387   : > { %v20001_v27 = vrot.slane %v5004_v29, 4  ;;  %v5072_v29 = vrot.slane %v5070_v57, 4  ;;  %v20023_v57 = vld [vmem:[%s18354_s12 + $0xd0] sm:$0xf]  ;;  %v5067_v28 = vrot.slane %v5065_v24, 5 }
 0x388   : > { %15914 = vmatmul.mubr.msk.bf16.gmra.mrb[8].mxu0 %vm1141_vm5, %v14326_v19  ;;  %v5024_v19 = vrot.slane %v5022_v6, 4  ;;  %v5073_v6 = vshll.u32 %v14303_v33, 16  ;;  %22833 = vst [vmem:[#allocation39_spill] sm:$0xff] %v20023_v57 }
 0x389   : > { %15917 = vmatprep.mubr.msk.bf16.mxu0 %vm1141_vm5, %v14327_v53  ;;  %v5027_v53 = vrot.slane %v5025_v12, 5  ;;  %v4996_v12 = vsel %vm18408_vm4, %v4991_v42, %v4995_v18  ;;  %v5079_v18 = vshll.u32 %v19997_v36, 16  ;;  %v5052_v42 = vor.u32 %v5051_v60, %v5048_v10 }
 0x38a   : > { %v5075_v40 = vrot.slane %v5073_v6, 5  ;;  %v14331_v33 = vcombine.low %v4986_v45, %v4996_v12  ;;  %v5010_v4 = vsel %vm18408_vm4, %v20001_v27, %v19959_v52  ;;  %v5020_v10 = vsel %vm18408_vm4, %v5015_v61, %v20003_v37  ;;  %v14309_v6 = vld [vmem:[%s18354_s12 + $0xd8] sm:$0xf]  ;;  %v20029_v12 = vld [vmem:[%s18354_s12 + $0xdc] sm:$0xf] }
 0x38b   : > { %v5028_v7 = vor.u32 %v5027_v53, %v5024_v19  ;;  %v5043_v19 = vrot.slane %v5041_v20, 5  ;;  %v15098_v53 = vld [vmem:[#allocation5] ss:$0 sm:$0xff]  ;;  %v20026_v55 = vrot.slane %v5079_v18, 5  ;;  %v5097_v45 = vshll.u32 %v14306_v26, 16  ;;  %22834 = vst [vmem:[#allocation38_spill] sm:$0xff] %v20029_v12 }
 0x38c   : > { %v5053_v20 = vrot.slane %v5052_v42, 4  ;;  %v20032_v52 = vld [vmem:[%s18354_s12 + $0xc8] sm:$0x1]  ;;  %v5076_v27 = vor.u32 %v5075_v40, %v5072_v29  ;;  %13417 = vperm.xlu0 %17359, %v15098_v53   ;;  %v5103_v37 = vshll.u32 %v20023_v57, 16  ;;  %v5107_v61 = vshrl.u32 %v20023_v57, 16 }
 0x38d   : > { %v5029_v60 = vrot.slane %v5028_v7, 4  ;;  %22835 = vst [vmem:[#allocation34_spill] sm:$0xff] %v20032_v52  ;;  %v5118_v7 = vshrl.u32 %v14309_v6, 16  ;;  %v5131_v42 = vshrl.u32 %v20029_v12, 16  ;;  %v5089_v29 = vshll.u32 %v20032_v52, 16 }
 0x38e   : > { %v20053_v53 = vld [vmem:[%s18354_s12 + $0xd4] sm:$0x1] }
 0x38f   : > { %v5034_v18 = vsel %vm18408_vm4, %v5029_v60, %v19983_v15  ;;  %v5058_v15 = vsel %vm18408_vm4, %v5053_v20, %v19994_v13  ;;  %22836 = vst [vmem:[#allocation32_spill] sm:$0xff] %v20053_v53  ;;  %v20055_v60 = vrot.slane %v5103_v37, 5  ;;  %v14312_v20 = vld [vmem:[%s18354_s12 + $0xe4] sm:$0xf]  ;;  %v5113_v57 = vshll.u32 %v20053_v53, 16 }
 0x390   : > { %15918 = vmatmul.mubr.msk.bf16.gmra.mrb[12].mxu0 %vm1141_vm5, %v14328_v31  ;;  %v5062_v31 = vor.u32 %v5061_v43, %v19994_v13  ;;  %v5039_v43 = vrot.slane %v5038_v56, 4  ;;  %v5121_v56 = vshll.u32 %v14309_v6, 16  ;;  %v5133_v13 = vrot.slane %v5131_v42, 4  ;;  %v20065_v37 = vld [vmem:[%s18354_s12 + $0xe8] sm:$0xf] }
 0x391   : > { %15921 = vmatprep.mubr.msk.bf16.mxu0 %vm1141_vm5, %v14329_v0  ;;  %v14330_v0 = vcombine.low %v4962_v50, %v4972_v2  ;;  %v5085_v50 = vrot.slane %v5083_v62, 4  ;;  %v5094_v2 = vshrl.u32 %v14306_v26, 16  ;;  %v5127_v62 = vshll.u32 %v20029_v12, 16  ;;  %22838 = vst [vmem:[#allocation33_spill] sm:$0xff] %v20065_v37 }
 0x392   : > { %v5063_v44 = vrot.slane %v5062_v31, 4  ;;  %v5044_v24 = vsel %vm18408_vm4, %v5039_v43, %v5043_v19  ;;  %v5099_v26 = vrot.slane %v5097_v45, 5  ;;  %v5077_v19 = vrot.slane %v5076_v27, 4  ;;  %v20058_v45 = vld [vmem:[%s18354_s12 + $0xe0] sm:$0x1] }
 0x393   : > { %v5086_v31 = vor.u32 %v5085_v50, %v20026_v55  ;;  %v5096_v40 = vrot.slane %v5094_v2, 4  ;;  %v5120_v43 = vrot.slane %v5118_v7, 4  ;;  %v5123_v6 = vrot.slane %v5121_v56, 5  ;;  %22837 = vst [vmem:[#allocation31_spill] sm:$0xff] %v20058_v45 }
 0x394   : > { %v14332_v50 = vcombine.low %v5010_v4, %v5020_v10  ;;  %v14333_v2 = vcombine.low %v5034_v18, %v5044_v24  ;;  %v20060_v12 = vrot.slane %v5127_v62, 5  ;;  %v5137_v10 = vshll.u32 %v20058_v45, 16  ;;  %v14315_v18 = vld [vmem:[%s18354_s12 + $0xf0] sm:$0xf]  ;;  %v20071_v24 = vld [vmem:[%s18354_s12 + $0xf4] sm:$0xf] }
 0x395   : > { %v5100_v27 = vor.u32 %v5099_v26, %v5096_v40  ;;  %v5124_v4 = vor.u32 %v5123_v6, %v5120_v43  ;;  %v5142_v56 = vshrl.u32 %v14312_v20, 16  ;;  %v5145_v42 = vshll.u32 %v14312_v20, 16 }
 0x396   : > { %v5134_v62 = vor.u32 %v5133_v13, %v20060_v12  ;;  %v5082_v40 = vsel %vm18408_vm4, %v5077_v19, %v20026_v55  ;;  %v5169_v43 = vshll.u32 %v14315_v18, 16  ;;  %v5175_v6 = vshll.u32 %v20071_v24, 16  ;;  %v20086_v55 = vld [vmem:[%s18354_s12 + $0xec] sm:$0x1] }
 0x397   : > { %v5125_v20 = vrot.slane %v5124_v4, 4  ;;  %v5147_v19 = vrot.slane %v5145_v42, 5 }
 0x398   : > { %15922 = vmatmul.mubr.msk.bf16.gmra.mrb[16].mxu0 %vm1141_vm5, %v14330_v0  ;;  %v5068_v0 = vsel %vm18408_vm4, %v5063_v44, %v5067_v28  ;;  %v5087_v28 = vrot.slane %v5086_v31, 4  ;;  %v5091_v44 = vrot.slane %v5089_v29, 5  ;;  %v5151_v31 = vshll.u32 %v20065_v37, 16 }
 0x399   : > { %15925 = vmatprep.mubr.msk.bf16.mxu0 %vm1141_vm5, %v14331_v33  ;;  %v5109_v33 = vrot.slane %v5107_v61, 4  ;;  %v14334_v61 = vcombine.low %v5058_v15, %v5068_v0  ;;  %v5155_v29 = vshrl.u32 %v20065_v37, 16  ;;  %v5101_v15 = vrot.slane %v5100_v27, 4 }
 0x39a   : > { %v5092_v26 = vsel %vm18408_vm4, %v5087_v28, %v5091_v44  ;;  %v5115_v0 = vrot.slane %v5113_v57, 5  ;;  %v5144_v37 = vrot.slane %v5142_v56, 4  ;;  %v5135_v45 = vrot.slane %v5134_v62, 4  ;;  %v14318_v57 = vld [vmem:[%s18354_s12 + $0xfc] sm:$0xf] }
 0x39b   : > { %v5110_v7 = vor.u32 %v5109_v33, %v20055_v60  ;;  %v5166_v33 = vshrl.u32 %v14315_v18, 16  ;;  %v5153_v28 = vrot.slane %v5151_v31, 5  ;;  %v5157_v44 = vrot.slane %v5155_v29, 4  ;;  %v20099_v56 = vld [vmem:[%s18354_s12 + $0xf8] sm:$0x1] }
 0x39c   : > { %v14335_v27 = vcombine.low %v5082_v40, %v5092_v26  ;;  %v5171_v18 = vrot.slane %v5169_v43, 5  ;;  %v5177_v52 = vrot.slane %v5175_v6, 5  ;;  %v5130_v62 = vsel %vm18408_vm4, %v5125_v20, %v20060_v12 }
 0x39d   : > { %v5111_v13 = vrot.slane %v5110_v7, 4  ;;  %v5168_v53 = vrot.slane %v5166_v33, 4  ;;  %v5106_v7 = vsel %vm18408_vm4, %v5101_v15, %v20055_v60  ;;  %v5148_v31 = vor.u32 %v5147_v19, %v5144_v37 }
 0x39e   : > { %v5158_v29 = vor.u32 %v5157_v44, %v5153_v28  ;;  %v5190_v60 = vshrl.u32 %v14318_v57, 16  ;;  %v5193_v40 = vshll.u32 %v14318_v57, 16  ;;  %v5199_v26 = vshll.u32 %v20090_v11, 16  ;;  %v20112_v57 = vld [vmem:[%s18354_s12 + $0x104] sm:$0x1] }
 0x39f   : > { %v5116_v4 = vsel %vm18408_vm4, %v5111_v13, %v5115_v0  ;;  %v5203_v15 = vshrl.u32 %v20090_v11, 16  ;;  %v5172_v0 = vor.u32 %v5171_v18, %v5168_v53  ;;  %v5185_v33 = vshll.u32 %v20099_v56, 16 }
 0x3a0   : > { %15926 = vmatmul.mubr.msk.bf16.gmra.mrb[20].mxu0 %vm1141_vm5, %v14332_v50  ;;  %v5179_v50 = vshrl.u32 %v20071_v24, 16  ;;  %v14336_v43 = vcombine.low %v5106_v7, %v5116_v4  ;;  %v5149_v6 = vrot.slane %v5148_v31, 4  ;;  %v5192_v37 = vrot.slane %v5190_v60, 4  ;;  %v14361_v31 = vld [vmem:[%s18354_s12 + $0x18] sm:$0xe] }
 0x3a1   : > { %15929 = vmatprep.mubr.msk.bf16.mxu0 %vm1141_vm5, %v14333_v2  ;;  %v5139_v2 = vrot.slane %v5137_v10, 5  ;;  %v5161_v10 = vshll.u32 %v20086_v55, 16  ;;  %v5195_v13 = vrot.slane %v5193_v40, 5  ;;  %v5201_v20 = vrot.slane %v5199_v26, 5 }
 0x3a2   : > { %v5181_v36 = vrot.slane %v5179_v50, 4  ;;  %v5159_v50 = vrot.slane %v5158_v29, 4  ;;  %v5173_v19 = vrot.slane %v5172_v0, 4  ;;  %v5209_v4 = vshll.u32 %v20112_v57, 16 }
 0x3a3   : > { %v5140_v42 = vsel %vm18408_vm4, %v5135_v45, %v5139_v2  ;;  %v5163_v45 = vrot.slane %v5161_v10, 5  ;;  %v5205_v2 = vrot.slane %v5203_v15, 4  ;;  %v5196_v18 = vor.u32 %v5195_v13, %v5192_v37 }
 0x3a4   : > { %v14337_v12 = vcombine.low %v5130_v62, %v5140_v42  ;;  %v5178_v10 = vsel %vm18408_vm4, %v5173_v19, %v5177_v52  ;;  %v5653_v42 = vrot.slane %v19723_v32, 5  ;;  %v5211_v26 = vrot.slane %v5209_v4, 5 }
 0x3a5   : > { %v5164_v53 = vsel %vm18408_vm4, %v5159_v50, %v5163_v45  ;;  %v5206_v7 = vor.u32 %v5205_v2, %v5201_v20  ;;  %v5197_v60 = vrot.slane %v5196_v18, 4  ;;  %v14381_v15 = vrot.slane %v14361_v31, 9  ;;  %v14363_v50 = vld [vmem:[%s18354_s12 + $0x30] sm:$0xe]  ;;  %v14365_v18 = vld [vmem:[%s18354_s12 + $0x48] sm:$0xe] }
 0x3a6   : > { %v5655_v0 = vrot.slane %v5653_v42, 4  ;;  %v14383_v2 = vrot.slane %v14363_v50, 9  ;;  %v5670_v19 = vrot.slane %v19762_v22, 5  ;;  %v5681_v22 = vrot.slane %v19781_v21, 5 }
 0x3a7   : > { %v5207_v40 = vrot.slane %v5206_v7, 4  ;;  %v14385_v31 = vrot.slane %v14365_v18, 9 }
 0x3a8   : > { %15930 = vmatmul.mubr.msk.bf16.gmra.mrb[24].mxu0 %vm1141_vm5, %v14334_v61  ;;  %v5182_v61 = vor.u32 %v5181_v36, %v5177_v52  ;;  %v5154_v36 = vsel %vm18408_vm4, %v5149_v6, %v5153_v28  ;;  %v5202_v52 = vsel %vm18408_vm4, %v5197_v60, %v5201_v20  ;;  %v14362_v6 = vld [vmem:[%s18354_s12 + $0x24] sm:$0xe]  ;;  %v5688_v60 = vrot.slane %v19804_v39, 5 }
 0x3a9   : > { %15933 = vmatprep.mubr.msk.bf16.mxu0 %vm1141_vm5, %v14335_v27  ;;  %v5187_v27 = vrot.slane %v5185_v33, 5  ;;  %v14338_v28 = vcombine.low %v5154_v36, %v5164_v53  ;;  %v5212_v32 = vsel %vm18408_vm4, %v5207_v40, %v5211_v26  ;;  %v5660_v33 = vrot.slane %v19728_v25, 5  ;;  %v14364_v53 = vld [vmem:[%s18354_s12 + $0x3c] sm:$0xe]  ;;  %v14366_v26 = vld [vmem:[%s18354_s12 + $0x54] sm:$0xe] }
 0x3aa   : > { %v5183_v44 = vrot.slane %v5182_v61, 4  ;;  %v5656_v61 = vrot.slane %v19751_v49, 5  ;;  %v5667_v49 = vrot.slane %v19733_v34, 5  ;;  %v14340_v45 = vcombine.low %v5202_v52, %v5212_v32 }
 0x3ab   : > { %v14382_v13 = vrot.slane %v14362_v6, 9  ;;  %v5662_v20 = vrot.slane %v5660_v33, 4  ;;  %v5682_v40 = vsel %vm18775_vm8, %v14385_v31, %v5681_v22  ;;  %v14386_v52 = vrot.slane %v14366_v26, 9 }
 0x3ac   : > { %v5188_v62 = vsel %vm18408_vm4, %v5183_v44, %v5187_v27  ;;  %v5669_v25 = vrot.slane %v5667_v49, 4  ;;  %v5674_v27 = vrot.slane %v19748_v46, 5  ;;  %v5668_v36 = vsel %vm18775_vm8, %v14383_v2, %v5667_v49 }
 0x3ad   : > { %v14339_v29 = vcombine.low %v5178_v10, %v5188_v62  ;;  %v5661_v34 = vsel %vm18775_vm8, %v14382_v13, %v5660_v33  ;;  %v5664_v44 = vsel %vm18775_vm8, %v5662_v20, %v5663_v30  ;;  %v14384_v10 = vrot.slane %v14364_v53, 9  ;;  %v14371_v53 = vld [vmem:[%s18354_s12 + $0x90] sm:$0xe] }
 0x3ae   : > { %v5671_v14 = vsel %vm18775_vm8, %v5669_v25, %v5670_v19  ;;  %v14402_v7 = vcombine.low %v5661_v34, %v5664_v44  ;;  %v5676_v62 = vrot.slane %v5674_v27, 4  ;;  %v5683_v46 = vrot.slane %v5681_v22, 4 }
 0x3af   : > { %v14403_v4 = vcombine.low %v5668_v36, %v5671_v14  ;;  %v5675_v21 = vsel %vm18775_vm8, %v14384_v10, %v5674_v27  ;;  %v5690_v32 = vrot.slane %v5688_v60, 4  ;;  %v5691_v33 = vrot.slane %v19831_v35, 5  ;;  %v14370_v14 = vld [vmem:[%s18354_s12 + $0x84] sm:$0xe] }
 0x3b0   : > { %15934 = vmatmul.mubr.msk.bf16.gmra.mrb[28].mxu0 %vm1141_vm5, %v14336_v43  ;;  %v5654_v43 = vsel %vm18775_vm8, %v14381_v15, %v5653_v42  ;;  %v5677_v42 = vrot.slane %v19776_v63, 5  ;;  %v14367_v15 = vld [vmem:[%s18354_s12 + $0x60] sm:$0xe]  ;;  %v5702_v49 = vrot.slane %v19845_v41, 5  ;;  %v5705_v25 = vrot.slane %v19868_v58, 5 }
 0x3b1   : > { %15937 = vmatprep.mubr.msk.bf16.mxu0 %vm1141_vm5, %v14337_v12  ;;  %v5657_v12 = vsel %vm18775_vm8, %v5655_v0, %v5656_v61  ;;  %v5692_v6 = vsel %vm18775_vm8, %v5690_v32, %v5691_v33  ;;  %v5712_v34 = vrot.slane %v19877_v23, 5  ;;  %v5716_v27 = vrot.slane %v19895_v47, 5 }
 0x3b2   : > { %v14401_v37 = vcombine.low %v5654_v43, %v5657_v12  ;;  %v14387_v43 = vrot.slane %v14367_v15, 9  ;;  %v5698_v12 = vrot.slane %v19863_v1, 5  ;;  %v5709_v1 = vrot.slane %v19853_v59, 5 }
 0x3b3   : > { %v5704_v2 = vrot.slane %v5702_v49, 4  ;;  %v5723_v23 = vrot.slane %v19905_v9, 5  ;;  %v5719_v10 = vrot.slane %v19909_v5, 5 }
 0x3b4   : > { %v5711_v41 = vrot.slane %v5709_v1, 4 }
 0x3b5   : > { %v5706_v44 = vsel %vm18775_vm8, %v5704_v2, %v5705_v25  ;;  %v5725_v47 = vrot.slane %v5723_v23, 4  ;;  %v22843_v25 = vld [vmem:[#allocation39_spill] sm:$0xff] }
 0x3b6   : > { %v5713_v58 = vsel %vm18775_vm8, %v5711_v41, %v5712_v34 }
 0x3b8   : > { %15938 = vmatmul.mubr.msk.bf16.gmra.mrb[32].mxu0 %vm1141_vm5, %v14338_v28  ;;  %v5684_v28 = vrot.slane %v19801_v16, 5  ;;  %v5695_v16 = vrot.slane %v19835_v51, 5  ;;  %v5689_v51 = vsel %vm18775_vm8, %v14386_v52, %v5688_v60  ;;  %v22839_v52 = vld [vmem:[#allocation36_spill] sm:$0xff] }
 0x3b9   : > { %15941 = vmatprep.mubr.msk.bf16.mxu0 %vm1141_vm5, %v14339_v29  ;;  %v5678_v29 = vsel %vm18775_vm8, %v5676_v62, %v5677_v42  ;;  %v14406_v13 = vcombine.low %v5689_v51, %v5692_v6  ;;  %v14391_v62 = vrot.slane %v14371_v53, 9  ;;  %v5726_v42 = vrot.slane %v19943_v17, 5 }
 0x3ba   : > { %v5685_v63 = vsel %vm18775_vm8, %v5683_v46, %v5684_v28  ;;  %v14404_v0 = vcombine.low %v5675_v21, %v5678_v29  ;;  %v5697_v39 = vrot.slane %v5695_v16, 4  ;;  %v5696_v50 = vsel %vm18775_vm8, %v14387_v43, %v5695_v16  ;;  %v14372_v21 = vld [vmem:[%s18354_s12 + $0x9c] sm:$0xe]  ;;  %v14373_v29 = vld [vmem:[%s18354_s12 + $0xa8] sm:$0xe] }
 0x3bb   : > { %v14405_v61 = vcombine.low %v5682_v40, %v5685_v63  ;;  %v5730_v46 = vrot.slane %v19932_v3, 5  ;;  %v5724_v28 = vsel %vm18775_vm8, %v14391_v62, %v5723_v23  ;;  %v5727_v5 = vsel %vm18775_vm8, %v5725_v47, %v5726_v42  ;;  %v14374_v43 = vld [vmem:[%s18354_s12 + $0xb4] sm:$0xe] }
 0x3bc   : > { %v5699_v35 = vsel %vm18775_vm8, %v5697_v39, %v5698_v12  ;;  %v5737_v17 = vrot.slane %v19952_v54, 5  ;;  %v14411_v40 = vcombine.low %v5724_v28, %v5727_v5  ;;  %v14392_v63 = vrot.slane %v14372_v21, 9  ;;  %v14375_v12 = vld [vmem:[%s18354_s12 + $0xc0] sm:$0xe]  ;;  %v14378_v5 = vld [vmem:[%s18354_s12 + $0xe4] sm:$0xe] }
 0x3bd   : > { %v14407_v20 = vcombine.low %v5696_v50, %v5699_v35  ;;  %v5732_v26 = vrot.slane %v5730_v46, 4  ;;  %v5733_v16 = vrot.slane %v19966_v38, 5  ;;  %v14393_v15 = vrot.slane %v14373_v29, 9  ;;  %v22841_v35 = vld [vmem:[#allocation37_spill] sm:$0xff] }
 0x3be   : > { %v5739_v3 = vrot.slane %v5737_v17, 4  ;;  %v5731_v54 = vsel %vm18775_vm8, %v14392_v63, %v5730_v46  ;;  %v5744_v32 = vrot.slane %v22839_v52, 5  ;;  %v5779_v21 = vrot.slane %v20071_v24, 5  ;;  %v14380_v52 = vld [vmem:[%s18354_s12 + $0xfc] sm:$0xe] }
 0x3bf   : > { %v5738_v33 = vsel %vm18775_vm8, %v14393_v15, %v5737_v17  ;;  %v14379_v17 = vld [vmem:[%s18354_s12 + $0xf0] sm:$0xe] }
 0x3c0   : > { %15942 = vmatmul.mubr.msk.bf16.gmra.mrb[36].mxu0 %vm1141_vm5, %v14340_v45  ;;  %v14368_v45 = vld [vmem:[%s18354_s12 + $0x6c] sm:$0xe]  ;;  %v5746_v50 = vrot.slane %v5744_v32, 4  ;;  %v5781_v15 = vrot.slane %v5779_v21, 4 }
 0x3c1   : > { %15947 = vmatprep.mubr.msk.bf16.mxu0 %vm1141_vm5, %v14401_v37  ;;  %v14369_v37 = vld [vmem:[%s18354_s12 + $0x78] sm:$0xe]  ;;  %v14388_v30 = vrot.slane %v14368_v45, 9  ;;  %v5747_v45 = vrot.slane %v22841_v35, 5 }
 0x3c2   : > { %v14389_v19 = vrot.slane %v14369_v37, 9  ;;  %v17425_v35 = vld [vmem:[#allocation12 + $0x18] sm:$0xff]  }
 0x3c3   : > { %v5703_v59 = vsel %vm18775_vm8, %v14388_v30, %v5702_v49  ;;  %v14394_v49 = vrot.slane %v14374_v43, 9  ;;  %v5748_v2 = vsel %vm18775_vm8, %v5746_v50, %v5747_v45  ;;  %v5789_v43 = vrot.slane %v20112_v57, 5  ;;  %v17420_v57 = vld [vmem:[#allocation12] sm:$0xff]  }
 0x3c4   : > { %v5710_v36 = vsel %vm18775_vm8, %v14389_v19, %v5709_v1  ;;  %v14408_v22 = vcombine.low %v5703_v59, %v5706_v44  ;;  %v14395_v1 = vrot.slane %v14375_v12, 9  ;;  %v5758_v19 = vrot.slane %v22843_v25, 5  ;;  %v14376_v59 = vld [vmem:[%s18354_s12 + $0xcc] sm:$0xe]  ;;  %v13486_v12 = vld [vmem:[#allocation20] sm:$0xf]  ;;  %16023 = vmatprep.subr.bf16.mxu1 %v17420_v57 }
 0x3c5   : > { %v14409_v18 = vcombine.low %v5710_v36, %v5713_v58  ;;  %v5745_v30 = vsel %vm18775_vm8, %v14394_v49, %v5744_v32  ;;  %v22844_v44 = vld [vmem:[#allocation38_spill] sm:$0xff]  ;;  %v14377_v36 = vld [vmem:[%s18354_s12 + $0xd8] sm:$0xe]  ;;  %v14396_v23 = vrot.slane %v14376_v59, 9  ;;  %13489 = vperm.xlu0 %17359, %v13486_v12   ;;  %16024 = vmatpush3.bf16.msra.mxu1 %v17420_v57  ;;  %v6236_v50 = vlaneseq  ;;  %s22635_s12 = scalar_lea.hbm %s22972_s15, %s15100_s5 }
 0x3c6   : > { %v14414_v58 = vcombine.low %v5745_v30, %v5748_v2  ;;  %v5760_v53 = vrot.slane %v5758_v19, 4  ;;  %v17422_v49 = vld [vmem:[#allocation12 + $0x10] sm:$0xff]   ;;  %v20385_v30 = vstv %s14442_s14  ;;  %s17813_s14 = sshll.u32 %s17942_s2, 4  ;;  %s17814_s14 = int_to_ptr.vmem [resolvable:$false] %s17813_s14 }
 0x3c7   : > { %v5759_v47 = vsel %vm18775_vm8, %v14396_v23, %v5758_v19  ;;  %15987 = vmatprep.subr.bf16.mxu0 %v17422_v49  ;;  %v20333_v45 = vshrl.u32 %v6236_v50, 7  ;;  %s17815_s18 = scalar_lea.vmem %s17814_s14, 1280  ;;  %p17816_p13 = scmp.lt.s32.totalorder %s22630_s6, %s17814_s14 }
 0x3c8   : > { %15948 = vmatmul.mubr.msk.bf16.vlgmr.msra.gmra.mrb[0].mxu0 %vm1141_vm5, %v14402_v7  ;;  %v14390_v7 = vrot.slane %v14370_v14, 9 }
 0x3c9   : > { %15951 = vmatprep.mubr.msk.bf16.mxu0 %vm1141_vm5, %v14403_v4  ;;  %v5718_v4 = vrot.slane %v5716_v27, 4  ;;  %15988 = vmatpush3.bf16.msra.mxu0 %v17422_v49  ;;  %v6242_v2 = vadd.s32 %v20385_v30, %v20333_v45  ;;  %v20391_v25 = vsub.s32 1, %v20333_v45  ;;  %v20394_v19 = vsub.s32 0, %v20333_v45 }
 0x3ca   : > { %v5717_v9 = vsel %vm18775_vm8, %v14390_v7, %v5716_v27  ;;  %v5765_v27 = vrot.slane %v22844_v44, 5  ;;  %v14397_v7 = vrot.slane %v14377_v36, 9  ;;  %15989 = vmatprep.subr.bf16.mxu0 %v17425_v35  ;;  %v20404_v44 = vsub.s32 3, %v20333_v45 }
 0x3cb   : > { %v5720_v31 = vsel %vm18775_vm8, %v5718_v4, %v5719_v10  ;;  %v22846_v10 = vld [vmem:[#allocation31_spill] sm:$0xff]  ;;  %vm6245_vm11 = vcmp.ge.s32.totalorder %v6242_v2, 0  ;;  %vm6248_vm12 = vcmp.lt.s32.totalorder %v6242_v2, 16  ;;  %v20409_v36 = vsub.s32 2, %v20333_v45 }
 0x3cc   : > { %v14410_v60 = vcombine.low %v5717_v9, %v5720_v31  ;;  %v5767_v4 = vrot.slane %v5765_v27, 4  ;;  %v5768_v62 = vrot.slane %v22846_v10, 5  ;;  %v22847_v9 = vld [vmem:[#allocation33_spill] sm:$0xff]  ;;  %v5766_v46 = vsel %vm18775_vm8, %v14397_v7, %v5765_v27  ;;  %vm6251_vm13 = vmand %vm6245_vm11, %vm6248_vm12  ;;  %v20406_v27 = vld [vmem:[#allocation11] ss:$0 sm:$0xff] }
 0x3cd   : > { %v5772_v31 = vrot.slane %v22847_v9, 5  ;;  %15990 = vmatpush3.bf16.msra.mxu0 %v17425_v35  ;;  %vm20465_vm12 = vmor %vm1202_vm0, %vm6600_vm14  ;;  %vm7117_vm14 = vcmask 261120  }
 0x3ce   : > { %v5769_v28 = vsel %vm18775_vm8, %v5767_v4, %v5768_v62 }
 0x3cf   : > { %v5774_v63 = vrot.slane %v5772_v31, 4 }
 0x3d0   : > { %15952 = vmatmul.mubr.msk.bf16.gmra.mrb[4].mxu0 %vm1141_vm5, %v14404_v0  ;;  %v5740_v0 = vrot.slane %v19981_v8, 5  ;;  %v22840_v8 = vld [vmem:[#allocation35_spill] sm:$0xff] }
 0x3d1   : > { %15955 = vmatprep.mubr.msk.bf16.mxu0 %vm1141_vm5, %v14405_v61  ;;  %v5734_v61 = vsel %vm18775_vm8, %v5732_v26, %v5733_v16  ;;  %v5751_v39 = vrot.slane %v22840_v8, 5  ;;  %v5775_v26 = vrot.slane %v20086_v55, 5  ;;  %v14399_v16 = vrot.slane %v14379_v17, 9 }
 0x3d2   : > { %v5741_v38 = vsel %vm18775_vm8, %v5739_v3, %v5740_v0  ;;  %v14412_v51 = vcombine.low %v5731_v54, %v5734_v61  ;;  %v5782_v3 = vrot.slane %v20099_v56, 5  ;;  %v5786_v54 = vrot.slane %v20090_v11, 5 }
 0x3d3   : > { %v14413_v6 = vcombine.low %v5738_v33, %v5741_v38  ;;  %v5753_v37 = vrot.slane %v5751_v39, 4  ;;  %v5752_v41 = vsel %vm18775_vm8, %v14395_v1, %v5751_v39  ;;  %v5776_v24 = vsel %vm18775_vm8, %v5774_v63, %v5775_v26 }
 0x3d4   : > { %v5780_v61 = vsel %vm18775_vm8, %v14399_v16, %v5779_v21  ;;  %v5783_v55 = vsel %vm18775_vm8, %v5781_v15, %v5782_v3  ;;  %v14400_v33 = vrot.slane %v14380_v52, 9  ;;  %v5788_v38 = vrot.slane %v5786_v54, 4 }
 0x3d5   : > { %v14419_v32 = vcombine.low %v5780_v61, %v5783_v55  ;;  %v6238_v1 = vadd.s32 8, %v20333_v45 }
 0x3d6   : > { %v5787_v11 = vsel %vm18775_vm8, %v14400_v33, %v5786_v54  ;;  %v5790_v8 = vsel %vm18775_vm8, %v5788_v38, %v5789_v43 }
 0x3d7   : > { %v14420_v39 = vcombine.low %v5787_v11, %v5790_v8 }
 0x3d8   : > { %15956 = vmatmul.mubr.msk.bf16.gmra.mrb[8].mxu0 %vm1141_vm5, %v14406_v13  ;;  %v22842_v13 = vld [vmem:[#allocation34_spill] sm:$0xff] }
 0x3d9   : > { %15959 = vmatprep.mubr.msk.bf16.mxu0 %vm1141_vm5, %v14407_v20  ;;  %v5754_v20 = vrot.slane %v22842_v13, 5 }
 0x3db   : > { %v5755_v34 = vsel %vm18775_vm8, %v5753_v37, %v5754_v20  ;;  %v22742_v37 = vstv %s20335_s17  ;;  %v20383_v20 = vld [vmem:[#allocation12 + $0x20] sm:$0xff]  }
 0x3dc   : > { %v14415_v14 = vcombine.low %v5752_v41, %v5755_v34  ;;  %v20341_v13 = vadd.s32 %v22742_v37, %v6238_v1 }
 0x3e0   : > { %15960 = vmatmul.mubr.msk.bf16.gmra.mrb[12].mxu0 %vm1141_vm5, %v14408_v22  ;;  %v22845_v22 = vld [vmem:[#allocation32_spill] sm:$0xff] }
 0x3e1   : > { %15963 = vmatprep.mubr.msk.bf16.mxu0 %vm1141_vm5, %v14409_v18  ;;  %v5761_v18 = vrot.slane %v22845_v22, 5 }
 0x3e3   : > { %v5762_v42 = vsel %vm18775_vm8, %v5760_v53, %v5761_v18 }
 0x3e4   : > { %v14416_v29 = vcombine.low %v5759_v47, %v5762_v42  ;;  %v20427_v47 = vsub.s32 5, %v20333_v45 }
 0x3e8   : > { %15964 = vmatmul.mubr.msk.bf16.gmra.mrb[16].mxu0 %vm1141_vm5, %v14410_v60  ;;  %v14417_v60 = vcombine.low %v5766_v46, %v5769_v28  ;;  %v20431_v46 = vsub.s32 4, %v20333_v45  ;;  %v20434_v28 = vsub.s32 7, %v20333_v45 }
 0x3e9   : > { %15967 = vmatprep.mubr.msk.bf16.mxu0 %vm1141_vm5, %v14411_v40  ;;  %v14398_v40 = vrot.slane %v14378_v5, 9 }
 0x3ea   : > { %22854 = vst [vmem:[#allocation40_spill] sm:$0xff] %v20434_v28 }
 0x3eb   : > { %v5773_v0 = vsel %vm18775_vm8, %v14398_v40, %v5772_v31 }
 0x3ec   : > { %v14418_v56 = vcombine.low %v5773_v0, %v5776_v24 }
 0x3f0   : > { %15968 = vmatmul.mubr.msk.bf16.gmra.mrb[20].mxu0 %vm1141_vm5, %v14412_v51  ;;  %v22848_v51 = vmov 0  }
 0x3f1   : > { %15971 = vmatprep.mubr.msk.bf16.mxu0 %vm1141_vm5, %v14413_v6  ;;  %6438 = vst.msk [vmem:[#allocation2] sm:$0x1] %vm6437_vm9, %v22848_v51  ;;  %6439 = vst.msk [vmem:[#allocation2 + $0xc] sm:$0x1] %vm6437_vm9, %v22848_v51  ;;  %v17421_v6 = vld [vmem:[#allocation12 + $0x8] sm:$0xff]   ;;  %v20397_v41 = vsel %vm6251_vm13, 1, %v22848_v51 }
 0x3f2   : > { %6440 = vst.msk [vmem:[#allocation2 + $0x18] sm:$0x1] %vm6437_vm9, %v22848_v51  ;;  %6441 = vst.msk [vmem:[#allocation2 + $0x24] sm:$0x1] %vm6437_vm9, %v22848_v51  ;;  %16025 = vmatprep.subr.bf16.mxu1 %v17421_v6  ;;  %v6264_v34 = vrot.slane %v20397_v41, %v20391_v25  ;;  %v6260_v59 = vrot.slane %v20397_v41, %v20394_v19  ;;  %v6272_v7 = vrot.slane %v20397_v41, %v20404_v44 }
 0x3f3   : > { %6442 = vst.msk [vmem:[#allocation2 + $0x30] sm:$0x1] %vm6437_vm9, %v22848_v51  ;;  %6443 = vst.msk [vmem:[#allocation2 + $0x3c] sm:$0x1] %vm6437_vm9, %v22848_v51  ;;  %16026 = vmatpush3.bf16.msra.mxu1 %v17421_v6  ;;  %v6268_v62 = vrot.slane %v20397_v41, %v20409_v36  ;;  %v6280_v16 = vrot.slane %v20397_v41, %v20427_v47  ;;  %v6276_v24 = vrot.slane %v20397_v41, %v20431_v46 }
 0x3f4   : > { %6444 = vst.msk [vmem:[#allocation2 + $0x48] sm:$0x1] %vm6437_vm9, %v22848_v51  ;;  %6445 = vst.msk [vmem:[#allocation2 + $0x54] sm:$0x1] %vm6437_vm9, %v22848_v51  ;;  %16059 = vmatprep.subr.bf16.mxu1 %v20383_v20  ;;  %vm20413_vm15 = vcmp.ne.s32.totalorder %v6264_v34, 0  ;;  %vm20417_vm2 = vcmp.ne.s32.totalorder %v6260_v59, 0 }
 0x3f5   : > { %6446 = vst.msk [vmem:[#allocation2 + $0x60] sm:$0x1] %vm6437_vm9, %v22848_v51  ;;  %6447 = vst.msk [vmem:[#allocation2 + $0x6c] sm:$0x1] %vm6437_vm9, %v22848_v51  ;;  %vm20439_vm7 = vcmp.ne.s32.totalorder %v6272_v7, 0  ;;  %vm20475_vm13 = vcmp.ne.s32.totalorder %v6280_v16, 0 }
 0x3f6   : > { %6448 = vst.msk [vmem:[#allocation2 + $0x78] sm:$0x1] %vm6437_vm9, %v22848_v51  ;;  %6449 = vst.msk [vmem:[#allocation2 + $0x84] sm:$0x1] %vm6437_vm9, %v22848_v51  ;;  %vm20486_vm0 = vcmp.ne.s32.totalorder %v6276_v24, 0 }
 0x3f7   : > { %6450 = vst.msk [vmem:[#allocation2 + $0x90] sm:$0x1] %vm6437_vm9, %v22848_v51  ;;  %6451 = vst.msk [vmem:[#allocation2 + $0x9c] sm:$0x1] %vm6437_vm9, %v22848_v51 }
 0x3f8   : > { %15972 = vmatmul.mubr.msk.bf16.gmra.mrb[24].mxu0 %vm1141_vm5, %v14414_v58  ;;  %6452 = vst.msk [vmem:[#allocation2 + $0xa8] sm:$0x1] %vm6437_vm9, %v22848_v51  ;;  %6453 = vst.msk [vmem:[#allocation2 + $0xb4] sm:$0x1] %vm6437_vm9, %v22848_v51 }
 0x3f9   : > { %15975 = vmatprep.mubr.msk.bf16.mxu0 %vm1141_vm5, %v14415_v14  ;;  %6454 = vst.msk [vmem:[#allocation2 + $0xc0] sm:$0x1] %vm6437_vm9, %v22848_v51  ;;  %6455 = vst.msk [vmem:[#allocation2 + $0xcc] sm:$0x1] %vm6437_vm9, %v22848_v51  ;;  %v6243_v14 = vadd.s32 %v20385_v30, %v6238_v1 }
 0x3fa   : > { %6456 = vst.msk [vmem:[#allocation2 + $0xd8] sm:$0x1] %vm6437_vm9, %v22848_v51  ;;  %6457 = vst.msk [vmem:[#allocation2 + $0xe4] sm:$0x1] %vm6437_vm9, %v22848_v51 }
 0x3fb   : > { %6459 = vst.msk [vmem:[#allocation2 + $0x8] sm:$0x2] %vm6458_vm10, %v22848_v51  ;;  %6460 = vst.msk [vmem:[#allocation2 + $0x14] sm:$0x2] %vm6458_vm10, %v22848_v51  ;;  %vm6246_vm4 = vcmp.ge.s32.totalorder %v6243_v14, 0 }
 0x3fc   : > { %6461 = vst.msk [vmem:[#allocation2 + $0x20] sm:$0x2] %vm6458_vm10, %v22848_v51  ;;  %6462 = vst.msk [vmem:[#allocation2 + $0x2c] sm:$0x2] %vm6458_vm10, %v22848_v51 }
 0x3fd   : > { %6463 = vst.msk [vmem:[#allocation2 + $0x38] sm:$0x2] %vm6458_vm10, %v22848_v51  ;;  %6464 = vst.msk [vmem:[#allocation2 + $0x44] sm:$0x2] %vm6458_vm10, %v22848_v51 }
 0x3fe   : > { %6465 = vst.msk [vmem:[#allocation2 + $0x50] sm:$0x2] %vm6458_vm10, %v22848_v51  ;;  %6466 = vst.msk [vmem:[#allocation2 + $0x5c] sm:$0x2] %vm6458_vm10, %v22848_v51 }
 0x3ff   : > { %6467 = vst.msk [vmem:[#allocation2 + $0x68] sm:$0x2] %vm6458_vm10, %v22848_v51  ;;  %6468 = vst.msk [vmem:[#allocation2 + $0x74] sm:$0x2] %vm6458_vm10, %v22848_v51 }
 0x400   : > { %15976 = vmatmul.mubr.msk.bf16.gmra.mrb[28].mxu0 %vm1141_vm5, %v14416_v29  ;;  %6469 = vst.msk [vmem:[#allocation2 + $0x80] sm:$0x2] %vm6458_vm10, %v22848_v51  ;;  %6470 = vst.msk [vmem:[#allocation2 + $0x8c] sm:$0x2] %vm6458_vm10, %v22848_v51 }
 0x401   : > { %15979 = vmatprep.mubr.msk.bf16.mxu0 %vm1141_vm5, %v14417_v60  ;;  %6471 = vst.msk [vmem:[#allocation2 + $0x98] sm:$0x2] %vm6458_vm10, %v22848_v51  ;;  %6472 = vst.msk [vmem:[#allocation2 + $0xa4] sm:$0x2] %vm6458_vm10, %v22848_v51 }
 0x402   : > { %6473 = vst.msk [vmem:[#allocation2 + $0xb0] sm:$0x2] %vm6458_vm10, %v22848_v51  ;;  %6474 = vst.msk [vmem:[#allocation2 + $0xbc] sm:$0x2] %vm6458_vm10, %v22848_v51 }
 0x403   : > { %6475 = vst.msk [vmem:[#allocation2 + $0xc8] sm:$0x2] %vm6458_vm10, %v22848_v51  ;;  %6476 = vst.msk [vmem:[#allocation2 + $0xd4] sm:$0x2] %vm6458_vm10, %v22848_v51 }
 0x404   : > { %6477 = vst.msk [vmem:[#allocation2 + $0xe0] sm:$0x2] %vm6458_vm10, %v22848_v51  ;;  %6478 = vst.msk [vmem:[#allocation2 + $0xec] sm:$0x2] %vm6458_vm10, %v22848_v51  ;;  %vm20449_vm10 = vcmp.ne.s32.totalorder %v6268_v62, 0 }
 0x408   : > { %15980 = vmatmul.mubr.msk.bf16.gmra.mrb[32].mxu0 %vm1141_vm5, %v14418_v56 }
 0x409   : > { %15983 = vmatprep.mubr.msk.bf16.mxu0 %vm1141_vm5, %v14419_v32  ;;  %v6288_v32 = vrot.slane %v20397_v41, %v20434_v28 }
 0x410   : > { %15984 = vmatmul.mubr.msk.bf16.gmra.mrb[36].mxu0 %vm1141_vm5, %v14420_v39  ;;  %vm6249_vm5 = vcmp.lt.s32.totalorder %v6243_v14, 16  ;;  %v20471_v39 = vsub.s32 6, %v20333_v45  ;;  %v17441_v14 = vld [vmem:[#allocation12 + $0x28] sm:$0xff]  }
 0x411   : > { %vm20455_vm11 = vmand %vm6246_vm4, %vm6249_vm5 }
 0x412   : > { %22863 = vst [vmem:[#allocation41_spill] sm:$0xff] %v20471_v39  ;;  %v20482_v35 = vsel %vm20455_vm11, 1, %v22848_v51 }
 0x49b   : > { %v15949_v58 = vpop.f32.mrb[0].mxu0 }
 0x49c   : > { %v6158_v23 = vadd.f32 %v15949_v58, %v20406_v27  ;;  %v5950_v22 = vpop.f32.mrb[1].mxu0 }
 0x49d   : > { %v6156_v4 = vadd.f32 %v20406_v27, %v5950_v22  ;;  %v15950_v10 = vpop.f32.mrb[2].mxu0 }
 0x49e   : > { %v6198_v42 = vmax.f32 %v6158_v23, 0.0  ;;  %v6159_v9 = vadd.f32 %v15950_v10, %v20406_v27  ;;  %v5953_v31 = vpop.f32.mrb[3].mxu0 }
 0x49f   : > { %v6196_v5 = vmax.f32 %v6156_v4, 0.0  ;;  %v6157_v21 = vadd.f32 %v20406_v27, %v5953_v31 }
 0x4a0   : > { %v6399_v17 = vsel %vm20413_vm15, %v6198_v42, 0.0  ;;  %v6199_v29 = vmax.f32 %v6159_v9, 0.0 }
 0x4a1   : > { %v15105_v40 = vpack.c.bf16 %v6399_v17, %v6399_v17  ;;  %v6397_v63 = vsel %vm20417_vm2, %v6196_v5, 0.0  ;;  %v6197_v26 = vmax.f32 %v6157_v21, 0.0  ;;  %v6284_v5 = vrot.slane %v20397_v41, %v20471_v39 }
 0x4a2   : > { %v15103_v15 = vpack.c.bf16 %v6397_v63, %v6397_v63  ;;  %v6400_v3 = vsel %vm20413_vm15, %v6199_v29, 0.0  ;;  %v6296_v29 = vrot.slane %v20482_v35, %v20391_v25  ;;  %v6304_v41 = vrot.slane %v20482_v35, %v20404_v44 }
 0x4a3   : > { %v6607_v61 = vrot.slane %v15105_v40, 7  ;;  %v15106_v55 = vpack.c.bf16 %v6400_v3, %v6400_v3  ;;  %v6398_v52 = vsel %vm20417_vm2, %v6197_v26, 0.0  ;;  %v15953_v56 = vpop.f32.mrb[4].mxu0  ;;  %v6292_v40 = vrot.slane %v20482_v35, %v20394_v19 }
 0x4a4   : > { %v6602_v38 = vrot.slane %v15103_v15, 7  ;;  %v15104_v43 = vpack.c.bf16 %v6398_v52, %v6398_v52  ;;  %v6162_v11 = vadd.f32 %v15953_v56, %v20406_v27  ;;  %v5966_v8 = vpop.f32.mrb[5].mxu0  ;;  %vm20520_vm15 = vcmp.ne.s32.totalorder %v6288_v32, 0 }
 0x4a5   : > { %v6608_v12 = vrot.slane %v6607_v61, 4  ;;  %6767 = vst.msk [vmem:[#allocation2 + $0xc] sm:$0xe] %vm6762_vm3, %v6607_v61  ;;  %v6609_v57 = vrot.slane %v15106_v55, 7  ;;  %v6160_v6 = vadd.f32 %v20406_v27, %v5966_v8  ;;  %v15954_v49 = vpop.f32.mrb[6].mxu0  ;;  %v6300_v61 = vrot.slane %v20482_v35, %v20409_v36 }
 0x4a6   : > { %v6603_v1 = vrot.slane %v6602_v38, 4  ;;  %6763 = vst.msk [vmem:[#allocation2] sm:$0xe] %vm6762_vm3, %v6602_v38  ;;  %v6604_v2 = vrot.slane %v15104_v43, 7  ;;  %v6202_v34 = vmax.f32 %v6162_v11, 0.0  ;;  %v6163_v59 = vadd.f32 %v15954_v49, %v20406_v27  ;;  %v5969_v58 = vpop.f32.mrb[7].mxu0 }
 0x4a7   : > { %v6610_v23 = vsel %vm20465_vm12, %v6608_v12, %v6609_v57  ;;  %v6611_v53 = vrot.slane %v6609_v57, 4  ;;  %v6200_v22 = vmax.f32 %v6160_v6, 0.0  ;;  %v6161_v18 = vadd.f32 %v20406_v27, %v5969_v58 }
 0x4a8   : > { %6768 = vst.msk [vmem:[#allocation2 + $0x10] sm:$0xf] %vm6764_vm6, %v6610_v23  ;;  %v6605_v7 = vsel %vm20465_vm12, %v6603_v1, %v6604_v2  ;;  %v6606_v4 = vrot.slane %v6604_v2, 4  ;;  %v6403_v10 = vsel %vm20439_vm7, %v6202_v34, 0.0  ;;  %v6203_v62 = vmax.f32 %v6163_v59, 0.0 }
 0x4a9   : > { %6769 = vst.msk [vmem:[#allocation2 + $0x14] sm:$0x1] %vm6437_vm9, %v6611_v53  ;;  %v15109_v42 = vpack.c.bf16 %v6403_v10, %v6403_v10  ;;  %v6401_v9 = vsel %vm20449_vm10, %v6200_v22, 0.0  ;;  %v6201_v31 = vmax.f32 %v6161_v18, 0.0  ;;  %v6312_v43 = vrot.slane %v20482_v35, %v20427_v47 }
 0x4aa   : > { %6765 = vst.msk [vmem:[#allocation2 + $0x4] sm:$0xf] %vm6764_vm6, %v6605_v7  ;;  %v15107_v21 = vpack.c.bf16 %v6401_v9, %v6401_v9  ;;  %v6404_v17 = vsel %vm20439_vm7, %v6203_v62, 0.0  ;;  %v6308_v10 = vrot.slane %v20482_v35, %v20431_v46  ;;  %vm20554_vm2 = vcmp.ne.s32.totalorder %v6284_v5, 0 }
 0x4ab   : > { %6766 = vst.msk [vmem:[#allocation2 + $0x8] sm:$0x1] %vm6437_vm9, %v6606_v4  ;;  %v6617_v63 = vrot.slane %v15109_v42, 7  ;;  %v15110_v26 = vpack.c.bf16 %v6404_v17, %v6404_v17  ;;  %v6402_v16 = vsel %vm20449_vm10, %v6201_v31, 0.0  ;;  %v15957_v15 = vpop.f32.mrb[8].mxu0  ;;  %vm20572_vm4 = vcmp.ne.s32.totalorder %v6296_v29, 0 }
 0x4ac   : > { %v6612_v3 = vrot.slane %v15107_v21, 7  ;;  %v15108_v24 = vpack.c.bf16 %v6402_v16, %v6402_v16  ;;  %v6166_v60 = vadd.f32 %v15957_v15, %v20406_v27  ;;  %v5982_v54 = vpop.f32.mrb[9].mxu0  ;;  %v6239_v21 = vadd.s32 16, %v20333_v45 }
 0x4ad   : > { %v6618_v55 = vrot.slane %v6617_v63, 4  ;;  %6773 = vst.msk [vmem:[#allocation2 + $0x24] sm:$0xe] %vm6762_vm3, %v6617_v63  ;;  %v6619_v52 = vrot.slane %v15110_v26, 7  ;;  %v6164_v56 = vadd.f32 %v20406_v27, %v5982_v54  ;;  %v15958_v0 = vpop.f32.mrb[10].mxu0  ;;  %vm20590_vm5 = vcmp.ne.s32.totalorder %v6292_v40, 0 }
 0x4ae   : > { %v6613_v11 = vrot.slane %v6612_v3, 4  ;;  %6770 = vst.msk [vmem:[#allocation2 + $0x18] sm:$0xe] %vm6762_vm3, %v6612_v3  ;;  %v6614_v8 = vrot.slane %v15108_v24, 7  ;;  %v6206_v12 = vmax.f32 %v6166_v60, 0.0  ;;  %v6167_v57 = vadd.f32 %v15958_v0, %v20406_v27  ;;  %v5985_v6 = vpop.f32.mrb[11].mxu0 }
 0x4af   : > { %v6620_v49 = vsel %vm20465_vm12, %v6618_v55, %v6619_v52  ;;  %v6621_v1 = vrot.slane %v6619_v52, 4  ;;  %v6204_v2 = vmax.f32 %v6164_v56, 0.0  ;;  %v6165_v32 = vadd.f32 %v20406_v27, %v5985_v6  ;;  %v6824_v4 = vld [vmem:[#allocation2] sm:$0xf]  ;;  %v20548_v31 = vld [vmem:[#allocation2 + $0x10] sm:$0xf] }
 0x4b0   : > { %6774 = vst.msk [vmem:[#allocation2 + $0x28] sm:$0xf] %vm6764_vm6, %v6620_v49  ;;  %v6615_v34 = vsel %vm20465_vm12, %v6613_v11, %v6614_v8  ;;  %v6616_v59 = vrot.slane %v6614_v8, 4  ;;  %v6407_v58 = vsel %vm20475_vm13, %v6206_v12, 0.0  ;;  %v6207_v23 = vmax.f32 %v6167_v57, 0.0 }
 0x4b1   : > { %v20536_v53 = vld [vmem:[#allocation2 + $0x4] sm:$0xf]  ;;  %6775 = vst.msk [vmem:[#allocation2 + $0x2c] sm:$0x1] %vm6437_vm9, %v6621_v1  ;;  %v15113_v22 = vpack.c.bf16 %v6407_v58, %v6407_v58  ;;  %v6405_v18 = vsel %vm20486_vm0, %v6204_v2, 0.0  ;;  %v6205_v7 = vmax.f32 %v6165_v32, 0.0  ;;  %v6320_v52 = vrot.slane %v20482_v35, %v20434_v28 }
 0x4b2   : > { %6771 = vst.msk [vmem:[#allocation2 + $0x1c] sm:$0xf] %vm6764_vm6, %v6615_v34  ;;  %v15111_v62 = vpack.c.bf16 %v6405_v18, %v6405_v18  ;;  %v6408_v42 = vsel %vm20475_vm13, %v6207_v23, 0.0  ;;  %v14533_v9 = vcombine.low %v6824_v4, %v20536_v53  ;;  %v6942_v15 = vrot.slane %v20536_v53, 5  ;;  %v6826_v55 = vld [vmem:[#allocation2 + $0xc] sm:$0xf] }
 0x4b3   : > { %6772 = vst.msk [vmem:[#allocation2 + $0x20] sm:$0x1] %vm6437_vm9, %v6616_v59  ;;  %v6627_v17 = vrot.slane %v15113_v22, 7  ;;  %v15114_v63 = vpack.c.bf16 %v6408_v42, %v6408_v42  ;;  %v6406_v26 = vsel %vm20486_vm0, %v6205_v7, 0.0  ;;  %v15961_v16 = vpop.f32.mrb[12].mxu0  ;;  %v6949_v8 = vrot.slane %v20548_v31, 5 }
 0x4b4   : > { %v6622_v50 = vrot.slane %v15111_v62, 7  ;;  %v15112_v24 = vpack.c.bf16 %v6406_v26, %v6406_v26  ;;  %v6170_v60 = vadd.f32 %v15961_v16, %v20406_v27  ;;  %16027 = vmatprep.mubr.msk.bf16.mxu1 %vm7117_vm14, %v14533_v9  ;;  %v5998_v54 = vpop.f32.mrb[13].mxu0  ;;  %v6862_v11 = vld [vmem:[#allocation2 + $0xc] sm:$0xe]  ;;  %v14534_v1 = vcombine.low %v6826_v55, %v20548_v31  ;;  %v6860_v32 = vld [vmem:[#allocation2] sm:$0xe] }
 0x4b5   : > { %v6628_v56 = vrot.slane %v6627_v17, 4  ;;  %6779 = vst.msk [vmem:[#allocation2 + $0x3c] sm:$0xe] %vm6762_vm3, %v6627_v17  ;;  %v6629_v0 = vrot.slane %v15114_v63, 7  ;;  %v6168_v5 = vadd.f32 %v20406_v27, %v5998_v54  ;;  %v15962_v12 = vpop.f32.mrb[14].mxu0  ;;  %v6944_v58 = vrot.slane %v6942_v15, 4 }
 0x4b6   : > { %v6623_v57 = vrot.slane %v6622_v50, 4  ;;  %6776 = vst.msk [vmem:[#allocation2 + $0x30] sm:$0xe] %vm6762_vm3, %v6622_v50  ;;  %v6624_v6 = vrot.slane %v15112_v24, 7  ;;  %v6210_v49 = vmax.f32 %v6170_v60, 0.0  ;;  %v6001_v2 = vpop.f32.mrb[15].mxu0  ;;  %v20577_v7 = vadd.s32 %v20385_v30, %v6239_v21  ;;  %16028 = vmatmul.mubr.msk.bf16.vlgmr.msra.gmra.mrb[0].mxu1 %vm7117_vm14, %v14534_v1 }
 0x4b7   : > { %v6630_v34 = vsel %vm20465_vm12, %v6628_v56, %v6629_v0  ;;  %v6631_v59 = vrot.slane %v6629_v0, 4  ;;  %v6861_v23 = vld [vmem:[#allocation2 + $0x8] sm:$0x1]  ;;  %v6863_v22 = vld [vmem:[#allocation2 + $0x14] sm:$0x1]  ;;  %v6951_v9 = vrot.slane %v6949_v8, 4  ;;  %v6171_v63 = vadd.f32 %v15962_v12, %v20406_v27  ;;  %16060 = vmatpush3.bf16.msra.mxu1 %v20383_v20 }
 0x4b8   : > { %6780 = vst.msk [vmem:[#allocation2 + $0x40] sm:$0xf] %vm6764_vm6, %v6630_v34  ;;  %v6625_v4 = vsel %vm20465_vm12, %v6623_v57, %v6624_v6  ;;  %v6626_v62 = vrot.slane %v6624_v6, 4  ;;  %v20584_v42 = vsel %vm20520_vm15, %v6210_v49, 0.0  ;;  %v6208_v21 = vmax.f32 %v6168_v5, 0.0  ;;  %16061 = vmatprep.subr.bf16.mxu1 %v17441_v14 }
 0x4b9   : > { %6781 = vst.msk [vmem:[#allocation2 + $0x44] sm:$0x1] %vm6437_vm9, %v6631_v59  ;;  %v15117_v30 = vpack.c.bf16 %v20584_v42, %v20584_v42  ;;  %v14484_v17 = vrot.slane %v6862_v11, 9  ;;  %v6169_v40 = vadd.f32 %v20406_v27, %v6001_v2  ;;  %v14483_v26 = vrot.slane %v6860_v32, 9  ;;  %v20613_v11 = vld [vmem:[#allocation2 + $0x1c] sm:$0xf] }
 0x4ba   : > { %6777 = vst.msk [vmem:[#allocation2 + $0x34] sm:$0xf] %vm6764_vm6, %v6625_v4  ;;  %v6945_v16 = vrot.slane %v6861_v23, 5  ;;  %v6952_v50 = vrot.slane %v6863_v22, 5  ;;  %v6211_v60 = vmax.f32 %v6171_v63, 0.0  ;;  %v6316_v55 = vrot.slane %v20482_v35, %v20471_v39 }
 0x4bb   : > { %6778 = vst.msk [vmem:[#allocation2 + $0x38] sm:$0x1] %vm6437_vm9, %v6626_v62  ;;  %v6637_v24 = vrot.slane %v15117_v30, 7  ;;  %v15965_v54 = vpop.f32.mrb[16].mxu0  ;;  %vm6247_vm7 = vcmp.ge.s32.totalorder %v20577_v7, 0  ;;  %v6950_v56 = vsel %vm18775_vm8, %v14484_v17, %v6949_v8  ;;  %v6943_v20 = vsel %vm18775_vm8, %v14483_v26, %v6942_v15  ;;  %16062 = vmatpush3.bf16.msra.mxu1 %v17441_v14 }
 0x4bc   : > { %v6946_v0 = vsel %vm18775_vm8, %v6944_v58, %v6945_v16  ;;  %v6953_v5 = vsel %vm18775_vm8, %v6951_v9, %v6952_v50  ;;  %v6014_v12 = vpop.f32.mrb[17].mxu0  ;;  %v20618_v6 = vsel %vm20520_vm15, %v6211_v60, 0.0  ;;  %v6209_v8 = vmax.f32 %v6169_v40, 0.0  ;;  %v20620_v1 = vld [vmem:[#allocation2 + $0x28] sm:$0xf] }
 0x4bd   : > { %v6638_v57 = vrot.slane %v6637_v24, 4  ;;  %6785 = vst.msk [vmem:[#allocation2 + $0x54] sm:$0xe] %vm6762_vm3, %v6637_v24  ;;  %v14499_v49 = vcombine.low %v6943_v20, %v6946_v0  ;;  %v15966_v15 = vpop.f32.mrb[18].mxu0  ;;  %v15118_v2 = vpack.c.bf16 %v20618_v6, %v20618_v6  ;;  %v14500_v32 = vcombine.low %v6950_v56, %v6953_v5  ;;  %v6828_v58 = vld [vmem:[#allocation2 + $0x18] sm:$0xf] }
 0x4be   : > { %v6409_v34 = vsel %vm20554_vm2, %v6208_v21, 0.0  ;;  %v6174_v59 = vadd.f32 %v15965_v54, %v20406_v27  ;;  %v6017_v23 = vpop.f32.mrb[19].mxu0  ;;  %v14535_v22 = vcombine.low %v6828_v58, %v20613_v11  ;;  %v6172_v4 = vadd.f32 %v20406_v27, %v6014_v12  ;;  %v6830_v14 = vld [vmem:[#allocation2 + $0x24] sm:$0xf]  ;;  %v6864_v16 = vld [vmem:[#allocation2 + $0x18] sm:$0xe] }
 0x4bf   : > { %15991 = vmatprep.mubr.msk.bf16.mxu0 %vm7117_vm14, %v14499_v49  ;;  %13535 = vxpose.xlu0.b32.start [1/16] (narrow) %v6409_v34, 32  ;;  %v15115_v38 = vpack.c.bf16 %v6409_v34, %v6409_v34  ;;  %vm6250_vm10 = vcmp.lt.s32.totalorder %v20577_v7, 16  ;;  %v6639_v62 = vrot.slane %v15118_v2, 7  ;;  %v6956_v30 = vrot.slane %v20613_v11, 5  ;;  %v6865_v56 = vld [vmem:[#allocation2 + $0x20] sm:$0x1] }
 0x4c0   : > { %15992 = vmatmul.mubr.msk.bf16.vlgmr.msra.gmra.mrb[40].mxu0 %vm7117_vm14, %v14500_v32  ;;  %v6214_v9 = vmax.f32 %v6174_v59, 0.0  ;;  %v14536_v21 = vcombine.low %v6830_v14, %v20620_v1  ;;  %16031 = vmatprep.mubr.msk.bf16.mxu1 %vm7117_vm14, %v14535_v22  ;;  %v6212_v63 = vmax.f32 %v6172_v4, 0.0  ;;  %v6963_v40 = vrot.slane %v20620_v1, 5  ;;  %v6866_v2 = vld [vmem:[#allocation2 + $0x24] sm:$0xe]  ;;  %vm20669_vm13 = vmand %vm6247_vm7, %vm6250_vm10 }
 0x4c1   : > { %v6632_v17 = vrot.slane %v15115_v38, 7  ;;  %v6175_v26 = vadd.f32 %v15966_v15, %v20406_v27  ;;  %v6640_v50 = vsel %vm20465_vm12, %v6638_v57, %v6639_v62  ;;  %v6641_v24 = vrot.slane %v6639_v62, 4  ;;  %v20684_v7 = vld [vmem:[#allocation12 + $0x30] sm:$0xff]   ;;  %v20717_v59 = vld [vmem:[#allocation2 + $0x40] sm:$0xf] }
 0x4c2   : > { %v20641_v60 = vsel %vm20572_vm4, %v6214_v9, 0.0  ;;  %16032 = vmatmul.mubr.msk.bf16.gmra.mrb[4].mxu1 %vm7117_vm14, %v14536_v21  ;;  %v6410_v54 = vsel %vm20554_vm2, %v6209_v8, 0.0  ;;  %6786 = vst.msk [vmem:[#allocation2 + $0x58] sm:$0xf] %vm6764_vm6, %v6640_v50  ;;  %v20652_v5 = vsel %vm20590_vm5, %v6212_v63, 0.0  ;;  %v6173_v49 = vadd.f32 %v20406_v27, %v6017_v23  ;;  %16095 = vmatprep.subr.bf16.mxu1 %v20684_v7 }
 0x4c3   : > { %v6633_v20 = vrot.slane %v6632_v17, 4  ;;  %6782 = vst.msk [vmem:[#allocation2 + $0x48] sm:$0xe] %vm6762_vm3, %v6632_v17  ;;  %v15121_v0 = vpack.c.bf16 %v20641_v60, %v20641_v60  ;;  %v6215_v12 = vmax.f32 %v6175_v26, 0.0  ;;  %13536 = vxpose.xlu0.b32.cont [2/16] (narrow) %v6410_v54, 32  ;;  %v15969_v57 = vpop.f32.mrb[20].mxu0  ;;  %v15119_v3 = vpack.c.bf16 %v20652_v5, %v20652_v5 }
 0x4c4   : > { %6787 = vst.msk [vmem:[#allocation2 + $0x5c] sm:$0x1] %vm6437_vm9, %v6641_v24  ;;  %v15116_v8 = vpack.c.bf16 %v6410_v54, %v6410_v54  ;;  %v14485_v15 = vrot.slane %v6864_v16, 9  ;;  %vm20661_vm11 = vcmp.ne.s32.totalorder %v6304_v41, 0  ;;  %v6030_v34 = vpop.f32.mrb[21].mxu0  ;;  %v6958_v38 = vrot.slane %v6956_v30, 4 }
 0x4c5   : > { %v6647_v58 = vrot.slane %v15121_v0, 7  ;;  %v20675_v23 = vsel %vm20572_vm4, %v6215_v12, 0.0  ;;  %v6959_v22 = vrot.slane %v6865_v56, 5  ;;  %vm20680_vm0 = vcmp.ne.s32.totalorder %v6300_v61, 0  ;;  %v15970_v4 = vpop.f32.mrb[22].mxu0 }
 0x4c6   : > { %v6642_v14 = vrot.slane %v15119_v3, 7  ;;  %v15122_v62 = vpack.c.bf16 %v20675_v23, %v20675_v23  ;;  %v6634_v9 = vrot.slane %v15116_v8, 7  ;;  %v6213_v18 = vmax.f32 %v6173_v49, 0.0  ;;  %v6033_v21 = vpop.f32.mrb[23].mxu0  ;;  %v6867_v26 = vld [vmem:[#allocation2 + $0x2c] sm:$0x1] }
 0x4c7   : > { %v6648_v17 = vrot.slane %v6647_v58, 4  ;;  %6791 = vst.msk [vmem:[#allocation2 + $0x6c] sm:$0xe] %vm6762_vm3, %v6647_v58  ;;  %v6957_v63 = vsel %vm18775_vm8, %v14485_v15, %v6956_v30  ;;  %v6960_v61 = vsel %vm18775_vm8, %v6958_v38, %v6959_v22  ;;  %13537 = vxpose.xlu0.b32.cont [3/16] (narrow) %v20584_v42, 32  ;;  %v20697_v16 = vsel %vm20669_vm13, 1, %v22848_v51 }
 0x4c8   : > { %6788 = vst.msk [vmem:[#allocation2 + $0x60] sm:$0xe] %vm6762_vm3, %v6642_v14  ;;  %v6649_v50 = vrot.slane %v15122_v62, 7  ;;  %v6635_v24 = vsel %vm20465_vm12, %v6633_v20, %v6634_v9  ;;  %v6636_v30 = vrot.slane %v6634_v9, 4  ;;  %v14486_v54 = vrot.slane %v6866_v2, 9 }
 0x4c9   : > { %v20703_v56 = vld [vmem:[#allocation2 + $0x34] sm:$0xf]  ;;  %v6643_v0 = vrot.slane %v6642_v14, 4  ;;  %6783 = vst.msk [vmem:[#allocation2 + $0x4c] sm:$0xf] %vm6764_vm6, %v6635_v24  ;;  %v20708_v42 = vsel %vm20590_vm5, %v6213_v18, 0.0  ;;  %v14501_v12 = vcombine.low %v6957_v63, %v6960_v61  ;;  %v6178_v29 = vadd.f32 %v15969_v57, %v20406_v27 }
 0x4ca   : > { %v6965_v3 = vrot.slane %v6963_v40, 4  ;;  %v6650_v8 = vsel %vm20465_vm12, %v6648_v17, %v6649_v50  ;;  %v6651_v49 = vrot.slane %v6649_v50, 4  ;;  %6784 = vst.msk [vmem:[#allocation2 + $0x50] sm:$0x1] %vm6437_vm9, %v6636_v30  ;;  %v15120_v20 = vpack.c.bf16 %v20708_v42, %v20708_v42  ;;  %v6832_v2 = vld [vmem:[#allocation2 + $0x30] sm:$0xf] }
 0x4cb   : > { %v6966_v15 = vrot.slane %v6867_v26, 5  ;;  %6792 = vst.msk [vmem:[#allocation2 + $0x70] sm:$0xf] %vm6764_vm6, %v6650_v8  ;;  %15995 = vmatprep.mubr.msk.bf16.mxu0 %vm7117_vm14, %v14501_v12  ;;  %v6970_v58 = vrot.slane %v20703_v56, 5  ;;  %v14537_v38 = vcombine.low %v6832_v2, %v20703_v56  ;;  %13538 = vxpose.xlu0.b32.cont [4/16] (narrow) %v20618_v6, 32  ;;  %v20725_v22 = vpop.f32.mrb[24].mxu0  ;;  %v6328_v14 = vrot.slane %v20697_v16, %v20391_v25 }
 0x4cc   : > { %6793 = vst.msk [vmem:[#allocation2 + $0x74] sm:$0x1] %vm6437_vm9, %v6651_v49  ;;  %v6644_v62 = vrot.slane %v15120_v20, 7  ;;  %v6964_v9 = vsel %vm18775_vm8, %v14486_v54, %v6963_v40  ;;  %v6176_v18 = vadd.f32 %v20406_v27, %v6030_v34  ;;  %v6834_v17 = vld [vmem:[#allocation2 + $0x3c] sm:$0xf]  ;;  %v20737_v63 = vpop.f32.mrb[25].mxu0 }
 0x4cd   : > { %v6967_v57 = vsel %vm18775_vm8, %v6965_v3, %v6966_v15  ;;  %v6868_v6 = vld [vmem:[#allocation2 + $0x30] sm:$0xe]  ;;  %v6218_v26 = vmax.f32 %v6178_v29, 0.0  ;;  %16035 = vmatprep.mubr.msk.bf16.mxu1 %vm7117_vm14, %v14537_v38  ;;  %v6977_v50 = vrot.slane %v20717_v59, 5  ;;  %v14538_v24 = vcombine.low %v6834_v17, %v20717_v59  ;;  %v6869_v30 = vld [vmem:[#allocation2 + $0x38] sm:$0x1] }
 0x4ce   : > { %v14502_v61 = vcombine.low %v6964_v9, %v6967_v57  ;;  %v20742_v12 = vpop.f32.mrb[26].mxu0  ;;  %v6645_v40 = vsel %vm20465_vm12, %v6643_v0, %v6644_v62  ;;  %v6646_v54 = vrot.slane %v6644_v62, 4  ;;  %v6216_v34 = vmax.f32 %v6176_v18, 0.0  ;;  %v6870_v8 = vld [vmem:[#allocation2 + $0x3c] sm:$0xe] }
 0x4cf   : > { %v6179_v3 = vadd.f32 %v15970_v4, %v20406_v27  ;;  %vm20750_vm15 = vcmp.ne.s32.totalorder %v6312_v43, 0  ;;  %v20754_v20 = vpop.f32.mrb[27].mxu0  ;;  %6789 = vst.msk [vmem:[#allocation2 + $0x64] sm:$0xf] %vm6764_vm6, %v6645_v40  ;;  %v20760_v0 = vsel %vm20661_vm11, %v6218_v26, 0.0  ;;  %16036 = vmatmul.mubr.msk.bf16.gmra.mrb[8].mxu1 %vm7117_vm14, %v14538_v24  ;;  %v6177_v4 = vadd.f32 %v20406_v27, %v6033_v21  ;;  %13539 = vxpose.xlu0.b32.cont [5/16] (narrow) %v20652_v5, 32 }
 0x4d0   : > { %15996 = vmatmul.mubr.msk.bf16.gmra.mrb[44].mxu0 %vm7117_vm14, %v14502_v61  ;;  %v14487_v15 = vrot.slane %v6868_v6, 9  ;;  %v6972_v2 = vrot.slane %v6970_v58, 4  ;;  %6790 = vst.msk [vmem:[#allocation2 + $0x68] sm:$0x1] %vm6437_vm9, %v6646_v54  ;;  %v15125_v43 = vpack.c.bf16 %v20760_v0, %v20760_v0  ;;  %v20769_v29 = vsel %vm20680_vm0, %v6216_v34, 0.0 }
 0x4d1   : > { %v6219_v38 = vmax.f32 %v6179_v3, 0.0  ;;  %v6973_v62 = vrot.slane %v6869_v30, 5  ;;  %v15123_v9 = vpack.c.bf16 %v20769_v29, %v20769_v29  ;;  %v6217_v57 = vmax.f32 %v6177_v4, 0.0  ;;  %v6871_v18 = vld [vmem:[#allocation2 + $0x44] sm:$0x1] }
 0x4d2   : > { %v6971_v21 = vsel %vm18775_vm8, %v14487_v15, %v6970_v58  ;;  %v14488_v17 = vrot.slane %v6870_v8, 9  ;;  %vm20779_vm2 = vcmp.ne.s32.totalorder %v6308_v10, 0  ;;  %v6657_v61 = vrot.slane %v15125_v43, 7  ;;  %v20795_v54 = vld [vmem:[#allocation2 + $0x4c] sm:$0xf] }
 0x4d3   : > { %v20785_v5 = vsel %vm20661_vm11, %v6219_v38, 0.0  ;;  %v6974_v26 = vsel %vm18775_vm8, %v6972_v2, %v6973_v62  ;;  %v6979_v24 = vrot.slane %v6977_v50, 4  ;;  %v6652_v30 = vrot.slane %v15123_v9, 7  ;;  %v20797_v34 = vpop.f32.mrb[28].mxu0  ;;  %13540 = vxpose.xlu0.b32.cont [6/16] (narrow) %v20708_v42, 32 }
 0x4d4   : > { %v15126_v58 = vpack.c.bf16 %v20785_v5, %v20785_v5  ;;  %v20793_v40 = vsel %vm20680_vm0, %v6217_v57, 0.0  ;;  %v14503_v10 = vcombine.low %v6971_v21, %v6974_v26  ;;  %v6658_v32 = vrot.slane %v6657_v61, 4  ;;  %6797 = vst.msk [vmem:[#allocation2 + $0x84] sm:$0xe] %vm6762_vm3, %v6657_v61  ;;  %v20803_v4 = vpop.f32.mrb[29].mxu0 }
 0x4d5   : > { %v15124_v3 = vpack.c.bf16 %v20793_v40, %v20793_v40  ;;  %v6980_v8 = vrot.slane %v6871_v18, 5  ;;  %v6653_v15 = vrot.slane %v6652_v30, 4  ;;  %6794 = vst.msk [vmem:[#allocation2 + $0x78] sm:$0xe] %vm6762_vm3, %v6652_v30  ;;  %v6978_v43 = vsel %vm18775_vm8, %v14488_v17, %v6977_v50  ;;  %v6836_v62 = vld [vmem:[#allocation2 + $0x48] sm:$0xf] }
 0x4d6   : > { %v6659_v2 = vrot.slane %v15126_v58, 7  ;;  %15999 = vmatprep.mubr.msk.bf16.mxu0 %vm7117_vm14, %v14503_v10  ;;  %v6182_v38 = vadd.f32 %v20725_v22, %v20406_v27  ;;  %v20813_v9 = vpop.f32.mrb[30].mxu0  ;;  %v6984_v21 = vrot.slane %v20795_v54, 5  ;;  %v14539_v18 = vcombine.low %v6836_v62, %v20795_v54  ;;  %v20819_v61 = vld [vmem:[#allocation2 + $0x58] sm:$0xf] }
 0x4d7   : > { %v6654_v42 = vrot.slane %v15124_v3, 7  ;;  %v6981_v57 = vsel %vm18775_vm8, %v6979_v24, %v6980_v8  ;;  %v20821_v26 = vpop.f32.mrb[31].mxu0  ;;  %v6838_v58 = vld [vmem:[#allocation2 + $0x54] sm:$0xf]  ;;  %v6180_v3 = vadd.f32 %v20406_v27, %v20737_v63  ;;  %v6872_v8 = vld [vmem:[#allocation2 + $0x48] sm:$0xe] }
 0x4d8   : > { %v6660_v50 = vsel %vm20465_vm12, %v6658_v32, %v6659_v2  ;;  %v6661_v17 = vrot.slane %v6659_v2, 4  ;;  %v14504_v22 = vcombine.low %v6978_v43, %v6981_v57  ;;  %v6222_v30 = vmax.f32 %v6182_v38, 0.0  ;;  %16039 = vmatprep.mubr.msk.bf16.mxu1 %vm7117_vm14, %v14539_v18  ;;  %v6873_v62 = vld [vmem:[#allocation2 + $0x50] sm:$0x1]  ;;  %13541 = vxpose.xlu0.b32.cont [7/16] (narrow) %v20641_v60, 32 }
 0x4d9   : > { %6798 = vst.msk [vmem:[#allocation2 + $0x88] sm:$0xf] %vm6764_vm6, %v6660_v50  ;;  %v6655_v24 = vsel %vm20465_vm12, %v6653_v15, %v6654_v42  ;;  %v6656_v10 = vrot.slane %v6654_v42, 4  ;;  %v22743_v2 = vrot.slane %v20536_v53, 6  ;;  %v14540_v63 = vcombine.low %v6838_v58, %v20819_v61  ;;  %v6874_v43 = vld [vmem:[#allocation2 + $0x54] sm:$0xe] }
 0x4da   : > { %6799 = vst.msk [vmem:[#allocation2 + $0x8c] sm:$0x1] %vm6437_vm9, %v6661_v17  ;;  %16000 = vmatmul.mubr.msk.bf16.gmra.mrb[48].mxu0 %vm7117_vm14, %v14504_v22  ;;  %v20840_v15 = vsel %vm20750_vm15, %v6222_v30, 0.0  ;;  %v6183_v60 = vadd.f32 %v20742_v12, %v20406_v27  ;;  %vm20848_vm4 = vcmp.ne.s32.totalorder %v6320_v52, 0  ;;  %v6220_v57 = vmax.f32 %v6180_v3, 0.0 }
 0x4db   : > { %6795 = vst.msk [vmem:[#allocation2 + $0x7c] sm:$0xf] %vm6764_vm6, %v6655_v24  ;;  %v15129_v42 = vpack.c.bf16 %v20840_v15, %v20840_v15  ;;  %v6991_v18 = vrot.slane %v20819_v61, 5  ;;  %v6181_v50 = vadd.f32 %v20406_v27, %v20754_v20  ;;  %v6875_v12 = vld [vmem:[#allocation2 + $0x5c] sm:$0x1]  ;;  %16040 = vmatmul.mubr.msk.bf16.gmra.mrb[12].mxu1 %vm7117_vm14, %v14540_v63  ;;  %v14489_v22 = vrot.slane %v6872_v8, 9 }
 0x4dc   : > { %6796 = vst.msk [vmem:[#allocation2 + $0x80] sm:$0x1] %vm6437_vm9, %v6656_v10  ;;  %v6223_v17 = vmax.f32 %v6183_v60, 0.0  ;;  %v6986_v52 = vrot.slane %v6984_v21, 4  ;;  %v6987_v30 = vrot.slane %v6873_v62, 5  ;;  %v20859_v58 = vpop.f32.mrb[32].mxu0 }
 0x4dd   : > { %v6667_v24 = vrot.slane %v15129_v42, 7  ;;  %v20863_v10 = vsel %vm20779_vm2, %v6220_v57, 0.0  ;;  %v6221_v3 = vmax.f32 %v6181_v50, 0.0  ;;  %v14490_v37 = vrot.slane %v6874_v43, 9  ;;  %13542 = vxpose.xlu0.b32.cont [8/16] (narrow) %v20675_v23, 32 }
 0x4de   : > { %vm20868_vm5 = vcmp.ne.s32.totalorder %v6316_v55, 0  ;;  %v15127_v8 = vpack.c.bf16 %v20863_v10, %v20863_v10  ;;  %v20877_v62 = vsel %vm20750_vm15, %v6223_v17, 0.0  ;;  %v6985_v63 = vsel %vm18775_vm8, %v14489_v22, %v6984_v21  ;;  %v20883_v35 = vld [vmem:[#allocation2 + $0x64] sm:$0xf]  ;;  %v20885_v55 = vpop.f32.mrb[33].mxu0 }
 0x4df   : > { %v6988_v60 = vsel %vm18775_vm8, %v6986_v52, %v6987_v30  ;;  %v6668_v43 = vrot.slane %v6667_v24, 4  ;;  %6803 = vst.msk [vmem:[#allocation2 + $0x9c] sm:$0xe] %vm6762_vm3, %v6667_v24  ;;  %v15130_v23 = vpack.c.bf16 %v20877_v62, %v20877_v62  ;;  %v20892_v49 = vsel %vm20779_vm2, %v6221_v3, 0.0  ;;  %v20894_v57 = vpop.f32.mrb[34].mxu0 }
 0x4e0   : > { %v14505_v42 = vcombine.low %v6985_v63, %v6988_v60  ;;  %v6662_v21 = vrot.slane %v15127_v8, 7  ;;  %v15128_v50 = vpack.c.bf16 %v20892_v49, %v20892_v49  ;;  %v6993_v17 = vrot.slane %v6991_v18, 4  ;;  %v6840_v52 = vld [vmem:[#allocation2 + $0x60] sm:$0xf]  ;;  %v20898_v30 = vpop.f32.mrb[35].mxu0 }
 0x4e1   : > { %v6994_v22 = vrot.slane %v6875_v12, 5  ;;  %v6669_v24 = vrot.slane %v15130_v23, 7  ;;  %v6992_v6 = vsel %vm18775_vm8, %v14490_v37, %v6991_v18  ;;  %v6186_v3 = vadd.f32 %v20797_v34, %v20406_v27  ;;  %13543 = vxpose.xlu0.b32.cont [9/16] (narrow) %v20769_v29, 32  ;;  %v6842_v29 = vld [vmem:[#allocation2 + $0x6c] sm:$0xf] }
 0x4e2   : > { %16003 = vmatprep.mubr.msk.bf16.mxu0 %vm7117_vm14, %v14505_v42  ;;  %v14541_v63 = vcombine.low %v6840_v52, %v20883_v35  ;;  %v6663_v8 = vrot.slane %v6662_v21, 4  ;;  %6800 = vst.msk [vmem:[#allocation2 + $0x90] sm:$0xe] %vm6762_vm3, %v6662_v21  ;;  %v6664_v12 = vrot.slane %v15128_v50, 7  ;;  %v6998_v23 = vrot.slane %v20883_v35, 5 }
 0x4e3   : > { %v6995_v60 = vsel %vm18775_vm8, %v6993_v17, %v6994_v22  ;;  %v20911_v42 = vld [vmem:[#allocation2 + $0x70] sm:$0xf]  ;;  %v6670_v37 = vsel %vm20465_vm12, %v6668_v43, %v6669_v24  ;;  %v6671_v18 = vrot.slane %v6669_v24, 4  ;;  %v6226_v32 = vmax.f32 %v6186_v3, 0.0  ;;  %v6876_v22 = vld [vmem:[#allocation2 + $0x60] sm:$0xe] }
 0x4e4   : > { %v14506_v34 = vcombine.low %v6992_v6, %v6995_v60  ;;  %16043 = vmatprep.mubr.msk.bf16.mxu1 %vm7117_vm14, %v14541_v63  ;;  %6804 = vst.msk [vmem:[#allocation2 + $0xa0] sm:$0xf] %vm6764_vm6, %v6670_v37  ;;  %v6665_v21 = vsel %vm20465_vm12, %v6663_v8, %v6664_v12  ;;  %v6666_v50 = vrot.slane %v6664_v12, 4  ;;  %v6184_v17 = vadd.f32 %v20406_v27, %v20803_v4  ;;  %v6877_v52 = vld [vmem:[#allocation2 + $0x68] sm:$0x1]  ;;  %v20921_v41 = vpop.f32.mrb[36].mxu0 }
 0x4e5   : > { %v20927_v24 = vrot.slane %v22743_v2, 4  ;;  %6805 = vst.msk [vmem:[#allocation2 + $0xa4] sm:$0x1] %vm6437_vm9, %v6671_v18  ;;  %v6427_v4 = vsel %vm20848_vm4, %v6226_v32, 0.0  ;;  %v14542_v6 = vcombine.low %v6842_v29, %v20911_v42  ;;  %v6187_v3 = vadd.f32 %v20813_v9, %v20406_v27  ;;  %v6878_v63 = vld [vmem:[#allocation2 + $0x6c] sm:$0xe] }
 0x4e6   : > { %6801 = vst.msk [vmem:[#allocation2 + $0x94] sm:$0xf] %vm6764_vm6, %v6665_v21  ;;  %16004 = vmatmul.mubr.msk.bf16.gmra.mrb[52].mxu0 %vm7117_vm14, %v14506_v34  ;;  %vm20940_vm7 = vcmp.ne.s32.totalorder %v6328_v14, 0  ;;  %13544 = vxpose.xlu0.b32.cont [10/16] (narrow) %v20793_v40, 32  ;;  %v20945_v12 = vpop.f32.mrb[37].mxu0  ;;  %v15133_v32 = vpack.c.bf16 %v6427_v4, %v6427_v4  ;;  %v6224_v60 = vmax.f32 %v6184_v17, 0.0  ;;  %v6185_v9 = vadd.f32 %v20406_v27, %v20821_v26 }
 0x4e7   : > { %6802 = vst.msk [vmem:[#allocation2 + $0x98] sm:$0x1] %vm6437_vm9, %v6666_v50  ;;  %v7005_v37 = vrot.slane %v20911_v42, 5  ;;  %v20951_v18 = vpop.f32.mrb[38].mxu0  ;;  %16044 = vmatmul.mubr.msk.bf16.gmra.mrb[16].mxu1 %vm7117_vm14, %v14542_v6  ;;  %v6227_v14 = vmax.f32 %v6187_v3, 0.0  ;;  %v14491_v34 = vrot.slane %v6876_v22, 9  ;;  %v22892_v26 = vrot.slane %v20697_v16, %v20394_v19 }
 0x4e8   : > { %v7000_v29 = vrot.slane %v6998_v23, 4  ;;  %v7001_v21 = vrot.slane %v6877_v52, 5  ;;  %v20954_v40 = vpop.f32.mrb[39].mxu0  ;;  %v6677_v2 = vrot.slane %v15133_v32, 7  ;;  %v6425_v50 = vsel %vm20868_vm5, %v6224_v60, 0.0 }
 0x4e9   : > { %v6225_v17 = vmax.f32 %v6185_v9, 0.0  ;;  %v6879_v4 = vld [vmem:[#allocation2 + $0x74] sm:$0x1]  ;;  %v14492_v43 = vrot.slane %v6878_v63, 9  ;;  %vm20961_vm10 = vcmp.ne.s32.totalorder %v22892_v26, 0  ;;  %v15131_v6 = vpack.c.bf16 %v6425_v50, %v6425_v50 }
 0x4ea   : > { %v6428_v22 = vsel %vm20848_vm4, %v6227_v14, 0.0  ;;  %v6999_v52 = vsel %vm18775_vm8, %v14491_v34, %v6998_v23  ;;  %v7002_v3 = vsel %vm18775_vm8, %v7000_v29, %v7001_v21  ;;  %v20971_v32 = vld [vmem:[#allocation2 + $0x7c] sm:$0xf]  ;;  %13545 = vxpose.xlu0.b32.cont [11/16] (narrow) %v20760_v0, 32  ;;  %v6678_v63 = vrot.slane %v6677_v2, 4 }
 0x4eb   : > { %6809 = vst.msk [vmem:[#allocation2 + $0xb4] sm:$0xe] %vm6762_vm3, %v6677_v2  ;;  %v15134_v60 = vpack.c.bf16 %v6428_v22, %v6428_v22  ;;  %v6426_v9 = vsel %vm20868_vm5, %v6225_v17, 0.0  ;;  %v14507_v50 = vcombine.low %v6999_v52, %v7002_v3  ;;  %v6672_v38 = vrot.slane %v15131_v6, 7  ;;  %v6844_v23 = vld [vmem:[#allocation2 + $0x78] sm:$0xf] }
 0x4ec   : > { %v15132_v14 = vpack.c.bf16 %v6426_v9, %v6426_v9  ;;  %v7007_v26 = vrot.slane %v7005_v37, 4  ;;  %v7008_v28 = vrot.slane %v6879_v4, 5  ;;  %v20977_v34 = vld [vmem:[#allocation2 + $0xc] sm:$0xc]  ;;  %v7006_v0 = vsel %vm18775_vm8, %v14492_v43, %v7005_v37  ;;  %v20989_v22 = vld [vmem:[#allocation2 + $0x88] sm:$0xf] }
 0x4ed   : > { %v6679_v29 = vrot.slane %v15134_v60, 7  ;;  %16007 = vmatprep.mubr.msk.bf16.mxu0 %vm7117_vm14, %v14507_v50  ;;  %v6190_v2 = vadd.f32 %v20859_v58, %v20406_v27  ;;  %v14543_v20 = vcombine.low %v6844_v23, %v20971_v32  ;;  %v6673_v21 = vrot.slane %v6672_v38, 4  ;;  %6806 = vst.msk [vmem:[#allocation2 + $0xa8] sm:$0xe] %vm6762_vm3, %v6672_v38  ;;  %v6846_v52 = vld [vmem:[#allocation2 + $0x84] sm:$0xf] }
 0x4ee   : > { %v6674_v17 = vrot.slane %v15132_v14, 7  ;;  %v7009_v4 = vsel %vm18775_vm8, %v7007_v26, %v7008_v28  ;;  %v7012_v6 = vrot.slane %v20971_v32, 5  ;;  %13546 = vxpose.xlu0.b32.cont [12/16] (narrow) %v20785_v5, 32  ;;  %v6880_v3 = vld [vmem:[#allocation2 + $0x78] sm:$0xe]  ;;  %v14568_v60 = vrot.slane %v20977_v34, 10 }
 0x4ef   : > { %v6680_v43 = vsel %vm20465_vm12, %v6678_v63, %v6679_v29  ;;  %v6681_v37 = vrot.slane %v6679_v29, 4  ;;  %v14508_v27 = vcombine.low %v7006_v0, %v7009_v4  ;;  %v6230_v58 = vmax.f32 %v6190_v2, 0.0  ;;  %16047 = vmatprep.mubr.msk.bf16.mxu1 %vm7117_vm14, %v14543_v20  ;;  %v20999_v50 = vld [vmem:[#allocation11] ss:$0 sm:$0xff]  ;;  %v6881_v63 = vld [vmem:[#allocation2 + $0x80] sm:$0x1] }
 0x4f0   : > { %6810 = vst.msk [vmem:[#allocation2 + $0xb8] sm:$0xf] %vm6764_vm6, %v6680_v43  ;;  %v6675_v28 = vsel %vm20465_vm12, %v6673_v21, %v6674_v17  ;;  %v6676_v9 = vrot.slane %v6674_v17, 4  ;;  %v6188_v5 = vadd.f32 %v20999_v50, %v20885_v55  ;;  %v6882_v38 = vld [vmem:[#allocation2 + $0x84] sm:$0xe]  ;;  %v7688_v14 = vrot.slane %v20548_v31, 6 }
 0x4f1   : > { %6811 = vst.msk [vmem:[#allocation2 + $0xbc] sm:$0x1] %vm6437_vm9, %v6681_v37  ;;  %16008 = vmatmul.mubr.msk.bf16.gmra.mrb[56].mxu0 %vm7117_vm14, %v14508_v27  ;;  %v6431_v26 = vsel %vm20940_vm7, %v6230_v58, 0.0  ;;  %v14544_v23 = vcombine.low %v6846_v52, %v20989_v22  ;;  %v6191_v29 = vadd.f32 %v20999_v50, %v20894_v57  ;;  %v22895_v55 = vrot.slane %v20697_v16, %v20404_v44 }
 0x4f2   : > { %6807 = vst.msk [vmem:[#allocation2 + $0xac] sm:$0xf] %vm6764_vm6, %v6675_v28  ;;  %v15137_v2 = vpack.c.bf16 %v6431_v26, %v6431_v26  ;;  %v6228_v20 = vmax.f32 %v6188_v5, 0.0  ;;  %v7019_v21 = vrot.slane %v20989_v22, 5  ;;  %v6189_v17 = vadd.f32 %v20999_v50, %v20898_v30  ;;  %13547 = vxpose.xlu0.b32.cont [13/16] (narrow) %v20863_v10, 32 }
 0x4f3   : > { %vm21015_vm11 = vcmp.ne.s32.totalorder %v22895_v55, 0  ;;  %6808 = vst.msk [vmem:[#allocation2 + $0xb0] sm:$0x1] %vm6437_vm9, %v6676_v9  ;;  %16048 = vmatmul.mubr.msk.bf16.gmra.mrb[20].mxu1 %vm7117_vm14, %v14544_v23  ;;  %v6231_v57 = vmax.f32 %v6191_v29, 0.0  ;;  %v14493_v4 = vrot.slane %v6880_v3, 9  ;;  %v7014_v43 = vrot.slane %v7012_v6, 4 }
 0x4f4   : > { %v7015_v37 = vrot.slane %v6881_v63, 5  ;;  %v6687_v27 = vrot.slane %v15137_v2, 7  ;;  %v6429_v58 = vsel %vm20961_vm10, %v6228_v20, 0.0  ;;  %v6229_v52 = vmax.f32 %v6189_v17, 0.0  ;;  %v6883_v28 = vld [vmem:[#allocation2 + $0x8c] sm:$0x1] }
 0x4f5   : > { %v14494_v9 = vrot.slane %v6882_v38, 9  ;;  %v22898_v5 = vrot.slane %v20697_v16, %v20409_v36  ;;  %v15135_v10 = vpack.c.bf16 %v6429_v58, %v6429_v58  ;;  %v6432_v3 = vsel %vm20940_vm7, %v6231_v57, 0.0  ;;  %v21040_v23 = vld [vmem:[#allocation2 + $0x94] sm:$0xf] }
 0x4f6   : > { %v7013_v63 = vsel %vm18775_vm8, %v14493_v4, %v7012_v6  ;;  %v7016_v26 = vsel %vm18775_vm8, %v7014_v43, %v7015_v37  ;;  %v6688_v38 = vrot.slane %v6687_v27, 4  ;;  %6815 = vst.msk [vmem:[#allocation2 + $0xcc] sm:$0xe] %vm6762_vm3, %v6687_v27  ;;  %v15138_v16 = vpack.c.bf16 %v6432_v3, %v6432_v3  ;;  %13548 = vxpose.xlu0.b32.cont [14/16] (narrow) %v20892_v49, 32  ;;  %v6848_v6 = vld [vmem:[#allocation2 + $0x90] sm:$0xf] }
 0x4f7   : > { %vm21030_vm13 = vcmp.ne.s32.totalorder %v22898_v5, 0  ;;  %v6430_v29 = vsel %vm20961_vm10, %v6229_v52, 0.0  ;;  %v14509_v55 = vcombine.low %v7013_v63, %v7016_v26  ;;  %v6682_v8 = vrot.slane %v15135_v10, 7  ;;  %v6850_v52 = vld [vmem:[#allocation2 + $0x9c] sm:$0xf] }
 0x4f8   : > { %v15136_v2 = vpack.c.bf16 %v6430_v29, %v6430_v29  ;;  %v7021_v20 = vrot.slane %v7019_v21, 4  ;;  %v7022_v17 = vrot.slane %v6883_v28, 5  ;;  %v6689_v57 = vrot.slane %v15138_v16, 7  ;;  %v21056_v28 = vld [vmem:[#allocation2 + $0xa0] sm:$0xf] }
 0x4f9   : > { %16011 = vmatprep.mubr.msk.bf16.mxu0 %vm7117_vm14, %v14509_v55  ;;  %v7020_v4 = vsel %vm18775_vm8, %v14494_v9, %v7019_v21  ;;  %v6194_v43 = vadd.f32 %v20999_v50, %v20921_v41  ;;  %v14545_v39 = vcombine.low %v6848_v6, %v21040_v23  ;;  %v6683_v37 = vrot.slane %v6682_v8, 4  ;;  %6812 = vst.msk [vmem:[#allocation2 + $0xc0] sm:$0xe] %vm6762_vm3, %v6682_v8  ;;  %v6884_v10 = vld [vmem:[#allocation2 + $0x90] sm:$0xe] }
 0x4fa   : > { %v6684_v49 = vrot.slane %v15136_v2, 7  ;;  %v7023_v27 = vsel %vm18775_vm8, %v7021_v20, %v7022_v17  ;;  %v7026_v58 = vrot.slane %v21040_v23, 5  ;;  %vm7677_vm0 = vcmask 1045508   ;;  %v6886_v3 = vld [vmem:[#allocation2 + $0x9c] sm:$0xe]  ;;  %13549 = vxpose.xlu0.b32.cont [15/16] (narrow) %v20840_v15, 32 }
 0x4fb   : > { %v6690_v21 = vsel %vm20465_vm12, %v6688_v38, %v6689_v57  ;;  %v6691_v9 = vrot.slane %v6689_v57, 4  ;;  %v14510_v41 = vcombine.low %v7020_v4, %v7023_v27  ;;  %v6234_v5 = vmax.f32 %v6194_v43, 0.0  ;;  %16051 = vmatprep.mubr.msk.bf16.mxu1 %vm7117_vm14, %v14545_v39  ;;  %v6885_v29 = vld [vmem:[#allocation2 + $0x98] sm:$0x1]  ;;  %v6887_v57 = vld [vmem:[#allocation2 + $0xa4] sm:$0x1]  ;;  %vm21112_vm15 = vmor %vm1203_vm1, %vm7677_vm0 }
 0x4fc   : > { %v21064_v63 = vrot.slane %v7688_v14, 4  ;;  %6816 = vst.msk [vmem:[#allocation2 + $0xd0] sm:$0xf] %vm6764_vm6, %v6690_v21  ;;  %v6685_v26 = vsel %vm20465_vm12, %v6683_v37, %v6684_v49  ;;  %v6686_v16 = vrot.slane %v6684_v49, 4  ;;  %v6192_v38 = vadd.f32 %v20999_v50, %v20945_v12  ;;  %v21085_v49 = vld [vmem:[#allocation2 + $0xac] sm:$0xf] }
 0x4fd   : > { %v7695_v55 = vrot.slane %v20613_v11, 6  ;;  %6817 = vst.msk [vmem:[#allocation2 + $0xd4] sm:$0x1] %vm6437_vm9, %v6691_v9  ;;  %16012 = vmatmul.mubr.msk.bf16.gmra.mrb[60].mxu0 %vm7117_vm14, %v14510_v41  ;;  %v6435_v15 = vsel %vm21015_vm11, %v6234_v5, 0.0  ;;  %v14546_v8 = vcombine.low %v6850_v52, %v21056_v28  ;;  %v6195_v2 = vadd.f32 %v20999_v50, %v20951_v18  ;;  %v21090_v9 = vld [vmem:[#allocation2 + $0xb8] sm:$0xf] }
 0x4fe   : > { %6813 = vst.msk [vmem:[#allocation2 + $0xc4] sm:$0xf] %vm6764_vm6, %v6685_v26  ;;  %v15141_v12 = vpack.c.bf16 %v6435_v15, %v6435_v15  ;;  %v6232_v20 = vmax.f32 %v6192_v38, 0.0  ;;  %v7033_v17 = vrot.slane %v21056_v28, 5  ;;  %v6193_v6 = vadd.f32 %v20999_v50, %v20954_v40  ;;  %13550 = vxpose.xlu0.b32.end [16/16] (narrow) %v20877_v62, 32  ;;  %v21170_v11 = vld [vmem:[#allocation12 + $0x40] sm:$0xff]  }
 0x4ff   : > { %6814 = vst.msk [vmem:[#allocation2 + $0xc8] sm:$0x1] %vm6437_vm9, %v6686_v16  ;;  %16052 = vmatmul.mubr.msk.bf16.gmra.mrb[24].mxu1 %vm7117_vm14, %v14546_v8  ;;  %v6235_v4 = vmax.f32 %v6195_v2, 0.0  ;;  %v14495_v43 = vrot.slane %v6884_v10, 9  ;;  %v7028_v39 = vrot.slane %v7026_v58, 4  ;;  %v7029_v37 = vrot.slane %v6885_v29, 5 }
 0x500   : > { %v6697_v18 = vrot.slane %v15141_v12, 7  ;;  %v6433_v27 = vsel %vm21030_vm13, %v6232_v20, 0.0  ;;  %v6233_v52 = vmax.f32 %v6193_v6, 0.0  ;;  %v14496_v21 = vrot.slane %v6886_v3, 9  ;;  %v6852_v10 = vld [vmem:[#allocation2 + $0xa8] sm:$0xf] }
 0x501   : > { %v15139_v40 = vpack.c.bf16 %v6433_v27, %v6433_v27  ;;  %v6436_v50 = vsel %vm21015_vm11, %v6235_v4, 0.0  ;;  %v7027_v41 = vsel %vm18775_vm8, %v14495_v43, %v7026_v58  ;;  %v7030_v5 = vsel %vm18775_vm8, %v7028_v39, %v7029_v37  ;;  %v7612_v38 = vld [vmem:[#allocation2] sm:$0xc]  ;;  %v6854_v2 = vld [vmem:[#allocation2 + $0xb4] sm:$0xf] }
 0x502   : > { %v6698_v62 = vrot.slane %v6697_v18, 4  ;;  %6821 = vst.msk [vmem:[#allocation2 + $0xe4] sm:$0xe] %vm6762_vm3, %v6697_v18  ;;  %v15142_v26 = vpack.c.bf16 %v6436_v50, %v6436_v50  ;;  %v6434_v3 = vsel %vm21030_vm13, %v6233_v52, 0.0  ;;  %v14511_v16 = vcombine.low %v7027_v41, %v7030_v5  ;;  %v7613_v12 = vld [vmem:[#allocation2 + $0x8] sm:$0x3] }
 0x503   : > { %v6692_v29 = vrot.slane %v15139_v40, 7  ;;  %v15140_v15 = vpack.c.bf16 %v6434_v3, %v6434_v3  ;;  %v7035_v0 = vrot.slane %v7033_v17, 4  ;;  %v7036_v8 = vrot.slane %v6887_v57, 5  ;;  %v6888_v58 = vld [vmem:[#allocation2 + $0xa8] sm:$0xe] }
 0x504   : > { %v6699_v20 = vrot.slane %v15142_v26, 7  ;;  %16015 = vmatprep.mubr.msk.bf16.mxu0 %vm7117_vm14, %v14511_v16  ;;  %v7034_v6 = vsel %vm18775_vm8, %v14496_v21, %v7033_v17  ;;  %v7040_v4 = vrot.slane %v21085_v49, 5  ;;  %v14547_v30 = vcombine.low %v6852_v10, %v21085_v49  ;;  %v6889_v43 = vld [vmem:[#allocation2 + $0xb0] sm:$0x1]  ;;  %v6890_v39 = vld [vmem:[#allocation2 + $0xb4] sm:$0xe] }
 0x505   : > { %v6891_v37 = vld [vmem:[#allocation2 + $0xbc] sm:$0x1]  ;;  %v6693_v18 = vrot.slane %v6692_v29, 4  ;;  %6818 = vst.msk [vmem:[#allocation2 + $0xd8] sm:$0xe] %vm6762_vm3, %v6692_v29  ;;  %v6694_v57 = vrot.slane %v15140_v15, 7  ;;  %v7037_v27 = vsel %vm18775_vm8, %v7035_v0, %v7036_v8  ;;  %v14548_v5 = vcombine.low %v6854_v2, %v21090_v9 }
 0x506   : > { %v7047_v52 = vrot.slane %v21090_v9, 5  ;;  %v7615_v40 = vld [vmem:[#allocation2 + $0x14] sm:$0x3]  ;;  %v6700_v21 = vsel %vm20465_vm12, %v6698_v62, %v6699_v20  ;;  %v6701_v50 = vrot.slane %v6699_v20, 4  ;;  %v14512_v41 = vcombine.low %v7034_v6, %v7037_v27  ;;  %16055 = vmatprep.mubr.msk.bf16.mxu1 %vm7117_vm14, %v14547_v30  ;;  %v7616_v8 = vld [vmem:[#allocation2 + $0x18] sm:$0xc] }
 0x507   : > { %v7702_v10 = vrot.slane %v20620_v1, 6  ;;  %6822 = vst.msk [vmem:[#allocation2 + $0xe8] sm:$0xf] %vm6764_vm6, %v6700_v21  ;;  %v6695_v26 = vsel %vm20465_vm12, %v6693_v18, %v6694_v57  ;;  %v6696_v3 = vrot.slane %v6694_v57, 4  ;;  %v14567_v16 = vrot.slane %v7612_v38, 10  ;;  %16056 = vmatmul.mubr.msk.bf16.gmra.mrb[28].mxu1 %vm7117_vm14, %v14548_v5 }
 0x508   : > { %6823 = vst.msk [vmem:[#allocation2 + $0xec] sm:$0x1] %vm6437_vm9, %v6701_v50  ;;  %16016 = vmatmul.mubr.msk.bf16.gmra.mrb[64].mxu0 %vm7117_vm14, %v14512_v41  ;;  %v7684_v62 = vrot.slane %v7613_v12, 6  ;;  %v14497_v29 = vrot.slane %v6888_v58, 9  ;;  %v7042_v15 = vrot.slane %v7040_v4, 4  ;;  %v7043_v0 = vrot.slane %v6889_v43, 5 }
 0x509   : > { %6819 = vst.msk [vmem:[#allocation2 + $0xdc] sm:$0xf] %vm6764_vm6, %v6695_v26  ;;  %v7617_v2 = vld [vmem:[#allocation2 + $0x20] sm:$0x3]  ;;  %v22903_v33 = vrot.slane %v20536_v53, 6  ;;  %v14498_v20 = vrot.slane %v6890_v39, 9 }
 0x50a   : > { %6820 = vst.msk [vmem:[#allocation2 + $0xe0] sm:$0x1] %vm6437_vm9, %v6696_v3  ;;  %v7049_v6 = vrot.slane %v7047_v52, 4  ;;  %v7050_v30 = vrot.slane %v6891_v37, 5  ;;  %v7685_v18 = vsel %vm21112_vm15, %v20927_v24, %v7684_v62  ;;  %v7041_v12 = vsel %vm18775_vm8, %v14497_v29, %v7040_v4  ;;  %v7619_v57 = vld [vmem:[#allocation2 + $0x2c] sm:$0x3] }
 0x50b   : > { %v7682_v38 = vsel %vm21112_vm15, %v14567_v16, %v22903_v33  ;;  %v7044_v58 = vsel %vm18775_vm8, %v7042_v15, %v7043_v0  ;;  %v7691_v43 = vrot.slane %v7615_v40, 6  ;;  %v7709_v39 = vrot.slane %v20703_v56, 6  ;;  %v17444_v26 = vld [vmem:[#allocation12 + $0x38] sm:$0xff]   ;;  %v7618_v3 = vld [vmem:[#allocation2 + $0x24] sm:$0xc] }
 0x50c   : > { %v14583_v27 = vcombine.low %v7682_v38, %v7685_v18  ;;  %v14513_v53 = vcombine.low %v7041_v12, %v7044_v58  ;;  %v7051_v21 = vsel %vm18775_vm8, %v7049_v6, %v7050_v30  ;;  %v7697_v24 = vrot.slane %v7695_v55, 4  ;;  %v7620_v29 = vld [vmem:[#allocation2 + $0x30] sm:$0xc]  ;;  %v7623_v38 = vld [vmem:[#allocation2 + $0x44] sm:$0x3] }
 0x50d   : > { %v7692_v37 = vsel %vm21112_vm15, %v21064_v63, %v7691_v43  ;;  %v7689_v4 = vsel %vm21112_vm15, %v14568_v60, %v7688_v14  ;;  %v7048_v56 = vsel %vm18775_vm8, %v14498_v20, %v7047_v52  ;;  %v14569_v40 = vrot.slane %v7616_v8, 10  ;;  %v7621_v63 = vld [vmem:[#allocation2 + $0x38] sm:$0x3]  ;;  %v7625_v20 = vld [vmem:[#allocation2 + $0x50] sm:$0x3] }
 0x50e   : > { %16063 = vmatprep.mubr.msk.bf16.mxu1 %vm7117_vm14, %v14583_v27  ;;  %16019 = vmatprep.mubr.msk.bf16.mxu0 %vm7117_vm14, %v14513_v53  ;;  %v7698_v50 = vrot.slane %v7617_v2, 6  ;;  %v14514_v41 = vcombine.low %v7048_v56, %v7051_v21  ;;  %v14584_v5 = vcombine.low %v7689_v4, %v7692_v37  ;;  %v7704_v60 = vrot.slane %v7702_v10, 4  ;;  %v7622_v12 = vld [vmem:[#allocation2 + $0x3c] sm:$0xc]  ;;  %v7624_v1 = vld [vmem:[#allocation2 + $0x48] sm:$0xc] }
 0x50f   : > { %v7696_v31 = vsel %vm21112_vm15, %v14569_v40, %v7695_v55  ;;  %v7705_v14 = vrot.slane %v7619_v57, 6  ;;  %v7711_v16 = vrot.slane %v7709_v39, 4  ;;  %v7712_v62 = vrot.slane %v7621_v63, 6  ;;  %v7627_v37 = vld [vmem:[#allocation2 + $0x5c] sm:$0x3] }
 0x510   : > { %v7699_v34 = vsel %vm21112_vm15, %v7697_v24, %v7698_v50  ;;  %16020 = vmatmul.mubr.msk.bf16.gmra.mrb[68].mxu0 %vm7117_vm14, %v14514_v41  ;;  %16064 = vmatmul.mubr.msk.bf16.vlgmr.msra.gmra.mrb[0].mxu1 %vm7117_vm14, %v14584_v5  ;;  %v7716_v55 = vrot.slane %v20717_v59, 6  ;;  %v14570_v15 = vrot.slane %v7618_v3, 10  ;;  %v7723_v8 = vrot.slane %v20795_v54, 6  ;;  %v7629_v4 = vld [vmem:[#allocation2 + $0x68] sm:$0x3] }
 0x511   : > { %v14585_v52 = vcombine.low %v7696_v31, %v7699_v34  ;;  %16096 = vmatpush3.bf16.msra.mxu1 %v20684_v7  ;;  %v7706_v0 = vsel %vm21112_vm15, %v7704_v60, %v7705_v14  ;;  %v14571_v2 = vrot.slane %v7620_v29, 10  ;;  %v7713_v33 = vsel %vm21112_vm15, %v7711_v16, %v7712_v62  ;;  %v7626_v41 = vld [vmem:[#allocation2 + $0x54] sm:$0xc]  ;;  %v7631_v16 = vld [vmem:[#allocation2 + $0x74] sm:$0x3] }
 0x512   : > { %16097 = vmatprep.subr.bf16.mxu1 %v17444_v26  ;;  %v7703_v7 = vsel %vm21112_vm15, %v14570_v15, %v7702_v10  ;;  %v7718_v54 = vrot.slane %v7716_v55, 4  ;;  %v7719_v18 = vrot.slane %v7623_v38, 6  ;;  %v7725_v58 = vrot.slane %v7723_v8, 4  ;;  %v7633_v29 = vld [vmem:[#allocation2 + $0x80] sm:$0x3] }
 0x513   : > { %16067 = vmatprep.mubr.msk.bf16.mxu1 %vm7117_vm14, %v14585_v52  ;;  %v14586_v6 = vcombine.low %v7703_v7, %v7706_v0  ;;  %v7710_v59 = vsel %vm21112_vm15, %v14571_v2, %v7709_v39  ;;  %v7726_v43 = vrot.slane %v7625_v20, 6  ;;  %v7730_v10 = vrot.slane %v20819_v61, 6  ;;  %v7630_v2 = vld [vmem:[#allocation2 + $0x6c] sm:$0xc]  ;;  %v7632_v38 = vld [vmem:[#allocation2 + $0x78] sm:$0xc] }
 0x514   : > { %v14587_v30 = vcombine.low %v7710_v59, %v7713_v33  ;;  %v14572_v57 = vrot.slane %v7622_v12, 10  ;;  %v7720_v27 = vsel %vm21112_vm15, %v7718_v54, %v7719_v18  ;;  %v7737_v53 = vrot.slane %v20883_v35, 6  ;;  %v7635_v18 = vld [vmem:[#allocation2 + $0x8c] sm:$0x3] }
 0x515   : > { %16098 = vmatpush3.bf16.msra.mxu1 %v17444_v26  ;;  %v14573_v21 = vrot.slane %v7624_v1, 10  ;;  %v7727_v39 = vsel %vm21112_vm15, %v7725_v58, %v7726_v43  ;;  %v7732_v50 = vrot.slane %v7730_v10, 4  ;;  %v7733_v63 = vrot.slane %v7627_v37, 6  ;;  %v7628_v26 = vld [vmem:[#allocation2 + $0x60] sm:$0xc] }
 0x516   : > { %16131 = vmatprep.subr.bf16.mxu1 %v21170_v11  ;;  %v7717_v24 = vsel %vm21112_vm15, %v14572_v57, %v7716_v55  ;;  %v7739_v35 = vrot.slane %v7737_v53, 4  ;;  %v7740_v5 = vrot.slane %v7629_v4, 6  ;;  %v7744_v31 = vrot.slane %v20911_v42, 6  ;;  %v7637_v58 = vld [vmem:[#allocation2 + $0x98] sm:$0x3] }
 0x517   : > { %v14588_v56 = vcombine.low %v7717_v24, %v7720_v27  ;;  %v7724_v40 = vsel %vm21112_vm15, %v14573_v21, %v7723_v8  ;;  %v14574_v34 = vrot.slane %v7626_v41, 10  ;;  %v7734_v60 = vsel %vm21112_vm15, %v7732_v50, %v7733_v63  ;;  %v7634_v27 = vld [vmem:[#allocation2 + $0x84] sm:$0xc]  ;;  %v7636_v21 = vld [vmem:[#allocation2 + $0x90] sm:$0xc] }
 0x518   : > { %16068 = vmatmul.mubr.msk.bf16.gmra.mrb[4].mxu1 %vm7117_vm14, %v14586_v6  ;;  %v14589_v61 = vcombine.low %v7724_v40, %v7727_v39  ;;  %v7751_v14 = vrot.slane %v20971_v32, 6  ;;  %v14575_v52 = vrot.slane %v7628_v26, 10  ;;  %v7741_v3 = vsel %vm21112_vm15, %v7739_v35, %v7740_v5  ;;  %v7641_v63 = vld [vmem:[#allocation2 + $0xb0] sm:$0x3] }
 0x519   : > { %16071 = vmatprep.mubr.msk.bf16.mxu1 %vm7117_vm14, %v14587_v30  ;;  %v7731_v62 = vsel %vm21112_vm15, %v14574_v34, %v7730_v10  ;;  %v7746_v0 = vrot.slane %v7744_v31, 4  ;;  %v7747_v8 = vrot.slane %v7631_v16, 6  ;;  %v7754_v33 = vrot.slane %v7633_v29, 6  ;;  %v7643_v29 = vld [vmem:[#allocation2 + $0xbc] sm:$0x3] }
 0x51a   : > { %v14590_v55 = vcombine.low %v7731_v62, %v7734_v60  ;;  %v7738_v15 = vsel %vm21112_vm15, %v14575_v52, %v7737_v53  ;;  %v7753_v32 = vrot.slane %v7751_v14, 4  ;;  %v7758_v7 = vrot.slane %v20989_v22, 6  ;;  %v7640_v60 = vld [vmem:[#allocation2 + $0xa8] sm:$0xc] }
 0x51b   : > { %v14591_v42 = vcombine.low %v7738_v15, %v7741_v3  ;;  %v14576_v20 = vrot.slane %v7630_v2, 10  ;;  %v7748_v6 = vsel %vm21112_vm15, %v7746_v0, %v7747_v8  ;;  %v7765_v59 = vrot.slane %v21040_v23, 6 }
 0x51c   : > { %v14577_v30 = vrot.slane %v7632_v38, 10  ;;  %v7755_v54 = vsel %vm21112_vm15, %v7753_v32, %v7754_v33  ;;  %v7760_v10 = vrot.slane %v7758_v7, 4  ;;  %v7761_v57 = vrot.slane %v7635_v18, 6  ;;  %v17447_v18 = vld [vmem:[#allocation2 + $0x3c] sm:$0xff]  }
 0x51d   : > { %v7745_v12 = vsel %vm21112_vm15, %v14576_v20, %v7744_v31  ;;  %v7767_v23 = vrot.slane %v7765_v59, 4  ;;  %v7768_v53 = vrot.slane %v7637_v58, 6  ;;  %v7772_v39 = vrot.slane %v21056_v28, 6  ;;  %v7638_v31 = vld [vmem:[#allocation2 + $0x9c] sm:$0xc]  ;;  %v17449_v58 = vld [vmem:[#allocation2 + $0x54] sm:$0xff]  }
 0x51e   : > { %v14592_v43 = vcombine.low %v7745_v12, %v7748_v6  ;;  %v7752_v1 = vsel %vm21112_vm15, %v14577_v30, %v7751_v14  ;;  %v14578_v37 = vrot.slane %v7634_v27, 10  ;;  %v7762_v24 = vsel %vm21112_vm15, %v7760_v10, %v7761_v57  ;;  %v17443_v20 = vld [vmem:[#allocation2 + $0x18] sm:$0xff]   ;;  %v17445_v6 = vld [vmem:[#allocation2 + $0x24] sm:$0xff]   ;;  %v17446_v30 = vld [vmem:[#allocation2 + $0x30] sm:$0xff]  }
 0x51f   : > { %v14593_v22 = vcombine.low %v7752_v1, %v7755_v54  ;;  %v7779_v4 = vrot.slane %v21085_v49, 6  ;;  %v7769_v40 = vsel %vm21112_vm15, %v7767_v23, %v7768_v53  ;;  %v7774_v5 = vrot.slane %v7772_v39, 4  ;;  %v21255_v54 = vld [vmem:[#allocation12 + $0x50] sm:$0xff]   ;;  %v17454_v10 = vld [vmem:[#allocation2 + $0x90] sm:$0xff]   ;;  %v17455_v57 = vld [vmem:[#allocation2 + $0x9c] sm:$0xff]  }
 0x520   : > { %16072 = vmatmul.mubr.msk.bf16.gmra.mrb[8].mxu1 %vm7117_vm14, %v14588_v56  ;;  %v14579_v56 = vrot.slane %v7636_v21, 10  ;;  %v7759_v50 = vsel %vm21112_vm15, %v14578_v37, %v7758_v7  ;;  %v7782_v34 = vrot.slane %v7641_v63, 6  ;;  %v7786_v14 = vrot.slane %v21090_v9, 6  ;;  %v7642_v9 = vld [vmem:[#allocation2 + $0xb4] sm:$0xc]  ;;  %v17448_v12 = vld [vmem:[#allocation2 + $0x48] sm:$0xff]  }
 0x521   : > { %16075 = vmatprep.mubr.msk.bf16.mxu1 %vm7117_vm14, %v14589_v61  ;;  %v7639_v61 = vld [vmem:[#allocation2 + $0xa4] sm:$0x3]  ;;  %v14594_v41 = vcombine.low %v7759_v50, %v7762_v24  ;;  %v7781_v49 = vrot.slane %v7779_v4, 4  ;;  %v14580_v52 = vrot.slane %v7638_v31, 10  ;;  %v14581_v16 = vrot.slane %v7640_v60, 10  ;;  %v17451_v1 = vld [vmem:[#allocation2 + $0x6c] sm:$0xff]  }
 0x522   : > { %v7766_v35 = vsel %vm21112_vm15, %v14579_v56, %v7765_v59  ;;  %v7775_v26 = vrot.slane %v7639_v61, 6  ;;  %v7788_v8 = vrot.slane %v7786_v14, 4  ;;  %v7789_v2 = vrot.slane %v7643_v29, 6  ;;  %v17461_v59 = vld [vmem:[#allocation12 + $0x48] sm:$0xff]   ;;  %v17456_v27 = vld [vmem:[#allocation2 + $0xa8] sm:$0xff]  }
 0x523   : > { %v14595_v28 = vcombine.low %v7766_v35, %v7769_v40  ;;  %v7783_v62 = vsel %vm21112_vm15, %v7781_v49, %v7782_v34  ;;  %v14582_v32 = vrot.slane %v7642_v9, 10  ;;  %v21268_v23 = vld [vmem:[#allocation2 + $0x1c] sm:$0xf]  ;;  %v8470_v21 = vld [vmem:[#allocation2 + $0x20] sm:$0x1]  ;;  %vm11149_vm1 = vcmask 125954  }
 0x524   : > { %v7776_v3 = vsel %vm21112_vm15, %v7774_v5, %v7775_v26  ;;  %v7790_v33 = vsel %vm21112_vm15, %v7788_v8, %v7789_v2  ;;  %v8566_v53 = vrot.slane %v21268_v23, 5  ;;  %v17458_v37 = vld [vmem:[#allocation2 + $0xc0] sm:$0xff]   ;;  %v21272_v56 = vld [vmem:[#allocation2 + $0x28] sm:$0xf]  ;;  %v8468_v40 = vld [vmem:[#allocation2 + $0x18] sm:$0xe] }
 0x525   : > { %v7787_v38 = vsel %vm21112_vm15, %v14582_v32, %v7786_v14  ;;  %v21275_v61 = vld [vmem:[#allocation2 + $0x34] sm:$0xf]  ;;  %v8573_v50 = vrot.slane %v21272_v56, 5  ;;  %v14651_v63 = vrot.slane %v8468_v40, 9  ;;  %v8473_v35 = vld [vmem:[#allocation2 + $0x2c] sm:$0x1] }
 0x526   : > { %v14598_v7 = vcombine.low %v7787_v38, %v7790_v33  ;;  %v8568_v24 = vrot.slane %v8566_v53, 4  ;;  %v8476_v5 = vld [vmem:[#allocation2 + $0x38] sm:$0x1]  ;;  %v17459_v26 = vld [vmem:[#allocation2 + $0xcc] sm:$0xff]   ;;  %v8576_v60 = vrot.slane %v8473_v35, 5  ;;  %vm10981_vm12 = vcmp.ge.s32.totalorder %v20341_v13, 0 }
 0x527   : > { %v8567_v31 = vsel %vm18775_vm8, %v14651_v63, %v8566_v53  ;;  %v8575_v34 = vrot.slane %v8573_v50, 4  ;;  %v8471_v14 = vld [vmem:[#allocation2 + $0x24] sm:$0xe]  ;;  %v21287_v29 = vld [vmem:[#allocation2 + $0x4c] sm:$0xf]  ;;  %vm11391_vm10 = vcmask 125952  }
 0x528   : > { %16076 = vmatmul.mubr.msk.bf16.gmra.mrb[12].mxu1 %vm7117_vm14, %v14590_v55  ;;  %v7773_v55 = vsel %vm21112_vm15, %v14580_v52, %v7772_v39  ;;  %v17457_v39 = vld [vmem:[#allocation2 + $0xb4] sm:$0xff]   ;;  %v8479_v2 = vld [vmem:[#allocation2 + $0x44] sm:$0x1]  ;;  %v8594_v9 = vrot.slane %v21287_v29, 5  ;;  %v8482_v33 = vld [vmem:[#allocation2 + $0x50] sm:$0x1] }
 0x529   : > { %16079 = vmatprep.mubr.msk.bf16.mxu1 %vm7117_vm14, %v14591_v42  ;;  %v14596_v15 = vcombine.low %v7773_v55, %v7776_v3  ;;  %v7780_v42 = vsel %vm21112_vm15, %v14581_v16, %v7779_v4  ;;  %v8569_v4 = vrot.slane %v8470_v21, 5  ;;  %v8583_v3 = vrot.slane %v8476_v5, 5  ;;  %v21284_v16 = vld [vmem:[#allocation2 + $0x40] sm:$0xf]  ;;  %11150 = vst.msk [vmem:[#allocation3 + $0x8] sm:$0xc] %vm11149_vm1, %v22848_v51 }
 0x52a   : > { %v14597_v0 = vcombine.low %v7780_v42, %v7783_v62  ;;  %v8474_v62 = vld [vmem:[#allocation2 + $0x30] sm:$0xe]  ;;  %v14652_v55 = vrot.slane %v8471_v14, 9  ;;  %v8587_v42 = vrot.slane %v21284_v16, 5  ;;  %v21329_v14 = vld [vmem:[#allocation2 + $0x7c] sm:$0xf] }
 0x52b   : > { %11151 = vst.msk [vmem:[#allocation3 + $0x14] sm:$0xc] %vm11149_vm1, %v22848_v51  ;;  %11152 = vst.msk [vmem:[#allocation3 + $0x20] sm:$0xc] %vm11149_vm1, %v22848_v51 }
 0x52c   : > { %v8574_v32 = vsel %vm18775_vm8, %v14652_v55, %v8573_v50  ;;  %11153 = vst.msk [vmem:[#allocation3 + $0x2c] sm:$0xc] %vm11149_vm1, %v22848_v51  ;;  %11154 = vst.msk [vmem:[#allocation3 + $0x38] sm:$0xc] %vm11149_vm1, %v22848_v51 }
 0x52d   : > { %11155 = vst.msk [vmem:[#allocation3 + $0x44] sm:$0xc] %vm11149_vm1, %v22848_v51  ;;  %11156 = vst.msk [vmem:[#allocation3 + $0x50] sm:$0xc] %vm11149_vm1, %v22848_v51 }
 0x52e   : > { %11157 = vst.msk [vmem:[#allocation3 + $0x5c] sm:$0xc] %vm11149_vm1, %v22848_v51  ;;  %11158 = vst.msk [vmem:[#allocation3 + $0x68] sm:$0xc] %vm11149_vm1, %v22848_v51 }
 0x52f   : > { %11159 = vst.msk [vmem:[#allocation3 + $0x74] sm:$0xc] %vm11149_vm1, %v22848_v51  ;;  %11160 = vst.msk [vmem:[#allocation3 + $0x80] sm:$0xc] %vm11149_vm1, %v22848_v51 }
 0x530   : > { %16080 = vmatmul.mubr.msk.bf16.gmra.mrb[16].mxu1 %vm7117_vm14, %v14592_v43  ;;  %v17450_v43 = vld [vmem:[#allocation2 + $0x60] sm:$0xff]   ;;  %11161 = vst.msk [vmem:[#allocation3 + $0x8c] sm:$0xc] %vm11149_vm1, %v22848_v51  ;;  %11162 = vst.msk [vmem:[#allocation3 + $0x98] sm:$0xc] %vm11149_vm1, %v22848_v51 }
 0x531   : > { %16083 = vmatprep.mubr.msk.bf16.mxu1 %vm7117_vm14, %v14593_v22  ;;  %v17453_v22 = vld [vmem:[#allocation2 + $0x84] sm:$0xff]   ;;  %11163 = vst.msk [vmem:[#allocation3 + $0xa4] sm:$0xc] %vm11149_vm1, %v22848_v51  ;;  %11164 = vst.msk [vmem:[#allocation3 + $0xb0] sm:$0xc] %vm11149_vm1, %v22848_v51 }
 0x532   : > { %11165 = vst.msk [vmem:[#allocation3 + $0xbc] sm:$0xc] %vm11149_vm1, %v22848_v51 }
 0x538   : > { %16084 = vmatmul.mubr.msk.bf16.gmra.mrb[20].mxu1 %vm7117_vm14, %v14594_v41  ;;  %v8570_v41 = vsel %vm18775_vm8, %v8568_v24, %v8569_v4 }
 0x539   : > { %16087 = vmatprep.mubr.msk.bf16.mxu1 %vm7117_vm14, %v14595_v28  ;;  %v8580_v28 = vrot.slane %v21275_v61, 5  ;;  %v14667_v49 = vcombine.low %v8567_v31, %v8570_v41  ;;  %v8483_v41 = vld [vmem:[#allocation2 + $0x54] sm:$0xe] }
 0x53b   : > { %v8582_v52 = vrot.slane %v8580_v28, 4 }
 0x53d   : > { %v8584_v8 = vsel %vm18775_vm8, %v8582_v52, %v8583_v3  ;;  %v14656_v3 = vrot.slane %v8483_v41, 9 }
 0x540   : > { %16088 = vmatmul.mubr.msk.bf16.gmra.mrb[24].mxu1 %vm7117_vm14, %v14596_v15  ;;  %v8577_v15 = vsel %vm18775_vm8, %v8575_v34, %v8576_v60  ;;  %v8486_v60 = vld [vmem:[#allocation2 + $0x60] sm:$0xe] }
 0x541   : > { %16091 = vmatprep.mubr.msk.bf16.mxu1 %vm7117_vm14, %v14597_v0  ;;  %v14653_v0 = vrot.slane %v8474_v62, 9  ;;  %v14668_v38 = vcombine.low %v8574_v32, %v8577_v15  ;;  %v14657_v15 = vrot.slane %v8486_v60, 9 }
 0x548   : > { %16092 = vmatmul.mubr.msk.bf16.gmra.mrb[28].mxu1 %vm7117_vm14, %v14598_v7  ;;  %v8581_v7 = vsel %vm18775_vm8, %v14653_v0, %v8580_v28  ;;  %v8491_v0 = vld [vmem:[#allocation2 + $0x74] sm:$0x1] }
 0x549   : > { %16099 = vmatprep.mubr.msk.bf16.mxu1 %vm7117_vm14, %v17443_v20  ;;  %v17463_v20 = vld [vmem:[#allocation12 + $0x58] sm:$0xff]  }
 0x550   : > { %16100 = vmatmul.mubr.msk.bf16.vlgmr.msra.gmra.mrb[0].mxu1 %vm7117_vm14, %v17445_v6  ;;  %v14669_v6 = vcombine.low %v8581_v7, %v8584_v8  ;;  %v8622_v8 = vrot.slane %v21329_v14, 5 }
 0x551   : > { %16103 = vmatprep.mubr.msk.bf16.mxu1 %vm7117_vm14, %v17446_v30  ;;  %16132 = vmatpush3.bf16.msra.mxu1 %v21170_v11  ;;  %v17452_v11 = vld [vmem:[#allocation2 + $0x78] sm:$0xff]   ;;  %v8590_v30 = vrot.slane %v8479_v2, 5 }
 0x552   : > { %16133 = vmatprep.subr.bf16.mxu1 %v17461_v59 }
 0x555   : > { %16134 = vmatpush3.bf16.msra.mxu1 %v17461_v59  ;;  %v8589_v59 = vrot.slane %v8587_v42, 4 }
 0x556   : > { %16167 = vmatprep.subr.bf16.mxu1 %v21255_v54 }
 0x558   : > { %16104 = vmatmul.mubr.msk.bf16.gmra.mrb[4].mxu1 %vm7117_vm14, %v17447_v18  ;;  %v8477_v18 = vld [vmem:[#allocation2 + $0x3c] sm:$0xe] }
 0x559   : > { %16107 = vmatprep.mubr.msk.bf16.mxu1 %vm7117_vm14, %v17448_v12  ;;  %v8596_v12 = vrot.slane %v8594_v9, 4 }
 0x560   : > { %16108 = vmatmul.mubr.msk.bf16.gmra.mrb[8].mxu1 %vm7117_vm14, %v17449_v58  ;;  %v8597_v58 = vrot.slane %v8482_v33, 5 }
 0x561   : > { %16111 = vmatprep.mubr.msk.bf16.mxu1 %vm7117_vm14, %v17450_v43  ;;  %v21300_v43 = vld [vmem:[#allocation2 + $0x58] sm:$0xf] }
 0x562   : > { %v8598_v21 = vsel %vm18775_vm8, %v8596_v12, %v8597_v58  ;;  %v8492_v12 = vld [vmem:[#allocation2 + $0x78] sm:$0xe]  ;;  %v21347_v58 = vld [vmem:[#allocation2 + $0x94] sm:$0xf] }
 0x568   : > { %16112 = vmatmul.mubr.msk.bf16.gmra.mrb[12].mxu1 %vm7117_vm14, %v17451_v1  ;;  %v8480_v1 = vld [vmem:[#allocation2 + $0x48] sm:$0xe] }
 0x569   : > { %16115 = vmatprep.mubr.msk.bf16.mxu1 %vm7117_vm14, %v17452_v11  ;;  %v21303_v11 = vld [vmem:[#allocation2 + $0x64] sm:$0xf]  ;;  %v14655_v53 = vrot.slane %v8480_v1, 9 }
 0x56b   : > { %v8595_v40 = vsel %vm18775_vm8, %v14655_v53, %v8594_v9  ;;  %v8494_v9 = vld [vmem:[#allocation2 + $0x80] sm:$0x1] }
 0x56c   : > { %v14671_v63 = vcombine.low %v8595_v40, %v8598_v21  ;;  %v8497_v21 = vld [vmem:[#allocation2 + $0x8c] sm:$0x1] }
 0x570   : > { %16116 = vmatmul.mubr.msk.bf16.gmra.mrb[16].mxu1 %vm7117_vm14, %v17453_v22  ;;  %v21306_v22 = vld [vmem:[#allocation12 + $0x60] sm:$0xff]  }
 0x571   : > { %16119 = vmatprep.mubr.msk.bf16.mxu1 %vm7117_vm14, %v17454_v10  ;;  %v14654_v10 = vrot.slane %v8477_v18, 9  ;;  %v21344_v18 = vld [vmem:[#allocation2 + $0x88] sm:$0xf] }
 0x573   : > { %v8588_v24 = vsel %vm18775_vm8, %v14654_v10, %v8587_v42 }
 0x578   : > { %16120 = vmatmul.mubr.msk.bf16.gmra.mrb[20].mxu1 %vm7117_vm14, %v17455_v57  ;;  %v8591_v57 = vsel %vm18775_vm8, %v8589_v59, %v8590_v30  ;;  %v8624_v59 = vrot.slane %v8622_v8, 4  ;;  %v8625_v30 = vrot.slane %v8494_v9, 5 }
 0x579   : > { %16123 = vmatprep.mubr.msk.bf16.mxu1 %vm7117_vm14, %v17456_v27  ;;  %v8601_v27 = vrot.slane %v21300_v43, 5  ;;  %v14670_v4 = vcombine.low %v8588_v24, %v8591_v57  ;;  %v8629_v57 = vrot.slane %v21344_v18, 5 }
 0x57a   : > { %v8626_v53 = vsel %vm18775_vm8, %v8624_v59, %v8625_v30 }
 0x57b   : > { %v8603_v35 = vrot.slane %v8601_v27, 4  ;;  %v8602_v2 = vsel %vm18775_vm8, %v14656_v3, %v8601_v27  ;;  %v14659_v27 = vrot.slane %v8492_v12, 9 }
 0x57d   : > { %v8623_v40 = vsel %vm18775_vm8, %v14659_v27, %v8622_v8 }
 0x57e   : > { %v14675_v41 = vcombine.low %v8623_v40, %v8626_v53 }
 0x580   : > { %16124 = vmatmul.mubr.msk.bf16.gmra.mrb[24].mxu1 %vm7117_vm14, %v17457_v39  ;;  %v8485_v39 = vld [vmem:[#allocation2 + $0x5c] sm:$0x1] }
 0x581   : > { %16127 = vmatprep.mubr.msk.bf16.mxu1 %vm7117_vm14, %v17458_v37  ;;  %v8608_v37 = vrot.slane %v21303_v11, 5  ;;  %v8604_v28 = vrot.slane %v8485_v39, 5  ;;  %v8636_v39 = vrot.slane %v21347_v58, 5 }
 0x583   : > { %v8605_v62 = vsel %vm18775_vm8, %v8603_v35, %v8604_v28  ;;  %v8609_v33 = vsel %vm18775_vm8, %v14657_v15, %v8608_v37  ;;  %v8495_v35 = vld [vmem:[#allocation2 + $0x84] sm:$0xe]  ;;  %v8631_v28 = vrot.slane %v8629_v57, 4  ;;  %v8638_v60 = vrot.slane %v8636_v39, 4  ;;  %v8498_v15 = vld [vmem:[#allocation2 + $0x90] sm:$0xe] }
 0x584   : > { %v14672_v32 = vcombine.low %v8602_v2, %v8605_v62  ;;  %v14661_v9 = vrot.slane %v8498_v15, 9 }
 0x586   : > { %v8637_v59 = vsel %vm18775_vm8, %v14661_v9, %v8636_v39  ;;  %v21393_v39 = vld [vmem:[#allocation2 + $0xc4] sm:$0xf] }
 0x587   : > { %v8664_v15 = vrot.slane %v21393_v39, 5 }
 0x588   : > { %16128 = vmatmul.mubr.msk.bf16.gmra.mrb[28].mxu1 %vm7117_vm14, %v17459_v26  ;;  %v8610_v26 = vrot.slane %v8608_v37, 4 }
 0x589   : > { %16135 = vmatprep.mubr.msk.bf16.mxu1 %vm7117_vm14, %v14667_v49  ;;  %v21324_v49 = vld [vmem:[#allocation2 + $0x70] sm:$0xf] }
 0x58a   : > { %v8615_v55 = vrot.slane %v21324_v49, 5 }
 0x58c   : > { %v8617_v7 = vrot.slane %v8615_v55, 4 }
 0x590   : > { %16136 = vmatmul.mubr.msk.bf16.vlgmr.msra.gmra.mrb[0].mxu1 %vm7117_vm14, %v14668_v38 }
 0x591   : > { %16139 = vmatprep.mubr.msk.bf16.mxu1 %vm7117_vm14, %v14669_v6  ;;  %16168 = vmatpush3.bf16.msra.mxu1 %v21255_v54  ;;  %v8488_v54 = vld [vmem:[#allocation2 + $0x68] sm:$0x1]  ;;  %v8489_v6 = vld [vmem:[#allocation2 + $0x6c] sm:$0xe] }
 0x592   : > { %16169 = vmatprep.subr.bf16.mxu1 %v17463_v20  ;;  %v8611_v31 = vrot.slane %v8488_v54, 5  ;;  %v14658_v1 = vrot.slane %v8489_v6, 9  ;;  %v8500_v54 = vld [vmem:[#allocation2 + $0x98] sm:$0x1] }
 0x593   : > { %v21318_v50 = vpop.f32.mrb[40].mxu0  ;;  %v8639_v3 = vrot.slane %v8500_v54, 5  ;;  %v21388_v54 = vld [vmem:[#allocation2 + $0xb8] sm:$0xf] }
 0x594   : > { %v21321_v5 = vpop.f32.mrb[41].mxu0  ;;  %v8612_v42 = vsel %vm18775_vm8, %v8610_v26, %v8611_v31  ;;  %v8616_v37 = vsel %vm18775_vm8, %v14658_v1, %v8615_v55  ;;  %v8632_v26 = vrot.slane %v8497_v21, 5  ;;  %v21368_v55 = vld [vmem:[#allocation2 + $0xa0] sm:$0xf]  ;;  %v8501_v1 = vld [vmem:[#allocation2 + $0x9c] sm:$0xe] }
 0x595   : > { %16170 = vmatpush3.bf16.msra.mxu1 %v17463_v20  ;;  %v21326_v34 = vpop.f32.mrb[42].mxu0  ;;  %v14673_v38 = vcombine.low %v8609_v33, %v8612_v42  ;;  %v8618_v20 = vrot.slane %v8491_v0, 5  ;;  %v21371_v42 = vld [vmem:[#allocation2 + $0xac] sm:$0xf]  ;;  %v14660_v0 = vrot.slane %v8495_v35, 9  ;;  %v8643_v2 = vrot.slane %v21368_v55, 5 }
 0x596   : > { %16203 = vmatprep.subr.bf16.mxu1 %v21306_v22  ;;  %v21331_v52 = vpop.f32.mrb[43].mxu0  ;;  %v8633_v8 = vsel %vm18775_vm8, %v8631_v28, %v8632_v26  ;;  %v8503_v33 = vld [vmem:[#allocation2 + $0xa4] sm:$0x1]  ;;  %v8657_v28 = vrot.slane %v21388_v54, 5 }
 0x597   : > { %v8619_v10 = vsel %vm18775_vm8, %v8617_v7, %v8618_v20  ;;  %v8630_v7 = vsel %vm18775_vm8, %v14660_v0, %v8629_v57  ;;  %v8506_v20 = vld [vmem:[#allocation2 + $0xb0] sm:$0x1]  ;;  %v8646_v27 = vrot.slane %v8503_v33, 5  ;;  %v8504_v57 = vld [vmem:[#allocation2 + $0xa8] sm:$0xe] }
 0x598   : > { %16140 = vmatmul.mubr.msk.bf16.gmra.mrb[4].mxu1 %vm7117_vm14, %v14670_v4  ;;  %v14674_v4 = vcombine.low %v8616_v37, %v8619_v10  ;;  %v14676_v6 = vcombine.low %v8630_v7, %v8633_v8  ;;  %v8645_v10 = vrot.slane %v8643_v2, 4  ;;  %v8653_v37 = vrot.slane %v8506_v20, 5  ;;  %v8512_v8 = vld [vmem:[#allocation2 + $0xc8] sm:$0x1] }
 0x599   : > { %16143 = vmatprep.mubr.msk.bf16.mxu1 %vm7117_vm14, %v14671_v63  ;;  %v14663_v26 = vrot.slane %v8504_v57, 9  ;;  %v8659_v7 = vrot.slane %v8657_v28, 4 }
 0x59a   : > { %v8647_v35 = vsel %vm18775_vm8, %v8645_v10, %v8646_v27  ;;  %v8510_v10 = vld [vmem:[#allocation2 + $0xc0] sm:$0xe] }
 0x59b   : > { %v14665_v57 = vrot.slane %v8510_v10, 9 }
 0x5a0   : > { %16144 = vmatmul.mubr.msk.bf16.gmra.mrb[8].mxu1 %vm7117_vm14, %v14672_v32  ;;  %v8640_v32 = vsel %vm18775_vm8, %v8638_v60, %v8639_v3  ;;  %v8509_v3 = vld [vmem:[#allocation2 + $0xbc] sm:$0x1] }
 0x5a1   : > { %16147 = vmatprep.mubr.msk.bf16.mxu1 %vm7117_vm14, %v14673_v38  ;;  %v8650_v38 = vrot.slane %v21371_v42, 5  ;;  %v14677_v30 = vcombine.low %v8637_v59, %v8640_v32  ;;  %v8660_v20 = vrot.slane %v8509_v3, 5  ;;  %v8666_v59 = vrot.slane %v8664_v15, 4 }
 0x5a3   : > { %v21357_v24 = vpop.f32.mrb[44].mxu0  ;;  %v8652_v21 = vrot.slane %v8650_v38, 4  ;;  %v8651_v32 = vsel %vm18775_vm8, %v14663_v26, %v8650_v38  ;;  %v8515_v26 = vld [vmem:[#allocation2 + $0xd4] sm:$0x1] }
 0x5a4   : > { %v21361_v63 = vpop.f32.mrb[45].mxu0 }
 0x5a5   : > { %v21363_v31 = vpop.f32.mrb[46].mxu0  ;;  %v8654_v60 = vsel %vm18775_vm8, %v8652_v21, %v8653_v37  ;;  %v8661_v21 = vsel %vm18775_vm8, %v8659_v7, %v8660_v20  ;;  %v8674_v20 = vrot.slane %v8515_v26, 5 }
 0x5a6   : > { %v21366_v62 = vpop.f32.mrb[47].mxu0  ;;  %v14679_v33 = vcombine.low %v8651_v32, %v8654_v60  ;;  %v9048_v60 = vrot.slane %v21268_v23, 6  ;;  %v8665_v32 = vsel %vm18775_vm8, %v14665_v57, %v8664_v15  ;;  %v8982_v23 = vld [vmem:[#allocation2 + $0x18] sm:$0xc]  ;;  %v8985_v57 = vld [vmem:[#allocation2 + $0x2c] sm:$0x3] }
 0x5a8   : > { %16148 = vmatmul.mubr.msk.bf16.gmra.mrb[12].mxu1 %vm7117_vm14, %v14674_v4 }
 0x5a9   : > { %16151 = vmatprep.mubr.msk.bf16.mxu1 %vm7117_vm14, %v14675_v41  ;;  %v14662_v41 = vrot.slane %v8501_v1, 9  ;;  %v21408_v1 = vld [vmem:[#allocation2 + $0xd0] sm:$0xf] }
 0x5aa   : > { %v8671_v37 = vrot.slane %v21408_v1, 5 }
 0x5ab   : > { %v8644_v0 = vsel %vm18775_vm8, %v14662_v41, %v8643_v2 }
 0x5ac   : > { %v14678_v9 = vcombine.low %v8644_v0, %v8647_v35  ;;  %v8673_v7 = vrot.slane %v8671_v37, 4 }
 0x5ad   : > { %v21383_v12 = vpop.f32.mrb[48].mxu0 }
 0x5ae   : > { %v21386_v53 = vpop.f32.mrb[49].mxu0 }
 0x5af   : > { %v21391_v4 = vpop.f32.mrb[50].mxu0 }
 0x5b0   : > { %16152 = vmatmul.mubr.msk.bf16.gmra.mrb[16].mxu1 %vm7117_vm14, %v14676_v6  ;;  %v21395_v40 = vpop.f32.mrb[51].mxu0  ;;  %v8507_v6 = vld [vmem:[#allocation2 + $0xb4] sm:$0xe] }
 0x5b1   : > { %16155 = vmatprep.mubr.msk.bf16.mxu1 %vm7117_vm14, %v14677_v30  ;;  %v8667_v30 = vrot.slane %v8512_v8, 5  ;;  %v14664_v2 = vrot.slane %v8507_v6, 9  ;;  %v8983_v8 = vld [vmem:[#allocation2 + $0x20] sm:$0x3]  ;;  %v8513_v6 = vld [vmem:[#allocation2 + $0xcc] sm:$0xe] }
 0x5b2   : > { %v14666_v10 = vrot.slane %v8513_v6, 9  ;;  %v9058_v6 = vrot.slane %v8985_v57, 6  ;;  %v8989_v57 = vld [vmem:[#allocation2 + $0x44] sm:$0x3] }
 0x5b3   : > { %v8668_v41 = vsel %vm18775_vm8, %v8666_v59, %v8667_v30  ;;  %v8658_v3 = vsel %vm18775_vm8, %v14664_v2, %v8657_v28  ;;  %v9050_v59 = vrot.slane %v9048_v60, 4  ;;  %v9051_v30 = vrot.slane %v8983_v8, 6  ;;  %v8987_v8 = vld [vmem:[#allocation2 + $0x38] sm:$0x3] }
 0x5b4   : > { %v8675_v28 = vsel %vm18775_vm8, %v8673_v7, %v8674_v20  ;;  %v9055_v2 = vrot.slane %v21272_v56, 6 }
 0x5b5   : > { %v9052_v15 = vsel %vm21112_vm15, %v9050_v59, %v9051_v30  ;;  %v8984_v59 = vld [vmem:[#allocation2 + $0x24] sm:$0xc] }
 0x5b6   : > { %v9057_v20 = vrot.slane %v9055_v2, 4 }
 0x5b8   : > { %16156 = vmatmul.mubr.msk.bf16.gmra.mrb[20].mxu1 %vm7117_vm14, %v14678_v9  ;;  %v14680_v9 = vcombine.low %v8658_v3, %v8661_v21  ;;  %v14701_v21 = vrot.slane %v8982_v23, 10  ;;  %v8672_v3 = vsel %vm18775_vm8, %v14666_v10, %v8671_v37  ;;  %v9065_v23 = vrot.slane %v8987_v8, 6  ;;  %v8986_v37 = vld [vmem:[#allocation2 + $0x30] sm:$0xc]  ;;  %v8991_v8 = vld [vmem:[#allocation2 + $0x50] sm:$0x3] }
 0x5b9   : > { %16159 = vmatprep.mubr.msk.bf16.mxu1 %vm7117_vm14, %v14679_v33  ;;  %v21411_v27 = vpop.f32.mrb[52].mxu0  ;;  %v14681_v33 = vcombine.low %v8665_v32, %v8668_v41  ;;  %v9062_v41 = vrot.slane %v21275_v61, 6  ;;  %v14702_v10 = vrot.slane %v8984_v59, 10  ;;  %v17466_v59 = vld [vmem:[#allocation12 + $0x68] sm:$0xff]  }
 0x5ba   : > { %v21415_v38 = vpop.f32.mrb[53].mxu0 }
 0x5bb   : > { %v21420_v35 = vpop.f32.mrb[54].mxu0  ;;  %v9064_v30 = vrot.slane %v9062_v41, 4 }
 0x5bc   : > { %v21425_v0 = vpop.f32.mrb[55].mxu0 }
 0x5c0   : > { %16160 = vmatmul.mubr.msk.bf16.gmra.mrb[24].mxu1 %vm7117_vm14, %v14680_v9  ;;  %v14682_v9 = vcombine.low %v8672_v3, %v8675_v28  ;;  %v9059_v28 = vsel %vm21112_vm15, %v9057_v20, %v9058_v6  ;;  %v9076_v3 = vrot.slane %v21287_v29, 6  ;;  %v9072_v6 = vrot.slane %v8989_v57, 6 }
 0x5c1   : > { %16163 = vmatprep.mubr.msk.bf16.mxu1 %vm7117_vm14, %v14681_v33  ;;  %v9049_v33 = vsel %vm21112_vm15, %v14701_v21, %v9048_v60  ;;  %v9069_v60 = vrot.slane %v21284_v16, 6  ;;  %v14703_v21 = vrot.slane %v8986_v37, 10  ;;  %v9079_v37 = vrot.slane %v8991_v8, 6  ;;  %v8993_v8 = vld [vmem:[#allocation2 + $0x5c] sm:$0x3] }
 0x5c2   : > { %v14717_v56 = vcombine.low %v9049_v33, %v9052_v15  ;;  %v9066_v15 = vsel %vm21112_vm15, %v9064_v30, %v9065_v23  ;;  %v8988_v30 = vld [vmem:[#allocation2 + $0x3c] sm:$0xc]  ;;  %v9078_v23 = vrot.slane %v9076_v3, 4  ;;  %v9083_v57 = vrot.slane %v21300_v43, 6 }
 0x5c3   : > { %v9071_v20 = vrot.slane %v9069_v60, 4 }
 0x5c4   : > { %v21437_v26 = vpop.f32.mrb[56].mxu0  ;;  %v9085_v43 = vrot.slane %v9083_v57, 4 }
 0x5c5   : > { %22904 = vst [vmem:[#allocation36_spill] sm:$0xff] %v21437_v26  ;;  %v21441_v32 = vpop.f32.mrb[57].mxu0 }
 0x5c6   : > { %22905 = vst [vmem:[#allocation35_spill] sm:$0xff] %v21441_v32  ;;  %v21445_v7 = vpop.f32.mrb[58].mxu0 }
 0x5c7   : > { %22906 = vst [vmem:[#allocation37_spill] sm:$0xff] %v21445_v7  ;;  %v21448_v61 = vpop.f32.mrb[59].mxu0  ;;  %v21684_v7 = vld [vmem:[#allocation2 + $0xdc] sm:$0xf] }
 0x5c8   : > { %16164 = vmatmul.mubr.msk.bf16.gmra.mrb[28].mxu1 %vm7117_vm14, %v14682_v9  ;;  %22907 = vst [vmem:[#allocation34_spill] sm:$0xff] %v21448_v61  ;;  %v9056_v9 = vsel %vm21112_vm15, %v14702_v10, %v9055_v2  ;;  %v8990_v2 = vld [vmem:[#allocation2 + $0x48] sm:$0xc] }
 0x5c9   : > { %16171 = vmatprep.mubr.msk.bf16.mxu1 %vm7117_vm14, %v14717_v56  ;;  %v14718_v33 = vcombine.low %v9056_v9, %v9059_v28  ;;  %v9063_v56 = vsel %vm21112_vm15, %v14703_v21, %v9062_v41  ;;  %v21470_v41 = vld [vmem:[#allocation12 + $0x70] sm:$0xff]   ;;  %v14704_v21 = vrot.slane %v8988_v30, 10  ;;  %v14705_v9 = vrot.slane %v8990_v2, 10 }
 0x5ca   : > { %v14719_v61 = vcombine.low %v9063_v56, %v9066_v15  ;;  %v9073_v15 = vsel %vm21112_vm15, %v9071_v20, %v9072_v6  ;;  %v8995_v56 = vld [vmem:[#allocation2 + $0x68] sm:$0x3]  ;;  %v9086_v6 = vrot.slane %v8993_v8, 6  ;;  %v9104_v8 = vrot.slane %v21329_v14, 6 }
 0x5cb   : > { %v9077_v30 = vsel %vm21112_vm15, %v14705_v9, %v9076_v3  ;;  %v9093_v2 = vrot.slane %v8995_v56, 6  ;;  %v9097_v3 = vrot.slane %v21324_v49, 6 }
 0x5d0   : > { %v21461_v16 = vpop.f32.mrb[60].mxu0  ;;  %16172 = vmatmul.mubr.msk.bf16.vlgmr.msra.gmra.mrb[0].mxu1 %vm7117_vm14, %v14718_v33  ;;  %v9070_v33 = vsel %vm21112_vm15, %v14704_v21, %v9069_v60  ;;  %v9087_v21 = vsel %vm21112_vm15, %v9085_v43, %v9086_v6 }
 0x5d1   : > { %22908 = vst [vmem:[#allocation39_spill] sm:$0xff] %v21461_v16  ;;  %v21464_v29 = vpop.f32.mrb[61].mxu0  ;;  %16175 = vmatprep.mubr.msk.bf16.mxu1 %vm7117_vm14, %v14719_v61  ;;  %16204 = vmatpush3.bf16.msra.mxu1 %v21306_v22  ;;  %v9080_v61 = vsel %vm21112_vm15, %v9078_v23, %v9079_v37  ;;  %v9090_v22 = vrot.slane %v21303_v11, 6  ;;  %v8992_v23 = vld [vmem:[#allocation2 + $0x54] sm:$0xc] }
 0x5d2   : > { %22909 = vst [vmem:[#allocation38_spill] sm:$0xff] %v21464_v29  ;;  %v21468_v10 = vpop.f32.mrb[62].mxu0  ;;  %16205 = vmatprep.subr.bf16.mxu1 %v17466_v59  ;;  %v14721_v20 = vcombine.low %v9077_v30, %v9080_v61  ;;  %v8994_v11 = vld [vmem:[#allocation2 + $0x60] sm:$0xc]  ;;  %v8997_v61 = vld [vmem:[#allocation2 + $0x74] sm:$0x3] }
 0x5d3   : > { %22910 = vst [vmem:[#allocation32_spill] sm:$0xff] %v21468_v10  ;;  %v21472_v28 = vpop.f32.mrb[63].mxu0  ;;  %v14720_v10 = vcombine.low %v9070_v33, %v9073_v15  ;;  %v9092_v37 = vrot.slane %v9090_v22, 4  ;;  %v14707_v9 = vrot.slane %v8994_v11, 10  ;;  %v8999_v30 = vld [vmem:[#allocation2 + $0x80] sm:$0x3] }
 0x5d4   : > { %22911 = vst [vmem:[#allocation31_spill] sm:$0xff] %v21472_v28  ;;  %v9100_v11 = vrot.slane %v8997_v61, 6  ;;  %v9107_v14 = vrot.slane %v8999_v30, 6  ;;  %v9001_v61 = vld [vmem:[#allocation2 + $0x8c] sm:$0x3] }
 0x5d5   : > { %16206 = vmatpush3.bf16.msra.mxu1 %v17466_v59  ;;  %v14706_v59 = vrot.slane %v8992_v23, 10  ;;  %v9091_v49 = vsel %vm21112_vm15, %v14707_v9, %v9090_v22  ;;  %v9099_v23 = vrot.slane %v9097_v3, 4  ;;  %v21668_v29 = vld [vmem:[#allocation2 + $0xc4] sm:$0xf] }
 0x5d6   : > { %16239 = vmatprep.subr.bf16.mxu1 %v21470_v41 }
 0x5d7   : > { %v9084_v56 = vsel %vm21112_vm15, %v14706_v59, %v9083_v57  ;;  %v9101_v59 = vsel %vm21112_vm15, %v9099_v23, %v9100_v11 }
 0x5d8   : > { %16176 = vmatmul.mubr.msk.bf16.gmra.mrb[4].mxu1 %vm7117_vm14, %v14720_v10  ;;  %v9094_v10 = vsel %vm21112_vm15, %v9092_v37, %v9093_v2  ;;  %v14722_v43 = vcombine.low %v9084_v56, %v9087_v21  ;;  %v8996_v37 = vld [vmem:[#allocation2 + $0x6c] sm:$0xc]  ;;  %v9106_v2 = vrot.slane %v9104_v8, 4  ;;  %v9111_v21 = vrot.slane %v21344_v18, 6 }
 0x5d9   : > { %16179 = vmatprep.mubr.msk.bf16.mxu1 %vm7117_vm14, %v14721_v20  ;;  %v14723_v6 = vcombine.low %v9091_v49, %v9094_v10  ;;  %v14708_v57 = vrot.slane %v8996_v37, 10  ;;  %v9118_v56 = vrot.slane %v21347_v58, 6  ;;  %v9003_v49 = vld [vmem:[#allocation2 + $0x98] sm:$0x3]  ;;  %v9114_v37 = vrot.slane %v9001_v61, 6 }
 0x5da   : > { %v9108_v10 = vsel %vm21112_vm15, %v9106_v2, %v9107_v14  ;;  %v9000_v2 = vld [vmem:[#allocation2 + $0x84] sm:$0xc]  ;;  %v9121_v58 = vrot.slane %v9003_v49, 6 }
 0x5db   : > { %v21487_v60 = vpop.f32.mrb[64].mxu0  ;;  %v9120_v14 = vrot.slane %v9118_v56, 4 }
 0x5dc   : > { %22912 = vst [vmem:[#allocation33_spill] sm:$0xff] %v21487_v60  ;;  %v21492_v15 = vpop.f32.mrb[65].mxu0  ;;  %v21652_v60 = vld [vmem:[#allocation2 + $0xac] sm:$0xf] }
 0x5dd   : > { %22913 = vst [vmem:[#allocation42_spill] sm:$0xff] %v21492_v15  ;;  %v21497_v33 = vpop.f32.mrb[66].mxu0 }
 0x5de   : > { %22914 = vst [vmem:[#allocation43_spill] sm:$0xff] %v21497_v33  ;;  %v21501_v20 = vpop.f32.mrb[67].mxu0  ;;  %v8998_v33 = vld [vmem:[#allocation2 + $0x78] sm:$0xc] }
 0x5df   : > { %22915 = vst [vmem:[#allocation44_spill] sm:$0xff] %v21501_v20  ;;  %v14709_v9 = vrot.slane %v8998_v33, 10  ;;  %v9113_v33 = vrot.slane %v9111_v21, 4 }
 0x5e0   : > { %16180 = vmatmul.mubr.msk.bf16.gmra.mrb[8].mxu1 %vm7117_vm14, %v14722_v43  ;;  %v9098_v43 = vsel %vm21112_vm15, %v14708_v57, %v9097_v3  ;;  %v9125_v57 = vrot.slane %v21368_v55, 6  ;;  %v9004_v55 = vld [vmem:[#allocation2 + $0x9c] sm:$0xc] }
 0x5e1   : > { %16183 = vmatprep.mubr.msk.bf16.mxu1 %vm7117_vm14, %v14723_v6  ;;  %v14724_v23 = vcombine.low %v9098_v43, %v9101_v59  ;;  %v9105_v18 = vsel %vm21112_vm15, %v14709_v9, %v9104_v8  ;;  %v9115_v3 = vsel %vm21112_vm15, %v9113_v33, %v9114_v37  ;;  %v9122_v8 = vsel %vm21112_vm15, %v9120_v14, %v9121_v58  ;;  %v9005_v9 = vld [vmem:[#allocation2 + $0xa4] sm:$0x3]  ;;  %v9007_v43 = vld [vmem:[#allocation2 + $0xb0] sm:$0x3]  ;;  %v9009_v58 = vld [vmem:[#allocation2 + $0xbc] sm:$0x3] }
 0x5e2   : > { %v14725_v11 = vcombine.low %v9105_v18, %v9108_v10  ;;  %v9132_v10 = vrot.slane %v21371_v42, 6  ;;  %v9128_v33 = vrot.slane %v9005_v9, 6  ;;  %v9135_v37 = vrot.slane %v9007_v43, 6 }
 0x5e3   : > { %v21507_v15 = vpop.f32.mrb[68].mxu0  ;;  %v14712_v42 = vrot.slane %v9004_v55, 10  ;;  %v9153_v55 = vrot.slane %v21408_v1, 6 }
 0x5e4   : > { %22916 = vst [vmem:[#allocation45_spill] sm:$0xff] %v21507_v15  ;;  %v21512_v22 = vpop.f32.mrb[69].mxu0  ;;  %v9853_v15 = vld [vmem:[#allocation2 + $0x78] sm:$0xe] }
 0x5e5   : > { %22917 = vst [vmem:[#allocation46_spill] sm:$0xff] %v21512_v22  ;;  %v21517_v30 = vpop.f32.mrb[70].mxu0  ;;  %v14710_v22 = vrot.slane %v9000_v2, 10  ;;  %v9006_v2 = vld [vmem:[#allocation2 + $0xa8] sm:$0xc] }
 0x5e6   : > { %22918 = vst [vmem:[#allocation47_spill] sm:$0xff] %v21517_v30  ;;  %v21521_v6 = vpop.f32.mrb[71].mxu0  ;;  %v9002_v30 = vld [vmem:[#allocation2 + $0x90] sm:$0xc]  ;;  %v14713_v14 = vrot.slane %v9006_v2, 10 }
 0x5e7   : > { %22919 = vst [vmem:[#allocation48_spill] sm:$0xff] %v21521_v6  ;;  %v14711_v59 = vrot.slane %v9002_v30, 10  ;;  %v9112_v61 = vsel %vm21112_vm15, %v14710_v22, %v9111_v21  ;;  %v9134_v30 = vrot.slane %v9132_v10, 4  ;;  %v9139_v22 = vrot.slane %v21388_v54, 6  ;;  %v9008_v54 = vld [vmem:[#allocation2 + $0xb4] sm:$0xc] }
 0x5e8   : > { %16184 = vmatmul.mubr.msk.bf16.gmra.mrb[12].mxu1 %vm7117_vm14, %v14724_v23  ;;  %v14726_v49 = vcombine.low %v9112_v61, %v9115_v3  ;;  %v9146_v3 = vrot.slane %v21393_v39, 6  ;;  %v9133_v61 = vsel %vm21112_vm15, %v14713_v14, %v9132_v10  ;;  %v14714_v39 = vrot.slane %v9008_v54, 10  ;;  %v17469_v54 = vld [vmem:[#allocation2 + $0x54] sm:$0xff]   ;;  %v9847_v6 = vld [vmem:[#allocation2 + $0x60] sm:$0xe] }
 0x5e9   : > { %16187 = vmatprep.mubr.msk.bf16.mxu1 %vm7117_vm14, %v14725_v11  ;;  %v9119_v23 = vsel %vm21112_vm15, %v14711_v59, %v9118_v56  ;;  %v9127_v11 = vrot.slane %v9125_v57, 4  ;;  %v9136_v56 = vsel %vm21112_vm15, %v9134_v30, %v9135_v37  ;;  %v9126_v59 = vsel %vm21112_vm15, %v14712_v42, %v9125_v57  ;;  %v9013_v37 = vld [vmem:[#allocation2 + $0xd4] sm:$0x3] }
 0x5ea   : > { %v14727_v18 = vcombine.low %v9119_v23, %v9122_v8  ;;  %v9011_v8 = vld [vmem:[#allocation2 + $0xc8] sm:$0x3]  ;;  %v14729_v43 = vcombine.low %v9133_v61, %v9136_v56  ;;  %v9142_v23 = vrot.slane %v9009_v58, 6  ;;  %v9140_v2 = vsel %vm21112_vm15, %v14714_v39, %v9139_v22  ;;  %v17465_v61 = vld [vmem:[#allocation2 + $0x30] sm:$0xff]  }
 0x5eb   : > { %v9129_v21 = vsel %vm21112_vm15, %v9127_v11, %v9128_v33  ;;  %v9149_v11 = vrot.slane %v9011_v8, 6  ;;  %v9010_v33 = vld [vmem:[#allocation2 + $0xc0] sm:$0xc]  ;;  %v9155_v56 = vrot.slane %v9153_v55, 4  ;;  %v9156_v58 = vrot.slane %v9013_v37, 6  ;;  %v17473_v39 = vld [vmem:[#allocation2 + $0x84] sm:$0xff]  }
 0x5ec   : > { %v14728_v9 = vcombine.low %v9126_v59, %v9129_v21  ;;  %v14715_v30 = vrot.slane %v9010_v33, 10  ;;  %v9012_v59 = vld [vmem:[#allocation2 + $0xcc] sm:$0xc]  ;;  %v17472_v33 = vld [vmem:[#allocation2 + $0x78] sm:$0xff]   ;;  %v21584_v37 = vld [vmem:[#allocation2 + $0x34] sm:$0xf] }
 0x5ed   : > { %v14716_v1 = vrot.slane %v9012_v59, 10  ;;  %v9157_v8 = vsel %vm21112_vm15, %v9155_v56, %v9156_v58  ;;  %v21588_v59 = vld [vmem:[#allocation2 + $0x40] sm:$0xf] }
 0x5ee   : > { %v9147_v21 = vsel %vm21112_vm15, %v14715_v30, %v9146_v3  ;;  %v17477_v30 = vld [vmem:[#allocation2 + $0xb4] sm:$0xff]  }
 0x5f0   : > { %16188 = vmatmul.mubr.msk.bf16.gmra.mrb[16].mxu1 %vm7117_vm14, %v14726_v49  ;;  %v9141_v49 = vrot.slane %v9139_v22, 4 }
 0x5f1   : > { %16191 = vmatprep.mubr.msk.bf16.mxu1 %vm7117_vm14, %v14727_v18  ;;  %v9148_v18 = vrot.slane %v9146_v3, 4  ;;  %v17467_v3 = vld [vmem:[#allocation2 + $0x3c] sm:$0xff]  }
 0x5f2   : > { %v9143_v57 = vsel %vm21112_vm15, %v9141_v49, %v9142_v23  ;;  %v17468_v49 = vld [vmem:[#allocation2 + $0x48] sm:$0xff]   ;;  %v21571_v23 = vld [vmem:[#allocation12 + $0x80] sm:$0xff]  }
 0x5f3   : > { %v9150_v10 = vsel %vm21112_vm15, %v9148_v18, %v9149_v11  ;;  %v14730_v42 = vcombine.low %v9140_v2, %v9143_v57  ;;  %v17470_v18 = vld [vmem:[#allocation2 + $0x60] sm:$0xff]   ;;  %v17471_v11 = vld [vmem:[#allocation2 + $0x6c] sm:$0xff]   ;;  %v9933_v2 = vrot.slane %v21584_v37, 5 }
 0x5f4   : > { %v14731_v14 = vcombine.low %v9147_v21, %v9150_v10  ;;  %v17475_v57 = vld [vmem:[#allocation2 + $0x9c] sm:$0xff]   ;;  %v17479_v21 = vld [vmem:[#allocation2 + $0xcc] sm:$0xff]  }
 0x5f5   : > { %v17478_v10 = vld [vmem:[#allocation2 + $0xc0] sm:$0xff]   ;;  %v9935_v56 = vrot.slane %v9933_v2, 4 }
 0x5f8   : > { %16192 = vmatmul.mubr.msk.bf16.gmra.mrb[20].mxu1 %vm7117_vm14, %v14728_v9  ;;  %v9154_v9 = vsel %vm21112_vm15, %v14716_v1, %v9153_v55  ;;  %v17476_v55 = vld [vmem:[#allocation2 + $0xa8] sm:$0xff]   ;;  %v9835_v1 = vld [vmem:[#allocation2 + $0x30] sm:$0xe] }
 0x5f9   : > { %16195 = vmatprep.mubr.msk.bf16.mxu1 %vm7117_vm14, %v14729_v43  ;;  %v14732_v22 = vcombine.low %v9154_v9, %v9157_v8  ;;  %v17483_v43 = vld [vmem:[#allocation12 + $0x78] sm:$0xff]   ;;  %v9940_v9 = vrot.slane %v21588_v59, 5 }
 0x5fa   : > { %v21591_v8 = vld [vmem:[#allocation2 + $0x4c] sm:$0xf] }
 0x600   : > { %16196 = vmatmul.mubr.msk.bf16.gmra.mrb[24].mxu1 %vm7117_vm14, %v14730_v42  ;;  %v9837_v42 = vld [vmem:[#allocation2 + $0x38] sm:$0x1] }
 0x601   : > { %16199 = vmatprep.mubr.msk.bf16.mxu1 %vm7117_vm14, %v14731_v14  ;;  %v17480_v14 = vld [vmem:[#allocation2 + $0xd8] sm:$0xff]   ;;  %v9936_v58 = vrot.slane %v9837_v42, 5  ;;  %v21603_v42 = vld [vmem:[#allocation2 + $0x64] sm:$0xf] }
 0x608   : > { %16200 = vmatmul.mubr.msk.bf16.gmra.mrb[28].mxu1 %vm7117_vm14, %v14732_v22  ;;  %v14785_v22 = vrot.slane %v9835_v1, 9  ;;  %v9846_v1 = vld [vmem:[#allocation2 + $0x5c] sm:$0x1] }
 0x609   : > { %16207 = vmatprep.mubr.msk.bf16.mxu1 %vm7117_vm14, %v17465_v61  ;;  %v9937_v61 = vsel %vm18775_vm8, %v9935_v56, %v9936_v58 }
 0x610   : > { %16208 = vmatmul.mubr.msk.bf16.vlgmr.msra.gmra.mrb[0].mxu1 %vm7117_vm14, %v17467_v3  ;;  %v9840_v3 = vld [vmem:[#allocation2 + $0x44] sm:$0x1] }
 0x611   : > { %16211 = vmatprep.mubr.msk.bf16.mxu1 %vm7117_vm14, %v17468_v49  ;;  %16240 = vmatpush3.bf16.msra.mxu1 %v21470_v41  ;;  %v17474_v41 = vld [vmem:[#allocation2 + $0x90] sm:$0xff]  }
 0x612   : > { %16241 = vmatprep.subr.bf16.mxu1 %v17483_v43  ;;  %v9843_v49 = vld [vmem:[#allocation2 + $0x50] sm:$0x1] }
 0x615   : > { %16242 = vmatpush3.bf16.msra.mxu1 %v17483_v43  ;;  %v9947_v43 = vrot.slane %v21591_v8, 5 }
 0x616   : > { %16275 = vmatprep.subr.bf16.mxu1 %v21571_v23 }
 0x618   : > { %16212 = vmatmul.mubr.msk.bf16.gmra.mrb[4].mxu1 %vm7117_vm14, %v17469_v54  ;;  %v17481_v54 = vld [vmem:[#allocation2 + $0xe4] sm:$0xff]  }
 0x619   : > { %16215 = vmatprep.mubr.msk.bf16.mxu1 %vm7117_vm14, %v17470_v18  ;;  %v9934_v18 = vsel %vm18775_vm8, %v14785_v22, %v9933_v2  ;;  %v9961_v22 = vrot.slane %v21603_v42, 5 }
 0x620   : > { %16216 = vmatmul.mubr.msk.bf16.gmra.mrb[8].mxu1 %vm7117_vm14, %v17471_v11  ;;  %v14801_v11 = vcombine.low %v9934_v18, %v9937_v61  ;;  %v17485_v18 = vld [vmem:[#allocation12 + $0x88] sm:$0xff]  }
 0x621   : > { %16219 = vmatprep.mubr.msk.bf16.mxu1 %vm7117_vm14, %v17472_v33  ;;  %v9942_v33 = vrot.slane %v9940_v9, 4 }
 0x628   : > { %16220 = vmatmul.mubr.msk.bf16.gmra.mrb[12].mxu1 %vm7117_vm14, %v17473_v39  ;;  %v9943_v39 = vrot.slane %v9840_v3, 5  ;;  %v9849_v3 = vld [vmem:[#allocation2 + $0x68] sm:$0x1] }
 0x629   : > { %16223 = vmatprep.mubr.msk.bf16.mxu1 %vm7117_vm14, %v17474_v41  ;;  %v9838_v41 = vld [vmem:[#allocation2 + $0x3c] sm:$0xe] }
 0x630   : > { %16224 = vmatmul.mubr.msk.bf16.gmra.mrb[16].mxu1 %vm7117_vm14, %v17475_v57  ;;  %v9949_v57 = vrot.slane %v9947_v43, 4 }
 0x631   : > { %16227 = vmatprep.mubr.msk.bf16.mxu1 %vm7117_vm14, %v17476_v55  ;;  %v9950_v55 = vrot.slane %v9843_v49, 5 }
 0x633   : > { %v9951_v58 = vsel %vm18775_vm8, %v9949_v57, %v9950_v55  ;;  %v9964_v57 = vrot.slane %v9849_v3, 5  ;;  %v21616_v55 = vld [vmem:[#allocation2 + $0x70] sm:$0xf] }
 0x638   : > { %16228 = vmatmul.mubr.msk.bf16.gmra.mrb[20].mxu1 %vm7117_vm14, %v17477_v30  ;;  %v21600_v30 = vld [vmem:[#allocation2 + $0x58] sm:$0xf] }
 0x639   : > { %16231 = vmatprep.mubr.msk.bf16.mxu1 %vm7117_vm14, %v17478_v10  ;;  %v9841_v10 = vld [vmem:[#allocation2 + $0x48] sm:$0xe]  ;;  %v9954_v2 = vrot.slane %v21600_v30, 5 }
 0x63a   : > { %v14787_v56 = vrot.slane %v9841_v10, 9  ;;  %v9963_v10 = vrot.slane %v9961_v22, 4 }
 0x640   : > { %16232 = vmatmul.mubr.msk.bf16.gmra.mrb[24].mxu1 %vm7117_vm14, %v17479_v21  ;;  %v14786_v21 = vrot.slane %v9838_v41, 9  ;;  %v9844_v41 = vld [vmem:[#allocation2 + $0x54] sm:$0xe] }
 0x641   : > { %16235 = vmatprep.mubr.msk.bf16.mxu1 %vm7117_vm14, %v17480_v14  ;;  %v9944_v14 = vsel %vm18775_vm8, %v9942_v33, %v9943_v39  ;;  %v9956_v33 = vrot.slane %v9954_v2, 4  ;;  %v9957_v39 = vrot.slane %v9846_v1, 5  ;;  %v9852_v1 = vld [vmem:[#allocation2 + $0x74] sm:$0x1] }
 0x642   : > { %v9941_v61 = vsel %vm18775_vm8, %v14786_v21, %v9940_v9  ;;  %v21619_v9 = vld [vmem:[#allocation2 + $0x7c] sm:$0xf] }
 0x643   : > { %v14802_v49 = vcombine.low %v9941_v61, %v9944_v14  ;;  %v9958_v21 = vsel %vm18775_vm8, %v9956_v33, %v9957_v39  ;;  %v9968_v14 = vrot.slane %v21616_v55, 5  ;;  %v9975_v61 = vrot.slane %v21619_v9, 5 }
 0x644   : > { %v9971_v39 = vrot.slane %v9852_v1, 5 }
 0x645   : > { %v9970_v33 = vrot.slane %v9968_v14, 4 }
 0x648   : > { %16236 = vmatmul.mubr.msk.bf16.gmra.mrb[28].mxu1 %vm7117_vm14, %v17481_v54  ;;  %v9948_v54 = vsel %vm18775_vm8, %v14787_v56, %v9947_v43  ;;  %v14788_v43 = vrot.slane %v9844_v41, 9  ;;  %v14789_v56 = vrot.slane %v9847_v6, 9  ;;  %v9850_v6 = vld [vmem:[#allocation2 + $0x6c] sm:$0xe]  ;;  %v9977_v41 = vrot.slane %v9975_v61, 4 }
 0x649   : > { %16243 = vmatprep.mubr.msk.bf16.mxu1 %vm7117_vm14, %v14801_v11  ;;  %v14803_v11 = vcombine.low %v9948_v54, %v9951_v58  ;;  %v9965_v58 = vsel %vm18775_vm8, %v9963_v10, %v9964_v57  ;;  %v21633_v57 = vld [vmem:[#allocation2 + $0x88] sm:$0xf] }
 0x64a   : > { %v9955_v3 = vsel %vm18775_vm8, %v14788_v43, %v9954_v2  ;;  %v9962_v54 = vsel %vm18775_vm8, %v14789_v56, %v9961_v22  ;;  %v21636_v2 = vld [vmem:[#allocation2 + $0x94] sm:$0xf]  ;;  %v9972_v43 = vsel %vm18775_vm8, %v9970_v33, %v9971_v39  ;;  %v9982_v22 = vrot.slane %v21633_v57, 5 }
 0x64b   : > { %v9989_v1 = vrot.slane %v21636_v2, 5 }
 0x64d   : > { %v9991_v39 = vrot.slane %v9989_v1, 4 }
 0x650   : > { %16244 = vmatmul.mubr.msk.bf16.vlgmr.msra.gmra.mrb[0].mxu1 %vm7117_vm14, %v14802_v49  ;;  %v9855_v49 = vld [vmem:[#allocation2 + $0x80] sm:$0x1] }
 0x651   : > { %16247 = vmatprep.mubr.msk.bf16.mxu1 %vm7117_vm14, %v14803_v11  ;;  %16276 = vmatpush3.bf16.msra.mxu1 %v21571_v23  ;;  %v14804_v23 = vcombine.low %v9955_v3, %v9958_v21  ;;  %v14805_v11 = vcombine.low %v9962_v54, %v9965_v58  ;;  %v9978_v10 = vrot.slane %v9855_v49, 5  ;;  %v14791_v21 = vrot.slane %v9853_v15, 9  ;;  %v9858_v58 = vld [vmem:[#allocation2 + $0x8c] sm:$0x1]  ;;  %v9861_v49 = vld [vmem:[#allocation2 + $0x98] sm:$0x1] }
 0x652   : > { %16277 = vmatprep.subr.bf16.mxu1 %v17485_v18  ;;  %v9985_v33 = vrot.slane %v9858_v58, 5  ;;  %v9856_v15 = vld [vmem:[#allocation2 + $0x84] sm:$0xe]  ;;  %v9992_v20 = vrot.slane %v9861_v49, 5  ;;  %v10003_v58 = vrot.slane %v21652_v60, 5 }
 0x653   : > { %v9979_v56 = vsel %vm18775_vm8, %v9977_v41, %v9978_v10  ;;  %v9976_v54 = vsel %vm18775_vm8, %v14791_v21, %v9975_v61  ;;  %v21649_v41 = vld [vmem:[#allocation2 + $0xa0] sm:$0xf]  ;;  %v9859_v10 = vld [vmem:[#allocation2 + $0x90] sm:$0xe]  ;;  %v9867_v49 = vld [vmem:[#allocation2 + $0xb0] sm:$0x1] }
 0x654   : > { %v9996_v61 = vrot.slane %v21649_v41, 5  ;;  %v9993_v21 = vsel %vm18775_vm8, %v9991_v39, %v9992_v20  ;;  %v10006_v28 = vrot.slane %v9867_v49, 5  ;;  %v21665_v20 = vld [vmem:[#allocation2 + $0xb8] sm:$0xf]  ;;  %v9865_v39 = vld [vmem:[#allocation2 + $0xa8] sm:$0xe] }
 0x655   : > { %16278 = vmatpush3.bf16.msra.mxu1 %v17485_v18  ;;  %v14790_v18 = vrot.slane %v9850_v6, 9  ;;  %v9984_v6 = vrot.slane %v9982_v22, 4  ;;  %v9873_v49 = vld [vmem:[#allocation2 + $0xc8] sm:$0x1] }
 0x656   : > { %v10020_v16 = vrot.slane %v9873_v49, 5  ;;  %v9879_v49 = vld [vmem:[#allocation2 + $0xe0] sm:$0x1] }
 0x657   : > { %v9969_v3 = vsel %vm18775_vm8, %v14790_v18, %v9968_v14  ;;  %v14792_v14 = vrot.slane %v9856_v15, 9  ;;  %v9986_v18 = vsel %vm18775_vm8, %v9984_v6, %v9985_v33  ;;  %v9998_v15 = vrot.slane %v9996_v61, 4  ;;  %v9862_v33 = vld [vmem:[#allocation2 + $0x9c] sm:$0xe] }
 0x658   : > { %16248 = vmatmul.mubr.msk.bf16.gmra.mrb[4].mxu1 %vm7117_vm14, %v14804_v23  ;;  %v14806_v23 = vcombine.low %v9969_v3, %v9972_v43  ;;  %v14793_v43 = vrot.slane %v9859_v10, 9  ;;  %v10005_v10 = vrot.slane %v10003_v58, 4  ;;  %v10034_v32 = vrot.slane %v9879_v49, 5 }
 0x659   : > { %16251 = vmatprep.mubr.msk.bf16.mxu1 %vm7117_vm14, %v14805_v11  ;;  %v14807_v11 = vcombine.low %v9976_v54, %v9979_v56  ;;  %v9864_v56 = vld [vmem:[#allocation2 + $0xa4] sm:$0x1]  ;;  %v9983_v3 = vsel %vm18775_vm8, %v14792_v14, %v9982_v22  ;;  %v14794_v22 = vrot.slane %v9862_v33, 9 }
 0x65a   : > { %v9990_v54 = vsel %vm18775_vm8, %v14793_v43, %v9989_v1  ;;  %v9999_v6 = vrot.slane %v9864_v56, 5  ;;  %v10010_v1 = vrot.slane %v21665_v20, 5  ;;  %v10007_v43 = vsel %vm18775_vm8, %v10005_v10, %v10006_v28  ;;  %v21681_v28 = vld [vmem:[#allocation2 + $0xd0] sm:$0xf]  ;;  %v9871_v10 = vld [vmem:[#allocation2 + $0xc0] sm:$0xe] }
 0x65b   : > { %v10017_v56 = vrot.slane %v21668_v29, 5 }
 0x65c   : > { %v10000_v14 = vsel %vm18775_vm8, %v9998_v15, %v9999_v6  ;;  %v10012_v33 = vrot.slane %v10010_v1, 4  ;;  %v9868_v6 = vld [vmem:[#allocation2 + $0xb4] sm:$0xe] }
 0x660   : > { %16252 = vmatmul.mubr.msk.bf16.gmra.mrb[8].mxu1 %vm7117_vm14, %v14806_v23  ;;  %v14808_v23 = vcombine.low %v9983_v3, %v9986_v18  ;;  %v14795_v18 = vrot.slane %v9865_v39, 9  ;;  %v9997_v3 = vsel %vm18775_vm8, %v14794_v22, %v9996_v61  ;;  %v10019_v39 = vrot.slane %v10017_v56, 4 }
 0x661   : > { %16255 = vmatprep.mubr.msk.bf16.mxu1 %vm7117_vm14, %v14807_v11  ;;  %v14809_v11 = vcombine.low %v9990_v54, %v9993_v21  ;;  %v9870_v21 = vld [vmem:[#allocation2 + $0xbc] sm:$0x1]  ;;  %v14796_v61 = vrot.slane %v9868_v6, 9 }
 0x662   : > { %v10004_v54 = vsel %vm18775_vm8, %v14795_v18, %v10003_v58  ;;  %v10013_v15 = vrot.slane %v9870_v21, 5  ;;  %v10024_v58 = vrot.slane %v21681_v28, 5  ;;  %v10021_v18 = vsel %vm18775_vm8, %v10019_v39, %v10020_v16  ;;  %v21697_v16 = vld [vmem:[#allocation2 + $0xe8] sm:$0xf]  ;;  %v9877_v39 = vld [vmem:[#allocation2 + $0xd8] sm:$0xe] }
 0x663   : > { %v10031_v21 = vrot.slane %v21684_v7, 5 }
 0x664   : > { %v10014_v22 = vsel %vm18775_vm8, %v10012_v33, %v10013_v15  ;;  %v10026_v6 = vrot.slane %v10024_v58, 4  ;;  %v9874_v15 = vld [vmem:[#allocation2 + $0xcc] sm:$0xe] }
 0x665   : > { %v14798_v26 = vrot.slane %v9874_v15, 9 }
 0x668   : > { %16256 = vmatmul.mubr.msk.bf16.gmra.mrb[12].mxu1 %vm7117_vm14, %v14808_v23  ;;  %v14810_v23 = vcombine.low %v9997_v3, %v10000_v14  ;;  %v14797_v14 = vrot.slane %v9871_v10, 9  ;;  %v10011_v3 = vsel %vm18775_vm8, %v14796_v61, %v10010_v1  ;;  %v10033_v10 = vrot.slane %v10031_v21, 4 }
 0x669   : > { %16259 = vmatprep.mubr.msk.bf16.mxu1 %vm7117_vm14, %v14809_v11  ;;  %v14811_v11 = vcombine.low %v10004_v54, %v10007_v43  ;;  %v9876_v43 = vld [vmem:[#allocation2 + $0xd4] sm:$0x1]  ;;  %v10038_v61 = vrot.slane %v21697_v16, 5 }
 0x66a   : > { %v10018_v54 = vsel %vm18775_vm8, %v14797_v14, %v10017_v56  ;;  %v10027_v33 = vrot.slane %v9876_v43, 5  ;;  %v14799_v56 = vrot.slane %v9877_v39, 9  ;;  %v9882_v14 = vld [vmem:[#allocation2 + $0xec] sm:$0x1]  ;;  %v10025_v43 = vsel %vm18775_vm8, %v14798_v26, %v10024_v58 }
 0x66b   : > { %v10422_v58 = vrot.slane %v21588_v59, 6  ;;  %v10351_v59 = vld [vmem:[#allocation2 + $0x3c] sm:$0xc] }
 0x66c   : > { %v10028_v1 = vsel %vm18775_vm8, %v10026_v6, %v10027_v33  ;;  %v10041_v6 = vrot.slane %v9882_v14, 5  ;;  %v9880_v33 = vld [vmem:[#allocation2 + $0xe4] sm:$0xe]  ;;  %v10354_v14 = vld [vmem:[#allocation2 + $0x50] sm:$0x3] }
 0x66d   : > { %v14814_v49 = vcombine.low %v10025_v43, %v10028_v1  ;;  %v10352_v1 = vld [vmem:[#allocation2 + $0x44] sm:$0x3] }
 0x670   : > { %16260 = vmatmul.mubr.msk.bf16.gmra.mrb[16].mxu1 %vm7117_vm14, %v14810_v23  ;;  %v14812_v23 = vcombine.low %v10011_v3, %v10014_v22  ;;  %v10035_v22 = vsel %vm18775_vm8, %v10033_v10, %v10034_v32  ;;  %v10350_v3 = vld [vmem:[#allocation2 + $0x38] sm:$0x3]  ;;  %v10349_v32 = vld [vmem:[#allocation2 + $0x30] sm:$0xc] }
 0x671   : > { %16263 = vmatprep.mubr.msk.bf16.mxu1 %vm7117_vm14, %v14811_v11  ;;  %v14813_v11 = vcombine.low %v10018_v54, %v10021_v18  ;;  %v10415_v18 = vrot.slane %v21584_v37, 6  ;;  %v10418_v39 = vrot.slane %v10350_v3, 6  ;;  %v14800_v37 = vrot.slane %v9880_v33, 9  ;;  %v10353_v33 = vld [vmem:[#allocation2 + $0x48] sm:$0xc] }
 0x672   : > { %v14835_v10 = vrot.slane %v10349_v32, 10  ;;  %v10443_v32 = vrot.slane %v21603_v42, 6 }
 0x673   : > { %v10417_v15 = vrot.slane %v10415_v18, 4 }
 0x674   : > { %v10416_v3 = vsel %vm21112_vm15, %v14835_v10, %v10415_v18 }
 0x678   : > { %16264 = vmatmul.mubr.msk.bf16.gmra.mrb[20].mxu1 %vm7117_vm14, %v14812_v23  ;;  %v10032_v23 = vsel %vm18775_vm8, %v14799_v56, %v10031_v21  ;;  %v10419_v21 = vsel %vm21112_vm15, %v10417_v15, %v10418_v39  ;;  %v10429_v56 = vrot.slane %v21591_v8, 6  ;;  %v14836_v8 = vrot.slane %v10351_v59, 10  ;;  %v10356_v39 = vld [vmem:[#allocation2 + $0x5c] sm:$0x3]  ;;  %v10360_v59 = vld [vmem:[#allocation2 + $0x74] sm:$0x3] }
 0x679   : > { %16267 = vmatprep.mubr.msk.bf16.mxu1 %vm7117_vm14, %v14813_v11  ;;  %v14815_v54 = vcombine.low %v10032_v23, %v10035_v22  ;;  %v10040_v11 = vrot.slane %v10038_v61, 4  ;;  %v10039_v22 = vsel %vm18775_vm8, %v14800_v37, %v10038_v61  ;;  %v10424_v23 = vrot.slane %v10422_v58, 4 }
 0x67a   : > { %v10436_v61 = vrot.slane %v21600_v30, 6  ;;  %v14837_v15 = vrot.slane %v10353_v33, 10  ;;  %v10423_v37 = vsel %vm21112_vm15, %v14836_v8, %v10422_v58  ;;  %v10355_v30 = vld [vmem:[#allocation2 + $0x54] sm:$0xc]  ;;  %v10362_v33 = vld [vmem:[#allocation2 + $0x80] sm:$0x3] }
 0x67b   : > { %v10042_v26 = vsel %vm18775_vm8, %v10040_v11, %v10041_v6  ;;  %v10431_v11 = vrot.slane %v10429_v56, 4  ;;  %v10432_v6 = vrot.slane %v10354_v14, 6  ;;  %v10439_v14 = vrot.slane %v10356_v39, 6 }
 0x67c   : > { %v14816_v43 = vcombine.low %v10039_v22, %v10042_v26  ;;  %v10358_v26 = vld [vmem:[#allocation2 + $0x68] sm:$0x3]  ;;  %v10438_v22 = vrot.slane %v10436_v61, 4  ;;  %v14838_v42 = vrot.slane %v10355_v30, 10  ;;  %v10453_v39 = vrot.slane %v10360_v59, 6 }
 0x67d   : > { %v10433_v18 = vsel %vm21112_vm15, %v10431_v11, %v10432_v6  ;;  %v10457_v11 = vrot.slane %v21619_v9, 6  ;;  %vm11132_vm8 = vcmask 123904  }
 0x67e   : > { %v10440_v58 = vsel %vm21112_vm15, %v10438_v22, %v10439_v14  ;;  %v10437_v6 = vsel %vm21112_vm15, %v14838_v42, %v10436_v61  ;;  %v10364_v22 = vld [vmem:[#allocation2 + $0x8c] sm:$0x3]  ;;  %v10471_v14 = vrot.slane %v21636_v2, 6  ;;  %11133 = vst.msk [vmem:[#allocation3] sm:$0x3] %vm11132_vm8, %v22848_v51 }
 0x67f   : > { %v14854_v8 = vcombine.low %v10437_v6, %v10440_v58  ;;  %v10365_v6 = vld [vmem:[#allocation2 + $0x90] sm:$0xc]  ;;  %11134 = vst.msk [vmem:[#allocation3 + $0xc] sm:$0x3] %vm11132_vm8, %v22848_v51  ;;  %11135 = vst.msk [vmem:[#allocation3 + $0x18] sm:$0x3] %vm11132_vm8, %v22848_v51 }
 0x680   : > { %16268 = vmatmul.mubr.msk.bf16.gmra.mrb[24].mxu1 %vm7117_vm14, %v14814_v49  ;;  %v14851_v49 = vcombine.low %v10416_v3, %v10419_v21  ;;  %v10430_v21 = vsel %vm21112_vm15, %v14837_v15, %v10429_v56  ;;  %v10446_v3 = vrot.slane %v10358_v26, 6  ;;  %v10460_v26 = vrot.slane %v10362_v33, 6  ;;  %11136 = vst.msk [vmem:[#allocation3 + $0x24] sm:$0x3] %vm11132_vm8, %v22848_v51  ;;  %11137 = vst.msk [vmem:[#allocation3 + $0x30] sm:$0x3] %vm11132_vm8, %v22848_v51 }
 0x681   : > { %16271 = vmatprep.mubr.msk.bf16.mxu1 %vm7117_vm14, %v14815_v54  ;;  %v10425_v54 = vrot.slane %v10352_v1, 6  ;;  %v14853_v1 = vcombine.low %v10430_v21, %v10433_v18  ;;  %v10464_v21 = vrot.slane %v21633_v57, 6  ;;  %v10363_v57 = vld [vmem:[#allocation2 + $0x84] sm:$0xc]  ;;  %v10478_v33 = vrot.slane %v21649_v41, 6 }
 0x682   : > { %v14842_v2 = vrot.slane %v10363_v57, 10  ;;  %v10367_v41 = vld [vmem:[#allocation2 + $0x9c] sm:$0xc]  ;;  %11138 = vst.msk [vmem:[#allocation3 + $0x3c] sm:$0x3] %vm11132_vm8, %v22848_v51 }
 0x683   : > { %v10426_v48 = vsel %vm21112_vm15, %v10424_v23, %v10425_v54  ;;  %v10450_v23 = vrot.slane %v21616_v55, 6  ;;  %v10359_v55 = vld [vmem:[#allocation2 + $0x6c] sm:$0xc]  ;;  %v10466_v58 = vrot.slane %v10464_v21, 4  ;;  %11139 = vst.msk [vmem:[#allocation3 + $0x48] sm:$0x3] %vm11132_vm8, %v22848_v51 }
 0x684   : > { %v14852_v10 = vcombine.low %v10423_v37, %v10426_v48  ;;  %v10459_v37 = vrot.slane %v10457_v11, 4  ;;  %v14840_v9 = vrot.slane %v10359_v55, 10  ;;  %11140 = vst.msk [vmem:[#allocation3 + $0x54] sm:$0x3] %vm11132_vm8, %v22848_v51  ;;  %11141 = vst.msk [vmem:[#allocation3 + $0x60] sm:$0x3] %vm11132_vm8, %v22848_v51 }
 0x685   : > { %v10452_v18 = vrot.slane %v10450_v23, 4  ;;  %11142 = vst.msk [vmem:[#allocation3 + $0x6c] sm:$0x3] %vm11132_vm8, %v22848_v51  ;;  %11143 = vst.msk [vmem:[#allocation3 + $0x78] sm:$0x3] %vm11132_vm8, %v22848_v51 }
 0x686   : > { %v10451_v30 = vsel %vm21112_vm15, %v14840_v9, %v10450_v23  ;;  %11144 = vst.msk [vmem:[#allocation3 + $0x84] sm:$0x3] %vm11132_vm8, %v22848_v51  ;;  %11145 = vst.msk [vmem:[#allocation3 + $0x90] sm:$0x3] %vm11132_vm8, %v22848_v51 }
 0x687   : > { %v10454_v61 = vsel %vm21112_vm15, %v10452_v18, %v10453_v39  ;;  %v10465_v18 = vsel %vm21112_vm15, %v14842_v2, %v10464_v21  ;;  %v10370_v39 = vld [vmem:[#allocation2 + $0xb0] sm:$0x3]  ;;  %11146 = vst.msk [vmem:[#allocation3 + $0x9c] sm:$0x3] %vm11132_vm8, %v22848_v51  ;;  %11147 = vst.msk [vmem:[#allocation3 + $0xa8] sm:$0x3] %vm11132_vm8, %v22848_v51 }
 0x688   : > { %16272 = vmatmul.mubr.msk.bf16.gmra.mrb[28].mxu1 %vm7117_vm14, %v14816_v43  ;;  %v10445_v43 = vrot.slane %v10443_v32, 4  ;;  %11148 = vst.msk [vmem:[#allocation3 + $0xb4] sm:$0x3] %vm11132_vm8, %v22848_v51 }
 0x689   : > { %16279 = vmatprep.mubr.msk.bf16.mxu1 %vm7117_vm14, %v14851_v49  ;;  %v10357_v49 = vld [vmem:[#allocation2 + $0x60] sm:$0xc] }
 0x68a   : > { %v14839_v54 = vrot.slane %v10357_v49, 10  ;;  %v10447_v56 = vsel %vm21112_vm15, %v10445_v43, %v10446_v3  ;;  %v10366_v43 = vld [vmem:[#allocation2 + $0x98] sm:$0x3]  ;;  %v14856_v3 = vcombine.low %v10451_v30, %v10454_v61 }
 0x68b   : > { %v10474_v59 = vrot.slane %v10366_v43, 6  ;;  %v10372_v43 = vld [vmem:[#allocation2 + $0xbc] sm:$0x3] }
 0x68c   : > { %v10444_v48 = vsel %vm21112_vm15, %v14839_v54, %v10443_v32  ;;  %v10461_v32 = vsel %vm21112_vm15, %v10459_v37, %v10460_v26  ;;  %v10467_v54 = vrot.slane %v10364_v22, 6  ;;  %v10492_v22 = vrot.slane %v21665_v20, 6  ;;  %v10371_v20 = vld [vmem:[#allocation2 + $0xb4] sm:$0xc] }
 0x68d   : > { %v14855_v15 = vcombine.low %v10444_v48, %v10447_v56  ;;  %v10473_v56 = vrot.slane %v10471_v14, 4  ;;  %v10368_v48 = vld [vmem:[#allocation2 + $0xa4] sm:$0x3] }
 0x68e   : > { %v10468_v23 = vsel %vm21112_vm15, %v10466_v58, %v10467_v54  ;;  %v10481_v9 = vrot.slane %v10368_v48, 6 }
 0x68f   : > { %v14858_v55 = vcombine.low %v10465_v18, %v10468_v23  ;;  %v10373_v23 = vld [vmem:[#allocation2 + $0xc0] sm:$0xc]  ;;  %v10513_v18 = vrot.slane %v21684_v7, 6 }
 0x690   : > { %16280 = vmatmul.mubr.msk.bf16.vlgmr.msra.gmra.mrb[0].mxu1 %vm7117_vm14, %v14852_v10  ;;  %v10361_v10 = vld [vmem:[#allocation2 + $0x78] sm:$0xc] }
 0x691   : > { %16283 = vmatprep.mubr.msk.bf16.mxu1 %vm7117_vm14, %v14853_v1  ;;  %v14841_v1 = vrot.slane %v10361_v10, 10  ;;  %v10480_v10 = vrot.slane %v10478_v33, 4 }
 0x693   : > { %v10458_v49 = vsel %vm21112_vm15, %v14841_v1, %v10457_v11  ;;  %v10475_v11 = vsel %vm21112_vm15, %v10473_v56, %v10474_v59  ;;  %v10488_v1 = vrot.slane %v10370_v39, 6  ;;  %v10482_v21 = vsel %vm21112_vm15, %v10480_v10, %v10481_v9 }
 0x694   : > { %v14857_v42 = vcombine.low %v10458_v49, %v10461_v32  ;;  %v10369_v32 = vld [vmem:[#allocation2 + $0xa8] sm:$0xc]  ;;  %v10494_v56 = vrot.slane %v10492_v22, 4  ;;  %v10495_v59 = vrot.slane %v10372_v43, 6 }
 0x695   : > { %v14845_v30 = vrot.slane %v10369_v32, 10  ;;  %v10377_v32 = vld [vmem:[#allocation2 + $0xd8] sm:$0xc] }
 0x698   : > { %16284 = vmatmul.mubr.msk.bf16.gmra.mrb[4].mxu1 %vm7117_vm14, %v14854_v8  ;;  %v14843_v8 = vrot.slane %v10365_v6, 10 }
 0x699   : > { %16287 = vmatprep.mubr.msk.bf16.mxu1 %vm7117_vm14, %v14855_v15  ;;  %v10485_v15 = vrot.slane %v21652_v60, 6  ;;  %v14844_v60 = vrot.slane %v10367_v41, 10 }
 0x69a   : > { %v10472_v37 = vsel %vm21112_vm15, %v14843_v8, %v10471_v14  ;;  %v10506_v8 = vrot.slane %v21681_v28, 6  ;;  %v10375_v28 = vld [vmem:[#allocation2 + $0xcc] sm:$0xc] }
 0x69b   : > { %v14859_v26 = vcombine.low %v10472_v37, %v10475_v11  ;;  %v10487_v61 = vrot.slane %v10485_v15, 4  ;;  %v10479_v49 = vsel %vm21112_vm15, %v14844_v60, %v10478_v33  ;;  %v10486_v54 = vsel %vm21112_vm15, %v14845_v30, %v10485_v15  ;;  %v10376_v15 = vld [vmem:[#allocation2 + $0xd4] sm:$0x3] }
 0x69c   : > { %v14860_v58 = vcombine.low %v10479_v49, %v10482_v21  ;;  %v10496_v33 = vsel %vm21112_vm15, %v10494_v56, %v10495_v59  ;;  %v14847_v11 = vrot.slane %v10373_v23, 10  ;;  %v10508_v9 = vrot.slane %v10506_v8, 4 }
 0x69d   : > { %v10489_v14 = vsel %vm21112_vm15, %v10487_v61, %v10488_v1  ;;  %v10509_v41 = vrot.slane %v10376_v15, 6  ;;  %v10515_v61 = vrot.slane %v10513_v18, 4  ;;  %v14848_v7 = vrot.slane %v10375_v28, 10  ;;  %v21891_v15 = vld [vmem:[#allocation14] ss:$0 sm:$0xff] }
 0x69e   : > { %v14861_v57 = vcombine.low %v10486_v54, %v10489_v14  ;;  %v10520_v21 = vrot.slane %v21697_v16, 6  ;;  %v10380_v14 = vld [vmem:[#allocation2 + $0xec] sm:$0x3]  ;;  %v22920_v23 = vstv %s20335_s17  ;;  %s17809_s17 = scalar_lea.vmem %s22630_s6, 640 }
 0x69f   : > { %v10510_v60 = vsel %vm21112_vm15, %v10508_v9, %v10509_v41  ;;  %v10507_v43 = vsel %vm21112_vm15, %v14848_v7, %v10506_v8  ;;  %v10523_v54 = vrot.slane %v10380_v14, 6  ;;  %v22925_v41 = vld [vmem:[#allocation40_spill] sm:$0xff]  ;;  %v22926_v7 = vld [vmem:[#allocation41_spill] sm:$0xff]  ;;  %p17810_p11 = scmp.ne.s32.totalorder %s22630_s6, %s17809_s17  ;;  %p17817_p0 = scmp.lt.s32.totalorder %s17815_s18, %s17809_s17 }
 0x6a0   : > { %16288 = vmatmul.mubr.msk.bf16.gmra.mrb[8].mxu1 %vm7117_vm14, %v14856_v3  ;;  %v10499_v3 = vrot.slane %v21668_v29, 6  ;;  %v14846_v29 = vrot.slane %v10371_v20, 10 }
 0x6a1   : > { %16291 = vmatprep.mubr.msk.bf16.mxu1 %vm7117_vm14, %v14857_v42  ;;  %v10374_v42 = vld [vmem:[#allocation2 + $0xc8] sm:$0x3]  ;;  %p17811_p7 = pnand %p17810_p11, %p22973_p4  ;;  %p17818_p2 = por %p17817_p0, %p17816_p13 }
 0x6a2   : > { %v10501_v6 = vrot.slane %v10499_v3, 4  ;;  %v10502_v2 = vrot.slane %v10374_v42, 6  ;;  %v10493_v39 = vsel %vm21112_vm15, %v14846_v29, %v10492_v22  ;;  %v14849_v22 = vrot.slane %v10377_v32, 10 }
 0x6a3   : > { %v14862_v37 = vcombine.low %v10493_v39, %v10496_v33  ;;  %v10978_v29 = vadd.s32 %v22920_v23, %v20333_v45  ;;  %p17812_p5 = pneg %p17811_p7 }
 0x6a4   : > { %v10503_v48 = vsel %vm21112_vm15, %v10501_v6, %v10502_v2  ;;  %v10514_v49 = vsel %vm21112_vm15, %v14849_v22, %v10513_v18  ;;  %v17486_v6 = vld [vmem:[#allocation15 + $0x8] sm:$0xff]   ;;  %v21876_v2 = vld [vmem:[#allocation15] sm:$0xff]  }
 0x6a5   : > { %16311 = vmatprep.subr.bf16.mxu1 %v17486_v6  ;;  %vm10980_vm9 = vcmp.ge.s32.totalorder %v10978_v29, 0  ;;  %vm10982_vm3 = vcmp.lt.s32.totalorder %v10978_v29, 16  ;;  %p17819_p6 = pnand %p17818_p2, %p17812_p5 }
 0x6a6   : > { %16312 = vmatpush3.bf16.msra.mxu1 %v17486_v6  ;;  %vm10984_vm6 = vmand %vm10980_vm9, %vm10982_vm3 }
 0x6a7   : > { %16329 = vmatprep.subr.bf16.mxu1 %v21876_v2  ;;  %v21883_v33 = vsel %vm10984_vm6, 1, %v22848_v51 }
 0x6a8   : > { %16292 = vmatmul.mubr.msk.bf16.gmra.mrb[12].mxu1 %vm7117_vm14, %v14858_v55  ;;  %v10378_v55 = vld [vmem:[#allocation2 + $0xe0] sm:$0x3]  ;;  %v10995_v8 = vrot.slane %v21883_v33, %v20391_v25  ;;  %v11019_v28 = vrot.slane %v21883_v33, %v22925_v41 }
 0x6a9   : > { %16295 = vmatprep.mubr.msk.bf16.mxu1 %vm7117_vm14, %v14859_v26  ;;  %v10500_v26 = vsel %vm21112_vm15, %v14847_v11, %v10499_v3  ;;  %v10516_v1 = vrot.slane %v10378_v55, 6  ;;  %v14864_v3 = vcombine.low %v10507_v43, %v10510_v60  ;;  %v10991_v11 = vrot.slane %v21883_v33, %v20394_v19 }
 0x6aa   : > { %v14863_v10 = vcombine.low %v10500_v26, %v10503_v48  ;;  %vm21893_vm4 = vcmp.ne.s32.totalorder %v10995_v8, 0  ;;  %v10999_v26 = vrot.slane %v21883_v33, %v20409_v36  ;;  %v11015_v60 = vrot.slane %v21883_v33, %v22926_v7 }
 0x6ab   : > { %v10517_v30 = vsel %vm21112_vm15, %v10515_v61, %v10516_v1  ;;  %vm21901_vm5 = vcmp.ne.s32.totalorder %v10991_v11, 0 }
 0x6ac   : > { %v14865_v42 = vcombine.low %v10514_v49, %v10517_v30  ;;  %vm21940_vm0 = vcmp.ne.s32.totalorder %v10999_v26, 0 }
 0x6b0   : > { %16296 = vmatmul.mubr.msk.bf16.gmra.mrb[16].mxu1 %vm7117_vm14, %v14860_v58  ;;  %v10522_v58 = vrot.slane %v10520_v21, 4 }
 0x6b1   : > { %16299 = vmatprep.mubr.msk.bf16.mxu1 %vm7117_vm14, %v14861_v57  ;;  %v10379_v57 = vld [vmem:[#allocation2 + $0xe4] sm:$0xc] }
 0x6b2   : > { %v14850_v16 = vrot.slane %v10379_v57, 10  ;;  %v10524_v56 = vsel %vm21112_vm15, %v10522_v58, %v10523_v54 }
 0x6b4   : > { %v10521_v59 = vsel %vm21112_vm15, %v14850_v16, %v10520_v21  ;;  %v21922_v21 = vpop.permute.xlu0 %10909 }
 0x6b5   : > { %v14866_v20 = vcombine.low %v10521_v59, %v10524_v56 }
 0x6b8   : > { %16300 = vmatmul.mubr.msk.bf16.gmra.mrb[20].mxu1 %vm7117_vm14, %v14862_v37  ;;  %v11003_v37 = vrot.slane %v21883_v33, %v20404_v44 }
 0x6b9   : > { %16303 = vmatprep.mubr.msk.bf16.mxu1 %vm7117_vm14, %v14863_v10 }
 0x6ba   : > { %vm21932_vm11 = vcmp.ne.s32.totalorder %v11003_v37, 0 }
 0x6c0   : > { %16304 = vmatmul.mubr.msk.bf16.gmra.mrb[24].mxu1 %vm7117_vm14, %v14864_v3 }
 0x6c1   : > { %16307 = vmatprep.mubr.msk.bf16.mxu1 %vm7117_vm14, %v14865_v42 }
 0x6c8   : > { %16308 = vmatmul.mubr.msk.bf16.gmra.mrb[28].mxu1 %vm7117_vm14, %v14866_v20  ;;  %vm10983_vm14 = vcmp.lt.s32.totalorder %v20341_v13, 16 }
 0x6c9   : > { %vm10985_vm2 = vmand %vm10981_vm12, %vm10983_vm14 }
 0x6ca   : > { %v21898_v18 = vsel %vm10985_vm2, 1, %v22848_v51  ;;  %v11011_v51 = vrot.slane %v21883_v33, %v20427_v47 }
 0x6cb   : > { %v11023_v14 = vrot.slane %v21898_v18, %v20394_v19  ;;  %v11035_v43 = vrot.slane %v21898_v18, %v20404_v44  ;;  %v11031_v42 = vrot.slane %v21898_v18, %v20409_v36  ;;  %v11043_v57 = vrot.slane %v21898_v18, %v20427_v47 }
 0x6cc   : > { %v11039_v59 = vrot.slane %v21898_v18, %v20431_v46  ;;  %vm21973_vm14 = vcmp.ne.s32.totalorder %v11011_v51, 0 }
 0x763   : > { %v16281_v48 = vpop.f32.mrb[0].mxu1 }
 0x764   : > { %v16479_v39 = vadd.f32 %v16281_v48, %v21318_v50  ;;  %v10672_v13 = vpop.f32.mrb[1].mxu1  ;;  %v11007_v50 = vrot.slane %v21883_v33, %v20431_v46 }
 0x765   : > { %v16480_v10 = vadd.f32 %v10672_v13, %v21321_v5  ;;  %v16282_v9 = vpop.f32.mrb[2].mxu1  ;;  %v11027_v5 = vrot.slane %v21898_v18, %v20391_v25 }
 0x766   : > { %v10840_v61 = vadd.f32 %v16479_v39, %v21891_v15  ;;  %v16481_v1 = vadd.f32 %v16282_v9, %v21326_v34  ;;  %v10675_v32 = vpop.f32.mrb[3].mxu1  ;;  %vm21985_vm2 = vcmp.ne.s32.totalorder %v11007_v50, 0 }
 0x767   : > { %v10838_v22 = vadd.f32 %v16480_v10, %v21891_v15  ;;  %v16482_v30 = vadd.f32 %v10675_v32, %v21331_v52 }
 0x768   : > { %vm10872_vm7 = vcmp.ge.f32.partialorder %v10840_v61, 0.0  ;;  %v10914_v34 = vmul.f32 %v21922_v21, %v10840_v61  ;;  %v10841_v3 = vadd.f32 %v16481_v1, %v21891_v15 }
 0x769   : > { %vm10870_vm13 = vcmp.ge.f32.partialorder %v10838_v22, 0.0  ;;  %v10912_v52 = vmul.f32 %v21922_v21, %v10838_v22  ;;  %v10839_v58 = vadd.f32 %v16482_v30, %v21891_v15 }
 0x76a   : > { %v10946_v16 = vsel %vm10872_vm7, %v10840_v61, %v10914_v34  ;;  %vm10873_vm9 = vcmp.ge.f32.partialorder %v10841_v3, 0.0  ;;  %v10915_v56 = vmul.f32 %v21922_v21, %v10841_v3 }
 0x76b   : > { %v11102_v20 = vsel %vm21893_vm4, %v10946_v16, 0.0  ;;  %v10944_v6 = vsel %vm10870_vm13, %v10838_v22, %v10912_v52  ;;  %vm10871_vm3 = vcmp.ge.f32.partialorder %v10839_v58, 0.0  ;;  %v10913_v23 = vmul.f32 %v21922_v21, %v10839_v58  ;;  %v16285_v29 = vpop.f32.mrb[4].mxu1 }
 0x76c   : > { %v15145_v8 = vpack.c.bf16 %v11102_v20, %v11102_v20  ;;  %v11100_v11 = vsel %vm21901_vm5, %v10944_v6, 0.0  ;;  %v10947_v48 = vsel %vm10873_vm9, %v10841_v3, %v10915_v56  ;;  %v16483_v39 = vadd.f32 %v16285_v29, %v21357_v24  ;;  %v10688_v13 = vpop.f32.mrb[5].mxu1 }
 0x76d   : > { %v15143_v37 = vpack.c.bf16 %v11100_v11, %v11100_v11  ;;  %v11103_v26 = vsel %vm21893_vm4, %v10947_v48, 0.0  ;;  %v10945_v10 = vsel %vm10871_vm3, %v10839_v58, %v10913_v23  ;;  %v16484_v9 = vadd.f32 %v10688_v13, %v21361_v63  ;;  %v16286_v61 = vpop.f32.mrb[6].mxu1 }
 0x76e   : > { %v11267_v1 = vrot.slane %v15145_v8, 6  ;;  %v15146_v32 = vpack.c.bf16 %v11103_v26, %v11103_v26  ;;  %v11101_v22 = vsel %vm21901_vm5, %v10945_v10, 0.0  ;;  %v10844_v30 = vadd.f32 %v16483_v39, %v21891_v15  ;;  %v10691_v34 = vpop.f32.mrb[7].mxu1 }
 0x76f   : > { %v11262_v3 = vrot.slane %v15143_v37, 6  ;;  %v15144_v52 = vpack.c.bf16 %v11101_v22, %v11101_v22  ;;  %v10842_v24 = vadd.f32 %v16484_v9, %v21891_v15  ;;  %v16485_v16 = vadd.f32 %v16286_v61, %v21363_v31 }
 0x770   : > { %v11268_v45 = vrot.slane %v11267_v1, 4  ;;  %11394 = vst.msk [vmem:[#allocation3 + $0xc] sm:$0xc] %vm11149_vm1, %v11267_v1  ;;  %v11269_v58 = vrot.slane %v15146_v32, 6  ;;  %vm10876_vm6 = vcmp.ge.f32.partialorder %v10844_v30, 0.0  ;;  %v10918_v63 = vmul.f32 %v21922_v21, %v10844_v30 }
 0x771   : > { %v11263_v56 = vrot.slane %v11262_v3, 4  ;;  %11390 = vst.msk [vmem:[#allocation3] sm:$0xc] %vm11149_vm1, %v11262_v3  ;;  %v11264_v55 = vrot.slane %v15144_v52, 6  ;;  %vm10874_vm12 = vcmp.ge.f32.partialorder %v10842_v24, 0.0  ;;  %v10916_v20 = vmul.f32 %v21922_v21, %v10842_v24 }
 0x772   : > { %v11270_v6 = vsel %vm21112_vm15, %v11268_v45, %v11269_v58  ;;  %v11271_v23 = vrot.slane %v11269_v58, 4  ;;  %v10950_v29 = vsel %vm10876_vm6, %v10844_v30, %v10918_v63  ;;  %v10845_v31 = vadd.f32 %v16485_v16, %v21891_v15 }
 0x773   : > { %11395 = vst.msk [vmem:[#allocation3 + $0x10] sm:$0xf] %vm11391_vm10, %v11270_v6  ;;  %v11265_v11 = vsel %vm21112_vm15, %v11263_v56, %v11264_v55  ;;  %v11266_v48 = vrot.slane %v11264_v55, 4  ;;  %v11106_v39 = vsel %vm21932_vm11, %v10950_v29, 0.0  ;;  %v10948_v13 = vsel %vm10874_vm12, %v10842_v24, %v10916_v20  ;;  %v16289_v37 = vpop.f32.mrb[8].mxu1 }
 0x774   : > { %11396 = vst.msk [vmem:[#allocation3 + $0x14] sm:$0x3] %vm11132_vm8, %v11271_v23  ;;  %v15149_v51 = vpack.c.bf16 %v11106_v39, %v11106_v39  ;;  %v11104_v10 = vsel %vm21940_vm0, %v10948_v13, 0.0  ;;  %vm10877_vm4 = vcmp.ge.f32.partialorder %v10845_v31, 0.0  ;;  %v10919_v9 = vmul.f32 %v21922_v21, %v10845_v31  ;;  %v10704_v61 = vpop.f32.mrb[9].mxu1 }
 0x775   : > { %11392 = vst.msk [vmem:[#allocation3 + $0x4] sm:$0xf] %vm11391_vm10, %v11265_v11  ;;  %v15147_v1 = vpack.c.bf16 %v11104_v10, %v11104_v10  ;;  %v16486_v50 = vadd.f32 %v10691_v34, %v21366_v62  ;;  %v16487_v32 = vadd.f32 %v16289_v37, %v21383_v12  ;;  %v16488_v22 = vadd.f32 %v10704_v61, %v21386_v53  ;;  %v16290_v30 = vpop.f32.mrb[10].mxu1 }
 0x776   : > { %11393 = vst.msk [vmem:[#allocation3 + $0x8] sm:$0x3] %vm11132_vm8, %v11266_v48  ;;  %v11277_v3 = vrot.slane %v15149_v51, 6  ;;  %v10951_v52 = vsel %vm10877_vm4, %v10845_v31, %v10919_v9  ;;  %v16489_v24 = vadd.f32 %v16290_v30, %v21391_v4  ;;  %v10707_v16 = vpop.f32.mrb[11].mxu1  ;;  %v11051_v45 = vrot.slane %v21898_v18, %v22925_v41 }
 0x777   : > { %v11272_v58 = vrot.slane %v15147_v1, 6  ;;  %v11107_v63 = vsel %vm21932_vm11, %v10951_v52, 0.0  ;;  %v10843_v56 = vadd.f32 %v16486_v50, %v21891_v15  ;;  %v10848_v62 = vadd.f32 %v16487_v32, %v21891_v15 }
 0x778   : > { %v11278_v12 = vrot.slane %v11277_v3, 4  ;;  %11400 = vst.msk [vmem:[#allocation3 + $0x24] sm:$0xc] %vm11149_vm1, %v11277_v3  ;;  %v15150_v53 = vpack.c.bf16 %v11107_v63, %v11107_v63  ;;  %v10846_v34 = vadd.f32 %v16488_v22, %v21891_v15  ;;  %v10849_v4 = vadd.f32 %v16489_v24, %v21891_v15 }
 0x779   : > { %v11273_v55 = vrot.slane %v11272_v58, 4  ;;  %11397 = vst.msk [vmem:[#allocation3 + $0x18] sm:$0xc] %vm11149_vm1, %v11272_v58  ;;  %vm10875_vm5 = vcmp.ge.f32.partialorder %v10843_v56, 0.0  ;;  %v10917_v20 = vmul.f32 %v21922_v21, %v10843_v56  ;;  %vm10880_vm7 = vcmp.ge.f32.partialorder %v10848_v62, 0.0 }
 0x77a   : > { %v11279_v49 = vrot.slane %v15150_v53, 6  ;;  %v10922_v6 = vmul.f32 %v21922_v21, %v10848_v62  ;;  %vm10878_vm11 = vcmp.ge.f32.partialorder %v10846_v34, 0.0  ;;  %v10920_v23 = vmul.f32 %v21922_v21, %v10846_v34 }
 0x77b   : > { %v10949_v29 = vsel %vm10875_vm5, %v10843_v56, %v10917_v20  ;;  %vm10881_vm13 = vcmp.ge.f32.partialorder %v10849_v4, 0.0  ;;  %v10923_v31 = vmul.f32 %v21922_v21, %v10849_v4  ;;  %v16490_v11 = vadd.f32 %v10707_v16, %v21395_v40  ;;  %v16293_v48 = vpop.f32.mrb[12].mxu1 }
 0x77c   : > { %v11280_v39 = vsel %vm21112_vm15, %v11278_v12, %v11279_v49  ;;  %v11281_v13 = vrot.slane %v11279_v49, 4  ;;  %v11105_v37 = vsel %vm21940_vm0, %v10949_v29, 0.0  ;;  %v10954_v51 = vsel %vm10880_vm7, %v10848_v62, %v10922_v6  ;;  %v10720_v9 = vpop.f32.mrb[13].mxu1  ;;  %v11457_v29 = vld [vmem:[#allocation3] sm:$0xc] }
 0x77d   : > { %vm22021_vm9 = vcmp.ne.s32.totalorder %v11019_v28, 0  ;;  %11401 = vst.msk [vmem:[#allocation3 + $0x28] sm:$0xf] %vm11391_vm10, %v11280_v39  ;;  %v15148_v40 = vpack.c.bf16 %v11105_v37, %v11105_v37  ;;  %v11110_v61 = vsel %vm21973_vm14, %v10954_v51, 0.0  ;;  %v10952_v1 = vsel %vm10878_vm11, %v10846_v34, %v10920_v23  ;;  %v16294_v28 = vpop.f32.mrb[14].mxu1  ;;  %v22952_v39 = vld [vmem:[#allocation38_spill] sm:$0xff] }
 0x77e   : > { %v10955_v50 = vsel %vm10881_vm13, %v10849_v4, %v10923_v31  ;;  %vm22032_vm0 = vcmp.ne.s32.totalorder %v11015_v60, 0  ;;  %11402 = vst.msk [vmem:[#allocation3 + $0x2c] sm:$0x3] %vm11132_vm8, %v11281_v13  ;;  %v15153_v32 = vpack.c.bf16 %v11110_v61, %v11110_v61  ;;  %v11108_v22 = vsel %vm21985_vm2, %v10952_v1, 0.0  ;;  %v10723_v52 = vpop.f32.mrb[15].mxu1 }
 0x77f   : > { %v11111_v30 = vsel %vm21973_vm14, %v10955_v50, 0.0  ;;  %v10847_v3 = vadd.f32 %v16490_v11, %v21891_v15  ;;  %v11274_v24 = vrot.slane %v15148_v40, 6  ;;  %v15151_v16 = vpack.c.bf16 %v11108_v22, %v11108_v22  ;;  %v22079_v22 = vld [vmem:[#allocation3 + $0x4] sm:$0xf] }
 0x780   : > { %v15154_v33 = vpack.c.bf16 %v11111_v30, %v11111_v30  ;;  %v16491_v60 = vadd.f32 %v16293_v48, %v21411_v27  ;;  %v11287_v58 = vrot.slane %v15153_v32, 6  ;;  %v16492_v56 = vadd.f32 %v10720_v9, %v21415_v38  ;;  %v11458_v30 = vld [vmem:[#allocation3 + $0x8] sm:$0x3] }
 0x781   : > { %vm10879_vm3 = vcmp.ge.f32.partialorder %v10847_v3, 0.0  ;;  %v10921_v63 = vmul.f32 %v21922_v21, %v10847_v3  ;;  %v11275_v62 = vsel %vm21112_vm15, %v11273_v55, %v11274_v24  ;;  %v11276_v12 = vrot.slane %v11274_v24, 4 }
 0x782   : > { %v11282_v8 = vrot.slane %v15151_v16, 6  ;;  %v11289_v53 = vrot.slane %v15154_v33, 6  ;;  %11398 = vst.msk [vmem:[#allocation3 + $0x1c] sm:$0xf] %vm11391_vm10, %v11275_v62  ;;  %v11288_v34 = vrot.slane %v11287_v58, 4  ;;  %v10852_v27 = vadd.f32 %v16491_v60, %v21891_v15 }
 0x783   : > { %11406 = vst.msk [vmem:[#allocation3 + $0x3c] sm:$0xc] %vm11149_vm1, %v11287_v58  ;;  %v10953_v4 = vsel %vm10879_vm3, %v10847_v3, %v10921_v63  ;;  %v10850_v20 = vadd.f32 %v16492_v56, %v21891_v15  ;;  %v16493_v6 = vadd.f32 %v16294_v28, %v21420_v35  ;;  %v16297_v23 = vpop.f32.mrb[16].mxu1  ;;  %vm22062_vm12 = vcmp.ne.s32.totalorder %v11027_v5, 0  ;;  %v22941_v5 = vld [vmem:[#allocation36_spill] sm:$0xff] }
 0x784   : > { %11399 = vst.msk [vmem:[#allocation3 + $0x20] sm:$0x3] %vm11132_vm8, %v11276_v12  ;;  %v11283_v49 = vrot.slane %v11282_v8, 4  ;;  %v11291_v38 = vrot.slane %v11289_v53, 4  ;;  %v11109_v55 = vsel %vm21985_vm2, %v10953_v4, 0.0  ;;  %v11290_v31 = vsel %vm21112_vm15, %v11288_v34, %v11289_v53  ;;  %v10736_v26 = vpop.f32.mrb[17].mxu1 }
 0x785   : > { %11403 = vst.msk [vmem:[#allocation3 + $0x30] sm:$0xc] %vm11149_vm1, %v11282_v8  ;;  %v15152_v11 = vpack.c.bf16 %v11109_v55, %v11109_v55  ;;  %vm10884_vm6 = vcmp.ge.f32.partialorder %v10852_v27, 0.0  ;;  %v10926_v48 = vmul.f32 %v21922_v21, %v10852_v27  ;;  %vm10882_vm14 = vcmp.ge.f32.partialorder %v10850_v20, 0.0  ;;  %v22071_v51 = vpop.f32.mrb[18].mxu1 }
 0x786   : > { %11407 = vst.msk [vmem:[#allocation3 + $0x40] sm:$0xf] %vm11391_vm10, %v11290_v31  ;;  %v10924_v35 = vmul.f32 %v21922_v21, %v10850_v20  ;;  %v10853_v13 = vadd.f32 %v16493_v6, %v21891_v15  ;;  %v16494_v37 = vadd.f32 %v10723_v52, %v21425_v0  ;;  %v16495_v40 = vadd.f32 %v16297_v23, %v22941_v5  ;;  %v22074_v1 = vpop.f32.mrb[19].mxu1 }
 0x787   : > { %11408 = vst.msk [vmem:[#allocation3 + $0x44] sm:$0x3] %vm11132_vm8, %v11291_v38  ;;  %v11284_v9 = vrot.slane %v15152_v11, 6  ;;  %v10958_v25 = vsel %vm10884_vm6, %v10852_v27, %v10926_v48  ;;  %v14920_v61 = vrot.slane %v11457_v29, 10  ;;  %vm11586_vm4 = vcmask 130048  }
 0x788   : > { %v11114_v50 = vsel %vm22021_vm9, %v10958_v25, 0.0  ;;  %v10956_v28 = vsel %vm10882_vm14, %v10850_v20, %v10924_v35  ;;  %vm10885_vm2 = vcmp.ge.f32.partialorder %v10853_v13, 0.0  ;;  %v10927_v32 = vmul.f32 %v21922_v21, %v10853_v13  ;;  %v11459_v27 = vld [vmem:[#allocation3 + $0xc] sm:$0xc]  ;;  %v22107_v29 = vld [vmem:[#allocation3 + $0x10] sm:$0xf] }
 0x789   : > { %v11285_v0 = vsel %vm21112_vm15, %v11283_v49, %v11284_v9  ;;  %v11286_v3 = vrot.slane %v11284_v9, 4  ;;  %v15157_v52 = vpack.c.bf16 %v11114_v50, %v11114_v50  ;;  %v11112_v24 = vsel %vm22032_vm0, %v10956_v28, 0.0  ;;  %v22944_v35 = vld [vmem:[#allocation35_spill] sm:$0xff] }
 0x78a   : > { %11404 = vst.msk [vmem:[#allocation3 + $0x34] sm:$0xf] %vm11391_vm10, %v11285_v0  ;;  %v15155_v16 = vpack.c.bf16 %v11112_v24, %v11112_v24  ;;  %v10959_v33 = vsel %vm10885_vm2, %v10853_v13, %v10927_v32  ;;  %v10851_v60 = vadd.f32 %v16494_v37, %v21891_v15  ;;  %v10856_v58 = vadd.f32 %v16495_v40, %v21891_v15  ;;  %v11460_v37 = vld [vmem:[#allocation3 + $0x14] sm:$0x3] }
 0x78b   : > { %11405 = vst.msk [vmem:[#allocation3 + $0x38] sm:$0x3] %vm11132_vm8, %v11286_v3  ;;  %v11297_v63 = vrot.slane %v15157_v52, 6  ;;  %v11115_v56 = vsel %vm22021_vm9, %v10959_v33, 0.0  ;;  %v11499_v62 = vrot.slane %v22079_v22, 6  ;;  %v11502_v12 = vrot.slane %v11458_v30, 6 }
 0x78c   : > { %vm22095_vm5 = vcmp.ne.s32.totalorder %v11023_v14, 0  ;;  %v11292_v53 = vrot.slane %v15155_v16, 6  ;;  %v15158_v34 = vpack.c.bf16 %v11115_v56, %v11115_v56  ;;  %vm10883_vm7 = vcmp.ge.f32.partialorder %v10851_v60, 0.0  ;;  %v16301_v20 = vpop.f32.mrb[20].mxu1  ;;  %v22945_v52 = vld [vmem:[#allocation37_spill] sm:$0xff] }
 0x78d   : > { %v10925_v4 = vmul.f32 %v21922_v21, %v10851_v60  ;;  %v11298_v49 = vrot.slane %v11297_v63, 4  ;;  %11412 = vst.msk [vmem:[#allocation3 + $0x54] sm:$0xc] %vm11149_vm1, %v11297_v63  ;;  %vm10888_vm11 = vcmp.ge.f32.partialorder %v10856_v58, 0.0  ;;  %v10930_v10 = vmul.f32 %v21922_v21, %v10856_v58  ;;  %v22104_v14 = vpop.f32.mrb[21].mxu1 }
 0x78e   : > { %v11500_v19 = vsel %vm21112_vm15, %v14920_v61, %v11499_v62  ;;  %v11293_v38 = vrot.slane %v11292_v53, 4  ;;  %11409 = vst.msk [vmem:[#allocation3 + $0x48] sm:$0xc] %vm11149_vm1, %v11292_v53  ;;  %v11299_v55 = vrot.slane %v15158_v34, 6  ;;  %v11501_v23 = vrot.slane %v11499_v62, 4  ;;  %v22109_v31 = vpop.f32.mrb[22].mxu1 }
 0x78f   : > { %v10957_v6 = vsel %vm10883_vm7, %v10851_v60, %v10925_v4  ;;  %v10962_v48 = vsel %vm10888_vm11, %v10856_v58, %v10930_v10  ;;  %v16496_v13 = vadd.f32 %v10736_v26, %v22944_v35  ;;  %v14921_v9 = vrot.slane %v11459_v27, 10  ;;  %v22114_v25 = vpop.f32.mrb[23].mxu1  ;;  %v22948_v34 = vld [vmem:[#allocation34_spill] sm:$0xff]  ;;  %v22949_v27 = vld [vmem:[#allocation39_spill] sm:$0xff] }
 0x790   : > { %v11113_v11 = vsel %vm22032_vm0, %v10957_v6, 0.0  ;;  %v11300_v5 = vsel %vm21112_vm15, %v11298_v49, %v11299_v55  ;;  %v11301_v40 = vrot.slane %v11299_v55, 4  ;;  %v11118_v50 = vsel %vm22062_vm12, %v10962_v48, 0.0  ;;  %v22153_v10 = vld [vmem:[#allocation3 + $0x1c] sm:$0xf] }
 0x791   : > { %v15156_v61 = vpack.c.bf16 %v11113_v11, %v11113_v11  ;;  %11413 = vst.msk [vmem:[#allocation3 + $0x58] sm:$0xf] %vm11391_vm10, %v11300_v5  ;;  %v15161_v28 = vpack.c.bf16 %v11118_v50, %v11118_v50  ;;  %v11503_v54 = vsel %vm21112_vm15, %v11501_v23, %v11502_v12  ;;  %v10854_v26 = vadd.f32 %v16496_v13, %v21891_v15 }
 0x792   : > { %v11506_v32 = vrot.slane %v22107_v29, 6  ;;  %11414 = vst.msk [vmem:[#allocation3 + $0x5c] sm:$0x3] %vm11132_vm8, %v11301_v40  ;;  %v14928_v0 = vcombine.low %v11500_v19, %v11503_v54  ;;  %v11509_v3 = vrot.slane %v11460_v37, 6  ;;  %v16497_v24 = vadd.f32 %v22071_v51, %v22945_v52  ;;  %v11462_v19 = vld [vmem:[#allocation3 + $0x20] sm:$0x3] }
 0x793   : > { %v11294_v30 = vrot.slane %v15156_v61, 6  ;;  %vm22131_vm13 = vcmp.ne.s32.totalorder %v11035_v43, 0  ;;  %v22135_v33 = vrot.slane %v15161_v28, 6  ;;  %vm10886_vm9 = vcmp.ge.f32.partialorder %v10854_v26, 0.0  ;;  %v11461_v43 = vld [vmem:[#allocation3 + $0x18] sm:$0xc] }
 0x794   : > { %v10928_v60 = vmul.f32 %v21922_v21, %v10854_v26  ;;  %v11507_v58 = vsel %vm21112_vm15, %v14921_v9, %v11506_v32  ;;  %16313 = vmatprep.mubr.msk.bf16.mxu1 %vm11586_vm4, %v14928_v0  ;;  %v11508_v51 = vrot.slane %v11506_v32, 4  ;;  %v10857_v44 = vadd.f32 %v16497_v24, %v21891_v15  ;;  %v22144_v62 = vpop.f32.mrb[24].mxu1  ;;  %v22176_v9 = vld [vmem:[#allocation15 + $0x10] sm:$0xff]  }
 0x795   : > { %v11295_v63 = vsel %vm21112_vm15, %v11293_v38, %v11294_v30  ;;  %v11296_v56 = vrot.slane %v11294_v30, 4  ;;  %v11308_v12 = vrot.slane %v22135_v33, 4  ;;  %11418 = vst.msk [vmem:[#allocation3 + $0x6c] sm:$0xc] %vm11149_vm1, %v22135_v33  ;;  %v16498_v4 = vadd.f32 %v22074_v1, %v22948_v34  ;;  %v22155_v38 = vpop.f32.mrb[25].mxu1 }
 0x796   : > { %11410 = vst.msk [vmem:[#allocation3 + $0x4c] sm:$0xf] %vm11391_vm10, %v11295_v63  ;;  %v10960_v53 = vsel %vm10886_vm9, %v10854_v26, %v10928_v60  ;;  %v16499_v49 = vadd.f32 %v16301_v20, %v22949_v27  ;;  %v11510_v6 = vsel %vm21112_vm15, %v11508_v51, %v11509_v3  ;;  %vm10889_vm0 = vcmp.ge.f32.partialorder %v10857_v44, 0.0  ;;  %v22163_v11 = vpop.f32.mrb[26].mxu1  ;;  %v22193_v63 = vld [vmem:[#allocation3 + $0x28] sm:$0xf] }
 0x797   : > { %11411 = vst.msk [vmem:[#allocation3 + $0x50] sm:$0x3] %vm11132_vm8, %v11296_v56  ;;  %v11116_v55 = vsel %vm22095_vm5, %v10960_v53, 0.0  ;;  %v10931_v23 = vmul.f32 %v21922_v21, %v10857_v44  ;;  %v14929_v20 = vcombine.low %v11507_v58, %v11510_v6  ;;  %v10855_v48 = vadd.f32 %v16498_v4, %v21891_v15  ;;  %v22174_v37 = vpop.f32.mrb[27].mxu1  ;;  %v11464_v53 = vld [vmem:[#allocation3 + $0x2c] sm:$0x3] }
 0x798   : > { %v15159_v1 = vpack.c.bf16 %v11116_v55, %v11116_v55  ;;  %v10860_v35 = vadd.f32 %v16499_v49, %v21891_v15  ;;  %vm22170_vm3 = vcmp.ne.s32.totalorder %v11031_v42, 0  ;;  %v14922_v40 = vrot.slane %v11461_v43, 10  ;;  %v11463_v42 = vld [vmem:[#allocation3 + $0x24] sm:$0xc] }
 0x799   : > { %v10963_v5 = vsel %vm10889_vm0, %v10857_v44, %v10931_v23  ;;  %v11513_v61 = vrot.slane %v22153_v10, 6  ;;  %v11516_v50 = vrot.slane %v11462_v19, 6  ;;  %16314 = vmatmul.mubr.msk.bf16.vlgmr.msra.gmra.mrb[32].mxu1 %vm11586_vm4, %v14929_v20  ;;  %vm10887_vm6 = vcmp.ge.f32.partialorder %v10855_v48, 0.0 }
 0x79a   : > { %v11302_v28 = vrot.slane %v15159_v1, 6  ;;  %v11119_v54 = vsel %vm22062_vm12, %v10963_v5, 0.0  ;;  %v10929_v36 = vmul.f32 %v21922_v21, %v10855_v48  ;;  %vm10892_vm14 = vcmp.ge.f32.partialorder %v10860_v35, 0.0  ;;  %16330 = vmatpush3.bf16.msra.mxu1 %v21876_v2  ;;  %v22954_v5 = vld [vmem:[#allocation31_spill] sm:$0xff] }
 0x79b   : > { %v15162_v26 = vpack.c.bf16 %v11119_v54, %v11119_v54  ;;  %v10934_v32 = vmul.f32 %v21922_v21, %v10860_v35  ;;  %v11514_v30 = vsel %vm21112_vm15, %v14922_v40, %v11513_v61  ;;  %v11515_v52 = vrot.slane %v11513_v61, 4  ;;  %16347 = vmatprep.subr.bf16.mxu1 %v22176_v9  ;;  %v22195_v51 = vpop.f32.mrb[28].mxu1 }
 0x79c   : > { %v11303_v0 = vrot.slane %v11302_v28, 4  ;;  %11415 = vst.msk [vmem:[#allocation3 + $0x60] sm:$0xc] %vm11149_vm1, %v11302_v28  ;;  %v10961_v3 = vsel %vm10887_vm6, %v10855_v48, %v10929_v36  ;;  %v16500_v24 = vadd.f32 %v22104_v14, %v22952_v39  ;;  %v14923_v56 = vrot.slane %v11463_v42, 10  ;;  %v22202_v34 = vpop.f32.mrb[29].mxu1  ;;  %v22953_v48 = vld [vmem:[#allocation32_spill] sm:$0xff] }
 0x79d   : > { %v11309_v33 = vrot.slane %v15162_v26, 6  ;;  %v11117_v60 = vsel %vm22095_vm5, %v10961_v3, 0.0  ;;  %v10966_v58 = vsel %vm10892_vm14, %v10860_v35, %v10934_v32  ;;  %v11517_v43 = vsel %vm21112_vm15, %v11515_v52, %v11516_v50  ;;  %v22206_v19 = vpop.f32.mrb[30].mxu1  ;;  %v11465_v50 = vld [vmem:[#allocation3 + $0x30] sm:$0xc] }
 0x79e   : > { %v15160_v2 = vpack.c.bf16 %v11117_v60, %v11117_v60  ;;  %v11122_v44 = vsel %vm22131_vm13, %v10966_v58, 0.0  ;;  %v10858_v14 = vadd.f32 %v16500_v24, %v21891_v15  ;;  %v14930_v49 = vcombine.low %v11514_v30, %v11517_v43  ;;  %v22211_v1 = vpop.f32.mrb[31].mxu1  ;;  %v22230_v42 = vld [vmem:[#allocation3 + $0x34] sm:$0xf]  ;;  %v11466_v52 = vld [vmem:[#allocation3 + $0x38] sm:$0x3] }
 0x79f   : > { %v11310_v8 = vsel %vm21112_vm15, %v11308_v12, %v11309_v33  ;;  %v11311_v4 = vrot.slane %v11309_v33, 4  ;;  %v15165_v27 = vpack.c.bf16 %v11122_v44, %v11122_v44  ;;  %v11520_v23 = vrot.slane %v22193_v63, 6 }
 0x7a0   : > { %11419 = vst.msk [vmem:[#allocation3 + $0x70] sm:$0xf] %vm11391_vm10, %v11310_v8  ;;  %v11304_v55 = vrot.slane %v15160_v2, 6  ;;  %vm10890_vm12 = vcmp.ge.f32.partialorder %v10858_v14, 0.0  ;;  %v10932_v6 = vmul.f32 %v21922_v21, %v10858_v14  ;;  %16317 = vmatprep.mubr.msk.bf16.mxu1 %vm11586_vm4, %v14930_v49  ;;  %v11523_v12 = vrot.slane %v11464_v53, 6 }
 0x7a1   : > { %11420 = vst.msk [vmem:[#allocation3 + $0x74] sm:$0x3] %vm11132_vm8, %v11311_v4  ;;  %v22214_v20 = vrot.slane %v15165_v27, 6  ;;  %v16501_v35 = vadd.f32 %v22109_v31, %v22953_v48  ;;  %v16502_v40 = vadd.f32 %v22114_v25, %v22954_v5  ;;  %vm22224_vm2 = vcmp.ne.s32.totalorder %v11043_v57, 0  ;;  %v22266_v27 = vld [vmem:[#allocation3 + $0x40] sm:$0xf] }
 0x7a2   : > { %v11305_v28 = vsel %vm21112_vm15, %v11303_v0, %v11304_v55  ;;  %v11306_v54 = vrot.slane %v11304_v55, 4  ;;  %v10964_v36 = vsel %vm10890_vm12, %v10858_v14, %v10932_v6  ;;  %v11047_v31 = vrot.slane %v21898_v18, %v22926_v7  ;;  %v22957_v0 = vld [vmem:[#allocation33_spill] sm:$0xff] }
 0x7a3   : > { %11416 = vst.msk [vmem:[#allocation3 + $0x64] sm:$0xf] %vm11391_vm10, %v11305_v28  ;;  %v11120_v47 = vsel %vm22170_vm3, %v10964_v36, 0.0  ;;  %v11521_v57 = vsel %vm21112_vm15, %v14923_v56, %v11520_v23  ;;  %v11522_v25 = vrot.slane %v11520_v23, 4  ;;  %v10861_v26 = vadd.f32 %v16501_v35, %v21891_v15  ;;  %v11467_v23 = vld [vmem:[#allocation3 + $0x3c] sm:$0xc] }
 0x7a4   : > { %11424 = vst.msk [vmem:[#allocation3 + $0x84] sm:$0xc] %vm11149_vm1, %v22214_v20  ;;  %v15163_v32 = vpack.c.bf16 %v11120_v47, %v11120_v47  ;;  %v10859_v30 = vadd.f32 %v16502_v40, %v21891_v15  ;;  %v16503_v3 = vadd.f32 %v22144_v62, %v22957_v0  ;;  %v14924_v39 = vrot.slane %v11465_v50, 10  ;;  %v22960_v35 = vld [vmem:[#allocation42_spill] sm:$0xff]  ;;  %v22289_v0 = vld [vmem:[#allocation3 + $0x4c] sm:$0xf] }
 0x7a5   : > { %11417 = vst.msk [vmem:[#allocation3 + $0x68] sm:$0x3] %vm11132_vm8, %v11306_v54  ;;  %v11524_v24 = vsel %vm21112_vm15, %v11522_v25, %v11523_v12  ;;  %vm10893_vm5 = vcmp.ge.f32.partialorder %v10861_v26, 0.0  ;;  %v10935_v33 = vmul.f32 %v21922_v21, %v10861_v26  ;;  %v11527_v60 = vrot.slane %v22230_v42, 6 }
 0x7a6   : > { %v11312_v58 = vrot.slane %v15163_v32, 6  ;;  %v14931_v56 = vcombine.low %v11521_v57, %v11524_v24  ;;  %vm10891_vm7 = vcmp.ge.f32.partialorder %v10859_v30, 0.0  ;;  %v10933_v2 = vmul.f32 %v21922_v21, %v10859_v30  ;;  %v11469_v24 = vld [vmem:[#allocation3 + $0x48] sm:$0xc] }
 0x7a7   : > { %vm22254_vm11 = vcmp.ne.s32.totalorder %v11039_v59, 0  ;;  %v11318_v44 = vrot.slane %v22214_v20, 4  ;;  %v10967_v43 = vsel %vm10893_vm5, %v10861_v26, %v10935_v33  ;;  %v10864_v14 = vadd.f32 %v16503_v3, %v21891_v15  ;;  %v11468_v20 = vld [vmem:[#allocation3 + $0x44] sm:$0x3]  ;;  %v22963_v33 = vld [vmem:[#allocation43_spill] sm:$0xff] }
 0x7a8   : > { %v11529_v53 = vrot.slane %v11527_v60, 4  ;;  %11421 = vst.msk [vmem:[#allocation3 + $0x78] sm:$0xc] %vm11149_vm1, %v11312_v58  ;;  %16318 = vmatmul.mubr.msk.bf16.gmra.mrb[36].mxu1 %vm11586_vm4, %v14931_v56  ;;  %v11123_v8 = vsel %vm22131_vm13, %v10967_v43, 0.0  ;;  %v10965_v4 = vsel %vm10891_vm7, %v10859_v30, %v10933_v2  ;;  %v11528_v46 = vsel %vm21112_vm15, %v14924_v39, %v11527_v60  ;;  %v22965_v43 = vld [vmem:[#allocation45_spill] sm:$0xff] }
 0x7a9   : > { %v11530_v59 = vrot.slane %v11466_v52, 6  ;;  %v15166_v49 = vpack.c.bf16 %v11123_v8, %v11123_v8  ;;  %v11121_v55 = vsel %vm22170_vm3, %v10965_v4, 0.0  ;;  %vm10896_vm9 = vcmp.ge.f32.partialorder %v10864_v14, 0.0 }
 0x7aa   : > { %v10938_v6 = vmul.f32 %v21922_v21, %v10864_v14  ;;  %v11313_v12 = vrot.slane %v11312_v58, 4  ;;  %v15164_v48 = vpack.c.bf16 %v11121_v55, %v11121_v55  ;;  %v16504_v5 = vadd.f32 %v22155_v38, %v22960_v35  ;;  %v22964_v58 = vld [vmem:[#allocation44_spill] sm:$0xff]  ;;  %v22325_v35 = vld [vmem:[#allocation3 + $0x58] sm:$0xf] }
 0x7ab   : > { %v11531_v16 = vsel %vm21112_vm15, %v11529_v53, %v11530_v59  ;;  %v11319_v40 = vrot.slane %v15166_v49, 6  ;;  %v11534_v54 = vrot.slane %v22266_v27, 6  ;;  %v14925_v57 = vrot.slane %v11467_v23, 10 }
 0x7ac   : > { %v10970_v50 = vsel %vm10896_vm9, %v10864_v14, %v10938_v6  ;;  %v14932_v28 = vcombine.low %v11528_v46, %v11531_v16  ;;  %v11314_v13 = vrot.slane %v15164_v48, 6  ;;  %v10862_v47 = vadd.f32 %v16504_v5, %v21891_v15 }
 0x7ad   : > { %v11126_v36 = vsel %vm22224_vm2, %v10970_v50, 0.0  ;;  %v11320_v25 = vsel %vm21112_vm15, %v11318_v44, %v11319_v40  ;;  %v11321_v26 = vrot.slane %v11319_v40, 4  ;;  %v11537_v38 = vrot.slane %v11468_v20, 6 }
 0x7ae   : > { %v15169_v32 = vpack.c.bf16 %v11126_v36, %v11126_v36  ;;  %16321 = vmatprep.mubr.msk.bf16.mxu1 %vm11586_vm4, %v14932_v28  ;;  %vm22285_vm13 = vcmp.ne.s32.totalorder %v11051_v45, 0  ;;  %11425 = vst.msk [vmem:[#allocation3 + $0x88] sm:$0xf] %vm11391_vm10, %v11320_v25  ;;  %v11315_v3 = vsel %vm21112_vm15, %v11313_v12, %v11314_v13  ;;  %v11316_v52 = vrot.slane %v11314_v13, 4  ;;  %v11472_v36 = vld [vmem:[#allocation3 + $0x5c] sm:$0x3] }
 0x7af   : > { %vm10894_vm0 = vcmp.ge.f32.partialorder %v10862_v47, 0.0  ;;  %v10936_v39 = vmul.f32 %v21922_v21, %v10862_v47  ;;  %11426 = vst.msk [vmem:[#allocation3 + $0x8c] sm:$0x3] %vm11132_vm8, %v11321_v26  ;;  %v11536_v45 = vrot.slane %v11534_v54, 4  ;;  %v16505_v60 = vadd.f32 %v22163_v11, %v22963_v33  ;;  %v22969_v33 = vld [vmem:[#allocation47_spill] sm:$0xff] }
 0x7b0   : > { %11422 = vst.msk [vmem:[#allocation3 + $0x7c] sm:$0xf] %vm11391_vm10, %v11315_v3  ;;  %v11327_v41 = vrot.slane %v15169_v32, 6  ;;  %v16506_v56 = vadd.f32 %v22174_v37, %v22964_v58  ;;  %v11535_v44 = vsel %vm21112_vm15, %v14925_v57, %v11534_v54  ;;  %v16507_v14 = vadd.f32 %v22195_v51, %v22965_v43  ;;  %v11470_v51 = vld [vmem:[#allocation3 + $0x50] sm:$0x3] }
 0x7b1   : > { %11423 = vst.msk [vmem:[#allocation3 + $0x80] sm:$0x3] %vm11132_vm8, %v11316_v52  ;;  %v10968_v2 = vsel %vm10894_vm0, %v10862_v47, %v10936_v39  ;;  %v11541_v53 = vrot.slane %v22289_v0, 6  ;;  %v11538_v11 = vsel %vm21112_vm15, %v11536_v45, %v11537_v38  ;;  %v10865_v37 = vadd.f32 %v16505_v60, %v21891_v15  ;;  %v11471_v3 = vld [vmem:[#allocation3 + $0x54] sm:$0xc] }
 0x7b2   : > { %11430 = vst.msk [vmem:[#allocation3 + $0x9c] sm:$0xc] %vm11149_vm1, %v11327_v41  ;;  %v11124_v8 = vsel %vm22254_vm11, %v10968_v2, 0.0  ;;  %v14926_v4 = vrot.slane %v11469_v24, 10  ;;  %v14933_v59 = vcombine.low %v11535_v44, %v11538_v11  ;;  %v10863_v49 = vadd.f32 %v16506_v56, %v21891_v15 }
 0x7b3   : > { %v15167_v46 = vpack.c.bf16 %v11124_v8, %v11124_v8  ;;  %v10868_v55 = vadd.f32 %v16507_v14, %v21891_v15  ;;  %vm22318_vm3 = vcmp.ne.s32.totalorder %v11047_v31, 0  ;;  %v11328_v23 = vrot.slane %v11327_v41, 4  ;;  %v22968_v31 = vld [vmem:[#allocation46_spill] sm:$0xff] }
 0x7b4   : > { %vm10897_vm6 = vcmp.ge.f32.partialorder %v10865_v37, 0.0  ;;  %v10939_v20 = vmul.f32 %v21922_v21, %v10865_v37  ;;  %v11543_v12 = vrot.slane %v11541_v53, 4  ;;  %16322 = vmatmul.mubr.msk.bf16.gmra.mrb[40].mxu1 %vm11586_vm4, %v14933_v59  ;;  %vm10895_vm14 = vcmp.ge.f32.partialorder %v10863_v49, 0.0  ;;  %v22970_v59 = vld [vmem:[#allocation48_spill] sm:$0xff] }
 0x7b5   : > { %v11322_v48 = vrot.slane %v15167_v46, 6  ;;  %v10937_v16 = vmul.f32 %v21922_v21, %v10863_v49  ;;  %vm10900_vm12 = vcmp.ge.f32.partialorder %v10868_v55, 0.0  ;;  %v10942_v18 = vmul.f32 %v21922_v21, %v10868_v55 }
 0x7b6   : > { %v10971_v5 = vsel %vm10897_vm6, %v10865_v37, %v10939_v20  ;;  %v11544_v7 = vrot.slane %v11470_v51, 6  ;;  %v16508_v40 = vadd.f32 %v22202_v34, %v22968_v31  ;;  %v11542_v13 = vsel %vm21112_vm15, %v14926_v4, %v11541_v53 }
 0x7b7   : > { %v11323_v50 = vrot.slane %v11322_v48, 4  ;;  %11427 = vst.msk [vmem:[#allocation3 + $0x90] sm:$0xc] %vm11149_vm1, %v11322_v48  ;;  %v11127_v28 = vsel %vm22224_vm2, %v10971_v5, 0.0  ;;  %v10969_v54 = vsel %vm10895_vm14, %v10863_v49, %v10937_v16  ;;  %v10974_v25 = vsel %vm10900_vm12, %v10868_v55, %v10942_v18 }
 0x7b8   : > { %v15170_v47 = vpack.c.bf16 %v11127_v28, %v11127_v28  ;;  %v11125_v57 = vsel %vm22254_vm11, %v10969_v54, 0.0  ;;  %v11545_v26 = vsel %vm21112_vm15, %v11543_v12, %v11544_v7  ;;  %v11130_v32 = vsel %vm22285_vm13, %v10974_v25, 0.0  ;;  %v17554_v12 = vld [vmem:[#allocation14] ss:$0 sm:$0xff] }
 0x7b9   : > { %v15168_v34 = vpack.c.bf16 %v11125_v57, %v11125_v57  ;;  %v14934_v38 = vcombine.low %v11542_v13, %v11545_v26  ;;  %v10866_v61 = vadd.f32 %v16508_v40, %v21891_v15  ;;  %v15173_v39 = vpack.c.bf16 %v11130_v32, %v11130_v32  ;;  %v11441_v13 = vld [vmem:[#allocation3 + $0xc] sm:$0xf]  ;;  %v11443_v57 = vld [vmem:[#allocation3 + $0x18] sm:$0xf]  ;;  %v17490_v25 = vld [vmem:[#allocation15 + $0x18] sm:$0xff]  }
 0x7ba   : > { %v11329_v52 = vrot.slane %v15170_v47, 6  ;;  %v11548_v24 = vrot.slane %v22325_v35, 6  ;;  %v11551_v41 = vrot.slane %v11472_v36, 6  ;;  %v16509_v60 = vadd.f32 %v22206_v19, %v22969_v33  ;;  %v11445_v32 = vld [vmem:[#allocation3 + $0x24] sm:$0xf] }
 0x7bb   : > { %v11324_v45 = vrot.slane %v15168_v34, 6  ;;  %16325 = vmatprep.mubr.msk.bf16.mxu1 %vm11586_vm4, %v14934_v38  ;;  %vm10898_vm2 = vcmp.ge.f32.partialorder %v10866_v61, 0.0  ;;  %v10940_v62 = vmul.f32 %v21922_v21, %v10866_v61  ;;  %v11337_v2 = vrot.slane %v15173_v39, 6 }
 0x7bc   : > { %v11330_v58 = vsel %vm21112_vm15, %v11328_v23, %v11329_v52  ;;  %v11331_v56 = vrot.slane %v11329_v52, 4  ;;  %v14927_v44 = vrot.slane %v11471_v3, 10  ;;  %v11550_v8 = vrot.slane %v11548_v24, 4  ;;  %v11439_v23 = vld [vmem:[#allocation3] sm:$0xf] }
 0x7bd   : > { %11431 = vst.msk [vmem:[#allocation3 + $0xa0] sm:$0xf] %vm11391_vm10, %v11330_v58  ;;  %v11325_v43 = vsel %vm21112_vm15, %v11323_v50, %v11324_v45  ;;  %v11326_v14 = vrot.slane %v11324_v45, 4  ;;  %v10972_v53 = vsel %vm10898_vm2, %v10866_v61, %v10940_v62  ;;  %v10869_v11 = vadd.f32 %v16509_v60, %v21891_v15  ;;  %v11447_v61 = vld [vmem:[#allocation3 + $0x30] sm:$0xf] }
 0x7be   : > { %11432 = vst.msk [vmem:[#allocation3 + $0xa4] sm:$0x3] %vm11132_vm8, %v11331_v56  ;;  %v11128_v19 = vsel %vm22318_vm3, %v10972_v53, 0.0  ;;  %v11549_v4 = vsel %vm21112_vm15, %v14927_v44, %v11548_v24  ;;  %v11552_v46 = vsel %vm21112_vm15, %v11550_v8, %v11551_v41  ;;  %v16510_v49 = vadd.f32 %v22211_v1, %v22970_v59  ;;  %v11449_v52 = vld [vmem:[#allocation3 + $0x3c] sm:$0xf] }
 0x7bf   : > { %11428 = vst.msk [vmem:[#allocation3 + $0x94] sm:$0xf] %vm11391_vm10, %v11325_v43  ;;  %v15171_v37 = vpack.c.bf16 %v11128_v19, %v11128_v19  ;;  %v14935_v55 = vcombine.low %v11549_v4, %v11552_v46  ;;  %vm10901_vm5 = vcmp.ge.f32.partialorder %v10869_v11, 0.0  ;;  %v10943_v51 = vmul.f32 %v21922_v21, %v10869_v11  ;;  %v11451_v24 = vld [vmem:[#allocation3 + $0x48] sm:$0xf]  ;;  %v22415_v4 = vld [vmem:[#allocation15 + $0x28] sm:$0xff]  }
 0x7c0   : > { %11436 = vst.msk [vmem:[#allocation3 + $0xb4] sm:$0xc] %vm11149_vm1, %v11337_v2  ;;  %v14945_v15 = vcombine.low %v11439_v23, %v22079_v22  ;;  %v10867_v48 = vadd.f32 %v17554_v12, %v16510_v49  ;;  %v11338_v18 = vrot.slane %v11337_v2, 4  ;;  %v14946_v47 = vcombine.low %v11441_v13, %v22107_v29  ;;  %v11867_v41 = vld [vmem:[#allocation3 + $0x8] sm:$0xf]  ;;  %v17498_v2 = vld [vmem:[#allocation15 + $0x20] sm:$0xff]  }
 0x7c1   : > { %11429 = vst.msk [vmem:[#allocation3 + $0x98] sm:$0x3] %vm11132_vm8, %v11326_v14  ;;  %v11332_v20 = vrot.slane %v15171_v37, 6  ;;  %16326 = vmatmul.mubr.msk.bf16.gmra.mrb[44].mxu1 %vm11586_vm4, %v14935_v55  ;;  %v10975_v16 = vsel %vm10901_vm5, %v10869_v11, %v10943_v51  ;;  %v14947_v26 = vcombine.low %v11443_v57, %v22153_v10  ;;  %v14948_v38 = vcombine.low %v11445_v32, %v22193_v63  ;;  %v11453_v45 = vld [vmem:[#allocation3 + $0x54] sm:$0xf]  ;;  %v17492_v46 = vld [vmem:[#allocation3 + $0x48] sm:$0xff]  }
 0x7c2   : > { %v11131_v5 = vsel %vm22285_vm13, %v10975_v16, 0.0  ;;  %16331 = vmatprep.mubr.msk.bf16.mxu1 %vm11586_vm4, %v14945_v15  ;;  %vm10899_vm7 = vcmp.ge.f32.partialorder %v10867_v48, 0.0  ;;  %v10941_v1 = vmul.f32 %v21922_v21, %v10867_v48  ;;  %v14949_v3 = vcombine.low %v11447_v61, %v22230_v42  ;;  %v11868_v60 = vld [vmem:[#allocation3 + $0x14] sm:$0xf]  ;;  %v11869_v58 = vld [vmem:[#allocation3 + $0x20] sm:$0xf] }
 0x7c3   : > { %11433 = vst.msk [vmem:[#allocation3 + $0xa8] sm:$0xc] %vm11149_vm1, %v11332_v20  ;;  %v15174_v7 = vpack.c.bf16 %v11131_v5, %v11131_v5  ;;  %v11333_v28 = vrot.slane %v11332_v20, 4  ;;  %v14950_v39 = vcombine.low %v11449_v52, %v22266_v27  ;;  %v14952_v62 = vcombine.low %v11453_v45, %v22325_v35  ;;  %v11870_v43 = vld [vmem:[#allocation3 + $0x2c] sm:$0xf]  ;;  %v17496_v51 = vld [vmem:[#allocation3 + $0x78] sm:$0xff]  }
 0x7c4   : > { %v10973_v31 = vsel %vm10899_vm7, %v10867_v48, %v10941_v1  ;;  %v14962_v33 = vcombine.low %v22079_v22, %v11867_v41  ;;  %v14963_v56 = vcombine.low %v22107_v29, %v11868_v60  ;;  %v14964_v44 = vcombine.low %v22153_v10, %v11869_v58  ;;  %v11871_v14 = vld [vmem:[#allocation3 + $0x38] sm:$0xf]  ;;  %v11872_v29 = vld [vmem:[#allocation3 + $0x44] sm:$0xf]  ;;  %v11873_v8 = vld [vmem:[#allocation3 + $0x50] sm:$0xf] }
 0x7c5   : > { %v11339_v40 = vrot.slane %v15174_v7, 6  ;;  %v11129_v50 = vsel %vm22318_vm3, %v10973_v31, 0.0  ;;  %v14965_v22 = vcombine.low %v22193_v63, %v11870_v43  ;;  %v14966_v53 = vcombine.low %v22230_v42, %v11871_v14  ;;  %v11874_v11 = vld [vmem:[#allocation3 + $0x5c] sm:$0xf]  ;;  %v17489_v63 = vld [vmem:[#allocation3 + $0x30] sm:$0xff]   ;;  %v22453_v41 = vld [vmem:[#allocation15 + $0x30] sm:$0xff]  }
 0x7c6   : > { %v15172_v54 = vpack.c.bf16 %v11129_v50, %v11129_v50  ;;  %v14967_v10 = vcombine.low %v22266_v27, %v11872_v29  ;;  %v14968_v19 = vcombine.low %v22289_v0, %v11873_v8  ;;  %v14969_v37 = vcombine.low %v22325_v35, %v11874_v11  ;;  %v17491_v42 = vld [vmem:[#allocation3 + $0x3c] sm:$0xff]   ;;  %v17493_v27 = vld [vmem:[#allocation3 + $0x54] sm:$0xff]   ;;  %v17495_v55 = vld [vmem:[#allocation3 + $0x6c] sm:$0xff]  }
 0x7c7   : > { %v11340_v36 = vsel %vm21112_vm15, %v11338_v18, %v11339_v40  ;;  %v11341_v30 = vrot.slane %v11339_v40, 4  ;;  %v22422_v35 = vld [vmem:[#allocation3 + $0x34] sm:$0xf]  ;;  %v12250_v49 = vld [vmem:[#allocation3 + $0x38] sm:$0x3]  ;;  %v17497_v40 = vld [vmem:[#allocation3 + $0x84] sm:$0xff]  }
 0x7c8   : > { %11437 = vst.msk [vmem:[#allocation3 + $0xb8] sm:$0xf] %vm11391_vm10, %v11340_v36  ;;  %v11334_v21 = vrot.slane %v15172_v54, 6  ;;  %v12298_v59 = vrot.slane %v22422_v35, 6  ;;  %v12301_v20 = vrot.slane %v12250_v49, 6  ;;  %vm17941_vm11 = vmmov 0  }
 0x7c9   : > { %11438 = vst.msk [vmem:[#allocation3 + $0xbc] sm:$0x3] %vm11132_vm8, %v11341_v30  ;;  %16332 = vmatmul.mubr.msk.bf16.vlgmr.msra.gmra.mrb[32].mxu1 %vm11586_vm4, %v14946_v47  ;;  %v22426_v15 = vld [vmem:[#allocation3 + $0x40] sm:$0xf]  ;;  %v12248_v12 = vld [vmem:[#allocation3 + $0x30] sm:$0xc] }
 0x7ca   : > { %v11335_v6 = vsel %vm21112_vm15, %v11333_v28, %v11334_v21  ;;  %v11336_v34 = vrot.slane %v11334_v21, 4  ;;  %16335 = vmatprep.mubr.msk.bf16.mxu1 %vm11586_vm4, %v14947_v26  ;;  %16348 = vmatpush3.bf16.msra.mxu1 %v22176_v9  ;;  %v14951_v9 = vcombine.low %v11451_v24, %v22289_v0  ;;  %v17494_v0 = vld [vmem:[#allocation3 + $0x60] sm:$0xff]   ;;  %v12300_v23 = vrot.slane %v12298_v59, 4  ;;  %v22429_v48 = vld [vmem:[#allocation3 + $0x4c] sm:$0xf] }
 0x7cb   : > { %11434 = vst.msk [vmem:[#allocation3 + $0xac] sm:$0xf] %vm11391_vm10, %v11335_v6  ;;  %16365 = vmatprep.subr.bf16.mxu1 %v17490_v25  ;;  %v12305_v16 = vrot.slane %v22426_v15, 6  ;;  %v14996_v5 = vrot.slane %v12248_v12, 10  ;;  %v12253_v18 = vld [vmem:[#allocation3 + $0x44] sm:$0x3] }
 0x7cc   : > { %11435 = vst.msk [vmem:[#allocation3 + $0xb0] sm:$0x3] %vm11132_vm8, %v11336_v34  ;;  %v12302_v1 = vsel %vm21112_vm15, %v12300_v23, %v12301_v20  ;;  %v12312_v7 = vrot.slane %v22429_v48, 6  ;;  %v12256_v31 = vld [vmem:[#allocation3 + $0x50] sm:$0x3]  ;;  %v12308_v13 = vrot.slane %v12253_v18, 6 }
 0x7cd   : > { %v12299_v50 = vsel %vm21112_vm15, %v14996_v5, %v12298_v59  ;;  %v12307_v54 = vrot.slane %v12305_v16, 4  ;;  %v12251_v36 = vld [vmem:[#allocation3 + $0x3c] sm:$0xc]  ;;  %v12315_v47 = vrot.slane %v12256_v31, 6  ;;  %v22438_v57 = vld [vmem:[#allocation3 + $0x58] sm:$0xf] }
 0x7ce   : > { %v15004_v28 = vcombine.low %v12299_v50, %v12302_v1  ;;  %v12314_v30 = vrot.slane %v12312_v7, 4  ;;  %v22441_v21 = vld [vmem:[#allocation3 + $0x64] sm:$0xf]  ;;  %v14997_v26 = vrot.slane %v12251_v36, 10  ;;  %v12319_v34 = vrot.slane %v22438_v57, 6 }
 0x7cf   : > { %v12309_v6 = vsel %vm21112_vm15, %v12307_v54, %v12308_v13  ;;  %v12259_v61 = vld [vmem:[#allocation3 + $0x5c] sm:$0x3]  ;;  %v12257_v60 = vld [vmem:[#allocation3 + $0x54] sm:$0xc]  ;;  %v12271_v1 = vld [vmem:[#allocation3 + $0x8c] sm:$0x3] }
 0x7d0   : > { %v12306_v52 = vsel %vm21112_vm15, %v14997_v26, %v12305_v16  ;;  %v22459_v43 = vld [vmem:[#allocation3 + $0x7c] sm:$0xf]  ;;  %v14999_v14 = vrot.slane %v12257_v60, 10  ;;  %v12269_v54 = vld [vmem:[#allocation3 + $0x84] sm:$0xc] }
 0x7d1   : > { %16336 = vmatmul.mubr.msk.bf16.gmra.mrb[36].mxu1 %vm11586_vm4, %v14948_v38  ;;  %v12316_v38 = vsel %vm21112_vm15, %v12314_v30, %v12315_v47  ;;  %v15005_v24 = vcombine.low %v12306_v52, %v12309_v6  ;;  %v15003_v13 = vrot.slane %v12269_v54, 10  ;;  %v12522_v30 = vld [vmem:[#allocation3 + $0x38] sm:$0xf]  ;;  %v12523_v6 = vld [vmem:[#allocation3 + $0x44] sm:$0xf] }
 0x7d2   : > { %16339 = vmatprep.mubr.msk.bf16.mxu1 %vm11586_vm4, %v14949_v3  ;;  %v12326_v3 = vrot.slane %v22441_v21, 6  ;;  %v12320_v11 = vsel %vm21112_vm15, %v14999_v14, %v12319_v34  ;;  %v15021_v26 = vcombine.low %v22422_v35, %v12522_v30  ;;  %v12526_v35 = vld [vmem:[#allocation3 + $0x68] sm:$0xf]  ;;  %v12925_v54 = vld [vmem:[#allocation3 + $0x98] sm:$0x3] }
 0x7d3   : > { %v17512_v60 = vld [vmem:[#allocation3 + $0x84] sm:$0xff]   ;;  %v13189_v17 = vld [vmem:[#allocation3 + $0x98] sm:$0xf] }
 0x7d4   : > { %v12328_v58 = vrot.slane %v12326_v3, 4  ;;  %v17515_v14 = vld [vmem:[#allocation3 + $0xa8] sm:$0xff]  }
 0x7d9   : > { %16340 = vmatmul.mubr.msk.bf16.gmra.mrb[40].mxu1 %vm11586_vm4, %v14950_v39  ;;  %v12262_v39 = vld [vmem:[#allocation3 + $0x68] sm:$0x3] }
 0x7da   : > { %16343 = vmatprep.mubr.msk.bf16.mxu1 %vm11586_vm4, %v14951_v9 }
 0x7e1   : > { %16344 = vmatmul.mubr.msk.bf16.gmra.mrb[44].mxu1 %vm11586_vm4, %v14952_v62  ;;  %v12321_v62 = vrot.slane %v12319_v34, 4  ;;  %v12524_v34 = vld [vmem:[#allocation3 + $0x50] sm:$0xf] }
 0x7e2   : > { %16349 = vmatprep.mubr.msk.bf16.mxu1 %vm11586_vm4, %v14962_v33  ;;  %v12322_v33 = vrot.slane %v12259_v61, 6  ;;  %v15023_v61 = vcombine.low %v22429_v48, %v12524_v34  ;;  %v12992_v34 = vrot.slane %v12925_v54, 6  ;;  %v13192_v54 = vld [vmem:[#allocation3 + $0xbc] sm:$0xf] }
 0x7e9   : > { %16350 = vmatmul.mubr.msk.bf16.vlgmr.msra.gmra.mrb[32].mxu1 %vm11586_vm4, %v14963_v56  ;;  %v12329_v56 = vrot.slane %v12262_v39, 6  ;;  %v15025_v39 = vcombine.low %v22441_v21, %v12526_v35  ;;  %v17519_v21 = vld [vmem:[#allocation15 + $0x40] sm:$0xff]  }
 0x7ea   : > { %16353 = vmatprep.mubr.msk.bf16.mxu1 %vm11586_vm4, %v14964_v44  ;;  %16366 = vmatpush3.bf16.msra.mxu1 %v17490_v25  ;;  %v12254_v25 = vld [vmem:[#allocation3 + $0x48] sm:$0xc]  ;;  %v12260_v44 = vld [vmem:[#allocation3 + $0x60] sm:$0xc] }
 0x7eb   : > { %16383 = vmatprep.subr.bf16.mxu1 %v17498_v2  ;;  %v14998_v32 = vrot.slane %v12254_v25, 10  ;;  %v15000_v29 = vrot.slane %v12260_v44, 10  ;;  %v12330_v8 = vsel %vm21112_vm15, %v12328_v58, %v12329_v56  ;;  %v17513_v58 = vld [vmem:[#allocation3 + $0x90] sm:$0xff]   ;;  %v22511_v56 = vld [vmem:[#allocation3 + $0x64] sm:$0xf] }
 0x7ec   : > { %v12913_v44 = vld [vmem:[#allocation3 + $0x68] sm:$0x3] }
 0x7ed   : > { %v12313_v9 = vsel %vm21112_vm15, %v14998_v32, %v12312_v7  ;;  %v15022_v32 = vcombine.low %v22426_v15, %v12523_v6  ;;  %v12527_v15 = vld [vmem:[#allocation3 + $0x74] sm:$0xf] }
 0x7ee   : > { %v15006_v45 = vcombine.low %v12313_v9, %v12316_v38  ;;  %v17517_v38 = vld [vmem:[#allocation15 + $0x38] sm:$0xff]  }
 0x7f1   : > { %16354 = vmatmul.mubr.msk.bf16.gmra.mrb[36].mxu1 %vm11586_vm4, %v14965_v22  ;;  %v12323_v22 = vsel %vm21112_vm15, %v12321_v62, %v12322_v33  ;;  %v17508_v62 = vld [vmem:[#allocation3 + $0x60] sm:$0xff]   ;;  %v17511_v33 = vld [vmem:[#allocation3 + $0x78] sm:$0xff]  }
 0x7f2   : > { %16357 = vmatprep.mubr.msk.bf16.mxu1 %vm11586_vm4, %v14966_v53 }
 0x7f9   : > { %16358 = vmatmul.mubr.msk.bf16.gmra.mrb[40].mxu1 %vm11586_vm4, %v14967_v10  ;;  %v12265_v10 = vld [vmem:[#allocation3 + $0x74] sm:$0x3] }
 0x7fa   : > { %16361 = vmatprep.mubr.msk.bf16.mxu1 %vm11586_vm4, %v14968_v19  ;;  %v12340_v19 = vrot.slane %v22459_v43, 6 }
 0x7fc   : > { %v12342_v59 = vrot.slane %v12340_v19, 4 }
 0x801   : > { %16362 = vmatmul.mubr.msk.bf16.gmra.mrb[44].mxu1 %vm11586_vm4, %v14969_v37  ;;  %v12268_v37 = vld [vmem:[#allocation3 + $0x80] sm:$0x3] }
 0x802   : > { %16367 = vmatprep.mubr.msk.bf16.mxu1 %vm11586_vm4, %v17489_v63  ;;  %v15007_v63 = vcombine.low %v12320_v11, %v12323_v22  ;;  %v12343_v49 = vrot.slane %v12268_v37, 6 }
 0x804   : > { %v12344_v5 = vsel %vm21112_vm15, %v12342_v59, %v12343_v49 }
 0x809   : > { %16368 = vmatmul.mubr.msk.bf16.vlgmr.msra.gmra.mrb[32].mxu1 %vm11586_vm4, %v17491_v42  ;;  %v12327_v42 = vsel %vm21112_vm15, %v15000_v29, %v12326_v3  ;;  %v12525_v3 = vld [vmem:[#allocation3 + $0x5c] sm:$0xf]  ;;  %v22515_v29 = vld [vmem:[#allocation3 + $0x70] sm:$0xf] }
 0x80a   : > { %16371 = vmatprep.mubr.msk.bf16.mxu1 %vm11586_vm4, %v17492_v46  ;;  %16384 = vmatpush3.bf16.msra.mxu1 %v17498_v2  ;;  %v22456_v2 = vld [vmem:[#allocation3 + $0x70] sm:$0xf]  ;;  %v15024_v52 = vcombine.low %v22438_v57, %v12525_v3 }
 0x80b   : > { %16401 = vmatprep.subr.bf16.mxu1 %v22415_v4  ;;  %v12333_v53 = vrot.slane %v22456_v2, 6  ;;  %v15026_v48 = vcombine.low %v22456_v2, %v12527_v15  ;;  %v17510_v57 = vld [vmem:[#allocation3 + $0x6c] sm:$0xff]   ;;  %v12961_v2 = vrot.slane %v22511_v56, 6 }
 0x80d   : > { %v12335_v46 = vrot.slane %v12333_v53, 4  ;;  %v12963_v22 = vrot.slane %v12961_v2, 4 }
 0x811   : > { %16372 = vmatmul.mubr.msk.bf16.gmra.mrb[36].mxu1 %vm11586_vm4, %v17493_v27  ;;  %v12336_v27 = vrot.slane %v12265_v10, 6  ;;  %v22518_v10 = vld [vmem:[#allocation3 + $0x7c] sm:$0xf] }
 0x812   : > { %16375 = vmatprep.mubr.msk.bf16.mxu1 %vm11586_vm4, %v17494_v0  ;;  %v12263_v0 = vld [vmem:[#allocation3 + $0x6c] sm:$0xc] }
 0x813   : > { %v15001_v23 = vrot.slane %v12263_v0, 10  ;;  %v12337_v20 = vsel %vm21112_vm15, %v12335_v46, %v12336_v27  ;;  %v17516_v46 = vld [vmem:[#allocation3 + $0xb4] sm:$0xff]  }
 0x815   : > { %v12334_v18 = vsel %vm21112_vm15, %v15001_v23, %v12333_v53  ;;  %v12964_v53 = vrot.slane %v12913_v44, 6  ;;  %v12933_v44 = vld [vmem:[#allocation3 + $0xb8] sm:$0xf] }
 0x816   : > { %v15009_v7 = vcombine.low %v12334_v18, %v12337_v20  ;;  %v22527_v20 = vld [vmem:[#allocation3 + $0x88] sm:$0xf] }
 0x817   : > { %v12965_v37 = vsel %vm21112_vm15, %v12963_v22, %v12964_v53  ;;  %v12982_v18 = vrot.slane %v22527_v20, 6  ;;  %v13010_v53 = vrot.slane %v12933_v44, 6 }
 0x819   : > { %16376 = vmatmul.mubr.msk.bf16.gmra.mrb[40].mxu1 %vm11586_vm4, %v17495_v55  ;;  %v12270_v55 = vld [vmem:[#allocation3 + $0x88] sm:$0xf] }
 0x81a   : > { %16379 = vmatprep.mubr.msk.bf16.mxu1 %vm11586_vm4, %v17496_v51  ;;  %v12266_v51 = vld [vmem:[#allocation3 + $0x78] sm:$0xc]  ;;  %v12347_v12 = vrot.slane %v12270_v55, 6 }
 0x81b   : > { %v15002_v16 = vrot.slane %v12266_v51, 10 }
 0x81c   : > { %v12349_v50 = vrot.slane %v12347_v12, 4  ;;  %v12348_v47 = vsel %vm21112_vm15, %v15003_v13, %v12347_v12  ;;  %v12917_v12 = vld [vmem:[#allocation3 + $0x78] sm:$0xc] }
 0x81d   : > { %v12341_v31 = vsel %vm21112_vm15, %v15002_v16, %v12340_v19  ;;  %v12968_v19 = vrot.slane %v22515_v29, 6  ;;  %v22530_v16 = vld [vmem:[#allocation3 + $0x94] sm:$0xf] }
 0x81f   : > { %v12970_v59 = vrot.slane %v12968_v19, 4 }
 0x821   : > { %16380 = vmatmul.mubr.msk.bf16.gmra.mrb[44].mxu1 %vm11586_vm4, %v17497_v40  ;;  %v15010_v40 = vcombine.low %v12341_v31, %v12344_v5 }
 0x822   : > { %16385 = vmatprep.mubr.msk.bf16.mxu1 %vm11586_vm4, %v15004_v28  ;;  %v12350_v28 = vrot.slane %v12271_v1, 6 }
 0x824   : > { %v12351_v36 = vsel %vm21112_vm15, %v12349_v50, %v12350_v28  ;;  %v12989_v50 = vrot.slane %v22530_v16, 6 }
 0x825   : > { %v15011_v25 = vcombine.low %v12348_v47, %v12351_v36  ;;  %v12984_v47 = vrot.slane %v12982_v18, 4 }
 0x826   : > { %v12991_v6 = vrot.slane %v12989_v50, 4 }
 0x828   : > { %v12993_v15 = vsel %vm21112_vm15, %v12991_v6, %v12992_v34 }
 0x829   : > { %16386 = vmatmul.mubr.msk.bf16.vlgmr.msra.gmra.mrb[32].mxu1 %vm11586_vm4, %v15005_v24  ;;  %v12528_v24 = vld [vmem:[#allocation3 + $0x80] sm:$0xf] }
 0x82a   : > { %16389 = vmatprep.mubr.msk.bf16.mxu1 %vm11586_vm4, %v15006_v45  ;;  %16402 = vmatpush3.bf16.msra.mxu1 %v22415_v4  ;;  %v15008_v4 = vcombine.low %v12327_v42, %v12330_v8  ;;  %v15027_v9 = vcombine.low %v22459_v43, %v12528_v24  ;;  %v17514_v43 = vld [vmem:[#allocation3 + $0x9c] sm:$0xff]   ;;  %v12975_v42 = vrot.slane %v22518_v10, 6  ;;  %v12928_v24 = vld [vmem:[#allocation3 + $0xa4] sm:$0x3] }
 0x82b   : > { %16419 = vmatprep.subr.bf16.mxu1 %v22453_v41  ;;  %v12911_v8 = vld [vmem:[#allocation3 + $0x60] sm:$0xc] }
 0x82c   : > { %v15055_v11 = vrot.slane %v12911_v8, 10  ;;  %v12977_v51 = vrot.slane %v12975_v42, 4 }
 0x82e   : > { %v12962_v27 = vsel %vm21112_vm15, %v15055_v11, %v12961_v2  ;;  %v12934_v11 = vld [vmem:[#allocation3 + $0xbc] sm:$0x3] }
 0x82f   : > { %v15063_v0 = vcombine.low %v12962_v27, %v12965_v37  ;;  %v13013_v27 = vrot.slane %v12934_v11, 6 }
 0x831   : > { %16390 = vmatmul.mubr.msk.bf16.gmra.mrb[36].mxu1 %vm11586_vm4, %v15007_v63  ;;  %v12916_v63 = vld [vmem:[#allocation3 + $0x74] sm:$0x3] }
 0x832   : > { %16393 = vmatprep.mubr.msk.bf16.mxu1 %vm11586_vm4, %v15008_v4  ;;  %v12919_v4 = vld [vmem:[#allocation3 + $0x80] sm:$0x3]  ;;  %v12971_v49 = vrot.slane %v12916_v63, 6 }
 0x833   : > { %v12978_v23 = vrot.slane %v12919_v4, 6 }
 0x834   : > { %v12972_v1 = vsel %vm21112_vm15, %v12970_v59, %v12971_v49 }
 0x835   : > { %v12979_v31 = vsel %vm21112_vm15, %v12977_v51, %v12978_v23 }
 0x839   : > { %16394 = vmatmul.mubr.msk.bf16.gmra.mrb[40].mxu1 %vm11586_vm4, %v15009_v7  ;;  %v15057_v7 = vrot.slane %v12917_v12, 10 }
 0x83a   : > { %16397 = vmatprep.mubr.msk.bf16.mxu1 %vm11586_vm4, %v15010_v40  ;;  %v12922_v40 = vld [vmem:[#allocation3 + $0x8c] sm:$0x3] }
 0x83b   : > { %v12976_v36 = vsel %vm21112_vm15, %v15057_v7, %v12975_v42 }
 0x83c   : > { %v15065_v30 = vcombine.low %v12976_v36, %v12979_v31  ;;  %v13188_v31 = vld [vmem:[#allocation3 + $0x8c] sm:$0xf] }
 0x841   : > { %16398 = vmatmul.mubr.msk.bf16.gmra.mrb[44].mxu1 %vm11586_vm4, %v15011_v25  ;;  %v12985_v25 = vrot.slane %v12922_v40, 6  ;;  %v15083_v40 = vcombine.low %v22527_v20, %v13188_v31  ;;  %v22590_v20 = vld [vmem:[#allocation17] ss:$0 sm:$0xff] }
 0x842   : > { %16403 = vmatprep.mubr.msk.bf16.mxu1 %vm11586_vm4, %v15021_v26  ;;  %v12920_v26 = vld [vmem:[#allocation3 + $0x84] sm:$0xc] }
 0x843   : > { %v15058_v3 = vrot.slane %v12920_v26, 10  ;;  %v12986_v35 = vsel %vm21112_vm15, %v12984_v47, %v12985_v25  ;;  %v22593_v25 = vpop.permute.xlu0 %13417 }
 0x849   : > { %16404 = vmatmul.mubr.msk.bf16.vlgmr.msra.gmra.mrb[32].mxu1 %vm11586_vm4, %v15022_v32  ;;  %v22543_v32 = vld [vmem:[#allocation3 + $0xa0] sm:$0xf] }
 0x84a   : > { %16407 = vmatprep.mubr.msk.bf16.mxu1 %vm11586_vm4, %v15023_v61  ;;  %16420 = vmatpush3.bf16.msra.mxu1 %v22453_v41  ;;  %v12529_v41 = vld [vmem:[#allocation3 + $0x8c] sm:$0xf] }
 0x84b   : > { %16437 = vmatprep.subr.bf16.mxu1 %v17517_v38  ;;  %v15028_v45 = vcombine.low %v12270_v55, %v12529_v41  ;;  %v12914_v55 = vld [vmem:[#allocation3 + $0x6c] sm:$0xc]  ;;  %v12931_v41 = vld [vmem:[#allocation3 + $0xb0] sm:$0x3] }
 0x84c   : > { %v15056_v5 = vrot.slane %v12914_v55, 10  ;;  %v22546_v61 = vld [vmem:[#allocation3 + $0xac] sm:$0xf]  ;;  %v13006_v2 = vrot.slane %v12931_v41, 6  ;;  %v13185_v55 = vld [vmem:[#allocation3 + $0x68] sm:$0xf] }
 0x84d   : > { %v15080_v12 = vcombine.low %v22511_v56, %v13185_v55  ;;  %v15084_v56 = vcombine.low %v22530_v16, %v13189_v17 }
 0x84e   : > { %v12969_v28 = vsel %vm21112_vm15, %v15056_v5, %v12968_v19  ;;  %v13186_v5 = vld [vmem:[#allocation3 + $0x74] sm:$0xf] }
 0x84f   : > { %v15064_v13 = vcombine.low %v12969_v28, %v12972_v1  ;;  %v13187_v1 = vld [vmem:[#allocation3 + $0x80] sm:$0xf]  ;;  %v13191_v28 = vld [vmem:[#allocation3 + $0xb0] sm:$0xf] }
 0x850   : > { %v15082_v7 = vcombine.low %v22518_v10, %v13187_v1  ;;  %v15086_v10 = vcombine.low %v22546_v61, %v13191_v28 }
 0x851   : > { %16408 = vmatmul.mubr.msk.bf16.gmra.mrb[36].mxu1 %vm11586_vm4, %v15024_v52  ;;  %v12996_v52 = vrot.slane %v22543_v32, 6 }
 0x852   : > { %16411 = vmatprep.mubr.msk.bf16.mxu1 %vm11586_vm4, %v15025_v39 }
 0x859   : > { %16412 = vmatmul.mubr.msk.bf16.gmra.mrb[40].mxu1 %vm11586_vm4, %v15026_v48  ;;  %v13003_v48 = vrot.slane %v22546_v61, 6 }
 0x85a   : > { %16415 = vmatprep.mubr.msk.bf16.mxu1 %vm11586_vm4, %v15027_v9  ;;  %v12983_v9 = vsel %vm21112_vm15, %v15058_v3, %v12982_v18  ;;  %v15081_v18 = vcombine.low %v22515_v29, %v13186_v5 }
 0x861   : > { %16416 = vmatmul.mubr.msk.bf16.gmra.mrb[44].mxu1 %vm11586_vm4, %v15028_v45  ;;  %v15066_v45 = vcombine.low %v12983_v9, %v12986_v35  ;;  %v17940_v9 = vmov 0.0  }
 0x862   : > { %16421 = vmatprep.mubr.msk.bf16.mxu1 %vm11586_vm4, %v17508_v62  ;;  %16473 = vmatprep.subr.bf16.mxu0 %v17940_v9 }
 0x863   : > { %16475 = vmatprep.mubr.msk.bf16.mxu0 %vm17941_vm11, %v17940_v9 }
 0x869   : > { %16422 = vmatmul.mubr.msk.bf16.vlgmr.msra.gmra.mrb[32].mxu1 %vm11586_vm4, %v17510_v57 }
 0x86a   : > { %16425 = vmatprep.mubr.msk.bf16.mxu1 %vm11586_vm4, %v17511_v33  ;;  %16438 = vmatpush3.bf16.msra.mxu1 %v17517_v38  ;;  %v12923_v38 = vld [vmem:[#allocation3 + $0x90] sm:$0xc]  ;;  %v12999_v33 = vrot.slane %v12928_v24, 6 }
 0x86b   : > { %16455 = vmatprep.subr.bf16.mxu1 %v17519_v21  ;;  %v15059_v39 = vrot.slane %v12923_v38, 10 }
 0x86d   : > { %v12990_v62 = vsel %vm21112_vm15, %v15059_v39, %v12989_v50  ;;  %v13190_v50 = vld [vmem:[#allocation3 + $0xa4] sm:$0xf] }
 0x86e   : > { %v15067_v57 = vcombine.low %v12990_v62, %v12993_v15  ;;  %v15085_v29 = vcombine.low %v22543_v32, %v13190_v50 }
 0x871   : > { %16426 = vmatmul.mubr.msk.bf16.gmra.mrb[36].mxu1 %vm11586_vm4, %v17512_v60  ;;  %v12926_v60 = vld [vmem:[#allocation3 + $0x9c] sm:$0xc] }
 0x872   : > { %16429 = vmatprep.mubr.msk.bf16.mxu1 %vm11586_vm4, %v17513_v58  ;;  %v13005_v58 = vrot.slane %v13003_v48, 4 }
 0x874   : > { %v13007_v19 = vsel %vm21112_vm15, %v13005_v58, %v13006_v2 }
 0x879   : > { %16430 = vmatmul.mubr.msk.bf16.gmra.mrb[40].mxu1 %vm11586_vm4, %v17514_v43  ;;  %v12929_v43 = vld [vmem:[#allocation3 + $0xa8] sm:$0xc] }
 0x87a   : > { %16433 = vmatprep.mubr.msk.bf16.mxu1 %vm11586_vm4, %v17515_v14  ;;  %v15060_v14 = vrot.slane %v12926_v60, 10  ;;  %v15061_v8 = vrot.slane %v12929_v43, 10 }
 0x87c   : > { %v12997_v37 = vsel %vm21112_vm15, %v15060_v14, %v12996_v52  ;;  %v13004_v42 = vsel %vm21112_vm15, %v15061_v8, %v13003_v48 }
 0x87d   : > { %v15069_v4 = vcombine.low %v13004_v42, %v13007_v19 }
 0x881   : > { %16434 = vmatmul.mubr.msk.bf16.gmra.mrb[44].mxu1 %vm11586_vm4, %v17516_v46  ;;  %v13012_v46 = vrot.slane %v13010_v53, 4 }
 0x882   : > { %16439 = vmatprep.mubr.msk.bf16.mxu1 %vm11586_vm4, %v15063_v0  ;;  %v12932_v0 = vld [vmem:[#allocation3 + $0xb4] sm:$0xc] }
 0x883   : > { %v15062_v59 = vrot.slane %v12932_v0, 10  ;;  %v13014_v49 = vsel %vm21112_vm15, %v13012_v46, %v13013_v27 }
 0x885   : > { %v13011_v51 = vsel %vm21112_vm15, %v15062_v59, %v13010_v53 }
 0x886   : > { %v15070_v23 = vcombine.low %v13011_v51, %v13014_v49 }
 0x889   : > { %16440 = vmatmul.mubr.msk.bf16.vlgmr.msra.gmra.mrb[32].mxu1 %vm11586_vm4, %v15064_v13  ;;  %v15087_v13 = vcombine.low %v12933_v44, %v13192_v54 }
 0x88a   : > { %16443 = vmatprep.mubr.msk.bf16.mxu1 %vm11586_vm4, %v15065_v30  ;;  %16456 = vmatpush3.bf16.msra.mxu1 %v17519_v21  ;;  %v12998_v21 = vrot.slane %v12996_v52, 4 }
 0x88c   : > { %v13000_v22 = vsel %vm21112_vm15, %v12998_v21, %v12999_v33 }
 0x88d   : > { %v15068_v63 = vcombine.low %v12997_v37, %v13000_v22 }
 0x891   : > { %16444 = vmatmul.mubr.msk.bf16.gmra.mrb[36].mxu1 %vm11586_vm4, %v15066_v45 }
 0x892   : > { %16447 = vmatprep.mubr.msk.bf16.mxu1 %vm11586_vm4, %v15067_v57 }
 0x899   : > { %16448 = vmatmul.mubr.msk.bf16.gmra.mrb[40].mxu1 %vm11586_vm4, %v15068_v63 }
 0x89a   : > { %16451 = vmatprep.mubr.msk.bf16.mxu1 %vm11586_vm4, %v15069_v4 }
 0x8a1   : > { %16452 = vmatmul.mubr.msk.bf16.gmra.mrb[44].mxu1 %vm11586_vm4, %v15070_v23 }
 0x8a2   : > { %16457 = vmatprep.mubr.msk.bf16.mxu1 %vm11586_vm4, %v15080_v12 }
 0x8a9   : > { %16458 = vmatmul.mubr.msk.bf16.vlgmr.msra.gmra.mrb[32].mxu1 %vm11586_vm4, %v15081_v18 }
 0x8aa   : > { %16461 = vmatprep.mubr.msk.bf16.mxu1 %vm11586_vm4, %v15082_v7 }
 0x8b1   : > { %16462 = vmatmul.mubr.msk.bf16.gmra.mrb[36].mxu1 %vm11586_vm4, %v15083_v40 }
 0x8b2   : > { %16465 = vmatprep.mubr.msk.bf16.mxu1 %vm11586_vm4, %v15084_v56 }
 0x8b9   : > { %16466 = vmatmul.mubr.msk.bf16.gmra.mrb[40].mxu1 %vm11586_vm4, %v15085_v29 }
 0x8ba   : > { %16469 = vmatprep.mubr.msk.bf16.mxu1 %vm11586_vm4, %v15086_v10 }
 0x8c1   : > { %16470 = vmatmul.mubr.msk.bf16.gmra.mrb[44].mxu1 %vm11586_vm4, %v15087_v13 }
 0x97c   : > { %v16459_v16 = vpop.f32.mrb[32].mxu1 }
 0x97d   : > { %v13292_v36 = vpop.f32.mrb[33].mxu1  ;;  %v13380_v32 = vadd.f32 %v16459_v16, %v22590_v20 }
 0x97e   : > { %v13378_v30 = vadd.f32 %v22590_v20, %v13292_v36  ;;  %v16460_v47 = vpop.f32.mrb[34].mxu1 }
 0x97f   : > { %v13295_v26 = vpop.f32.mrb[35].mxu1  ;;  %v13381_v52 = vadd.f32 %v16460_v47, %v22590_v20  ;;  %v13422_v24 = vmul.f32 %v22593_v25, %v13380_v32  ;;  %vm13396_vm8 = vcmp.ge.f32.partialorder %v13380_v32, 0.0 }
 0x980   : > { %v13379_v6 = vadd.f32 %v22590_v20, %v13295_v26  ;;  %vm13394_vm15 = vcmp.ge.f32.partialorder %v13378_v30, 0.0  ;;  %v13420_v34 = vmul.f32 %v22593_v25, %v13378_v30 }
 0x981   : > { %v13438_v45 = vsel %vm13396_vm8, %v13380_v32, %v13422_v24  ;;  %v13423_v62 = vmul.f32 %v22593_v25, %v13381_v52  ;;  %vm13397_vm10 = vcmp.ge.f32.partialorder %v13381_v52, 0.0 }
 0x982   : > { %v13436_v38 = vsel %vm13394_vm15, %v13378_v30, %v13420_v34  ;;  %v13421_v61 = vmul.f32 %v22593_v25, %v13379_v6  ;;  %vm13395_vm1 = vcmp.ge.f32.partialorder %v13379_v6, 0.0  ;;  %v13485_v34 = vld [vmem:[#allocation18] sm:$0x3] }
 0x983   : > { %13452 = vxpose.xlu1.b32.start [1/16] (narrow) %v13436_v38, 16  ;;  %v13439_v58 = vsel %vm13397_vm10, %v13381_v52, %v13423_v62 }
 0x984   : > { %v16463_v3 = vpop.f32.mrb[36].mxu1  ;;  %v13437_v15 = vsel %vm13395_vm1, %v13379_v6, %v13421_v61 }
 0x985   : > { %v13308_v35 = vpop.f32.mrb[37].mxu1  ;;  %v13384_v43 = vadd.f32 %v16463_v3, %v22590_v20 }
 0x986   : > { %v16464_v39 = vpop.f32.mrb[38].mxu1  ;;  %v13382_v41 = vadd.f32 %v22590_v20, %v13308_v35 }
 0x987   : > { %13453 = vxpose.xlu1.b32.cont [2/16] (narrow) %v13437_v15, 16  ;;  %v13311_v48 = vpop.f32.mrb[39].mxu1  ;;  %v13385_v19 = vadd.f32 %v16464_v39, %v22590_v20  ;;  %v13426_v63 = vmul.f32 %v22593_v25, %v13384_v43  ;;  %vm13400_vm0 = vcmp.ge.f32.partialorder %v13384_v43, 0.0 }
 0x988   : > { %v13383_v33 = vadd.f32 %v22590_v20, %v13311_v48  ;;  %v13424_v2 = vmul.f32 %v22593_v25, %v13382_v41  ;;  %vm13398_vm9 = vcmp.ge.f32.partialorder %v13382_v41, 0.0 }
 0x989   : > { %v13442_v46 = vsel %vm13400_vm0, %v13384_v43, %v13426_v63  ;;  %v13427_v27 = vmul.f32 %v22593_v25, %v13385_v19  ;;  %vm13401_vm3 = vcmp.ge.f32.partialorder %v13385_v19, 0.0 }
 0x98a   : > { %v13440_v14 = vsel %vm13398_vm9, %v13382_v41, %v13424_v2  ;;  %v13425_v22 = vmul.f32 %v22593_v25, %v13383_v33  ;;  %vm13399_vm13 = vcmp.ge.f32.partialorder %v13383_v33, 0.0 }
 0x98b   : > { %13454 = vxpose.xlu1.b32.cont [3/16] (narrow) %v13438_v45, 16  ;;  %v13443_v59 = vsel %vm13401_vm3, %v13385_v19, %v13427_v27 }
 0x98c   : > { %v16467_v57 = vpop.f32.mrb[40].mxu1  ;;  %v13441_v37 = vsel %vm13399_vm13, %v13383_v33, %v13425_v22 }
 0x98d   : > { %v13324_v21 = vpop.f32.mrb[41].mxu1  ;;  %v13388_v55 = vadd.f32 %v16467_v57, %v22590_v20 }
 0x98e   : > { %v16468_v60 = vpop.f32.mrb[42].mxu1  ;;  %v13386_v4 = vadd.f32 %v22590_v20, %v13324_v21 }
 0x98f   : > { %13455 = vxpose.xlu1.b32.cont [4/16] (narrow) %v13439_v58, 16  ;;  %v13327_v44 = vpop.f32.mrb[43].mxu1  ;;  %v13389_v12 = vadd.f32 %v16468_v60, %v22590_v20  ;;  %v13430_v1 = vmul.f32 %v22593_v25, %v13388_v55  ;;  %vm13404_vm12 = vcmp.ge.f32.partialorder %v13388_v55, 0.0 }
 0x990   : > { %v13387_v0 = vadd.f32 %v22590_v20, %v13327_v44  ;;  %v13428_v49 = vmul.f32 %v22593_v25, %v13386_v4  ;;  %vm13402_vm6 = vcmp.ge.f32.partialorder %v13386_v4, 0.0 }
 0x991   : > { %v13446_v7 = vsel %vm13404_vm12, %v13388_v55, %v13430_v1  ;;  %v13431_v31 = vmul.f32 %v22593_v25, %v13389_v12  ;;  %vm13405_vm2 = vcmp.ge.f32.partialorder %v13389_v12, 0.0 }
 0x992   : > { %v13444_v51 = vsel %vm13402_vm6, %v13386_v4, %v13428_v49  ;;  %v13429_v23 = vmul.f32 %v22593_v25, %v13387_v0  ;;  %vm13403_vm14 = vcmp.ge.f32.partialorder %v13387_v0, 0.0 }
 0x993   : > { %13456 = vxpose.xlu1.b32.cont [5/16] (narrow) %v13440_v14, 16  ;;  %v13447_v40 = vsel %vm13405_vm2, %v13389_v12, %v13431_v31 }
 0x994   : > { %v16471_v53 = vpop.f32.mrb[44].mxu1  ;;  %v13445_v5 = vsel %vm13403_vm14, %v13387_v0, %v13429_v23 }
 0x995   : > { %v13340_v8 = vpop.f32.mrb[45].mxu1  ;;  %v13392_v50 = vadd.f32 %v16471_v53, %v22590_v20 }
 0x996   : > { %v16472_v11 = vpop.f32.mrb[46].mxu1  ;;  %v13390_v18 = vadd.f32 %v22590_v20, %v13340_v8 }
 0x997   : > { %13457 = vxpose.xlu1.b32.cont [6/16] (narrow) %v13441_v37, 16  ;;  %v13343_v42 = vpop.f32.mrb[47].mxu1  ;;  %v13393_v10 = vadd.f32 %v16472_v11, %v22590_v20  ;;  %v13434_v13 = vmul.f32 %v22593_v25, %v13392_v50  ;;  %vm13408_vm15 = vcmp.ge.f32.partialorder %v13392_v50, 0.0 }
 0x998   : > { %v13391_v17 = vadd.f32 %v22590_v20, %v13343_v42  ;;  %v13432_v56 = vmul.f32 %v22593_v25, %v13390_v18  ;;  %vm13406_vm5 = vcmp.ge.f32.partialorder %v13390_v18, 0.0  ;;  %v13490_v20 = vpop.permute.xlu0 %13489 }
 0x999   : > { %v13450_v16 = vsel %vm13408_vm15, %v13392_v50, %v13434_v13  ;;  %v13435_v36 = vmul.f32 %v22593_v25, %v13393_v10  ;;  %vm13409_vm1 = vcmp.ge.f32.partialorder %v13393_v10, 0.0 }
 0x99a   : > { %v13448_v28 = vsel %vm13406_vm5, %v13390_v18, %v13432_v56  ;;  %v13433_v29 = vmul.f32 %v22593_v25, %v13391_v17  ;;  %vm13407_vm7 = vcmp.ge.f32.partialorder %v13391_v17, 0.0 }
 0x99b   : > { %13458 = vxpose.xlu1.b32.cont [7/16] (narrow) %v13442_v46, 16  ;;  %v13451_v30 = vsel %vm13409_vm1, %v13393_v10, %v13435_v36 }
 0x99c   : > { %v13449_v54 = vsel %vm13407_vm7, %v13391_v17, %v13433_v29  ;;  %v13551_v32 = vpop.trf.xlu0 }
 0x99d   : > { %13567 = vst [vmem:[%s532_s19] sm:$0xff] %v13551_v32 }
 0x99f   : > { %13459 = vxpose.xlu1.b32.cont [8/16] (narrow) %v13443_v59, 16 }
 0x9a0   : > { %v13552_v38 = vpop.trf.xlu0 }
 0x9a1   : > { %13568 = vst [vmem:[%s532_s19 + $0x8] sm:$0xff] %v13552_v38 }
 0x9a3   : > { %13460 = vxpose.xlu1.b32.cont [9/16] (narrow) %v13444_v51, 16 }
 0x9a4   : > { %v13553_v25 = vpop.trf.xlu0 }
 0x9a5   : > { %13569 = vst [vmem:[%s532_s19 + $0x10] sm:$0xff] %v13553_v25 }
 0x9a7   : > { %13461 = vxpose.xlu1.b32.cont [10/16] (narrow) %v13445_v5, 16 }
 0x9a8   : > { %v13554_v61 = vpop.trf.xlu0 }
 0x9a9   : > { %13570 = vst [vmem:[%s532_s19 + $0x18] sm:$0xff] %v13554_v61 }
 0x9ab   : > { %13462 = vxpose.xlu1.b32.cont [11/16] (narrow) %v13446_v7, 16 }
 0x9af   : > { %13463 = vxpose.xlu1.b32.cont [12/16] (narrow) %v13447_v40, 16 }
 0x9b3   : > { %13464 = vxpose.xlu1.b32.cont [13/16] (narrow) %v13448_v28, 16 }
 0x9b7   : > { %13465 = vxpose.xlu1.b32.cont [14/16] (narrow) %v13449_v54, 16 }
 0x9bb   : > { %13466 = vxpose.xlu1.b32.cont [15/16] (narrow) %v13450_v16, 16 }
 0x9bf   : > { %13467 = vxpose.xlu1.b32.end [16/16] (narrow) %v13451_v30, 16 }
 0xa03   : > { %v13468_v47 = vpop.trf.xlu1 }
 0xa07   : > { %v13469_v26 = vpop.trf.xlu1 }
 0xa08   : > { %v13484_v6 = vpack.c.bf16 %v13469_v26, %v13468_v47 }
 0xa0a   : > { %16474 = vmatpush3.bf16.msra.mxu0 %v13484_v6 }
 0xa0d   : > { %16476 = vmatmul.mubr.msk.bf16.vlgmr.msra.gmra.mrb[72].mxu0 %vm11586_vm4, %v13485_v34 }
 0xae0   : > { %v13529_v3 = vpop.f32.mrb[72].mxu0 }
 0xae1   : > { %v13530_v35 = vadd.f32 %v13529_v3, %v13490_v20  ;;  %v16477_v52 = vpop.f32.mrb[73].mxu0 }
 0xae2   : > { %v13532_v39 = vpop.f32.mrb[74].mxu0 }
 0xae3   : > { %v13571_v15 = vsub.f32 0.0, %v13530_v35  ;;  %13577 = vst [vmem:[%s532_s19 + $0x20] sm:$0xc] %v13530_v35  ;;  %v16478_v24 = vpop.f32.mrb[75].mxu0 }
 0xae5   : > { %v13572_v48 = vmul.f32 1.442695, %v13571_v15 }
 0xae7   : > { %17527 = vpow2.f32 %v13572_v48 }
 0xaf1   : > { %v17528_v9 = vpop.eup %17527 }
 0xaf2   : > { %v13574_v41 = vadd.f32 1.0, %v17528_v9 }
 0xaf4   : > { %17529 = vrcp.f32 %v13574_v41 }
 0xafe   : > { %v17530_v45 = vpop.eup %17529 }
 0xaff   : > { %13576 = vst [vmem:[%s532_s19 + $0x20] sm:$0x3] %v17530_v45 }
 0xb00   : > { %17822 = shalt.err (!%p17819_p6)
}
 0xb01   : > { %s17823_s19 = scalar_lea.hbm %s22635_s12, 640  ;;  %s17827_s16 = scalar_lea.hbm %s22972_s15, 2560 }
 0xb02   : > { %p17824_p1 = scmp.ne.s32.totalorder %s22635_s12, %s17823_s19  ;;  %p17828_p10 = scmp.lt.u32.totalorder %s22635_s12, %s22972_s15 }
 0xb03   : > { %p17829_p3 = scmp.lt.u32.totalorder %s17827_s16, %s17823_s19  ;;  %p17831_p11 = scmp.lt.u32.totalorder %s17823_s19, %s22635_s12 }
 0xb04   : > { %p17825_p8 = pnand %p17824_p1, %p22973_p4 }
 0xb05   : > { %p17830_p12 = por %p17829_p3, %p17828_p10 }
 0xb06   : > { %p17826_p9 = pneg %p17825_p8 }
 0xb07   : > { %p17832_p7 = por %p17831_p11, %p17830_p12 }
 0xb09   : > { %p17833_p5 = pnand %p17832_p7, %p17826_p9 }
 0xb0b   : > { %17836 = shalt.err (!%p17833_p5)
}
 0xb0c   : > { %s17943_s4 = smov 128   ;;  %s17944_s17 = smov 256  }
 0xb0d   : > { %s17945_s2 = smov 8  }
 0xb0e   : > { %17223 = dma.vmem_to_hbm [thread:$0]  (%p22973_p4), %s22630_s6, 640, %s22635_s12, %s13579_s28, %s17943_s4, %s17944_s17, %s17945_s2  }
 0xb0f PF: > { %p17275_p13 = scmp.ge.s32.totalorder %s17923_s26, 2  ;;  %s13608_s14 = sand.u32 1, %s17895_s21  }
 0xb10   : > { %p22974_p0 = scmp.ne.s32.totalorder %s22771_s24, 0  ;;  %s13609_s18 = scalar_lea.sflag [#allocation8], %s13608_s14 }
 0xb12   : > { %p17255_p2 = pnand %p17275_p13, %p22974_p0 }
 0xb14   : > { %17890 = dma.done.wait (!%p17255_p2), %s13609_s18, 640  }
 0xb15   : > { %17892 = vsyncadd (!%p17255_p2), %s13609_s18, 4294966656  ;;  %s35_s26 = sadd.s32 1, %s17923_s26   ;;  %s22975_s21 = smov %s17899_s22 }
 0xb16   : > { %p32_p6 = scmp.ge.s32.totalorder %s35_s26, 6   ;;  %s22976_s22 = smov %s17903_s23 }
 0xb17   : > { %s22977_s23 = smov %s18300_s27  ;;  %s22978_s5 = smov %s17915_s8 }
 0xb18   : > { %s22979_s24 = smov %s17919_s25  ;;  %s22980_s8 = smov %s22983_s13 }
 0xb19   : > { %s22981_s25 = smov %s22987_s29  ;;  %34 = sbr.rel (!%p32_p6) target bundleno = 18 (0x12), region = 171 }
 0xb20   :  { %13614 = vsyncpa [#allocation7], 1 }
 0xb21   :  { %13616 = vsyncpa [#allocation7 + $0x1], 1 }
 0xb22   :  { %13617 = vsyncpa [#allocation10], 1 }
 0xb23   :  { %13618 = vsyncpa [#allocation13], 1 }
 0xb24   :  { %13619 = vsyncpa [#allocation16], 1 }
 0xb25   :  { %13620 = vsyncpa [#allocation19], 1 }
 0xb26   :  { %13621 = vsyncpa [#allocation8], 1 }
 0xb27   :  { %13623 = vsyncpa [#allocation8 + $0x1], 1 }

</bundles_post_ra>
